<compile_context>
chip_gen: v6e
topology: v6e:2x2x1
jax: 0.10.0
libtpu: 0.0.40
codegen_flags: <defaults>
</compile_context>

<pallas_src>
import functools

import jax
import jax.numpy as jnp
from jax import lax
from jax.experimental import pallas as pl
from jax.experimental.pallas import tpu as pltpu


def simple_cnn_kernel(x_ref, w1_ref, b1_ref, w2_ref, b2_ref, w3_ref, b3_ref,
                      w4_ref, b4_ref, o_ref, xpad3, xpad64, *, H, W):
    # x_ref   : (1, H, W, 3)          one image (NHWC)
    # w*_ref  : (9, Cin, Cout)        3x3 taps on the leading dim (ky*3 + kx)
    # b*_ref  : (1, Cout)
    # o_ref   : (1, H, W, 3)
    # xpad3   : VMEM (H+2, W+2, 3)    zero-halo buffer for layer 1 input
    # xpad64  : VMEM (H+2, W+2, 64)   zero-halo buffer for layer 2-4 inputs

    # Zero the halo buffers once per image; layer interiors are overwritten
    # below, the 1-pixel border stays zero ("same" padding).
    xpad3[...] = jnp.zeros(xpad3.shape, xpad3.dtype)
    xpad64[...] = jnp.zeros(xpad64.shape, xpad64.dtype)

    def conv3x3(xpad_ref, w_ref, b_ref, relu):
        cin = xpad_ref.shape[-1]
        cout = w_ref.shape[-1]
        # 9 shifted-window MXU matmuls, f32 accumulation in registers.
        acc = jnp.zeros((H * W, cout), jnp.float32)
        for t in range(9):                              # static unroll
            dy, dx = t // 3, t % 3
            patch = xpad_ref[dy:dy + H, dx:dx + W, :]   # (H, W, cin)
            acc = acc + jnp.dot(patch.reshape(H * W, cin), w_ref[t],
                                preferred_element_type=jnp.float32)
        acc = acc + b_ref[...]                          # (1, cout) broadcast
        if relu:
            acc = jnp.maximum(acc, 0.0)
        return acc.reshape(H, W, cout)

    # Encoder: conv(3->64) + ReLU, conv(64->64) + ReLU
    xpad3[1:H + 1, 1:W + 1, :] = x_ref[0]
    a = conv3x3(xpad3, w1_ref, b1_ref, relu=True)
    xpad64[1:H + 1, 1:W + 1, :] = a
    a = conv3x3(xpad64, w2_ref, b2_ref, relu=True)
    # Decoder: conv(64->64) + ReLU, conv(64->3) (no ReLU)
    xpad64[1:H + 1, 1:W + 1, :] = a
    a = conv3x3(xpad64, w3_ref, b3_ref, relu=True)
    xpad64[1:H + 1, 1:W + 1, :] = a
    a = conv3x3(xpad64, w4_ref, b4_ref, relu=False)

    o_ref[...] = a[None].astype(o_ref.dtype)


def simple_cnn_forward(x_nchw, params):
    """Matches SimpleCNN.forward. One fused Pallas kernel, grid over batch."""
    x = jnp.transpose(x_nchw, (0, 2, 3, 1))                      # NCHW -> NHWC
    N, H, W, cin0 = x.shape
    cmid = params[0][0].shape[-1]                                # 64
    cout_last = params[-1][0].shape[-1]                          # 3

    # HWIO (3,3,Cin,Cout) -> (9, Cin, Cout); biases -> (1, Cout).
    w_taps = [w.reshape(9, w.shape[2], w.shape[3]) for w, _ in params]
    b_rows = [b.reshape(1, -1) for _, b in params]

    in_specs = [pl.BlockSpec((1, H, W, cin0), lambda n: (n, 0, 0, 0))]
    operands = [x]
    for wt, br in zip(w_taps, b_rows):
        in_specs.append(pl.BlockSpec(wt.shape, lambda n: (0, 0, 0)))
        in_specs.append(pl.BlockSpec(br.shape, lambda n: (0, 0)))
        operands += [wt, br]

    kernel = functools.partial(simple_cnn_kernel, H=H, W=W)
    out_nhwc = pl.pallas_call(
        kernel,
        out_shape=jax.ShapeDtypeStruct((N, H, W, cout_last), jnp.float32),
        grid=(N,),
        in_specs=in_specs,
        out_specs=pl.BlockSpec((1, H, W, cout_last), lambda n: (n, 0, 0, 0)),
        scratch_shapes=[
            pltpu.VMEM((H + 2, W + 2, cin0), jnp.float32),       # layer-1 halo
            pltpu.VMEM((H + 2, W + 2, cmid), jnp.float32),       # layer-2..4 halo
        ],
        compiler_params=pltpu.CompilerParams(
            dimension_semantics=("parallel",)),                  # batch -> 2 TCs on v7x
    )(*operands)
    return jnp.transpose(out_nhwc, (0, 3, 1, 2))                 # NHWC -> NCHW


def init_params(key):
    """Deterministic synthetic parameters (shapes from SimpleCNN.__init__), HWIO layout."""
    specs = [
        (3, 64),    # encoder conv1
        (64, 64),   # encoder conv2
        (64, 64),   # decoder conv1
        (64, 3),    # decoder conv2
    ]
    params = []
    for i, (cin, cout) in enumerate(specs):
        kw, kb = jax.random.split(jax.random.fold_in(key, i))
        scale = (2.0 / (cin * 9)) ** 0.5
        w = scale * jax.random.normal(kw, (3, 3, cin, cout), jnp.float32)
        b = 0.01 * jax.random.normal(kb, (cout,), jnp.float32)
        params.append((w, b))
    return params


def reference_forward(x_nchw, params):
    """Pure-JAX reference (lax conv) for correctness checking."""
    x = jnp.transpose(x_nchw, (0, 2, 3, 1))
    relus = (True, True, True, False)
    for (w, b), r in zip(params, relus):
        x = lax.conv_general_dilated(
            x, w, window_strides=(1, 1), padding="SAME",
            dimension_numbers=("NHWC", "HWIO", "NHWC"),
        ) + b
        if r:
            x = jnp.maximum(x, 0.0)
    return jnp.transpose(x, (0, 3, 1, 2))


if __name__ == "__main__":
    key = jax.random.PRNGKey(0)
    kx, kp = jax.random.split(key)

    # Small deterministic input, NCHW like the PyTorch module: (batch=2, C=3, H=16, W=16)
    x = jax.random.normal(kx, (2, 3, 16, 16), jnp.float32)
    params = init_params(kp)

    out = jax.jit(simple_cnn_forward)(x, params)
    out = jax.block_until_ready(out)

    ref = jax.block_until_ready(reference_forward(x, params))
    assert out.shape == (2, 3, 16, 16)
    assert jnp.allclose(out, ref, atol=1e-3, rtol=1e-3), "Pallas fused CNN mismatch vs reference"

    print("KERNEL_OK")
</pallas_src>

<mosaic_0001>
module attributes {stable_mosaic.version = 11 : i64} {
  func.func @simple_cnn_kernel(%arg0: i32, %arg1: memref<1x16x16x3xf32, #tpu.memory_space<vmem>>, %arg2: memref<9x3x64xf32, #tpu.memory_space<vmem>>, %arg3: memref<1x64xf32, #tpu.memory_space<vmem>>, %arg4: memref<9x64x64xf32, #tpu.memory_space<vmem>>, %arg5: memref<1x64xf32, #tpu.memory_space<vmem>>, %arg6: memref<9x64x64xf32, #tpu.memory_space<vmem>>, %arg7: memref<1x64xf32, #tpu.memory_space<vmem>>, %arg8: memref<9x64x3xf32, #tpu.memory_space<vmem>>, %arg9: memref<1x3xf32, #tpu.memory_space<vmem>>, %arg10: memref<1x16x16x3xf32, #tpu.memory_space<vmem>>, %arg11: memref<18x18x3xf32, #tpu.memory_space<vmem>>, %arg12: memref<18x18x64xf32, #tpu.memory_space<vmem>>) attributes {dimension_semantics = [#tpu.dimension_semantics<parallel>], iteration_bounds = array<i64: 2>, scalar_prefetch = 0 : i64, scratch_operands = 2 : i64, tpu.core_type = #tpu.core_type<tc>, window_params = [{transform_indices = @transform_0, window_bounds = array<i64: 1, 16, 16, 3>}, {pipeline_mode = #tpu.pipeline_mode<synchronous>, transform_indices = @transform_1, window_bounds = array<i64: 9, 3, 64>}, {pipeline_mode = #tpu.pipeline_mode<synchronous>, transform_indices = @transform_2, window_bounds = array<i64: 1, 64>}, {pipeline_mode = #tpu.pipeline_mode<synchronous>, transform_indices = @transform_3, window_bounds = array<i64: 9, 64, 64>}, {pipeline_mode = #tpu.pipeline_mode<synchronous>, transform_indices = @transform_4, window_bounds = array<i64: 1, 64>}, {pipeline_mode = #tpu.pipeline_mode<synchronous>, transform_indices = @transform_5, window_bounds = array<i64: 9, 64, 64>}, {pipeline_mode = #tpu.pipeline_mode<synchronous>, transform_indices = @transform_6, window_bounds = array<i64: 1, 64>}, {pipeline_mode = #tpu.pipeline_mode<synchronous>, transform_indices = @transform_7, window_bounds = array<i64: 9, 64, 3>}, {pipeline_mode = #tpu.pipeline_mode<synchronous>, transform_indices = @transform_8, window_bounds = array<i64: 1, 3>}, {transform_indices = @transform_9, window_bounds = array<i64: 1, 16, 16, 3>}]} {
    %cst = arith.constant 0.000000e+00 : f32
    %0 = vector.broadcast %cst : f32 to vector<18x18x3xf32>
    %c0 = arith.constant 0 : index
    %c0_0 = arith.constant 0 : index
    %c0_1 = arith.constant 0 : index
    %1 = vector.load %arg11[%c0, %c0_0, %c0_1] : memref<18x18x3xf32, #tpu.memory_space<vmem>>, vector<18x18x3xf32>
    tpu.vector_store %arg11[%c0, %c0_0, %c0_1], %0 {strides = array<i32>} : memref<18x18x3xf32, #tpu.memory_space<vmem>>, vector<18x18x3xf32>,
    %cst_2 = arith.constant 0.000000e+00 : f32
    %2 = vector.broadcast %cst_2 : f32 to vector<18x18x64xf32>
    %c0_3 = arith.constant 0 : index
    %c0_4 = arith.constant 0 : index
    %c0_5 = arith.constant 0 : index
    %3 = vector.load %arg12[%c0_3, %c0_4, %c0_5] : memref<18x18x64xf32, #tpu.memory_space<vmem>>, vector<18x18x64xf32>
    tpu.vector_store %arg12[%c0_3, %c0_4, %c0_5], %2 {strides = array<i32>} : memref<18x18x64xf32, #tpu.memory_space<vmem>>, vector<18x18x64xf32>,
    %c0_6 = arith.constant 0 : index
    %c0_7 = arith.constant 0 : index
    %c0_8 = arith.constant 0 : index
    %c0_9 = arith.constant 0 : index
    %4 = vector.load %arg1[%c0_6, %c0_7, %c0_8, %c0_9] : memref<1x16x16x3xf32, #tpu.memory_space<vmem>>, vector<1x16x16x3xf32>
    %5 = vector.shape_cast %4 : vector<1x16x16x3xf32> to vector<16x16x3xf32>
    %c1 = arith.constant 1 : index
    %c1_10 = arith.constant 1 : index
    %c0_11 = arith.constant 0 : index
    %6 = vector.load %arg11[%c1, %c1_10, %c0_11] : memref<18x18x3xf32, #tpu.memory_space<vmem>>, vector<16x16x3xf32>
    tpu.vector_store %arg11[%c1, %c1_10, %c0_11], %5 {strides = array<i32>} : memref<18x18x3xf32, #tpu.memory_space<vmem>>, vector<16x16x3xf32>,
    %cst_12 = arith.constant 0.000000e+00 : f32
    %7 = vector.broadcast %cst_12 : f32 to vector<256x64xf32>
    %c0_13 = arith.constant 0 : index
    %c0_14 = arith.constant 0 : index
    %c0_15 = arith.constant 0 : index
    %8 = vector.load %arg11[%c0_13, %c0_14, %c0_15] : memref<18x18x3xf32, #tpu.memory_space<vmem>>, vector<16x16x3xf32>
    %9 = vector.shape_cast %8 : vector<16x16x3xf32> to vector<256x3xf32>
    %c0_16 = arith.constant 0 : index
    %c0_17 = arith.constant 0 : index
    %c0_18 = arith.constant 0 : index
    %10 = vector.load %arg2[%c0_16, %c0_17, %c0_18] : memref<9x3x64xf32, #tpu.memory_space<vmem>>, vector<1x3x64xf32>
    %11 = vector.shape_cast %10 : vector<1x3x64xf32> to vector<3x64xf32>
    %cst_19 = arith.constant dense<0.000000e+00> : vector<256x64xf32>
    %12 = tpu.matmul %9, %11, %cst_19 {dimension_numbers = #tpu.dot_dimension_numbers<[1], [0], [0], [1], [0, 0, 1, 1], [], []>} : vector<256x3xf32>, vector<3x64xf32>, vector<256x64xf32> -> vector<256x64xf32>
    %13 = arith.addf %7, %12 : vector<256x64xf32>
    %c0_20 = arith.constant 0 : index
    %c1_21 = arith.constant 1 : index
    %c0_22 = arith.constant 0 : index
    %14 = vector.load %arg11[%c0_20, %c1_21, %c0_22] : memref<18x18x3xf32, #tpu.memory_space<vmem>>, vector<16x16x3xf32>
    %15 = vector.shape_cast %14 : vector<16x16x3xf32> to vector<256x3xf32>
    %c1_23 = arith.constant 1 : index
    %c0_24 = arith.constant 0 : index
    %c0_25 = arith.constant 0 : index
    %16 = vector.load %arg2[%c1_23, %c0_24, %c0_25] : memref<9x3x64xf32, #tpu.memory_space<vmem>>, vector<1x3x64xf32>
    %17 = vector.shape_cast %16 : vector<1x3x64xf32> to vector<3x64xf32>
    %cst_26 = arith.constant dense<0.000000e+00> : vector<256x64xf32>
    %18 = tpu.matmul %15, %17, %cst_26 {dimension_numbers = #tpu.dot_dimension_numbers<[1], [0], [0], [1], [0, 0, 1, 1], [], []>} : vector<256x3xf32>, vector<3x64xf32>, vector<256x64xf32> -> vector<256x64xf32>
    %19 = arith.addf %13, %18 : vector<256x64xf32>
    %c0_27 = arith.constant 0 : index
    %c2 = arith.constant 2 : index
    %c0_28 = arith.constant 0 : index
    %20 = vector.load %arg11[%c0_27, %c2, %c0_28] : memref<18x18x3xf32, #tpu.memory_space<vmem>>, vector<16x16x3xf32>
    %21 = vector.shape_cast %20 : vector<16x16x3xf32> to vector<256x3xf32>
    %c2_29 = arith.constant 2 : index
    %c0_30 = arith.constant 0 : index
    %c0_31 = arith.constant 0 : index
    %22 = vector.load %arg2[%c2_29, %c0_30, %c0_31] : memref<9x3x64xf32, #tpu.memory_space<vmem>>, vector<1x3x64xf32>
    %23 = vector.shape_cast %22 : vector<1x3x64xf32> to vector<3x64xf32>
    %cst_32 = arith.constant dense<0.000000e+00> : vector<256x64xf32>
    %24 = tpu.matmul %21, %23, %cst_32 {dimension_numbers = #tpu.dot_dimension_numbers<[1], [0], [0], [1], [0, 0, 1, 1], [], []>} : vector<256x3xf32>, vector<3x64xf32>, vector<256x64xf32> -> vector<256x64xf32>
    %25 = arith.addf %19, %24 : vector<256x64xf32>
    %c1_33 = arith.constant 1 : index
    %c0_34 = arith.constant 0 : index
    %c0_35 = arith.constant 0 : index
    %26 = vector.load %arg11[%c1_33, %c0_34, %c0_35] : memref<18x18x3xf32, #tpu.memory_space<vmem>>, vector<16x16x3xf32>
    %27 = vector.shape_cast %26 : vector<16x16x3xf32> to vector<256x3xf32>
    %c3 = arith.constant 3 : index
    %c0_36 = arith.constant 0 : index
    %c0_37 = arith.constant 0 : index
    %28 = vector.load %arg2[%c3, %c0_36, %c0_37] : memref<9x3x64xf32, #tpu.memory_space<vmem>>, vector<1x3x64xf32>
    %29 = vector.shape_cast %28 : vector<1x3x64xf32> to vector<3x64xf32>
    %cst_38 = arith.constant dense<0.000000e+00> : vector<256x64xf32>
    %30 = tpu.matmul %27, %29, %cst_38 {dimension_numbers = #tpu.dot_dimension_numbers<[1], [0], [0], [1], [0, 0, 1, 1], [], []>} : vector<256x3xf32>, vector<3x64xf32>, vector<256x64xf32> -> vector<256x64xf32>
    %31 = arith.addf %25, %30 : vector<256x64xf32>
    %c1_39 = arith.constant 1 : index
    %c1_40 = arith.constant 1 : index
    %c0_41 = arith.constant 0 : index
    %32 = vector.load %arg11[%c1_39, %c1_40, %c0_41] : memref<18x18x3xf32, #tpu.memory_space<vmem>>, vector<16x16x3xf32>
    %33 = vector.shape_cast %32 : vector<16x16x3xf32> to vector<256x3xf32>
    %c4 = arith.constant 4 : index
    %c0_42 = arith.constant 0 : index
    %c0_43 = arith.constant 0 : index
    %34 = vector.load %arg2[%c4, %c0_42, %c0_43] : memref<9x3x64xf32, #tpu.memory_space<vmem>>, vector<1x3x64xf32>
    %35 = vector.shape_cast %34 : vector<1x3x64xf32> to vector<3x64xf32>
    %cst_44 = arith.constant dense<0.000000e+00> : vector<256x64xf32>
    %36 = tpu.matmul %33, %35, %cst_44 {dimension_numbers = #tpu.dot_dimension_numbers<[1], [0], [0], [1], [0, 0, 1, 1], [], []>} : vector<256x3xf32>, vector<3x64xf32>, vector<256x64xf32> -> vector<256x64xf32>
    %37 = arith.addf %31, %36 : vector<256x64xf32>
    %c1_45 = arith.constant 1 : index
    %c2_46 = arith.constant 2 : index
    %c0_47 = arith.constant 0 : index
    %38 = vector.load %arg11[%c1_45, %c2_46, %c0_47] : memref<18x18x3xf32, #tpu.memory_space<vmem>>, vector<16x16x3xf32>
    %39 = vector.shape_cast %38 : vector<16x16x3xf32> to vector<256x3xf32>
    %c5 = arith.constant 5 : index
    %c0_48 = arith.constant 0 : index
    %c0_49 = arith.constant 0 : index
    %40 = vector.load %arg2[%c5, %c0_48, %c0_49] : memref<9x3x64xf32, #tpu.memory_space<vmem>>, vector<1x3x64xf32>
    %41 = vector.shape_cast %40 : vector<1x3x64xf32> to vector<3x64xf32>
    %cst_50 = arith.constant dense<0.000000e+00> : vector<256x64xf32>
    %42 = tpu.matmul %39, %41, %cst_50 {dimension_numbers = #tpu.dot_dimension_numbers<[1], [0], [0], [1], [0, 0, 1, 1], [], []>} : vector<256x3xf32>, vector<3x64xf32>, vector<256x64xf32> -> vector<256x64xf32>
    %43 = arith.addf %37, %42 : vector<256x64xf32>
    %c2_51 = arith.constant 2 : index
    %c0_52 = arith.constant 0 : index
    %c0_53 = arith.constant 0 : index
    %44 = vector.load %arg11[%c2_51, %c0_52, %c0_53] : memref<18x18x3xf32, #tpu.memory_space<vmem>>, vector<16x16x3xf32>
    %45 = vector.shape_cast %44 : vector<16x16x3xf32> to vector<256x3xf32>
    %c6 = arith.constant 6 : index
    %c0_54 = arith.constant 0 : index
    %c0_55 = arith.constant 0 : index
    %46 = vector.load %arg2[%c6, %c0_54, %c0_55] : memref<9x3x64xf32, #tpu.memory_space<vmem>>, vector<1x3x64xf32>
    %47 = vector.shape_cast %46 : vector<1x3x64xf32> to vector<3x64xf32>
    %cst_56 = arith.constant dense<0.000000e+00> : vector<256x64xf32>
    %48 = tpu.matmul %45, %47, %cst_56 {dimension_numbers = #tpu.dot_dimension_numbers<[1], [0], [0], [1], [0, 0, 1, 1], [], []>} : vector<256x3xf32>, vector<3x64xf32>, vector<256x64xf32> -> vector<256x64xf32>
    %49 = arith.addf %43, %48 : vector<256x64xf32>
    %c2_57 = arith.constant 2 : index
    %c1_58 = arith.constant 1 : index
    %c0_59 = arith.constant 0 : index
    %50 = vector.load %arg11[%c2_57, %c1_58, %c0_59] : memref<18x18x3xf32, #tpu.memory_space<vmem>>, vector<16x16x3xf32>
    %51 = vector.shape_cast %50 : vector<16x16x3xf32> to vector<256x3xf32>
    %c7 = arith.constant 7 : index
    %c0_60 = arith.constant 0 : index
    %c0_61 = arith.constant 0 : index
    %52 = vector.load %arg2[%c7, %c0_60, %c0_61] : memref<9x3x64xf32, #tpu.memory_space<vmem>>, vector<1x3x64xf32>
    %53 = vector.shape_cast %52 : vector<1x3x64xf32> to vector<3x64xf32>
    %cst_62 = arith.constant dense<0.000000e+00> : vector<256x64xf32>
    %54 = tpu.matmul %51, %53, %cst_62 {dimension_numbers = #tpu.dot_dimension_numbers<[1], [0], [0], [1], [0, 0, 1, 1], [], []>} : vector<256x3xf32>, vector<3x64xf32>, vector<256x64xf32> -> vector<256x64xf32>
    %55 = arith.addf %49, %54 : vector<256x64xf32>
    %c2_63 = arith.constant 2 : index
    %c2_64 = arith.constant 2 : index
    %c0_65 = arith.constant 0 : index
    %56 = vector.load %arg11[%c2_63, %c2_64, %c0_65] : memref<18x18x3xf32, #tpu.memory_space<vmem>>, vector<16x16x3xf32>
    %57 = vector.shape_cast %56 : vector<16x16x3xf32> to vector<256x3xf32>
    %c8 = arith.constant 8 : index
    %c0_66 = arith.constant 0 : index
    %c0_67 = arith.constant 0 : index
    %58 = vector.load %arg2[%c8, %c0_66, %c0_67] : memref<9x3x64xf32, #tpu.memory_space<vmem>>, vector<1x3x64xf32>
    %59 = vector.shape_cast %58 : vector<1x3x64xf32> to vector<3x64xf32>
    %cst_68 = arith.constant dense<0.000000e+00> : vector<256x64xf32>
    %60 = tpu.matmul %57, %59, %cst_68 {dimension_numbers = #tpu.dot_dimension_numbers<[1], [0], [0], [1], [0, 0, 1, 1], [], []>} : vector<256x3xf32>, vector<3x64xf32>, vector<256x64xf32> -> vector<256x64xf32>
    %61 = arith.addf %55, %60 : vector<256x64xf32>
    %c0_69 = arith.constant 0 : index
    %c0_70 = arith.constant 0 : index
    %62 = vector.load %arg3[%c0_69, %c0_70] : memref<1x64xf32, #tpu.memory_space<vmem>>, vector<1x64xf32>
    %63 = vector.broadcast %62 : vector<1x64xf32> to vector<256x64xf32>
    %64 = arith.addf %61, %63 : vector<256x64xf32>
    %cst_71 = arith.constant 0.000000e+00 : f32
    %65 = vector.broadcast %cst_71 : f32 to vector<256x64xf32>
    %66 = arith.maximumf %64, %65 : vector<256x64xf32>
    %67 = vector.shape_cast %66 : vector<256x64xf32> to vector<16x16x64xf32>
    %c1_72 = arith.constant 1 : index
    %c1_73 = arith.constant 1 : index
    %c0_74 = arith.constant 0 : index
    %68 = vector.load %arg12[%c1_72, %c1_73, %c0_74] : memref<18x18x64xf32, #tpu.memory_space<vmem>>, vector<16x16x64xf32>
    tpu.vector_store %arg12[%c1_72, %c1_73, %c0_74], %67 {strides = array<i32>} : memref<18x18x64xf32, #tpu.memory_space<vmem>>, vector<16x16x64xf32>,
    %cst_75 = arith.constant 0.000000e+00 : f32
    %69 = vector.broadcast %cst_75 : f32 to vector<256x64xf32>
    %c0_76 = arith.constant 0 : index
    %c0_77 = arith.constant 0 : index
    %c0_78 = arith.constant 0 : index
    %70 = vector.load %arg12[%c0_76, %c0_77, %c0_78] : memref<18x18x64xf32, #tpu.memory_space<vmem>>, vector<16x16x64xf32>
    %71 = vector.shape_cast %70 : vector<16x16x64xf32> to vector<256x64xf32>
    %c0_79 = arith.constant 0 : index
    %c0_80 = arith.constant 0 : index
    %c0_81 = arith.constant 0 : index
    %72 = vector.load %arg4[%c0_79, %c0_80, %c0_81] : memref<9x64x64xf32, #tpu.memory_space<vmem>>, vector<1x64x64xf32>
    %73 = vector.shape_cast %72 : vector<1x64x64xf32> to vector<64x64xf32>
    %cst_82 = arith.constant dense<0.000000e+00> : vector<256x64xf32>
    %74 = tpu.matmul %71, %73, %cst_82 {dimension_numbers = #tpu.dot_dimension_numbers<[1], [0], [0], [1], [0, 0, 1, 1], [], []>} : vector<256x64xf32>, vector<64x64xf32>, vector<256x64xf32> -> vector<256x64xf32>
    %75 = arith.addf %69, %74 : vector<256x64xf32>
    %c0_83 = arith.constant 0 : index
    %c1_84 = arith.constant 1 : index
    %c0_85 = arith.constant 0 : index
    %76 = vector.load %arg12[%c0_83, %c1_84, %c0_85] : memref<18x18x64xf32, #tpu.memory_space<vmem>>, vector<16x16x64xf32>
    %77 = vector.shape_cast %76 : vector<16x16x64xf32> to vector<256x64xf32>
    %c1_86 = arith.constant 1 : index
    %c0_87 = arith.constant 0 : index
    %c0_88 = arith.constant 0 : index
    %78 = vector.load %arg4[%c1_86, %c0_87, %c0_88] : memref<9x64x64xf32, #tpu.memory_space<vmem>>, vector<1x64x64xf32>
    %79 = vector.shape_cast %78 : vector<1x64x64xf32> to vector<64x64xf32>
    %cst_89 = arith.constant dense<0.000000e+00> : vector<256x64xf32>
    %80 = tpu.matmul %77, %79, %cst_89 {dimension_numbers = #tpu.dot_dimension_numbers<[1], [0], [0], [1], [0, 0, 1, 1], [], []>} : vector<256x64xf32>, vector<64x64xf32>, vector<256x64xf32> -> vector<256x64xf32>
    %81 = arith.addf %75, %80 : vector<256x64xf32>
    %c0_90 = arith.constant 0 : index
    %c2_91 = arith.constant 2 : index
    %c0_92 = arith.constant 0 : index
    %82 = vector.load %arg12[%c0_90, %c2_91, %c0_92] : memref<18x18x64xf32, #tpu.memory_space<vmem>>, vector<16x16x64xf32>
    %83 = vector.shape_cast %82 : vector<16x16x64xf32> to vector<256x64xf32>
    %c2_93 = arith.constant 2 : index
    %c0_94 = arith.constant 0 : index
    %c0_95 = arith.constant 0 : index
    %84 = vector.load %arg4[%c2_93, %c0_94, %c0_95] : memref<9x64x64xf32, #tpu.memory_space<vmem>>, vector<1x64x64xf32>
    %85 = vector.shape_cast %84 : vector<1x64x64xf32> to vector<64x64xf32>
    %cst_96 = arith.constant dense<0.000000e+00> : vector<256x64xf32>
    %86 = tpu.matmul %83, %85, %cst_96 {dimension_numbers = #tpu.dot_dimension_numbers<[1], [0], [0], [1], [0, 0, 1, 1], [], []>} : vector<256x64xf32>, vector<64x64xf32>, vector<256x64xf32> -> vector<256x64xf32>
    %87 = arith.addf %81, %86 : vector<256x64xf32>
    %c1_97 = arith.constant 1 : index
    %c0_98 = arith.constant 0 : index
    %c0_99 = arith.constant 0 : index
    %88 = vector.load %arg12[%c1_97, %c0_98, %c0_99] : memref<18x18x64xf32, #tpu.memory_space<vmem>>, vector<16x16x64xf32>
    %89 = vector.shape_cast %88 : vector<16x16x64xf32> to vector<256x64xf32>
    %c3_100 = arith.constant 3 : index
    %c0_101 = arith.constant 0 : index
    %c0_102 = arith.constant 0 : index
    %90 = vector.load %arg4[%c3_100, %c0_101, %c0_102] : memref<9x64x64xf32, #tpu.memory_space<vmem>>, vector<1x64x64xf32>
    %91 = vector.shape_cast %90 : vector<1x64x64xf32> to vector<64x64xf32>
    %cst_103 = arith.constant dense<0.000000e+00> : vector<256x64xf32>
    %92 = tpu.matmul %89, %91, %cst_103 {dimension_numbers = #tpu.dot_dimension_numbers<[1], [0], [0], [1], [0, 0, 1, 1], [], []>} : vector<256x64xf32>, vector<64x64xf32>, vector<256x64xf32> -> vector<256x64xf32>
    %93 = arith.addf %87, %92 : vector<256x64xf32>
    %c1_104 = arith.constant 1 : index
    %c1_105 = arith.constant 1 : index
    %c0_106 = arith.constant 0 : index
    %94 = vector.load %arg12[%c1_104, %c1_105, %c0_106] : memref<18x18x64xf32, #tpu.memory_space<vmem>>, vector<16x16x64xf32>
    %95 = vector.shape_cast %94 : vector<16x16x64xf32> to vector<256x64xf32>
    %c4_107 = arith.constant 4 : index
    %c0_108 = arith.constant 0 : index
    %c0_109 = arith.constant 0 : index
    %96 = vector.load %arg4[%c4_107, %c0_108, %c0_109] : memref<9x64x64xf32, #tpu.memory_space<vmem>>, vector<1x64x64xf32>
    %97 = vector.shape_cast %96 : vector<1x64x64xf32> to vector<64x64xf32>
    %cst_110 = arith.constant dense<0.000000e+00> : vector<256x64xf32>
    %98 = tpu.matmul %95, %97, %cst_110 {dimension_numbers = #tpu.dot_dimension_numbers<[1], [0], [0], [1], [0, 0, 1, 1], [], []>} : vector<256x64xf32>, vector<64x64xf32>, vector<256x64xf32> -> vector<256x64xf32>
    %99 = arith.addf %93, %98 : vector<256x64xf32>
    %c1_111 = arith.constant 1 : index
    %c2_112 = arith.constant 2 : index
    %c0_113 = arith.constant 0 : index
    %100 = vector.load %arg12[%c1_111, %c2_112, %c0_113] : memref<18x18x64xf32, #tpu.memory_space<vmem>>, vector<16x16x64xf32>
    %101 = vector.shape_cast %100 : vector<16x16x64xf32> to vector<256x64xf32>
    %c5_114 = arith.constant 5 : index
    %c0_115 = arith.constant 0 : index
    %c0_116 = arith.constant 0 : index
    %102 = vector.load %arg4[%c5_114, %c0_115, %c0_116] : memref<9x64x64xf32, #tpu.memory_space<vmem>>, vector<1x64x64xf32>
    %103 = vector.shape_cast %102 : vector<1x64x64xf32> to vector<64x64xf32>
    %cst_117 = arith.constant dense<0.000000e+00> : vector<256x64xf32>
    %104 = tpu.matmul %101, %103, %cst_117 {dimension_numbers = #tpu.dot_dimension_numbers<[1], [0], [0], [1], [0, 0, 1, 1], [], []>} : vector<256x64xf32>, vector<64x64xf32>, vector<256x64xf32> -> vector<256x64xf32>
    %105 = arith.addf %99, %104 : vector<256x64xf32>
    %c2_118 = arith.constant 2 : index
    %c0_119 = arith.constant 0 : index
    %c0_120 = arith.constant 0 : index
    %106 = vector.load %arg12[%c2_118, %c0_119, %c0_120] : memref<18x18x64xf32, #tpu.memory_space<vmem>>, vector<16x16x64xf32>
    %107 = vector.shape_cast %106 : vector<16x16x64xf32> to vector<256x64xf32>
    %c6_121 = arith.constant 6 : index
    %c0_122 = arith.constant 0 : index
    %c0_123 = arith.constant 0 : index
    %108 = vector.load %arg4[%c6_121, %c0_122, %c0_123] : memref<9x64x64xf32, #tpu.memory_space<vmem>>, vector<1x64x64xf32>
    %109 = vector.shape_cast %108 : vector<1x64x64xf32> to vector<64x64xf32>
    %cst_124 = arith.constant dense<0.000000e+00> : vector<256x64xf32>
    %110 = tpu.matmul %107, %109, %cst_124 {dimension_numbers = #tpu.dot_dimension_numbers<[1], [0], [0], [1], [0, 0, 1, 1], [], []>} : vector<256x64xf32>, vector<64x64xf32>, vector<256x64xf32> -> vector<256x64xf32>
    %111 = arith.addf %105, %110 : vector<256x64xf32>
    %c2_125 = arith.constant 2 : index
    %c1_126 = arith.constant 1 : index
    %c0_127 = arith.constant 0 : index
    %112 = vector.load %arg12[%c2_125, %c1_126, %c0_127] : memref<18x18x64xf32, #tpu.memory_space<vmem>>, vector<16x16x64xf32>
    %113 = vector.shape_cast %112 : vector<16x16x64xf32> to vector<256x64xf32>
    %c7_128 = arith.constant 7 : index
    %c0_129 = arith.constant 0 : index
    %c0_130 = arith.constant 0 : index
    %114 = vector.load %arg4[%c7_128, %c0_129, %c0_130] : memref<9x64x64xf32, #tpu.memory_space<vmem>>, vector<1x64x64xf32>
    %115 = vector.shape_cast %114 : vector<1x64x64xf32> to vector<64x64xf32>
    %cst_131 = arith.constant dense<0.000000e+00> : vector<256x64xf32>
    %116 = tpu.matmul %113, %115, %cst_131 {dimension_numbers = #tpu.dot_dimension_numbers<[1], [0], [0], [1], [0, 0, 1, 1], [], []>} : vector<256x64xf32>, vector<64x64xf32>, vector<256x64xf32> -> vector<256x64xf32>
    %117 = arith.addf %111, %116 : vector<256x64xf32>
    %c2_132 = arith.constant 2 : index
    %c2_133 = arith.constant 2 : index
    %c0_134 = arith.constant 0 : index
    %118 = vector.load %arg12[%c2_132, %c2_133, %c0_134] : memref<18x18x64xf32, #tpu.memory_space<vmem>>, vector<16x16x64xf32>
    %119 = vector.shape_cast %118 : vector<16x16x64xf32> to vector<256x64xf32>
    %c8_135 = arith.constant 8 : index
    %c0_136 = arith.constant 0 : index
    %c0_137 = arith.constant 0 : index
    %120 = vector.load %arg4[%c8_135, %c0_136, %c0_137] : memref<9x64x64xf32, #tpu.memory_space<vmem>>, vector<1x64x64xf32>
    %121 = vector.shape_cast %120 : vector<1x64x64xf32> to vector<64x64xf32>
    %cst_138 = arith.constant dense<0.000000e+00> : vector<256x64xf32>
    %122 = tpu.matmul %119, %121, %cst_138 {dimension_numbers = #tpu.dot_dimension_numbers<[1], [0], [0], [1], [0, 0, 1, 1], [], []>} : vector<256x64xf32>, vector<64x64xf32>, vector<256x64xf32> -> vector<256x64xf32>
    %123 = arith.addf %117, %122 : vector<256x64xf32>
    %c0_139 = arith.constant 0 : index
    %c0_140 = arith.constant 0 : index
    %124 = vector.load %arg5[%c0_139, %c0_140] : memref<1x64xf32, #tpu.memory_space<vmem>>, vector<1x64xf32>
    %125 = vector.broadcast %124 : vector<1x64xf32> to vector<256x64xf32>
    %126 = arith.addf %123, %125 : vector<256x64xf32>
    %cst_141 = arith.constant 0.000000e+00 : f32
    %127 = vector.broadcast %cst_141 : f32 to vector<256x64xf32>
    %128 = arith.maximumf %126, %127 : vector<256x64xf32>
    %129 = vector.shape_cast %128 : vector<256x64xf32> to vector<16x16x64xf32>
    %c1_142 = arith.constant 1 : index
    %c1_143 = arith.constant 1 : index
    %c0_144 = arith.constant 0 : index
    %130 = vector.load %arg12[%c1_142, %c1_143, %c0_144] : memref<18x18x64xf32, #tpu.memory_space<vmem>>, vector<16x16x64xf32>
    tpu.vector_store %arg12[%c1_142, %c1_143, %c0_144], %129 {strides = array<i32>} : memref<18x18x64xf32, #tpu.memory_space<vmem>>, vector<16x16x64xf32>,
    %cst_145 = arith.constant 0.000000e+00 : f32
    %131 = vector.broadcast %cst_145 : f32 to vector<256x64xf32>
    %c0_146 = arith.constant 0 : index
    %c0_147 = arith.constant 0 : index
    %c0_148 = arith.constant 0 : index
    %132 = vector.load %arg12[%c0_146, %c0_147, %c0_148] : memref<18x18x64xf32, #tpu.memory_space<vmem>>, vector<16x16x64xf32>
    %133 = vector.shape_cast %132 : vector<16x16x64xf32> to vector<256x64xf32>
    %c0_149 = arith.constant 0 : index
    %c0_150 = arith.constant 0 : index
    %c0_151 = arith.constant 0 : index
    %134 = vector.load %arg6[%c0_149, %c0_150, %c0_151] : memref<9x64x64xf32, #tpu.memory_space<vmem>>, vector<1x64x64xf32>
    %135 = vector.shape_cast %134 : vector<1x64x64xf32> to vector<64x64xf32>
    %cst_152 = arith.constant dense<0.000000e+00> : vector<256x64xf32>
    %136 = tpu.matmul %133, %135, %cst_152 {dimension_numbers = #tpu.dot_dimension_numbers<[1], [0], [0], [1], [0, 0, 1, 1], [], []>} : vector<256x64xf32>, vector<64x64xf32>, vector<256x64xf32> -> vector<256x64xf32>
    %137 = arith.addf %131, %136 : vector<256x64xf32>
    %c0_153 = arith.constant 0 : index
    %c1_154 = arith.constant 1 : index
    %c0_155 = arith.constant 0 : index
    %138 = vector.load %arg12[%c0_153, %c1_154, %c0_155] : memref<18x18x64xf32, #tpu.memory_space<vmem>>, vector<16x16x64xf32>
    %139 = vector.shape_cast %138 : vector<16x16x64xf32> to vector<256x64xf32>
    %c1_156 = arith.constant 1 : index
    %c0_157 = arith.constant 0 : index
    %c0_158 = arith.constant 0 : index
    %140 = vector.load %arg6[%c1_156, %c0_157, %c0_158] : memref<9x64x64xf32, #tpu.memory_space<vmem>>, vector<1x64x64xf32>
    %141 = vector.shape_cast %140 : vector<1x64x64xf32> to vector<64x64xf32>
    %cst_159 = arith.constant dense<0.000000e+00> : vector<256x64xf32>
    %142 = tpu.matmul %139, %141, %cst_159 {dimension_numbers = #tpu.dot_dimension_numbers<[1], [0], [0], [1], [0, 0, 1, 1], [], []>} : vector<256x64xf32>, vector<64x64xf32>, vector<256x64xf32> -> vector<256x64xf32>
    %143 = arith.addf %137, %142 : vector<256x64xf32>
    %c0_160 = arith.constant 0 : index
    %c2_161 = arith.constant 2 : index
    %c0_162 = arith.constant 0 : index
    %144 = vector.load %arg12[%c0_160, %c2_161, %c0_162] : memref<18x18x64xf32, #tpu.memory_space<vmem>>, vector<16x16x64xf32>
    %145 = vector.shape_cast %144 : vector<16x16x64xf32> to vector<256x64xf32>
    %c2_163 = arith.constant 2 : index
    %c0_164 = arith.constant 0 : index
    %c0_165 = arith.constant 0 : index
    %146 = vector.load %arg6[%c2_163, %c0_164, %c0_165] : memref<9x64x64xf32, #tpu.memory_space<vmem>>, vector<1x64x64xf32>
    %147 = vector.shape_cast %146 : vector<1x64x64xf32> to vector<64x64xf32>
    %cst_166 = arith.constant dense<0.000000e+00> : vector<256x64xf32>
    %148 = tpu.matmul %145, %147, %cst_166 {dimension_numbers = #tpu.dot_dimension_numbers<[1], [0], [0], [1], [0, 0, 1, 1], [], []>} : vector<256x64xf32>, vector<64x64xf32>, vector<256x64xf32> -> vector<256x64xf32>
    %149 = arith.addf %143, %148 : vector<256x64xf32>
    %c1_167 = arith.constant 1 : index
    %c0_168 = arith.constant 0 : index
    %c0_169 = arith.constant 0 : index
    %150 = vector.load %arg12[%c1_167, %c0_168, %c0_169] : memref<18x18x64xf32, #tpu.memory_space<vmem>>, vector<16x16x64xf32>
    %151 = vector.shape_cast %150 : vector<16x16x64xf32> to vector<256x64xf32>
    %c3_170 = arith.constant 3 : index
    %c0_171 = arith.constant 0 : index
    %c0_172 = arith.constant 0 : index
    %152 = vector.load %arg6[%c3_170, %c0_171, %c0_172] : memref<9x64x64xf32, #tpu.memory_space<vmem>>, vector<1x64x64xf32>
    %153 = vector.shape_cast %152 : vector<1x64x64xf32> to vector<64x64xf32>
    %cst_173 = arith.constant dense<0.000000e+00> : vector<256x64xf32>
    %154 = tpu.matmul %151, %153, %cst_173 {dimension_numbers = #tpu.dot_dimension_numbers<[1], [0], [0], [1], [0, 0, 1, 1], [], []>} : vector<256x64xf32>, vector<64x64xf32>, vector<256x64xf32> -> vector<256x64xf32>
    %155 = arith.addf %149, %154 : vector<256x64xf32>
    %c1_174 = arith.constant 1 : index
    %c1_175 = arith.constant 1 : index
    %c0_176 = arith.constant 0 : index
    %156 = vector.load %arg12[%c1_174, %c1_175, %c0_176] : memref<18x18x64xf32, #tpu.memory_space<vmem>>, vector<16x16x64xf32>
    %157 = vector.shape_cast %156 : vector<16x16x64xf32> to vector<256x64xf32>
    %c4_177 = arith.constant 4 : index
    %c0_178 = arith.constant 0 : index
    %c0_179 = arith.constant 0 : index
    %158 = vector.load %arg6[%c4_177, %c0_178, %c0_179] : memref<9x64x64xf32, #tpu.memory_space<vmem>>, vector<1x64x64xf32>
    %159 = vector.shape_cast %158 : vector<1x64x64xf32> to vector<64x64xf32>
    %cst_180 = arith.constant dense<0.000000e+00> : vector<256x64xf32>
    %160 = tpu.matmul %157, %159, %cst_180 {dimension_numbers = #tpu.dot_dimension_numbers<[1], [0], [0], [1], [0, 0, 1, 1], [], []>} : vector<256x64xf32>, vector<64x64xf32>, vector<256x64xf32> -> vector<256x64xf32>
    %161 = arith.addf %155, %160 : vector<256x64xf32>
    %c1_181 = arith.constant 1 : index
    %c2_182 = arith.constant 2 : index
    %c0_183 = arith.constant 0 : index
    %162 = vector.load %arg12[%c1_181, %c2_182, %c0_183] : memref<18x18x64xf32, #tpu.memory_space<vmem>>, vector<16x16x64xf32>
    %163 = vector.shape_cast %162 : vector<16x16x64xf32> to vector<256x64xf32>
    %c5_184 = arith.constant 5 : index
    %c0_185 = arith.constant 0 : index
    %c0_186 = arith.constant 0 : index
    %164 = vector.load %arg6[%c5_184, %c0_185, %c0_186] : memref<9x64x64xf32, #tpu.memory_space<vmem>>, vector<1x64x64xf32>
    %165 = vector.shape_cast %164 : vector<1x64x64xf32> to vector<64x64xf32>
    %cst_187 = arith.constant dense<0.000000e+00> : vector<256x64xf32>
    %166 = tpu.matmul %163, %165, %cst_187 {dimension_numbers = #tpu.dot_dimension_numbers<[1], [0], [0], [1], [0, 0, 1, 1], [], []>} : vector<256x64xf32>, vector<64x64xf32>, vector<256x64xf32> -> vector<256x64xf32>
    %167 = arith.addf %161, %166 : vector<256x64xf32>
    %c2_188 = arith.constant 2 : index
    %c0_189 = arith.constant 0 : index
    %c0_190 = arith.constant 0 : index
    %168 = vector.load %arg12[%c2_188, %c0_189, %c0_190] : memref<18x18x64xf32, #tpu.memory_space<vmem>>, vector<16x16x64xf32>
    %169 = vector.shape_cast %168 : vector<16x16x64xf32> to vector<256x64xf32>
    %c6_191 = arith.constant 6 : index
    %c0_192 = arith.constant 0 : index
    %c0_193 = arith.constant 0 : index
    %170 = vector.load %arg6[%c6_191, %c0_192, %c0_193] : memref<9x64x64xf32, #tpu.memory_space<vmem>>, vector<1x64x64xf32>
    %171 = vector.shape_cast %170 : vector<1x64x64xf32> to vector<64x64xf32>
    %cst_194 = arith.constant dense<0.000000e+00> : vector<256x64xf32>
    %172 = tpu.matmul %169, %171, %cst_194 {dimension_numbers = #tpu.dot_dimension_numbers<[1], [0], [0], [1], [0, 0, 1, 1], [], []>} : vector<256x64xf32>, vector<64x64xf32>, vector<256x64xf32> -> vector<256x64xf32>
    %173 = arith.addf %167, %172 : vector<256x64xf32>
    %c2_195 = arith.constant 2 : index
    %c1_196 = arith.constant 1 : index
    %c0_197 = arith.constant 0 : index
    %174 = vector.load %arg12[%c2_195, %c1_196, %c0_197] : memref<18x18x64xf32, #tpu.memory_space<vmem>>, vector<16x16x64xf32>
    %175 = vector.shape_cast %174 : vector<16x16x64xf32> to vector<256x64xf32>
    %c7_198 = arith.constant 7 : index
    %c0_199 = arith.constant 0 : index
    %c0_200 = arith.constant 0 : index
    %176 = vector.load %arg6[%c7_198, %c0_199, %c0_200] : memref<9x64x64xf32, #tpu.memory_space<vmem>>, vector<1x64x64xf32>
    %177 = vector.shape_cast %176 : vector<1x64x64xf32> to vector<64x64xf32>
    %cst_201 = arith.constant dense<0.000000e+00> : vector<256x64xf32>
    %178 = tpu.matmul %175, %177, %cst_201 {dimension_numbers = #tpu.dot_dimension_numbers<[1], [0], [0], [1], [0, 0, 1, 1], [], []>} : vector<256x64xf32>, vector<64x64xf32>, vector<256x64xf32> -> vector<256x64xf32>
    %179 = arith.addf %173, %178 : vector<256x64xf32>
    %c2_202 = arith.constant 2 : index
    %c2_203 = arith.constant 2 : index
    %c0_204 = arith.constant 0 : index
    %180 = vector.load %arg12[%c2_202, %c2_203, %c0_204] : memref<18x18x64xf32, #tpu.memory_space<vmem>>, vector<16x16x64xf32>
    %181 = vector.shape_cast %180 : vector<16x16x64xf32> to vector<256x64xf32>
    %c8_205 = arith.constant 8 : index
    %c0_206 = arith.constant 0 : index
    %c0_207 = arith.constant 0 : index
    %182 = vector.load %arg6[%c8_205, %c0_206, %c0_207] : memref<9x64x64xf32, #tpu.memory_space<vmem>>, vector<1x64x64xf32>
    %183 = vector.shape_cast %182 : vector<1x64x64xf32> to vector<64x64xf32>
    %cst_208 = arith.constant dense<0.000000e+00> : vector<256x64xf32>
    %184 = tpu.matmul %181, %183, %cst_208 {dimension_numbers = #tpu.dot_dimension_numbers<[1], [0], [0], [1], [0, 0, 1, 1], [], []>} : vector<256x64xf32>, vector<64x64xf32>, vector<256x64xf32> -> vector<256x64xf32>
    %185 = arith.addf %179, %184 : vector<256x64xf32>
    %c0_209 = arith.constant 0 : index
    %c0_210 = arith.constant 0 : index
    %186 = vector.load %arg7[%c0_209, %c0_210] : memref<1x64xf32, #tpu.memory_space<vmem>>, vector<1x64xf32>
    %187 = vector.broadcast %186 : vector<1x64xf32> to vector<256x64xf32>
    %188 = arith.addf %185, %187 : vector<256x64xf32>
    %cst_211 = arith.constant 0.000000e+00 : f32
    %189 = vector.broadcast %cst_211 : f32 to vector<256x64xf32>
    %190 = arith.maximumf %188, %189 : vector<256x64xf32>
    %191 = vector.shape_cast %190 : vector<256x64xf32> to vector<16x16x64xf32>
    %c1_212 = arith.constant 1 : index
    %c1_213 = arith.constant 1 : index
    %c0_214 = arith.constant 0 : index
    %192 = vector.load %arg12[%c1_212, %c1_213, %c0_214] : memref<18x18x64xf32, #tpu.memory_space<vmem>>, vector<16x16x64xf32>
    tpu.vector_store %arg12[%c1_212, %c1_213, %c0_214], %191 {strides = array<i32>} : memref<18x18x64xf32, #tpu.memory_space<vmem>>, vector<16x16x64xf32>,
    %cst_215 = arith.constant 0.000000e+00 : f32
    %193 = vector.broadcast %cst_215 : f32 to vector<256x3xf32>
    %c0_216 = arith.constant 0 : index
    %c0_217 = arith.constant 0 : index
    %c0_218 = arith.constant 0 : index
    %194 = vector.load %arg12[%c0_216, %c0_217, %c0_218] : memref<18x18x64xf32, #tpu.memory_space<vmem>>, vector<16x16x64xf32>
    %195 = vector.shape_cast %194 : vector<16x16x64xf32> to vector<256x64xf32>
    %c0_219 = arith.constant 0 : index
    %c0_220 = arith.constant 0 : index
    %c0_221 = arith.constant 0 : index
    %196 = vector.load %arg8[%c0_219, %c0_220, %c0_221] : memref<9x64x3xf32, #tpu.memory_space<vmem>>, vector<1x64x3xf32>
    %197 = vector.shape_cast %196 : vector<1x64x3xf32> to vector<64x3xf32>
    %cst_222 = arith.constant dense<0.000000e+00> : vector<256x3xf32>
    %198 = tpu.matmul %195, %197, %cst_222 {dimension_numbers = #tpu.dot_dimension_numbers<[1], [0], [0], [1], [0, 0, 1, 1], [], []>} : vector<256x64xf32>, vector<64x3xf32>, vector<256x3xf32> -> vector<256x3xf32>
    %199 = arith.addf %193, %198 : vector<256x3xf32>
    %c0_223 = arith.constant 0 : index
    %c1_224 = arith.constant 1 : index
    %c0_225 = arith.constant 0 : index
    %200 = vector.load %arg12[%c0_223, %c1_224, %c0_225] : memref<18x18x64xf32, #tpu.memory_space<vmem>>, vector<16x16x64xf32>
    %201 = vector.shape_cast %200 : vector<16x16x64xf32> to vector<256x64xf32>
    %c1_226 = arith.constant 1 : index
    %c0_227 = arith.constant 0 : index
    %c0_228 = arith.constant 0 : index
    %202 = vector.load %arg8[%c1_226, %c0_227, %c0_228] : memref<9x64x3xf32, #tpu.memory_space<vmem>>, vector<1x64x3xf32>
    %203 = vector.shape_cast %202 : vector<1x64x3xf32> to vector<64x3xf32>
    %cst_229 = arith.constant dense<0.000000e+00> : vector<256x3xf32>
    %204 = tpu.matmul %201, %203, %cst_229 {dimension_numbers = #tpu.dot_dimension_numbers<[1], [0], [0], [1], [0, 0, 1, 1], [], []>} : vector<256x64xf32>, vector<64x3xf32>, vector<256x3xf32> -> vector<256x3xf32>
    %205 = arith.addf %199, %204 : vector<256x3xf32>
    %c0_230 = arith.constant 0 : index
    %c2_231 = arith.constant 2 : index
    %c0_232 = arith.constant 0 : index
    %206 = vector.load %arg12[%c0_230, %c2_231, %c0_232] : memref<18x18x64xf32, #tpu.memory_space<vmem>>, vector<16x16x64xf32>
    %207 = vector.shape_cast %206 : vector<16x16x64xf32> to vector<256x64xf32>
    %c2_233 = arith.constant 2 : index
    %c0_234 = arith.constant 0 : index
    %c0_235 = arith.constant 0 : index
    %208 = vector.load %arg8[%c2_233, %c0_234, %c0_235] : memref<9x64x3xf32, #tpu.memory_space<vmem>>, vector<1x64x3xf32>
    %209 = vector.shape_cast %208 : vector<1x64x3xf32> to vector<64x3xf32>
    %cst_236 = arith.constant dense<0.000000e+00> : vector<256x3xf32>
    %210 = tpu.matmul %207, %209, %cst_236 {dimension_numbers = #tpu.dot_dimension_numbers<[1], [0], [0], [1], [0, 0, 1, 1], [], []>} : vector<256x64xf32>, vector<64x3xf32>, vector<256x3xf32> -> vector<256x3xf32>
    %211 = arith.addf %205, %210 : vector<256x3xf32>
    %c1_237 = arith.constant 1 : index
    %c0_238 = arith.constant 0 : index
    %c0_239 = arith.constant 0 : index
    %212 = vector.load %arg12[%c1_237, %c0_238, %c0_239] : memref<18x18x64xf32, #tpu.memory_space<vmem>>, vector<16x16x64xf32>
    %213 = vector.shape_cast %212 : vector<16x16x64xf32> to vector<256x64xf32>
    %c3_240 = arith.constant 3 : index
    %c0_241 = arith.constant 0 : index
    %c0_242 = arith.constant 0 : index
    %214 = vector.load %arg8[%c3_240, %c0_241, %c0_242] : memref<9x64x3xf32, #tpu.memory_space<vmem>>, vector<1x64x3xf32>
    %215 = vector.shape_cast %214 : vector<1x64x3xf32> to vector<64x3xf32>
    %cst_243 = arith.constant dense<0.000000e+00> : vector<256x3xf32>
    %216 = tpu.matmul %213, %215, %cst_243 {dimension_numbers = #tpu.dot_dimension_numbers<[1], [0], [0], [1], [0, 0, 1, 1], [], []>} : vector<256x64xf32>, vector<64x3xf32>, vector<256x3xf32> -> vector<256x3xf32>
    %217 = arith.addf %211, %216 : vector<256x3xf32>
    %c1_244 = arith.constant 1 : index
    %c1_245 = arith.constant 1 : index
    %c0_246 = arith.constant 0 : index
    %218 = vector.load %arg12[%c1_244, %c1_245, %c0_246] : memref<18x18x64xf32, #tpu.memory_space<vmem>>, vector<16x16x64xf32>
    %219 = vector.shape_cast %218 : vector<16x16x64xf32> to vector<256x64xf32>
    %c4_247 = arith.constant 4 : index
    %c0_248 = arith.constant 0 : index
    %c0_249 = arith.constant 0 : index
    %220 = vector.load %arg8[%c4_247, %c0_248, %c0_249] : memref<9x64x3xf32, #tpu.memory_space<vmem>>, vector<1x64x3xf32>
    %221 = vector.shape_cast %220 : vector<1x64x3xf32> to vector<64x3xf32>
    %cst_250 = arith.constant dense<0.000000e+00> : vector<256x3xf32>
    %222 = tpu.matmul %219, %221, %cst_250 {dimension_numbers = #tpu.dot_dimension_numbers<[1], [0], [0], [1], [0, 0, 1, 1], [], []>} : vector<256x64xf32>, vector<64x3xf32>, vector<256x3xf32> -> vector<256x3xf32>
    %223 = arith.addf %217, %222 : vector<256x3xf32>
    %c1_251 = arith.constant 1 : index
    %c2_252 = arith.constant 2 : index
    %c0_253 = arith.constant 0 : index
    %224 = vector.load %arg12[%c1_251, %c2_252, %c0_253] : memref<18x18x64xf32, #tpu.memory_space<vmem>>, vector<16x16x64xf32>
    %225 = vector.shape_cast %224 : vector<16x16x64xf32> to vector<256x64xf32>
    %c5_254 = arith.constant 5 : index
    %c0_255 = arith.constant 0 : index
    %c0_256 = arith.constant 0 : index
    %226 = vector.load %arg8[%c5_254, %c0_255, %c0_256] : memref<9x64x3xf32, #tpu.memory_space<vmem>>, vector<1x64x3xf32>
    %227 = vector.shape_cast %226 : vector<1x64x3xf32> to vector<64x3xf32>
    %cst_257 = arith.constant dense<0.000000e+00> : vector<256x3xf32>
    %228 = tpu.matmul %225, %227, %cst_257 {dimension_numbers = #tpu.dot_dimension_numbers<[1], [0], [0], [1], [0, 0, 1, 1], [], []>} : vector<256x64xf32>, vector<64x3xf32>, vector<256x3xf32> -> vector<256x3xf32>
    %229 = arith.addf %223, %228 : vector<256x3xf32>
    %c2_258 = arith.constant 2 : index
    %c0_259 = arith.constant 0 : index
    %c0_260 = arith.constant 0 : index
    %230 = vector.load %arg12[%c2_258, %c0_259, %c0_260] : memref<18x18x64xf32, #tpu.memory_space<vmem>>, vector<16x16x64xf32>
    %231 = vector.shape_cast %230 : vector<16x16x64xf32> to vector<256x64xf32>
    %c6_261 = arith.constant 6 : index
    %c0_262 = arith.constant 0 : index
    %c0_263 = arith.constant 0 : index
    %232 = vector.load %arg8[%c6_261, %c0_262, %c0_263] : memref<9x64x3xf32, #tpu.memory_space<vmem>>, vector<1x64x3xf32>
    %233 = vector.shape_cast %232 : vector<1x64x3xf32> to vector<64x3xf32>
    %cst_264 = arith.constant dense<0.000000e+00> : vector<256x3xf32>
    %234 = tpu.matmul %231, %233, %cst_264 {dimension_numbers = #tpu.dot_dimension_numbers<[1], [0], [0], [1], [0, 0, 1, 1], [], []>} : vector<256x64xf32>, vector<64x3xf32>, vector<256x3xf32> -> vector<256x3xf32>
    %235 = arith.addf %229, %234 : vector<256x3xf32>
    %c2_265 = arith.constant 2 : index
    %c1_266 = arith.constant 1 : index
    %c0_267 = arith.constant 0 : index
    %236 = vector.load %arg12[%c2_265, %c1_266, %c0_267] : memref<18x18x64xf32, #tpu.memory_space<vmem>>, vector<16x16x64xf32>
    %237 = vector.shape_cast %236 : vector<16x16x64xf32> to vector<256x64xf32>
    %c7_268 = arith.constant 7 : index
    %c0_269 = arith.constant 0 : index
    %c0_270 = arith.constant 0 : index
    %238 = vector.load %arg8[%c7_268, %c0_269, %c0_270] : memref<9x64x3xf32, #tpu.memory_space<vmem>>, vector<1x64x3xf32>
    %239 = vector.shape_cast %238 : vector<1x64x3xf32> to vector<64x3xf32>
    %cst_271 = arith.constant dense<0.000000e+00> : vector<256x3xf32>
    %240 = tpu.matmul %237, %239, %cst_271 {dimension_numbers = #tpu.dot_dimension_numbers<[1], [0], [0], [1], [0, 0, 1, 1], [], []>} : vector<256x64xf32>, vector<64x3xf32>, vector<256x3xf32> -> vector<256x3xf32>
    %241 = arith.addf %235, %240 : vector<256x3xf32>
    %c2_272 = arith.constant 2 : index
    %c2_273 = arith.constant 2 : index
    %c0_274 = arith.constant 0 : index
    %242 = vector.load %arg12[%c2_272, %c2_273, %c0_274] : memref<18x18x64xf32, #tpu.memory_space<vmem>>, vector<16x16x64xf32>
    %243 = vector.shape_cast %242 : vector<16x16x64xf32> to vector<256x64xf32>
    %c8_275 = arith.constant 8 : index
    %c0_276 = arith.constant 0 : index
    %c0_277 = arith.constant 0 : index
    %244 = vector.load %arg8[%c8_275, %c0_276, %c0_277] : memref<9x64x3xf32, #tpu.memory_space<vmem>>, vector<1x64x3xf32>
    %245 = vector.shape_cast %244 : vector<1x64x3xf32> to vector<64x3xf32>
    %cst_278 = arith.constant dense<0.000000e+00> : vector<256x3xf32>
    %246 = tpu.matmul %243, %245, %cst_278 {dimension_numbers = #tpu.dot_dimension_numbers<[1], [0], [0], [1], [0, 0, 1, 1], [], []>} : vector<256x64xf32>, vector<64x3xf32>, vector<256x3xf32> -> vector<256x3xf32>
    %247 = arith.addf %241, %246 : vector<256x3xf32>
    %c0_279 = arith.constant 0 : index
    %c0_280 = arith.constant 0 : index
    %248 = vector.load %arg9[%c0_279, %c0_280] : memref<1x3xf32, #tpu.memory_space<vmem>>, vector<1x3xf32>
    %249 = vector.broadcast %248 : vector<1x3xf32> to vector<256x3xf32>
    %250 = arith.addf %247, %249 : vector<256x3xf32>
    %251 = vector.shape_cast %250 : vector<256x3xf32> to vector<16x16x3xf32>
    %252 = vector.shape_cast %251 : vector<16x16x3xf32> to vector<1x16x16x3xf32>
    %c0_281 = arith.constant 0 : index
    %c0_282 = arith.constant 0 : index
    %c0_283 = arith.constant 0 : index
    %c0_284 = arith.constant 0 : index
    %253 = vector.load %arg10[%c0_281, %c0_282, %c0_283, %c0_284] : memref<1x16x16x3xf32, #tpu.memory_space<vmem>>, vector<1x16x16x3xf32>
    tpu.vector_store %arg10[%c0_281, %c0_282, %c0_283, %c0_284], %252 {strides = array<i32>} : memref<1x16x16x3xf32, #tpu.memory_space<vmem>>, vector<1x16x16x3xf32>,
    return
  }
  func.func @transform_0(%arg0: i32) -> (i32, i32, i32, i32) {
    %c0_i32 = arith.constant 0 : i32
    %c0_i32_0 = arith.constant 0 : i32
    %c0_i32_1 = arith.constant 0 : i32
    %c0_i32_2 = arith.constant 0 : i32
    return %arg0, %c0_i32, %c0_i32_0, %c0_i32_1 : i32, i32, i32, i32
  }
  func.func @transform_1(%arg0: i32) -> (i32, i32, i32) {
    %c0_i32 = arith.constant 0 : i32
    %c0_i32_0 = arith.constant 0 : i32
    %c0_i32_1 = arith.constant 0 : i32
    %c0_i32_2 = arith.constant 0 : i32
    return %c0_i32, %c0_i32_0, %c0_i32_1 : i32, i32, i32
  }
  func.func @transform_2(%arg0: i32) -> (i32, i32) {
    %c0_i32 = arith.constant 0 : i32
    %c0_i32_0 = arith.constant 0 : i32
    %c0_i32_1 = arith.constant 0 : i32
    return %c0_i32, %c0_i32_0 : i32, i32
  }
  func.func @transform_3(%arg0: i32) -> (i32, i32, i32) {
    %c0_i32 = arith.constant 0 : i32
    %c0_i32_0 = arith.constant 0 : i32
    %c0_i32_1 = arith.constant 0 : i32
    %c0_i32_2 = arith.constant 0 : i32
    return %c0_i32, %c0_i32_0, %c0_i32_1 : i32, i32, i32
  }
  func.func @transform_4(%arg0: i32) -> (i32, i32) {
    %c0_i32 = arith.constant 0 : i32
    %c0_i32_0 = arith.constant 0 : i32
    %c0_i32_1 = arith.constant 0 : i32
    return %c0_i32, %c0_i32_0 : i32, i32
  }
  func.func @transform_5(%arg0: i32) -> (i32, i32, i32) {
    %c0_i32 = arith.constant 0 : i32
    %c0_i32_0 = arith.constant 0 : i32
    %c0_i32_1 = arith.constant 0 : i32
    %c0_i32_2 = arith.constant 0 : i32
    return %c0_i32, %c0_i32_0, %c0_i32_1 : i32, i32, i32
  }
  func.func @transform_6(%arg0: i32) -> (i32, i32) {
    %c0_i32 = arith.constant 0 : i32
    %c0_i32_0 = arith.constant 0 : i32
    %c0_i32_1 = arith.constant 0 : i32
    return %c0_i32, %c0_i32_0 : i32, i32
  }
  func.func @transform_7(%arg0: i32) -> (i32, i32, i32) {
    %c0_i32 = arith.constant 0 : i32
    %c0_i32_0 = arith.constant 0 : i32
    %c0_i32_1 = arith.constant 0 : i32
    %c0_i32_2 = arith.constant 0 : i32
    return %c0_i32, %c0_i32_0, %c0_i32_1 : i32, i32, i32
  }
  func.func @transform_8(%arg0: i32) -> (i32, i32) {
    %c0_i32 = arith.constant 0 : i32
    %c0_i32_0 = arith.constant 0 : i32
    %c0_i32_1 = arith.constant 0 : i32
    return %c0_i32, %c0_i32_0 : i32, i32
  }
  func.func @transform_9(%arg0: i32) -> (i32, i32, i32, i32) {
    %c0_i32 = arith.constant 0 : i32
    %c0_i32_0 = arith.constant 0 : i32
    %c0_i32_1 = arith.constant 0 : i32
    %c0_i32_2 = arith.constant 0 : i32
    return %arg0, %c0_i32, %c0_i32_0, %c0_i32_1 : i32, i32, i32, i32
  }
}

</mosaic_0001>

<bundles_post_ra>
// kernel: simple_cnn_forward.1
= control target key start
LH: loop header
LB: loop body
LE: loop exit
PB: predicated region body
PF: predicated region fallthrough
CT: control target
= control target key end

     0   :  { %s19838_s30 = smov 0   ;;  %s26477_s0 = inlined_call_operand.vmem [shape: f32[2,16,16,3], index: 0, kind: input, shape index: {}]   ;;  %s26478_s1 = inlined_call_operand.vmem [shape: f32[9,3,64], index: 1, kind: input, shape index: {}]   ;;  %s26479_s2 = inlined_call_operand.vmem [shape: f32[1,64], index: 2, kind: input, shape index: {}]   ;;  %s26480_s3 = inlined_call_operand.vmem [shape: f32[9,64,64], index: 3, kind: input, shape index: {}]   ;;  %s26481_s4 = inlined_call_operand.vmem [shape: f32[1,64], index: 4, kind: input, shape index: {}]   ;;  %s26482_s5 = inlined_call_operand.vmem [shape: f32[9,64,64], index: 5, kind: input, shape index: {}]   ;;  %s26483_s6 = inlined_call_operand.vmem [shape: f32[1,64], index: 6, kind: input, shape index: {}]   ;;  %s26484_s7 = inlined_call_operand.vmem [shape: f32[9,64,3], index: 7, kind: input, shape index: {}]   ;;  %s26485_s8 = inlined_call_operand.vmem [shape: f32[1,3], index: 8, kind: input, shape index: {}]   ;;  %s26486_s9 = inlined_call_operand.vmem [shape: f32[2,16,16,3], index: 9, kind: output, shape index: {}]  }
   0x1 LB: > { %s14837_s10 = sadd.s32 4294967295, %s19785_s30   ;;  %p14841_p0 = scmp.ge.s32.totalorder %s19785_s30, 1  ;;  %s19785_s30 = sphi %s19838_s30, %s19_s30  }
   0x2   : > { %p287_p1 = scmp.lt.s32.totalorder %s19785_s30, 3 }
   0x4   : > { %p288_p2 = pnand %p14841_p0, %p287_p1 }
   0x6   : > { %291 = sbr.rel (%p288_p2) target bundleno = 1971 (0x7b3), region = 56 }
   0xb   : > { %v14846_v0 = vld [vmem:[%s26478_s1 + $0x4] sm:$0x7]  ;;  %vm673_vm0 = vcmask 1042432   ;;  %v542_v1 = vld [vmem:[%s26478_s1] sm:$0x7]  ;;  %vm333_vm1 = vcmask 23552  }
   0xc   : > { %17592 = vmatprep.subr.msk.mxu0 %vm673_vm0, %v14846_v0  ;;  %17642 = vmatprep.subr.msk.mxu1 %vm673_vm0, %v542_v1  ;;  %vm336_vm2 = vcmask 17408   ;;  %v19857_v2 = vld [vmem:[%s26478_s1 + $0x8] sm:$0x7]  ;;  %p19861_p3 = scmp.lt.s32.totalorder %s14837_s10, 1  ;;  %v26487_v3 = vmov 0.0   ;;  %vm389_vm3 = vcmask 523264  }
   0xd   : > { %17593 = vmatpush3.msk.msra.mxu0 %vm673_vm0, %v14846_v0  ;;  %334 = vst.msk [vmem:[#allocation2] sm:$0xff] %vm333_vm1, %v26487_v3  ;;  %335 = vst.msk [vmem:[#allocation2 + $0x8] sm:$0xff] %vm333_vm1, %v26487_v3  ;;  %17643 = vmatpush3.msk.msra.mxu1 %vm673_vm0, %v542_v1  ;;  %v14947_v4 = vld [vmem:[%s26478_s1 + $0xc] sm:$0x7]  ;;  %v20007_v11 = vld [vmem:[%s26478_s1 + $0x10] sm:$0x7] }
   0xe   : > { %338 = vst.msk [vmem:[#allocation2 + $0x18] sm:$0xff] %vm333_vm1, %v26487_v3  ;;  %339 = vst.msk [vmem:[#allocation2 + $0x20] sm:$0xff] %vm333_vm1, %v26487_v3  ;;  %17692 = vmatprep.subr.msk.mxu0 %vm673_vm0, %v19857_v2  ;;  %s27317_s10 = smov (!%p19861_p3, %s14837_s10), 1  ;;  %17742 = vmatprep.subr.msk.mxu1 %vm673_vm0, %v14947_v4  ;;  %vm392_vm4 = vcmask 517120  }
   0xf   : > { %341 = vst.msk [vmem:[#allocation2 + $0x30] sm:$0xff] %vm333_vm1, %v26487_v3  ;;  %342 = vst.msk [vmem:[#allocation2 + $0x38] sm:$0xff] %vm333_vm1, %v26487_v3  ;;  %s16213_s20 = sshll.u32 %s27317_s10, 8 }
  0x10   : > { %344 = vst.msk [vmem:[#allocation2 + $0x48] sm:$0xff] %vm333_vm1, %v26487_v3  ;;  %345 = vst.msk [vmem:[#allocation2 + $0x50] sm:$0xff] %vm333_vm1, %v26487_v3  ;;  %s19993_s23 = scalar_lea.vmem %s26477_s0, %s16213_s20  ;;  %s26265_s26 = scalar_lea.vmem %s26486_s9, %s16213_s20 }
  0x11   : > { %347 = vst.msk [vmem:[#allocation2 + $0x60] sm:$0xff] %vm333_vm1, %v26487_v3  ;;  %348 = vst.msk [vmem:[#allocation2 + $0x68] sm:$0xff] %vm333_vm1, %v26487_v3  ;;  %v445_v5 = vld [vmem:[%s19993_s23] sm:$0xff]  ;;  %v446_v6 = vld [vmem:[%s19993_s23 + $0x8] sm:$0xff] }
  0x12   : > { %350 = vst.msk [vmem:[#allocation2 + $0x78] sm:$0xff] %vm333_vm1, %v26487_v3  ;;  %351 = vst.msk [vmem:[#allocation2 + $0x80] sm:$0xff] %vm333_vm1, %v26487_v3  ;;  %v447_v7 = vld [vmem:[%s19993_s23 + $0x10] sm:$0xff]  ;;  %v448_v8 = vld [vmem:[%s19993_s23 + $0x18] sm:$0xff] }
  0x13   : > { %353 = vst.msk [vmem:[#allocation2 + $0x90] sm:$0xff] %vm333_vm1, %v26487_v3  ;;  %354 = vst.msk [vmem:[#allocation2 + $0x98] sm:$0xff] %vm333_vm1, %v26487_v3  ;;  %v449_v9 = vld [vmem:[%s19993_s23 + $0x20] sm:$0xff]  ;;  %v450_v10 = vld [vmem:[%s19993_s23 + $0x28] sm:$0xff] }
  0x14   : > { %356 = vst.msk [vmem:[#allocation2 + $0xa8] sm:$0xff] %vm333_vm1, %v26487_v3  ;;  %357 = vst.msk [vmem:[#allocation2 + $0xb0] sm:$0xff] %vm333_vm1, %v26487_v3  ;;  %v543_v12 = vld [vmem:[#allocation2 + $0x1] sm:$0xff]  ;;  %v451_v16 = vld [vmem:[%s19993_s23 + $0x30] sm:$0xff] }
  0x15   : > { %359 = vst.msk [vmem:[#allocation2 + $0xc0] sm:$0xff] %vm333_vm1, %v26487_v3  ;;  %360 = vst.msk [vmem:[#allocation2 + $0xc8] sm:$0xff] %vm333_vm1, %v26487_v3  ;;  %v510_v13 = vld [vmem:[#allocation2] sm:$0xff]  ;;  %17594 = vmatprep.mubr.msk.f32.mxu0 %vm333_vm1, %v543_v12  ;;  %v511_v15 = vld [vmem:[#allocation2 + $0x8] sm:$0xff] }
  0x16   : > { %362 = vst.msk [vmem:[#allocation2 + $0xd8] sm:$0xff] %vm333_vm1, %v26487_v3  ;;  %363 = vst.msk [vmem:[#allocation2 + $0xe0] sm:$0xff] %vm333_vm1, %v26487_v3  ;;  %17644 = vmatprep.mubr.msk.f32.mxu1 %vm333_vm1, %v510_v13  ;;  %v452_v17 = vld [vmem:[%s19993_s23 + $0x38] sm:$0xff]  ;;  %v453_v18 = vld [vmem:[%s19993_s23 + $0x40] sm:$0xff] }
  0x17   : > { %365 = vst.msk [vmem:[#allocation2 + $0xf0] sm:$0xff] %vm333_vm1, %v26487_v3  ;;  %366 = vst.msk [vmem:[#allocation2 + $0xf8] sm:$0xff] %vm333_vm1, %v26487_v3  ;;  %17645 = vmatmul.mubr.msk.f32.vlgmr.msra.gmra.mxu1 %vm333_vm1, %v511_v15  ;;  %v454_v19 = vld [vmem:[%s19993_s23 + $0x48] sm:$0xff]  ;;  %v455_v20 = vld [vmem:[%s19993_s23 + $0x50] sm:$0xff] }
  0x18   : > { %368 = vst.msk [vmem:[#allocation2 + $0x108] sm:$0xff] %vm333_vm1, %v26487_v3  ;;  %369 = vst.msk [vmem:[#allocation2 + $0x110] sm:$0xff] %vm333_vm1, %v26487_v3  ;;  %v456_v21 = vld [vmem:[%s19993_s23 + $0x58] sm:$0xff]  ;;  %v457_v22 = vld [vmem:[%s19993_s23 + $0x60] sm:$0xff]  ;;  %17743 = vmatpush3.msk.msra.mxu1 %vm673_vm0, %v14947_v4 }
  0x19   : > { %371 = vst.msk [vmem:[#allocation2 + $0x120] sm:$0xff] %vm333_vm1, %v26487_v3  ;;  %372 = vst.msk [vmem:[#allocation2 + $0x128] sm:$0xff] %vm333_vm1, %v26487_v3  ;;  %v458_v23 = vld [vmem:[%s19993_s23 + $0x68] sm:$0xff]  ;;  %v459_v24 = vld [vmem:[%s19993_s23 + $0x70] sm:$0xff] }
  0x1a   : > { %374 = vst.msk [vmem:[#allocation2 + $0x138] sm:$0xff] %vm333_vm1, %v26487_v3  ;;  %375 = vst.msk [vmem:[#allocation2 + $0x140] sm:$0xff] %vm333_vm1, %v26487_v3  ;;  %v460_v25 = vld [vmem:[%s19993_s23 + $0x78] sm:$0xff]  ;;  %v461_v26 = vld [vmem:[%s19993_s23 + $0x80] sm:$0xff] }
  0x1b   : > { %377 = vst.msk [vmem:[#allocation2 + $0x150] sm:$0xff] %vm333_vm1, %v26487_v3  ;;  %378 = vst.msk [vmem:[#allocation2 + $0x158] sm:$0xff] %vm333_vm1, %v26487_v3  ;;  %v462_v27 = vld [vmem:[%s19993_s23 + $0x88] sm:$0xff]  ;;  %v463_v28 = vld [vmem:[%s19993_s23 + $0x90] sm:$0xff] }
  0x1c   : > { %380 = vst.msk [vmem:[#allocation2 + $0x168] sm:$0xff] %vm333_vm1, %v26487_v3  ;;  %381 = vst.msk [vmem:[#allocation2 + $0x170] sm:$0xff] %vm333_vm1, %v26487_v3  ;;  %v464_v29 = vld [vmem:[%s19993_s23 + $0x98] sm:$0xff]  ;;  %v465_v50 = vld [vmem:[%s19993_s23 + $0xa0] sm:$0xff] }
  0x1d   : > { %383 = vst.msk [vmem:[#allocation2 + $0x180] sm:$0xff] %vm333_vm1, %v26487_v3  ;;  %384 = vst.msk [vmem:[#allocation2 + $0x188] sm:$0xff] %vm333_vm1, %v26487_v3  ;;  %v466_v51 = vld [vmem:[%s19993_s23 + $0xa8] sm:$0xff]  ;;  %v467_v53 = vld [vmem:[%s19993_s23 + $0xb0] sm:$0xff] }
  0x1e   : > { %386 = vst.msk [vmem:[#allocation2 + $0x198] sm:$0xff] %vm333_vm1, %v26487_v3  ;;  %387 = vst.msk [vmem:[#allocation2 + $0x1a0] sm:$0xff] %vm333_vm1, %v26487_v3  ;;  %v468_v54 = vld [vmem:[%s19993_s23 + $0xb8] sm:$0xff]  ;;  %v469_v55 = vld [vmem:[%s19993_s23 + $0xc0] sm:$0xff] }
  0x1f   : > { %337 = vst.msk [vmem:[#allocation2 + $0x10] sm:$0x3] %vm336_vm2, %v26487_v3  ;;  %340 = vst.msk [vmem:[#allocation2 + $0x28] sm:$0x3] %vm336_vm2, %v26487_v3  ;;  %v470_v56 = vld [vmem:[%s19993_s23 + $0xc8] sm:$0xff]  ;;  %v471_v57 = vld [vmem:[%s19993_s23 + $0xd0] sm:$0xff] }
  0x20   : > { %343 = vst.msk [vmem:[#allocation2 + $0x40] sm:$0x3] %vm336_vm2, %v26487_v3  ;;  %346 = vst.msk [vmem:[#allocation2 + $0x58] sm:$0x3] %vm336_vm2, %v26487_v3  ;;  %v472_v58 = vld [vmem:[%s19993_s23 + $0xd8] sm:$0xff]  ;;  %v473_v60 = vld [vmem:[%s19993_s23 + $0xe0] sm:$0xff] }
  0x21   : > { %349 = vst.msk [vmem:[#allocation2 + $0x70] sm:$0x3] %vm336_vm2, %v26487_v3  ;;  %352 = vst.msk [vmem:[#allocation2 + $0x88] sm:$0x3] %vm336_vm2, %v26487_v3  ;;  %v474_v61 = vld [vmem:[%s19993_s23 + $0xe8] sm:$0xff] }
  0x22   : > { %355 = vst.msk [vmem:[#allocation2 + $0xa0] sm:$0x3] %vm336_vm2, %v26487_v3  ;;  %358 = vst.msk [vmem:[#allocation2 + $0xb8] sm:$0x3] %vm336_vm2, %v26487_v3 }
  0x23   : > { %361 = vst.msk [vmem:[#allocation2 + $0xd0] sm:$0x3] %vm336_vm2, %v26487_v3  ;;  %364 = vst.msk [vmem:[#allocation2 + $0xe8] sm:$0x3] %vm336_vm2, %v26487_v3 }
  0x24   : > { %367 = vst.msk [vmem:[#allocation2 + $0x100] sm:$0x3] %vm336_vm2, %v26487_v3  ;;  %370 = vst.msk [vmem:[#allocation2 + $0x118] sm:$0x3] %vm336_vm2, %v26487_v3 }
  0x25   : > { %373 = vst.msk [vmem:[#allocation2 + $0x130] sm:$0x3] %vm336_vm2, %v26487_v3  ;;  %376 = vst.msk [vmem:[#allocation2 + $0x148] sm:$0x3] %vm336_vm2, %v26487_v3 }
  0x26   : > { %379 = vst.msk [vmem:[#allocation2 + $0x160] sm:$0x3] %vm336_vm2, %v26487_v3  ;;  %382 = vst.msk [vmem:[#allocation2 + $0x178] sm:$0x3] %vm336_vm2, %v26487_v3  ;;  %v544_v14 = vld [vmem:[#allocation2 + $0x9] sm:$0xff] }
  0x27   : > { %385 = vst.msk [vmem:[#allocation2 + $0x190] sm:$0x3] %vm336_vm2, %v26487_v3  ;;  %388 = vst.msk [vmem:[#allocation2 + $0x1a8] sm:$0x3] %vm336_vm2, %v26487_v3  ;;  %17595 = vmatmul.mubr.msk.f32.vlgmr.msra.gmra.mxu0 %vm333_vm1, %v544_v14  ;;  %v1227_v3 = vld [vmem:[#allocation2 + $0xa] sm:$0xff] }
  0x28   : > { %478 = vst.msk [vmem:[#allocation2 + $0x19] sm:$0xff] %vm333_vm1, %v445_v5  ;;  %479 = vst.msk [vmem:[#allocation2 + $0x21] sm:$0xff] %vm333_vm1, %v446_v6  ;;  %17693 = vmatpush3.msk.msra.mxu0 %vm673_vm0, %v19857_v2 }
  0x29   : > { %480 = vst.msk [vmem:[#allocation2 + $0x31] sm:$0xff] %vm333_vm1, %v447_v7  ;;  %481 = vst.msk [vmem:[#allocation2 + $0x39] sm:$0xff] %vm333_vm1, %v448_v8  ;;  %17792 = vmatprep.subr.msk.mxu0 %vm673_vm0, %v20007_v11 }
  0x2a   : > { %482 = vst.msk [vmem:[#allocation2 + $0x49] sm:$0xff] %vm333_vm1, %v449_v9  ;;  %483 = vst.msk [vmem:[#allocation2 + $0x51] sm:$0xff] %vm333_vm1, %v450_v10 }
  0x2b   : > { %484 = vst.msk [vmem:[#allocation2 + $0x61] sm:$0xff] %vm333_vm1, %v451_v16  ;;  %485 = vst.msk [vmem:[#allocation2 + $0x69] sm:$0xff] %vm333_vm1, %v452_v17  ;;  %v475_v16 = vld [vmem:[%s19993_s23 + $0xf0] sm:$0xff] }
  0x2c   : > { %486 = vst.msk [vmem:[#allocation2 + $0x79] sm:$0xff] %vm333_vm1, %v453_v18  ;;  %487 = vst.msk [vmem:[#allocation2 + $0x81] sm:$0xff] %vm333_vm1, %v454_v19  ;;  %v20221_v17 = vld [vmem:[%s26478_s1 + $0x14] sm:$0x7]  ;;  %v476_v18 = vld [vmem:[%s19993_s23 + $0xf8] sm:$0xff] }
  0x2d   : > { %488 = vst.msk [vmem:[#allocation2 + $0x91] sm:$0xff] %vm333_vm1, %v455_v20  ;;  %489 = vst.msk [vmem:[#allocation2 + $0x99] sm:$0xff] %vm333_vm1, %v456_v21  ;;  %17842 = vmatprep.subr.msk.mxu1 %vm673_vm0, %v20221_v17 }
  0x2e   : > { %490 = vst.msk [vmem:[#allocation2 + $0xa9] sm:$0xff] %vm333_vm1, %v457_v22  ;;  %491 = vst.msk [vmem:[#allocation2 + $0xb1] sm:$0xff] %vm333_vm1, %v458_v23 }
  0x2f   : > { %492 = vst.msk [vmem:[#allocation2 + $0xc1] sm:$0xff] %vm333_vm1, %v459_v24  ;;  %493 = vst.msk [vmem:[#allocation2 + $0xc9] sm:$0xff] %vm333_vm1, %v460_v25  ;;  %v20046_v30 = vld [vmem:[#allocation2 + $0x19] sm:$0xff]  ;;  %v20050_v32 = vld [vmem:[#allocation2 + $0x21] sm:$0xff] }
  0x30   : > { %494 = vst.msk [vmem:[#allocation2 + $0xd9] sm:$0xff] %vm333_vm1, %v461_v26  ;;  %v20048_v31 = vld [vmem:[#allocation2 + $0x18] sm:$0xff]  ;;  %495 = vst.msk [vmem:[#allocation2 + $0xe1] sm:$0xff] %vm333_vm1, %v462_v27  ;;  %17597 = vmatprep.mubr.msk.f32.mxu0 %vm333_vm1, %v20046_v30  ;;  %v20059_v33 = vld [vmem:[#allocation2 + $0x20] sm:$0xff] }
  0x31   : > { %496 = vst.msk [vmem:[#allocation2 + $0xf1] sm:$0xff] %vm333_vm1, %v463_v28  ;;  %497 = vst.msk [vmem:[#allocation2 + $0xf9] sm:$0xff] %vm333_vm1, %v464_v29  ;;  %17647 = vmatprep.mubr.msk.f32.mxu1 %vm333_vm1, %v20048_v31  ;;  %v20061_v34 = vld [vmem:[#allocation2 + $0x31] sm:$0xff]  ;;  %17598 = vmatmul.mubr.msk.f32.gmra.mxu0 %vm333_vm1, %v20050_v32  ;;  %v20073_v36 = vld [vmem:[#allocation2 + $0x39] sm:$0xff] }
  0x32   : > { %v20063_v35 = vld [vmem:[#allocation2 + $0x30] sm:$0xff]  ;;  %17648 = vmatmul.mubr.msk.f32.gmra.mxu1 %vm333_vm1, %v20059_v33  ;;  %17600 = vmatprep.mubr.msk.f32.mxu0 %vm333_vm1, %v20061_v34  ;;  %v20075_v37 = vld [vmem:[#allocation2 + $0x38] sm:$0xff]  ;;  %v20079_v39 = vld [vmem:[#allocation2 + $0x48] sm:$0xff]  ;;  %498 = vst.msk [vmem:[#allocation2 + $0x109] sm:$0xff] %vm333_vm1, %v465_v50 }
  0x33   : > { %26535 = vst [vmem:[#allocation4_spill] sm:$0xff] %v20063_v35  ;;  %17650 = vmatprep.mubr.msk.f32.mxu1 %vm333_vm1, %v20063_v35  ;;  %26536 = vst [vmem:[#allocation5_spill] sm:$0xff] %v20075_v37  ;;  %v20077_v38 = vld [vmem:[#allocation2 + $0x49] sm:$0xff]  ;;  %v20089_v40 = vld [vmem:[#allocation2 + $0x51] sm:$0xff] }
  0x34   : > { %26537 = vst [vmem:[#allocation6_spill] sm:$0xff] %v20079_v39  ;;  %v20091_v41 = vld [vmem:[#allocation2 + $0x50] sm:$0xff]  ;;  %v20093_v42 = vld [vmem:[#allocation2 + $0x61] sm:$0xff]  ;;  %v20109_v46 = vld [vmem:[#allocation2 + $0x79] sm:$0xff] }
  0x35   : > { %17601 = vmatmul.mubr.msk.f32.gmra.mxu0 %vm333_vm1, %v20073_v36  ;;  %26538 = vst [vmem:[#allocation7_spill] sm:$0xff] %v20091_v41  ;;  %v20095_v43 = vld [vmem:[#allocation2 + $0x60] sm:$0xff]  ;;  %v20105_v44 = vld [vmem:[#allocation2 + $0x69] sm:$0xff]  ;;  %v20111_v47 = vld [vmem:[#allocation2 + $0x78] sm:$0xff] }
  0x36   : > { %17651 = vmatmul.mubr.msk.f32.gmra.mxu1 %vm333_vm1, %v20075_v37  ;;  %17603 = vmatprep.mubr.msk.f32.mxu0 %vm333_vm1, %v20077_v38  ;;  %26539 = vst [vmem:[#allocation8_spill] sm:$0xff] %v20095_v43  ;;  %v20107_v45 = vld [vmem:[#allocation2 + $0x68] sm:$0xff]  ;;  %26541 = vst [vmem:[#allocation10_spill] sm:$0xff] %v20111_v47  ;;  %v20115_v49 = vld [vmem:[#allocation2 + $0x80] sm:$0xff] }
  0x37   : > { %17653 = vmatprep.mubr.msk.f32.mxu1 %vm333_vm1, %v20079_v39  ;;  %26540 = vst [vmem:[#allocation9_spill] sm:$0xff] %v20107_v45  ;;  %v20113_v48 = vld [vmem:[#allocation2 + $0x81] sm:$0xff]  ;;  %26542 = vst [vmem:[#allocation11_spill] sm:$0xff] %v20115_v49  ;;  %v20123_v52 = vld [vmem:[#allocation2 + $0x91] sm:$0xff] }
  0x38   : > { %499 = vst.msk [vmem:[#allocation2 + $0x111] sm:$0xff] %vm333_vm1, %v466_v51  ;;  %500 = vst.msk [vmem:[#allocation2 + $0x121] sm:$0xff] %vm333_vm1, %v467_v53  ;;  %v20140_v59 = vld [vmem:[#allocation2 + $0x90] sm:$0xff]  ;;  %v20157_v62 = vld [vmem:[#allocation2 + $0x99] sm:$0xff] }
  0x39   : > { %17604 = vmatmul.mubr.msk.f32.gmra.mxu0 %vm333_vm1, %v20089_v40  ;;  %501 = vst.msk [vmem:[#allocation2 + $0x129] sm:$0xff] %vm333_vm1, %v468_v54  ;;  %502 = vst.msk [vmem:[#allocation2 + $0x139] sm:$0xff] %vm333_vm1, %v469_v55  ;;  %v20159_v63 = vld [vmem:[#allocation2 + $0x98] sm:$0xff]  ;;  %v20161_v0 = vld [vmem:[#allocation2 + $0xa9] sm:$0xff] }
  0x3a   : > { %17654 = vmatmul.mubr.msk.f32.gmra.mxu1 %vm333_vm1, %v20091_v41  ;;  %17606 = vmatprep.mubr.msk.f32.mxu0 %vm333_vm1, %v20093_v42  ;;  %26543 = vst [vmem:[#allocation12_spill] sm:$0xff] %v20140_v59  ;;  %503 = vst.msk [vmem:[#allocation2 + $0x141] sm:$0xff] %vm333_vm1, %v470_v56  ;;  %v20163_v1 = vld [vmem:[#allocation2 + $0xa8] sm:$0xff]  ;;  %v20173_v2 = vld [vmem:[#allocation2 + $0xb1] sm:$0xff] }
  0x3b   : > { %17656 = vmatprep.mubr.msk.f32.mxu1 %vm333_vm1, %v20095_v43  ;;  %504 = vst.msk [vmem:[#allocation2 + $0x151] sm:$0xff] %vm333_vm1, %v471_v57  ;;  %505 = vst.msk [vmem:[#allocation2 + $0x159] sm:$0xff] %vm333_vm1, %v472_v58  ;;  %v20175_v4 = vld [vmem:[#allocation2 + $0xb0] sm:$0xff]  ;;  %v20177_v5 = vld [vmem:[#allocation2 + $0xc1] sm:$0xff] }
  0x3c   : > { %506 = vst.msk [vmem:[#allocation2 + $0x169] sm:$0xff] %vm333_vm1, %v473_v60  ;;  %507 = vst.msk [vmem:[#allocation2 + $0x171] sm:$0xff] %vm333_vm1, %v474_v61  ;;  %v20179_v6 = vld [vmem:[#allocation2 + $0xc0] sm:$0xff]  ;;  %v20189_v7 = vld [vmem:[#allocation2 + $0xc9] sm:$0xff] }
  0x3d   : > { %17607 = vmatmul.mubr.msk.f32.gmra.mxu0 %vm333_vm1, %v20105_v44  ;;  %26544 = vst [vmem:[#allocation13_spill] sm:$0xff] %v20159_v63  ;;  %26545 = vst [vmem:[#allocation14_spill] sm:$0xff] %v20163_v1  ;;  %v20191_v8 = vld [vmem:[#allocation2 + $0xc8] sm:$0xff]  ;;  %v20193_v9 = vld [vmem:[#allocation2 + $0xd9] sm:$0xff] }
  0x3e   : > { %17657 = vmatmul.mubr.msk.f32.gmra.mxu1 %vm333_vm1, %v20107_v45  ;;  %17609 = vmatprep.mubr.msk.f32.mxu0 %vm333_vm1, %v20109_v46  ;;  %26546 = vst [vmem:[#allocation15_spill] sm:$0xff] %v20175_v4  ;;  %26547 = vst [vmem:[#allocation16_spill] sm:$0xff] %v20179_v6  ;;  %v20195_v10 = vld [vmem:[#allocation2 + $0xd8] sm:$0xff]  ;;  %v20205_v12 = vld [vmem:[#allocation2 + $0xe1] sm:$0xff] }
  0x3f   : > { %17659 = vmatprep.mubr.msk.f32.mxu1 %vm333_vm1, %v20111_v47  ;;  %26548 = vst [vmem:[#allocation17_spill] sm:$0xff] %v20191_v8  ;;  %26549 = vst [vmem:[#allocation18_spill] sm:$0xff] %v20195_v10  ;;  %v20207_v13 = vld [vmem:[#allocation2 + $0xe0] sm:$0xff]  ;;  %v20209_v14 = vld [vmem:[#allocation2 + $0xf1] sm:$0xff] }
  0x40   : > { %26550 = vst [vmem:[#allocation19_spill] sm:$0xff] %v20207_v13  ;;  %v20211_v15 = vld [vmem:[#allocation2 + $0xf0] sm:$0xff]  ;;  %v20228_v19 = vld [vmem:[#allocation2 + $0xf9] sm:$0xff]  ;;  %508 = vst.msk [vmem:[#allocation2 + $0x181] sm:$0xff] %vm333_vm1, %v475_v16 }
  0x41   : > { %17610 = vmatmul.mubr.msk.f32.gmra.mxu0 %vm333_vm1, %v20113_v48  ;;  %26551 = vst [vmem:[#allocation20_spill] sm:$0xff] %v20211_v15  ;;  %v20230_v20 = vld [vmem:[#allocation2 + $0xf8] sm:$0xff]  ;;  %509 = vst.msk [vmem:[#allocation2 + $0x189] sm:$0xff] %vm333_vm1, %v476_v18  ;;  %v20234_v21 = vld [vmem:[#allocation2 + $0x109] sm:$0xff] }
  0x42   : > { %17660 = vmatmul.mubr.msk.f32.gmra.mxu1 %vm333_vm1, %v20115_v49  ;;  %17612 = vmatprep.mubr.msk.f32.mxu0 %vm333_vm1, %v20123_v52  ;;  %26552 = vst [vmem:[#allocation21_spill] sm:$0xff] %v20230_v20  ;;  %v20236_v22 = vld [vmem:[#allocation2 + $0x108] sm:$0xff]  ;;  %v20248_v23 = vld [vmem:[#allocation2 + $0x111] sm:$0xff]  ;;  %v20254_v26 = vld [vmem:[#allocation2 + $0x120] sm:$0xff] }
  0x43   : > { %17662 = vmatprep.mubr.msk.f32.mxu1 %vm333_vm1, %v20140_v59  ;;  %26553 = vst [vmem:[#allocation22_spill] sm:$0xff] %v20236_v22  ;;  %v20250_v24 = vld [vmem:[#allocation2 + $0x110] sm:$0xff]  ;;  %v20252_v25 = vld [vmem:[#allocation2 + $0x121] sm:$0xff]  ;;  %26555 = vst [vmem:[#allocation24_spill] sm:$0xff] %v20254_v26 }
  0x44   : > { %26554 = vst [vmem:[#allocation23_spill] sm:$0xff] %v20250_v24  ;;  %v20264_v27 = vld [vmem:[#allocation2 + $0x129] sm:$0xff]  ;;  %v20268_v29 = vld [vmem:[#allocation2 + $0x139] sm:$0xff]  ;;  %v20280_v51 = vld [vmem:[#allocation2 + $0x141] sm:$0xff] }
  0x45   : > { %17613 = vmatmul.mubr.msk.f32.gmra.mxu0 %vm333_vm1, %v20157_v62  ;;  %v20266_v28 = vld [vmem:[#allocation2 + $0x128] sm:$0xff]  ;;  %v20270_v50 = vld [vmem:[#allocation2 + $0x138] sm:$0xff]  ;;  %v20282_v53 = vld [vmem:[#allocation2 + $0x140] sm:$0xff] }
  0x46   : > { %17663 = vmatmul.mubr.msk.f32.gmra.mxu1 %vm333_vm1, %v20159_v63  ;;  %17615 = vmatprep.mubr.msk.f32.mxu0 %vm333_vm1, %v20161_v0  ;;  %26556 = vst [vmem:[#allocation25_spill] sm:$0xff] %v20266_v28  ;;  %26557 = vst [vmem:[#allocation26_spill] sm:$0xff] %v20270_v50  ;;  %v20284_v54 = vld [vmem:[#allocation2 + $0x151] sm:$0xff]  ;;  %v20296_v56 = vld [vmem:[#allocation2 + $0x159] sm:$0xff] }
  0x47   : > { %17665 = vmatprep.mubr.msk.f32.mxu1 %vm333_vm1, %v20163_v1  ;;  %26558 = vst [vmem:[#allocation27_spill] sm:$0xff] %v20282_v53  ;;  %v20286_v55 = vld [vmem:[#allocation2 + $0x150] sm:$0xff]  ;;  %v20298_v57 = vld [vmem:[#allocation2 + $0x158] sm:$0xff]  ;;  %v20302_v60 = vld [vmem:[#allocation2 + $0x168] sm:$0xff] }
  0x48   : > { %26559 = vst [vmem:[#allocation28_spill] sm:$0xff] %v20286_v55  ;;  %26560 = vst [vmem:[#allocation29_spill] sm:$0xff] %v20298_v57  ;;  %v20300_v58 = vld [vmem:[#allocation2 + $0x169] sm:$0xff]  ;;  %v20312_v61 = vld [vmem:[#allocation2 + $0x171] sm:$0xff] }
  0x49   : > { %17616 = vmatmul.mubr.msk.f32.gmra.mxu0 %vm333_vm1, %v20173_v2  ;;  %26561 = vst [vmem:[#allocation30_spill] sm:$0xff] %v20300_v58  ;;  %26562 = vst [vmem:[#allocation31_spill] sm:$0xff] %v20312_v61  ;;  %v20314_v16 = vld [vmem:[#allocation2 + $0x170] sm:$0xff]  ;;  %v1226_v18 = vld [vmem:[#allocation2 + $0x2] sm:$0xff] }
  0x4a   : > { %17666 = vmatmul.mubr.msk.f32.gmra.mxu1 %vm333_vm1, %v20175_v4  ;;  %17618 = vmatprep.mubr.msk.f32.mxu0 %vm333_vm1, %v20177_v5 }
  0x4b   : > { %17668 = vmatprep.mubr.msk.f32.mxu1 %vm333_vm1, %v20179_v6 }
  0x4d   : > { %17619 = vmatmul.mubr.msk.f32.gmra.mxu0 %vm333_vm1, %v20189_v7 }
  0x4e   : > { %17669 = vmatmul.mubr.msk.f32.gmra.mxu1 %vm333_vm1, %v20191_v8  ;;  %17621 = vmatprep.mubr.msk.f32.mxu0 %vm333_vm1, %v20193_v9 }
  0x4f   : > { %17671 = vmatprep.mubr.msk.f32.mxu1 %vm333_vm1, %v20195_v10 }
  0x51   : > { %17622 = vmatmul.mubr.msk.f32.gmra.mxu0 %vm333_vm1, %v20205_v12 }
  0x52   : > { %17672 = vmatmul.mubr.msk.f32.gmra.mxu1 %vm333_vm1, %v20207_v13  ;;  %17624 = vmatprep.mubr.msk.f32.mxu0 %vm333_vm1, %v20209_v14 }
  0x53   : > { %17674 = vmatprep.mubr.msk.f32.mxu1 %vm333_vm1, %v20211_v15 }
  0x55   : > { %17625 = vmatmul.mubr.msk.f32.gmra.mxu0 %vm333_vm1, %v20228_v19 }
  0x56   : > { %17675 = vmatmul.mubr.msk.f32.gmra.mxu1 %vm333_vm1, %v20230_v20  ;;  %17627 = vmatprep.mubr.msk.f32.mxu0 %vm333_vm1, %v20234_v21 }
  0x57   : > { %17677 = vmatprep.mubr.msk.f32.mxu1 %vm333_vm1, %v20236_v22 }
  0x59   : > { %17628 = vmatmul.mubr.msk.f32.gmra.mxu0 %vm333_vm1, %v20248_v23 }
  0x5a   : > { %17678 = vmatmul.mubr.msk.f32.gmra.mxu1 %vm333_vm1, %v20250_v24  ;;  %17630 = vmatprep.mubr.msk.f32.mxu0 %vm333_vm1, %v20252_v25 }
  0x5b   : > { %17680 = vmatprep.mubr.msk.f32.mxu1 %vm333_vm1, %v20254_v26 }
  0x5d   : > { %17631 = vmatmul.mubr.msk.f32.gmra.mxu0 %vm333_vm1, %v20264_v27 }
  0x5e   : > { %17681 = vmatmul.mubr.msk.f32.gmra.mxu1 %vm333_vm1, %v20266_v28  ;;  %17633 = vmatprep.mubr.msk.f32.mxu0 %vm333_vm1, %v20268_v29 }
  0x5f   : > { %17683 = vmatprep.mubr.msk.f32.mxu1 %vm333_vm1, %v20270_v50 }
  0x61   : > { %17634 = vmatmul.mubr.msk.f32.gmra.mxu0 %vm333_vm1, %v20280_v51 }
  0x62   : > { %17684 = vmatmul.mubr.msk.f32.gmra.mxu1 %vm333_vm1, %v20282_v53  ;;  %17636 = vmatprep.mubr.msk.f32.mxu0 %vm333_vm1, %v20284_v54 }
  0x63   : > { %17686 = vmatprep.mubr.msk.f32.mxu1 %vm333_vm1, %v20286_v55 }
  0x65   : > { %17637 = vmatmul.mubr.msk.f32.gmra.mxu0 %vm333_vm1, %v20296_v56 }
  0x66   : > { %17687 = vmatmul.mubr.msk.f32.gmra.mxu1 %vm333_vm1, %v20298_v57  ;;  %17639 = vmatprep.mubr.msk.f32.mxu0 %vm333_vm1, %v20300_v58  ;;  %v20323_v58 = vld [vmem:[#allocation2 + $0x1a] sm:$0xff] }
  0x67   : > { %17689 = vmatprep.mubr.msk.f32.mxu1 %vm333_vm1, %v20302_v60 }
  0x69   : > { %17640 = vmatmul.mubr.msk.f32.gmra.mxu0 %vm333_vm1, %v20312_v61  ;;  %v20331_v61 = vld [vmem:[%s26478_s1 + $0x18] sm:$0x7] }
  0x6a   : > { %17690 = vmatmul.mubr.msk.f32.gmra.mxu1 %vm333_vm1, %v20314_v16  ;;  %17694 = vmatprep.mubr.msk.f32.mxu0 %vm333_vm1, %v1226_v18  ;;  %v20336_v18 = vld [vmem:[%s26478_s1 + $0x1c] sm:$0x7] }
  0x6b   : > { %17744 = vmatprep.mubr.msk.f32.mxu1 %vm333_vm1, %v20048_v31  ;;  %v20346_v31 = vld [vmem:[#allocation2 + $0x32] sm:$0xff] }
  0x6d   : > { %17695 = vmatmul.mubr.msk.f32.vlgmr.msra.gmra.mxu0 %vm333_vm1, %v1227_v3  ;;  %v20342_v3 = vld [vmem:[#allocation2 + $0x22] sm:$0xff] }
  0x6e   : > { %17745 = vmatmul.mubr.msk.f32.vlgmr.msra.gmra.mxu1 %vm333_vm1, %v20059_v33  ;;  %17793 = vmatpush3.msk.msra.mxu0 %vm673_vm0, %v20007_v11  ;;  %v20360_v11 = vld [vmem:[#allocation2 + $0x3a] sm:$0xff]  ;;  %v20364_v33 = vld [vmem:[#allocation2 + $0x4a] sm:$0xff] }
  0x6f   : > { %17697 = vmatprep.mubr.msk.f32.mxu0 %vm333_vm1, %v20323_v58  ;;  %17747 = vmatprep.mubr.msk.f32.mxu1 %vm333_vm1, %v20063_v35  ;;  %v20510_v35 = vld [vmem:[#allocation2 + $0x180] sm:$0xff] }
  0x70   : > { %17843 = vmatpush3.msk.msra.mxu1 %vm673_vm0, %v20221_v17  ;;  %17892 = vmatprep.subr.msk.mxu0 %vm673_vm0, %v20331_v61  ;;  %v20372_v17 = vld [vmem:[#allocation2 + $0x52] sm:$0xff]  ;;  %26563 = vst [vmem:[#allocation32_spill] sm:$0xff] %v20510_v35 }
  0x71   : > { %17942 = vmatprep.subr.msk.mxu1 %vm673_vm0, %v20336_v18  ;;  %17698 = vmatmul.mubr.msk.f32.gmra.mxu0 %vm333_vm1, %v20342_v3 }
  0x72   : > { %17748 = vmatmul.mubr.msk.f32.gmra.mxu1 %vm333_vm1, %v20075_v37  ;;  %17700 = vmatprep.mubr.msk.f32.mxu0 %vm333_vm1, %v20346_v31  ;;  %v20376_v37 = vld [vmem:[#allocation2 + $0x62] sm:$0xff] }
  0x73   : > { %17750 = vmatprep.mubr.msk.f32.mxu1 %vm333_vm1, %v20079_v39  ;;  %v20388_v39 = vld [vmem:[#allocation2 + $0x7a] sm:$0xff] }
  0x75   : > { %17701 = vmatmul.mubr.msk.f32.gmra.mxu0 %vm333_vm1, %v20360_v11 }
  0x76   : > { %17751 = vmatmul.mubr.msk.f32.gmra.mxu1 %vm333_vm1, %v20091_v41  ;;  %17703 = vmatprep.mubr.msk.f32.mxu0 %vm333_vm1, %v20364_v33  ;;  %v20384_v41 = vld [vmem:[#allocation2 + $0x6a] sm:$0xff] }
  0x77   : > { %17753 = vmatprep.mubr.msk.f32.mxu1 %vm333_vm1, %v20095_v43  ;;  %v20400_v43 = vld [vmem:[#allocation2 + $0x92] sm:$0xff] }
  0x79   : > { %17704 = vmatmul.mubr.msk.f32.gmra.mxu0 %vm333_vm1, %v20372_v17 }
  0x7a   : > { %17754 = vmatmul.mubr.msk.f32.gmra.mxu1 %vm333_vm1, %v20107_v45  ;;  %17706 = vmatprep.mubr.msk.f32.mxu0 %vm333_vm1, %v20376_v37  ;;  %v20396_v45 = vld [vmem:[#allocation2 + $0x82] sm:$0xff] }
  0x7b   : > { %17756 = vmatprep.mubr.msk.f32.mxu1 %vm333_vm1, %v20111_v47  ;;  %v20412_v47 = vld [vmem:[#allocation2 + $0xaa] sm:$0xff] }
  0x7d   : > { %17707 = vmatmul.mubr.msk.f32.gmra.mxu0 %vm333_vm1, %v20384_v41 }
  0x7e   : > { %17757 = vmatmul.mubr.msk.f32.gmra.mxu1 %vm333_vm1, %v20115_v49  ;;  %17709 = vmatprep.mubr.msk.f32.mxu0 %vm333_vm1, %v20388_v39  ;;  %v20408_v49 = vld [vmem:[#allocation2 + $0x9a] sm:$0xff] }
  0x7f   : > { %17759 = vmatprep.mubr.msk.f32.mxu1 %vm333_vm1, %v20140_v59  ;;  %v20424_v59 = vld [vmem:[#allocation2 + $0xc2] sm:$0xff] }
  0x81   : > { %17710 = vmatmul.mubr.msk.f32.gmra.mxu0 %vm333_vm1, %v20396_v45 }
  0x82   : > { %17760 = vmatmul.mubr.msk.f32.gmra.mxu1 %vm333_vm1, %v20159_v63  ;;  %17712 = vmatprep.mubr.msk.f32.mxu0 %vm333_vm1, %v20400_v43  ;;  %v20420_v63 = vld [vmem:[#allocation2 + $0xb2] sm:$0xff] }
  0x83   : > { %17762 = vmatprep.mubr.msk.f32.mxu1 %vm333_vm1, %v20163_v1  ;;  %v20436_v1 = vld [vmem:[#allocation2 + $0xda] sm:$0xff] }
  0x85   : > { %17713 = vmatmul.mubr.msk.f32.gmra.mxu0 %vm333_vm1, %v20408_v49 }
  0x86   : > { %17763 = vmatmul.mubr.msk.f32.gmra.mxu1 %vm333_vm1, %v20175_v4  ;;  %17715 = vmatprep.mubr.msk.f32.mxu0 %vm333_vm1, %v20412_v47  ;;  %v20432_v4 = vld [vmem:[#allocation2 + $0xca] sm:$0xff] }
  0x87   : > { %17765 = vmatprep.mubr.msk.f32.mxu1 %vm333_vm1, %v20179_v6  ;;  %v20448_v6 = vld [vmem:[#allocation2 + $0xf2] sm:$0xff] }
  0x89   : > { %17716 = vmatmul.mubr.msk.f32.gmra.mxu0 %vm333_vm1, %v20420_v63 }
  0x8a   : > { %17766 = vmatmul.mubr.msk.f32.gmra.mxu1 %vm333_vm1, %v20191_v8  ;;  %17718 = vmatprep.mubr.msk.f32.mxu0 %vm333_vm1, %v20424_v59  ;;  %v20444_v8 = vld [vmem:[#allocation2 + $0xe2] sm:$0xff] }
  0x8b   : > { %17768 = vmatprep.mubr.msk.f32.mxu1 %vm333_vm1, %v20195_v10  ;;  %v20460_v10 = vld [vmem:[#allocation2 + $0x10a] sm:$0xff] }
  0x8d   : > { %17719 = vmatmul.mubr.msk.f32.gmra.mxu0 %vm333_vm1, %v20432_v4 }
  0x8e   : > { %17769 = vmatmul.mubr.msk.f32.gmra.mxu1 %vm333_vm1, %v20207_v13  ;;  %17721 = vmatprep.mubr.msk.f32.mxu0 %vm333_vm1, %v20436_v1  ;;  %v20456_v13 = vld [vmem:[#allocation2 + $0xfa] sm:$0xff] }
  0x8f   : > { %17771 = vmatprep.mubr.msk.f32.mxu1 %vm333_vm1, %v20211_v15  ;;  %v20472_v15 = vld [vmem:[#allocation2 + $0x122] sm:$0xff] }
  0x91   : > { %17722 = vmatmul.mubr.msk.f32.gmra.mxu0 %vm333_vm1, %v20444_v8 }
  0x92   : > { %17772 = vmatmul.mubr.msk.f32.gmra.mxu1 %vm333_vm1, %v20230_v20  ;;  %17724 = vmatprep.mubr.msk.f32.mxu0 %vm333_vm1, %v20448_v6  ;;  %v20468_v20 = vld [vmem:[#allocation2 + $0x112] sm:$0xff] }
  0x93   : > { %17774 = vmatprep.mubr.msk.f32.mxu1 %vm333_vm1, %v20236_v22  ;;  %v20484_v22 = vld [vmem:[#allocation2 + $0x13a] sm:$0xff] }
  0x95   : > { %17725 = vmatmul.mubr.msk.f32.gmra.mxu0 %vm333_vm1, %v20456_v13 }
  0x96   : > { %17775 = vmatmul.mubr.msk.f32.gmra.mxu1 %vm333_vm1, %v20250_v24  ;;  %17727 = vmatprep.mubr.msk.f32.mxu0 %vm333_vm1, %v20460_v10  ;;  %v20480_v24 = vld [vmem:[#allocation2 + $0x12a] sm:$0xff] }
  0x97   : > { %17777 = vmatprep.mubr.msk.f32.mxu1 %vm333_vm1, %v20254_v26  ;;  %v20496_v26 = vld [vmem:[#allocation2 + $0x152] sm:$0xff] }
  0x99   : > { %17728 = vmatmul.mubr.msk.f32.gmra.mxu0 %vm333_vm1, %v20468_v20 }
  0x9a   : > { %17778 = vmatmul.mubr.msk.f32.gmra.mxu1 %vm333_vm1, %v20266_v28  ;;  %17730 = vmatprep.mubr.msk.f32.mxu0 %vm333_vm1, %v20472_v15  ;;  %v20492_v28 = vld [vmem:[#allocation2 + $0x142] sm:$0xff] }
  0x9b   : > { %17780 = vmatprep.mubr.msk.f32.mxu1 %vm333_vm1, %v20270_v50  ;;  %v20508_v50 = vld [vmem:[#allocation2 + $0x16a] sm:$0xff] }
  0x9d   : > { %17731 = vmatmul.mubr.msk.f32.gmra.mxu0 %vm333_vm1, %v20480_v24 }
  0x9e   : > { %17781 = vmatmul.mubr.msk.f32.gmra.mxu1 %vm333_vm1, %v20282_v53  ;;  %17733 = vmatprep.mubr.msk.f32.mxu0 %vm333_vm1, %v20484_v22  ;;  %v20504_v53 = vld [vmem:[#allocation2 + $0x15a] sm:$0xff] }
  0x9f   : > { %17783 = vmatprep.mubr.msk.f32.mxu1 %vm333_vm1, %v20286_v55  ;;  %v20522_v55 = vld [vmem:[#allocation2 + $0x188] sm:$0xff] }
  0xa1   : > { %17734 = vmatmul.mubr.msk.f32.gmra.mxu0 %vm333_vm1, %v20492_v28 }
  0xa2   : > { %17784 = vmatmul.mubr.msk.f32.gmra.mxu1 %vm333_vm1, %v20298_v57  ;;  %17736 = vmatprep.mubr.msk.f32.mxu0 %vm333_vm1, %v20496_v26  ;;  %v20518_v57 = vld [vmem:[#allocation2 + $0x172] sm:$0xff] }
  0xa3   : > { %17786 = vmatprep.mubr.msk.f32.mxu1 %vm333_vm1, %v20302_v60 }
  0xa5   : > { %17737 = vmatmul.mubr.msk.f32.gmra.mxu0 %vm333_vm1, %v20504_v53 }
  0xa6   : > { %17787 = vmatmul.mubr.msk.f32.gmra.mxu1 %vm333_vm1, %v20314_v16  ;;  %17739 = vmatprep.mubr.msk.f32.mxu0 %vm333_vm1, %v20508_v50 }
  0xa7   : > { %17789 = vmatprep.mubr.msk.f32.mxu1 %vm333_vm1, %v20510_v35  ;;  %v20539_v35 = vld [vmem:[%s26478_s1 + $0x20] sm:$0x7] }
  0xa9   : > { %17740 = vmatmul.mubr.msk.f32.gmra.mxu0 %vm333_vm1, %v20518_v57 }
  0xaa   : > { %17790 = vmatmul.mubr.msk.f32.gmra.mxu1 %vm333_vm1, %v20522_v55  ;;  %17794 = vmatprep.mubr.msk.f32.mxu0 %vm333_vm1, %v20046_v30  ;;  %v26564_v30 = vld [vmem:[#allocation30_spill] sm:$0xff] }
  0xab   : > { %17844 = vmatprep.mubr.msk.f32.mxu1 %vm333_vm1, %v20323_v58 }
  0xad   : > { %17795 = vmatmul.mubr.msk.f32.vlgmr.msra.gmra.mxu0 %vm333_vm1, %v20050_v32  ;;  %v20655_v32 = vld [vmem:[#allocation2 + $0x181] sm:$0xff] }
  0xae   : > { %17845 = vmatmul.mubr.msk.f32.vlgmr.msra.gmra.mxu1 %vm333_vm1, %v20342_v3  ;;  %17893 = vmatpush3.msk.msra.mxu0 %vm673_vm0, %v20331_v61  ;;  %v26568_v61 = vld [vmem:[#allocation6_spill] sm:$0xff]  ;;  %v26569_v3 = vld [vmem:[#allocation7_spill] sm:$0xff] }
  0xaf   : > { %17797 = vmatprep.mubr.msk.f32.mxu0 %vm333_vm1, %v20061_v34  ;;  %17847 = vmatprep.mubr.msk.f32.mxu1 %vm333_vm1, %v20346_v31 }
  0xb0   : > { %17943 = vmatpush3.msk.msra.mxu1 %vm673_vm0, %v20336_v18  ;;  %17992 = vmatprep.subr.msk.mxu0 %vm673_vm0, %v20539_v35 }
  0xb1   : > { %17798 = vmatmul.mubr.msk.f32.gmra.mxu0 %vm333_vm1, %v20073_v36 }
  0xb2   : > { %17848 = vmatmul.mubr.msk.f32.gmra.mxu1 %vm333_vm1, %v20360_v11  ;;  %17800 = vmatprep.mubr.msk.f32.mxu0 %vm333_vm1, %v20077_v38 }
  0xb3   : > { %17850 = vmatprep.mubr.msk.f32.mxu1 %vm333_vm1, %v20364_v33 }
  0xb5   : > { %17801 = vmatmul.mubr.msk.f32.gmra.mxu0 %vm333_vm1, %v20089_v40 }
  0xb6   : > { %17851 = vmatmul.mubr.msk.f32.gmra.mxu1 %vm333_vm1, %v20372_v17  ;;  %17803 = vmatprep.mubr.msk.f32.mxu0 %vm333_vm1, %v20093_v42 }
  0xb7   : > { %17853 = vmatprep.mubr.msk.f32.mxu1 %vm333_vm1, %v20376_v37 }
  0xb9   : > { %17804 = vmatmul.mubr.msk.f32.gmra.mxu0 %vm333_vm1, %v20105_v44 }
  0xba   : > { %17854 = vmatmul.mubr.msk.f32.gmra.mxu1 %vm333_vm1, %v20384_v41  ;;  %17806 = vmatprep.mubr.msk.f32.mxu0 %vm333_vm1, %v20109_v46 }
  0xbb   : > { %17856 = vmatprep.mubr.msk.f32.mxu1 %vm333_vm1, %v20388_v39 }
  0xbd   : > { %17807 = vmatmul.mubr.msk.f32.gmra.mxu0 %vm333_vm1, %v20113_v48 }
  0xbe   : > { %17857 = vmatmul.mubr.msk.f32.gmra.mxu1 %vm333_vm1, %v20396_v45  ;;  %17809 = vmatprep.mubr.msk.f32.mxu0 %vm333_vm1, %v20123_v52 }
  0xbf   : > { %17859 = vmatprep.mubr.msk.f32.mxu1 %vm333_vm1, %v20400_v43 }
  0xc1   : > { %17810 = vmatmul.mubr.msk.f32.gmra.mxu0 %vm333_vm1, %v20157_v62 }
  0xc2   : > { %17860 = vmatmul.mubr.msk.f32.gmra.mxu1 %vm333_vm1, %v20408_v49  ;;  %17812 = vmatprep.mubr.msk.f32.mxu0 %vm333_vm1, %v20161_v0 }
  0xc3   : > { %17862 = vmatprep.mubr.msk.f32.mxu1 %vm333_vm1, %v20412_v47 }
  0xc5   : > { %17813 = vmatmul.mubr.msk.f32.gmra.mxu0 %vm333_vm1, %v20173_v2 }
  0xc6   : > { %17863 = vmatmul.mubr.msk.f32.gmra.mxu1 %vm333_vm1, %v20420_v63  ;;  %17815 = vmatprep.mubr.msk.f32.mxu0 %vm333_vm1, %v20177_v5 }
  0xc7   : > { %17865 = vmatprep.mubr.msk.f32.mxu1 %vm333_vm1, %v20424_v59 }
  0xc9   : > { %17816 = vmatmul.mubr.msk.f32.gmra.mxu0 %vm333_vm1, %v20189_v7 }
  0xca   : > { %17866 = vmatmul.mubr.msk.f32.gmra.mxu1 %vm333_vm1, %v20432_v4  ;;  %17818 = vmatprep.mubr.msk.f32.mxu0 %vm333_vm1, %v20193_v9 }
  0xcb   : > { %17868 = vmatprep.mubr.msk.f32.mxu1 %vm333_vm1, %v20436_v1 }
  0xcd   : > { %17819 = vmatmul.mubr.msk.f32.gmra.mxu0 %vm333_vm1, %v20205_v12 }
  0xce   : > { %17869 = vmatmul.mubr.msk.f32.gmra.mxu1 %vm333_vm1, %v20444_v8  ;;  %17821 = vmatprep.mubr.msk.f32.mxu0 %vm333_vm1, %v20209_v14 }
  0xcf   : > { %17871 = vmatprep.mubr.msk.f32.mxu1 %vm333_vm1, %v20448_v6 }
  0xd1   : > { %17822 = vmatmul.mubr.msk.f32.gmra.mxu0 %vm333_vm1, %v20228_v19 }
  0xd2   : > { %17872 = vmatmul.mubr.msk.f32.gmra.mxu1 %vm333_vm1, %v20456_v13  ;;  %17824 = vmatprep.mubr.msk.f32.mxu0 %vm333_vm1, %v20234_v21  ;;  %v26565_v13 = vld [vmem:[#allocation31_spill] sm:$0xff] }
  0xd3   : > { %17874 = vmatprep.mubr.msk.f32.mxu1 %vm333_vm1, %v20460_v10  ;;  %v20657_v10 = vld [vmem:[#allocation2 + $0x182] sm:$0xff] }
  0xd5   : > { %17825 = vmatmul.mubr.msk.f32.gmra.mxu0 %vm333_vm1, %v20248_v23 }
  0xd6   : > { %17875 = vmatmul.mubr.msk.f32.gmra.mxu1 %vm333_vm1, %v20468_v20  ;;  %17827 = vmatprep.mubr.msk.f32.mxu0 %vm333_vm1, %v20252_v25  ;;  %v20669_v20 = vld [vmem:[#allocation2 + $0x18a] sm:$0xff] }
  0xd7   : > { %17877 = vmatprep.mubr.msk.f32.mxu1 %vm333_vm1, %v20472_v15  ;;  %v20665_v15 = vld [vmem:[#allocation2 + $0x189] sm:$0xff] }
  0xd9   : > { %17828 = vmatmul.mubr.msk.f32.gmra.mxu0 %vm333_vm1, %v20264_v27 }
  0xda   : > { %17878 = vmatmul.mubr.msk.f32.gmra.mxu1 %vm333_vm1, %v20480_v24  ;;  %17830 = vmatprep.mubr.msk.f32.mxu0 %vm333_vm1, %v20268_v29 }
  0xdb   : > { %17880 = vmatprep.mubr.msk.f32.mxu1 %vm333_vm1, %v20484_v22  ;;  %v26566_v22 = vld [vmem:[#allocation4_spill] sm:$0xff] }
  0xdd   : > { %17831 = vmatmul.mubr.msk.f32.gmra.mxu0 %vm333_vm1, %v20280_v51 }
  0xde   : > { %17881 = vmatmul.mubr.msk.f32.gmra.mxu1 %vm333_vm1, %v20492_v28  ;;  %17833 = vmatprep.mubr.msk.f32.mxu0 %vm333_vm1, %v20284_v54 }
  0xdf   : > { %17883 = vmatprep.mubr.msk.f32.mxu1 %vm333_vm1, %v20496_v26  ;;  %v17646_v26 = vpop.f32.mrf.mxu1 }
  0xe1   : > { %17834 = vmatmul.mubr.msk.f32.gmra.mxu0 %vm333_vm1, %v20296_v56 }
  0xe2   : > { %17884 = vmatmul.mubr.msk.f32.gmra.mxu1 %vm333_vm1, %v20504_v53  ;;  %17836 = vmatprep.mubr.msk.f32.mxu0 %vm333_vm1, %v26564_v30  ;;  %v1067_v53 = vpop.f32.mrf.mxu1 }
  0xe3   : > { %17886 = vmatprep.mubr.msk.f32.mxu1 %vm333_vm1, %v20508_v50 }
  0xe5   : > { %17837 = vmatmul.mubr.msk.f32.gmra.mxu0 %vm333_vm1, %v26565_v13 }
  0xe6   : > { %17887 = vmatmul.mubr.msk.f32.gmra.mxu1 %vm333_vm1, %v20518_v57  ;;  %17839 = vmatprep.mubr.msk.f32.mxu0 %vm333_vm1, %v20655_v32  ;;  %v26567_v57 = vld [vmem:[#allocation5_spill] sm:$0xff] }
  0xe7   : > { %17889 = vmatprep.mubr.msk.f32.mxu1 %vm333_vm1, %v20657_v10  ;;  %v17596_v24 = vpop.f32.mrf.mxu0 }
  0xe8   : > { %v20679_v28 = vadd.f32 %v17646_v26, %v17596_v24 }
  0xe9   : > { %17840 = vmatmul.mubr.msk.f32.gmra.mxu0 %vm333_vm1, %v20665_v15  ;;  %v743_v50 = vpop.f32.mrf.mxu0 }
  0xea   : > { %17890 = vmatmul.mubr.msk.f32.gmra.mxu1 %vm333_vm1, %v20669_v20  ;;  %17894 = vmatprep.mubr.msk.f32.mxu0 %vm333_vm1, %v26566_v22  ;;  %v20685_v58 = vadd.f32 %v1067_v53, %v743_v50  ;;  %v26570_v22 = vld [vmem:[#allocation8_spill] sm:$0xff]  ;;  %v26571_v53 = vld [vmem:[#allocation9_spill] sm:$0xff] }
  0xeb   : > { %17944 = vmatprep.mubr.msk.f32.mxu1 %vm333_vm1, %v20061_v34 }
  0xed   : > { %17895 = vmatmul.mubr.msk.f32.vlgmr.msra.gmra.mxu0 %vm333_vm1, %v26567_v57  ;;  %v26572_v57 = vld [vmem:[#allocation10_spill] sm:$0xff] }
  0xee   : > { %17945 = vmatmul.mubr.msk.f32.vlgmr.msra.gmra.mxu1 %vm333_vm1, %v20073_v36  ;;  %17993 = vmatpush3.msk.msra.mxu0 %vm673_vm0, %v20539_v35 }
  0xef   : > { %17897 = vmatprep.mubr.msk.f32.mxu0 %vm333_vm1, %v26568_v61  ;;  %17947 = vmatprep.mubr.msk.f32.mxu1 %vm333_vm1, %v20077_v38 }
  0xf1   : > { %v17599_v34 = vpop.f32.mrf.mxu0  ;;  %17898 = vmatmul.mubr.msk.f32.gmra.mxu0 %vm333_vm1, %v26569_v3 }
  0xf2   : > { %v17649_v18 = vpop.f32.mrf.mxu1  ;;  %17948 = vmatmul.mubr.msk.f32.gmra.mxu1 %vm333_vm1, %v20089_v40  ;;  %17900 = vmatprep.mubr.msk.f32.mxu0 %vm333_vm1, %v26570_v22  ;;  %v26573_v22 = vld [vmem:[#allocation11_spill] sm:$0xff] }
  0xf3   : > { %v20697_v36 = vadd.f32 %v17649_v18, %v17599_v34  ;;  %17950 = vmatprep.mubr.msk.f32.mxu1 %vm333_vm1, %v20093_v42  ;;  %v753_v35 = vpop.f32.mrf.mxu0 }
  0xf4   : > { %v1077_v24 = vpop.f32.mrf.mxu1 }
  0xf5   : > { %v20703_v26 = vadd.f32 %v1077_v24, %v753_v35  ;;  %v17602_v38 = vpop.f32.mrf.mxu0  ;;  %17901 = vmatmul.mubr.msk.f32.gmra.mxu0 %vm333_vm1, %v26571_v53  ;;  %v26574_v35 = vld [vmem:[#allocation12_spill] sm:$0xff] }
  0xf6   : > { %v17652_v50 = vpop.f32.mrf.mxu1  ;;  %17951 = vmatmul.mubr.msk.f32.gmra.mxu1 %vm333_vm1, %v20105_v44  ;;  %17903 = vmatprep.mubr.msk.f32.mxu0 %vm333_vm1, %v26572_v57  ;;  %v26575_v57 = vld [vmem:[#allocation13_spill] sm:$0xff] }
  0xf7   : > { %v20709_v40 = vadd.f32 %v17652_v50, %v17602_v38  ;;  %17953 = vmatprep.mubr.msk.f32.mxu1 %vm333_vm1, %v20109_v46  ;;  %v763_v42 = vpop.f32.mrf.mxu0 }
  0xf8   : > { %v1087_v61 = vpop.f32.mrf.mxu1 }
  0xf9   : > { %v20715_v34 = vadd.f32 %v1087_v61, %v763_v42  ;;  %v17605_v18 = vpop.f32.mrf.mxu0  ;;  %17904 = vmatmul.mubr.msk.f32.gmra.mxu0 %vm333_vm1, %v26573_v22  ;;  %v26576_v42 = vld [vmem:[#allocation14_spill] sm:$0xff] }
  0xfa   : > { %v17655_v3 = vpop.f32.mrf.mxu1  ;;  %17954 = vmatmul.mubr.msk.f32.gmra.mxu1 %vm333_vm1, %v20113_v48  ;;  %17906 = vmatprep.mubr.msk.f32.mxu0 %vm333_vm1, %v26574_v35  ;;  %v26577_v35 = vld [vmem:[#allocation15_spill] sm:$0xff] }
  0xfb   : > { %v20721_v44 = vadd.f32 %v17655_v3, %v17605_v18  ;;  %17956 = vmatprep.mubr.msk.f32.mxu1 %vm333_vm1, %v20123_v52  ;;  %v773_v46 = vpop.f32.mrf.mxu0 }
  0xfc   : > { %v1097_v24 = vpop.f32.mrf.mxu1 }
  0xfd   : > { %v20727_v38 = vadd.f32 %v1097_v24, %v773_v46  ;;  %v17608_v50 = vpop.f32.mrf.mxu0  ;;  %17907 = vmatmul.mubr.msk.f32.gmra.mxu0 %vm333_vm1, %v26575_v57  ;;  %v26578_v46 = vld [vmem:[#allocation16_spill] sm:$0xff] }
  0xfe   : > { %v17658_v53 = vpop.f32.mrf.mxu1  ;;  %17957 = vmatmul.mubr.msk.f32.gmra.mxu1 %vm333_vm1, %v20157_v62  ;;  %17909 = vmatprep.mubr.msk.f32.mxu0 %vm333_vm1, %v26576_v42  ;;  %v26579_v42 = vld [vmem:[#allocation17_spill] sm:$0xff] }
  0xff   : > { %v20733_v48 = vadd.f32 %v17658_v53, %v17608_v50  ;;  %17959 = vmatprep.mubr.msk.f32.mxu1 %vm333_vm1, %v20161_v0  ;;  %v783_v52 = vpop.f32.mrf.mxu0 }
 0x100   : > { %v1107_v61 = vpop.f32.mrf.mxu1 }
 0x101   : > { %v20739_v18 = vadd.f32 %v1107_v61, %v783_v52  ;;  %v17611_v3 = vpop.f32.mrf.mxu0  ;;  %17910 = vmatmul.mubr.msk.f32.gmra.mxu0 %vm333_vm1, %v26577_v35  ;;  %v26580_v52 = vld [vmem:[#allocation18_spill] sm:$0xff] }
 0x102   : > { %v17661_v22 = vpop.f32.mrf.mxu1  ;;  %17960 = vmatmul.mubr.msk.f32.gmra.mxu1 %vm333_vm1, %v20173_v2  ;;  %17912 = vmatprep.mubr.msk.f32.mxu0 %vm333_vm1, %v26578_v46  ;;  %v26581_v46 = vld [vmem:[#allocation19_spill] sm:$0xff] }
 0x103   : > { %v20745_v62 = vadd.f32 %v17661_v22, %v17611_v3  ;;  %17962 = vmatprep.mubr.msk.f32.mxu1 %vm333_vm1, %v20177_v5  ;;  %v793_v0 = vpop.f32.mrf.mxu0 }
 0x104   : > { %v1117_v24 = vpop.f32.mrf.mxu1 }
 0x105   : > { %v20751_v50 = vadd.f32 %v1117_v24, %v793_v0  ;;  %v17614_v53 = vpop.f32.mrf.mxu0  ;;  %17913 = vmatmul.mubr.msk.f32.gmra.mxu0 %vm333_vm1, %v26579_v42  ;;  %v26582_v0 = vld [vmem:[#allocation20_spill] sm:$0xff] }
 0x106   : > { %v17664_v57 = vpop.f32.mrf.mxu1  ;;  %17963 = vmatmul.mubr.msk.f32.gmra.mxu1 %vm333_vm1, %v20189_v7  ;;  %17915 = vmatprep.mubr.msk.f32.mxu0 %vm333_vm1, %v26580_v52  ;;  %v26583_v52 = vld [vmem:[#allocation21_spill] sm:$0xff] }
 0x107   : > { %v20757_v2 = vadd.f32 %v17664_v57, %v17614_v53  ;;  %17965 = vmatprep.mubr.msk.f32.mxu1 %vm333_vm1, %v20193_v9  ;;  %v803_v5 = vpop.f32.mrf.mxu0 }
 0x108   : > { %v1127_v61 = vpop.f32.mrf.mxu1 }
 0x109   : > { %v20763_v3 = vadd.f32 %v1127_v61, %v803_v5  ;;  %v17617_v22 = vpop.f32.mrf.mxu0  ;;  %17916 = vmatmul.mubr.msk.f32.gmra.mxu0 %vm333_vm1, %v26581_v46  ;;  %v26584_v5 = vld [vmem:[#allocation22_spill] sm:$0xff]  ;;  %v26585_v46 = vld [vmem:[#allocation23_spill] sm:$0xff] }
 0x10a   : > { %v17667_v35 = vpop.f32.mrf.mxu1  ;;  %17966 = vmatmul.mubr.msk.f32.gmra.mxu1 %vm333_vm1, %v20205_v12  ;;  %17918 = vmatprep.mubr.msk.f32.mxu0 %vm333_vm1, %v26582_v0  ;;  %v26586_v0 = vld [vmem:[#allocation24_spill] sm:$0xff] }
 0x10b   : > { %v20769_v7 = vadd.f32 %v17667_v35, %v17617_v22  ;;  %17968 = vmatprep.mubr.msk.f32.mxu1 %vm333_vm1, %v20209_v14  ;;  %v813_v9 = vpop.f32.mrf.mxu0 }
 0x10c   : > { %v1137_v24 = vpop.f32.mrf.mxu1 }
 0x10d   : > { %v20775_v53 = vadd.f32 %v1137_v24, %v813_v9  ;;  %v17620_v57 = vpop.f32.mrf.mxu0  ;;  %17919 = vmatmul.mubr.msk.f32.gmra.mxu0 %vm333_vm1, %v26583_v52  ;;  %v26588_v52 = vld [vmem:[#allocation26_spill] sm:$0xff] }
 0x10e   : > { %v17670_v42 = vpop.f32.mrf.mxu1  ;;  %17969 = vmatmul.mubr.msk.f32.gmra.mxu1 %vm333_vm1, %v20228_v19  ;;  %17921 = vmatprep.mubr.msk.f32.mxu0 %vm333_vm1, %v26584_v5 }
 0x10f   : > { %v20781_v12 = vadd.f32 %v17670_v42, %v17620_v57  ;;  %17971 = vmatprep.mubr.msk.f32.mxu1 %vm333_vm1, %v20234_v21  ;;  %v20787_v14 = vpop.f32.mrf.mxu0  ;;  %v26587_v42 = vld [vmem:[#allocation25_spill] sm:$0xff] }
 0x110   : > { %v20789_v61 = vpop.f32.mrf.mxu1 }
 0x111   : > { %v17623_v22 = vpop.f32.mrf.mxu0  ;;  %17922 = vmatmul.mubr.msk.f32.gmra.mxu0 %vm333_vm1, %v26585_v46  ;;  %v26589_v46 = vld [vmem:[#allocation27_spill] sm:$0xff] }
 0x112   : > { %v17673_v35 = vpop.f32.mrf.mxu1  ;;  %17972 = vmatmul.mubr.msk.f32.gmra.mxu1 %vm333_vm1, %v20248_v23  ;;  %17924 = vmatprep.mubr.msk.f32.mxu0 %vm333_vm1, %v26586_v0  ;;  %v26590_v0 = vld [vmem:[#allocation28_spill] sm:$0xff] }
 0x113   : > { %v20795_v19 = vadd.f32 %v17673_v35, %v17623_v22  ;;  %17974 = vmatprep.mubr.msk.f32.mxu1 %vm333_vm1, %v20252_v25  ;;  %v20801_v21 = vpop.f32.mrf.mxu0 }
 0x114   : > { %v20803_v9 = vpop.f32.mrf.mxu1 }
 0x115   : > { %v17626_v24 = vpop.f32.mrf.mxu0  ;;  %17925 = vmatmul.mubr.msk.f32.gmra.mxu0 %vm333_vm1, %v26587_v42 }
 0x116   : > { %v17676_v57 = vpop.f32.mrf.mxu1  ;;  %17975 = vmatmul.mubr.msk.f32.gmra.mxu1 %vm333_vm1, %v20264_v27  ;;  %17927 = vmatprep.mubr.msk.f32.mxu0 %vm333_vm1, %v26588_v52  ;;  %v26591_v52 = vld [vmem:[#allocation29_spill] sm:$0xff] }
 0x117   : > { %v20809_v23 = vadd.f32 %v17676_v57, %v17626_v24  ;;  %17977 = vmatprep.mubr.msk.f32.mxu1 %vm333_vm1, %v20268_v29  ;;  %v20815_v25 = vpop.f32.mrf.mxu0 }
 0x118   : > { %v20817_v5 = vpop.f32.mrf.mxu1 }
 0x119   : > { %v17629_v22 = vpop.f32.mrf.mxu0  ;;  %17928 = vmatmul.mubr.msk.f32.gmra.mxu0 %vm333_vm1, %v26589_v46 }
 0x11a   : > { %v17679_v35 = vpop.f32.mrf.mxu1  ;;  %17978 = vmatmul.mubr.msk.f32.gmra.mxu1 %vm333_vm1, %v20280_v51  ;;  %17930 = vmatprep.mubr.msk.f32.mxu0 %vm333_vm1, %v26590_v0  ;;  %v26593_v0 = vld [vmem:[#allocation32_spill] sm:$0xff] }
 0x11b   : > { %v20823_v27 = vadd.f32 %v17679_v35, %v17629_v22  ;;  %17980 = vmatprep.mubr.msk.f32.mxu1 %vm333_vm1, %v20284_v54  ;;  %v20829_v29 = vpop.f32.mrf.mxu0 }
 0x11c   : > { %v20831_v24 = vpop.f32.mrf.mxu1 }
 0x11d   : > { %v17632_v57 = vpop.f32.mrf.mxu0  ;;  %17931 = vmatmul.mubr.msk.f32.gmra.mxu0 %vm333_vm1, %v26591_v52 }
 0x11e   : > { %v17682_v42 = vpop.f32.mrf.mxu1  ;;  %17981 = vmatmul.mubr.msk.f32.gmra.mxu1 %vm333_vm1, %v20296_v56  ;;  %17933 = vmatprep.mubr.msk.f32.mxu0 %vm333_vm1, %v20302_v60 }
 0x11f   : > { %v20837_v51 = vadd.f32 %v17682_v42, %v17632_v57  ;;  %17983 = vmatprep.mubr.msk.f32.mxu1 %vm333_vm1, %v26564_v30  ;;  %v20843_v54 = vpop.f32.mrf.mxu0  ;;  %v2817_v57 = vld [vmem:[#allocation2 + $0x198] sm:$0xff] }
 0x120   : > { %v20845_v22 = vpop.f32.mrf.mxu1  ;;  %v3207_v42 = vld [vmem:[#allocation2 + $0x199] sm:$0xff] }
 0x121   : > { %26592 = vst [vmem:[#allocation30_spill] sm:$0xff] %v20845_v22  ;;  %v17635_v35 = vpop.f32.mrf.mxu0  ;;  %17934 = vmatmul.mubr.msk.f32.gmra.mxu0 %vm333_vm1, %v20314_v16 }
 0x122   : > { %v17685_v46 = vpop.f32.mrf.mxu1  ;;  %17984 = vmatmul.mubr.msk.f32.gmra.mxu1 %vm333_vm1, %v26565_v13  ;;  %17936 = vmatprep.mubr.msk.f32.mxu0 %vm333_vm1, %v26593_v0  ;;  %v2818_v13 = vld [vmem:[#allocation2 + $0x1a0] sm:$0xff] }
 0x123   : > { %v20851_v56 = vadd.f32 %v17685_v46, %v17635_v35  ;;  %17986 = vmatprep.mubr.msk.f32.mxu1 %vm333_vm1, %v20655_v32  ;;  %v20857_v60 = vpop.f32.mrf.mxu0  ;;  %v3208_v32 = vld [vmem:[#allocation2 + $0x1a1] sm:$0xff] }
 0x124   : > { %26594 = vst [vmem:[#allocation31_spill] sm:$0xff] %v20857_v60  ;;  %v20859_v30 = vpop.f32.mrf.mxu1 }
 0x125   : > { %26595 = vst [vmem:[#allocation4_spill] sm:$0xff] %v20859_v30  ;;  %v17638_v52 = vpop.f32.mrf.mxu0  ;;  %17937 = vmatmul.mubr.msk.f32.gmra.mxu0 %vm333_vm1, %v20522_v55 }
 0x126   : > { %v17688_v22 = vpop.f32.mrf.mxu1  ;;  %17987 = vmatmul.mubr.msk.f32.gmra.mxu1 %vm333_vm1, %v20665_v15  ;;  %17939 = vmatprep.mubr.msk.f32.mxu0 %vm333_vm1, %v2817_v57 }
 0x127   : > { %v20865_v16 = vadd.f32 %v17688_v22, %v17638_v52  ;;  %17989 = vmatprep.mubr.msk.f32.mxu1 %vm333_vm1, %v3207_v42  ;;  %v20869_v35 = vpop.f32.mrf.mxu0 }
 0x128   : > { %26596 = vst [vmem:[#allocation5_spill] sm:$0xff] %v20869_v35  ;;  %v20871_v46 = vpop.f32.mrf.mxu1 }
 0x129   : > { %26597 = vst [vmem:[#allocation6_spill] sm:$0xff] %v20871_v46  ;;  %v17641_v0 = vpop.f32.mrf.mxu0  ;;  %17940 = vmatmul.mubr.msk.f32.gmra.mxu0 %vm333_vm1, %v2818_v13 }
 0x12a   : > { %v17691_v30 = vpop.f32.mrf.mxu1  ;;  %17990 = vmatmul.mubr.msk.f32.gmra.mxu1 %vm333_vm1, %v3208_v32  ;;  %17994 = vmatprep.mubr.msk.f32.mxu0 %vm333_vm1, %v20346_v31 }
 0x12b   : > { %v20875_v55 = vadd.f32 %v17691_v30, %v17641_v0  ;;  %v20879_v15 = vpop.f32.mrf.mxu0 }
 0x12c   : > { %26598 = vst [vmem:[#allocation7_spill] sm:$0xff] %v20879_v15  ;;  %v20881_v22 = vpop.f32.mrf.mxu1 }
 0x12d   : > { %26599 = vst [vmem:[#allocation8_spill] sm:$0xff] %v20881_v22  ;;  %v17696_v57 = vpop.f32.mrf.mxu0  ;;  %17995 = vmatmul.mubr.msk.f32.vlgmr.msra.gmra.mxu0 %vm333_vm1, %v20360_v11 }
 0x12e   : > { %v17746_v42 = vpop.f32.mrf.mxu1  ;;  %v1585_v52 = vadd.f32 %v17696_v57, %v20679_v28  ;;  %17997 = vmatprep.mubr.msk.f32.mxu0 %vm333_vm1, %v20364_v33 }
 0x12f   : > { %v1425_v13 = vpop.f32.mrf.mxu0 }
 0x130   : > { %v20888_v30 = vpop.f32.mrf.mxu1  ;;  %v20891_v32 = vadd.f32 %v1425_v13, %v20685_v58  ;;  %v20893_v31 = vadd.f32 %v17746_v42, %v1585_v52 }
 0x131   : > { %v17699_v0 = vpop.f32.mrf.mxu0  ;;  %17998 = vmatmul.mubr.msk.f32.gmra.mxu0 %vm333_vm1, %v20372_v17 }
 0x132   : > { %v17749_v22 = vpop.f32.mrf.mxu1  ;;  %v1587_v11 = vadd.f32 %v17699_v0, %v20697_v36  ;;  %18000 = vmatprep.mubr.msk.f32.mxu0 %vm333_vm1, %v20376_v37 }
 0x133   : > { %v1435_v28 = vpop.f32.mrf.mxu0 }
 0x134   : > { %v20900_v33 = vpop.f32.mrf.mxu1  ;;  %v20903_v57 = vadd.f32 %v1435_v28, %v20703_v26  ;;  %v20905_v58 = vadd.f32 %v17749_v22, %v1587_v11 }
 0x135   : > { %v17702_v42 = vpop.f32.mrf.mxu0  ;;  %18001 = vmatmul.mubr.msk.f32.gmra.mxu0 %vm333_vm1, %v20384_v41 }
 0x136   : > { %v17752_v52 = vpop.f32.mrf.mxu1  ;;  %v1589_v17 = vadd.f32 %v17702_v42, %v20709_v40  ;;  %18003 = vmatprep.mubr.msk.f32.mxu0 %vm333_vm1, %v20388_v39  ;;  %v15159_v39 = vld [vmem:[%s26480_s3 + $0x78] sm:$0xff] }
 0x137   : > { %v1445_v36 = vpop.f32.mrf.mxu0  ;;  %18042 = vmatprep.subr.mxu1 %v15159_v39 }
 0x138   : > { %v20912_v37 = vpop.f32.mrf.mxu1  ;;  %v20915_v13 = vadd.f32 %v1445_v36, %v20715_v34  ;;  %v20917_v26 = vadd.f32 %v17752_v52, %v1589_v17  ;;  %18043 = vmatpush3.msra.mxu1 %v15159_v39 }
 0x139   : > { %v17705_v22 = vpop.f32.mrf.mxu0  ;;  %18004 = vmatmul.mubr.msk.f32.gmra.mxu0 %vm333_vm1, %v20396_v45 }
 0x13a   : > { %v17755_v0 = vpop.f32.mrf.mxu1  ;;  %v1591_v41 = vadd.f32 %v17705_v22, %v20721_v44  ;;  %18006 = vmatprep.mubr.msk.f32.mxu0 %vm333_vm1, %v20400_v43 }
 0x13b   : > { %v1455_v40 = vpop.f32.mrf.mxu0 }
 0x13c   : > { %v20927_v11 = vpop.f32.mrf.mxu1  ;;  %v20930_v34 = vadd.f32 %v1455_v40, %v20727_v38  ;;  %v20932_v28 = vadd.f32 %v17755_v0, %v1591_v41 }
 0x13d   : > { %v17708_v45 = vpop.f32.mrf.mxu0  ;;  %18007 = vmatmul.mubr.msk.f32.gmra.mxu0 %vm333_vm1, %v20408_v49 }
 0x13e   : > { %v17758_v44 = vpop.f32.mrf.mxu1  ;;  %v1593_v43 = vadd.f32 %v17708_v45, %v20733_v48  ;;  %18009 = vmatprep.mubr.msk.f32.mxu0 %vm333_vm1, %v20412_v47  ;;  %v15158_v47 = vld [vmem:[%s26480_s3 + $0x70] sm:$0xff] }
 0x13f   : > { %v1465_v42 = vpop.f32.mrf.mxu0  ;;  %18044 = vmatprep.subr.mxu1 %v15158_v47 }
 0x140   : > { %v20939_v52 = vpop.f32.mrf.mxu1  ;;  %v20942_v17 = vadd.f32 %v1465_v42, %v20739_v18  ;;  %v20944_v38 = vadd.f32 %v17758_v44, %v1593_v43  ;;  %18045 = vmatpush3.msra.mxu1 %v15158_v47 }
 0x141   : > { %v17711_v36 = vpop.f32.mrf.mxu0  ;;  %18010 = vmatmul.mubr.msk.f32.gmra.mxu0 %vm333_vm1, %v20420_v63 }
 0x142   : > { %v17761_v22 = vpop.f32.mrf.mxu1  ;;  %v1595_v49 = vadd.f32 %v17711_v36, %v20745_v62  ;;  %18012 = vmatprep.mubr.msk.f32.mxu0 %vm333_vm1, %v20424_v59  ;;  %v3585_v36 = vld [vmem:[#allocation2 + $0x10a] sm:$0xff] }
 0x143   : > { %v1475_v48 = vpop.f32.mrf.mxu0 }
 0x144   : > { %v20954_v0 = vpop.f32.mrf.mxu1  ;;  %v20957_v18 = vadd.f32 %v1475_v48, %v20751_v50  ;;  %v20959_v41 = vadd.f32 %v17761_v22, %v1595_v49  ;;  %v1148_v49 = vadd.f32 %v20789_v61, %v20787_v14  ;;  %v3586_v48 = vld [vmem:[#allocation2 + $0x112] sm:$0xff]  ;;  %v15156_v14 = vld [vmem:[%s26480_s3 + $0x60] sm:$0xff] }
 0x145   : > { %v17714_v63 = vpop.f32.mrf.mxu0  ;;  %18013 = vmatmul.mubr.msk.f32.gmra.mxu0 %vm333_vm1, %v20432_v4 }
 0x146   : > { %v17764_v62 = vpop.f32.mrf.mxu1  ;;  %v1597_v59 = vadd.f32 %v17714_v63, %v20757_v2  ;;  %18015 = vmatprep.mubr.msk.f32.mxu0 %vm333_vm1, %v20436_v1  ;;  %v3584_v2 = vld [vmem:[#allocation2 + $0xfa] sm:$0xff]  ;;  %v15157_v1 = vld [vmem:[%s26480_s3 + $0x68] sm:$0xff] }
 0x147   : > { %v1485_v39 = vpop.f32.mrf.mxu0  ;;  %18046 = vmatprep.subr.mxu1 %v15157_v1 }
 0x148   : > { %v20966_v40 = vpop.f32.mrf.mxu1  ;;  %v20969_v45 = vadd.f32 %v1485_v39, %v20763_v3  ;;  %v20971_v50 = vadd.f32 %v17764_v62, %v1597_v59  ;;  %18047 = vmatpush3.msra.mxu1 %v15157_v1  ;;  %v3589_v1 = vld [vmem:[#allocation2 + $0x13a] sm:$0xff] }
 0x149   : > { %26600 = vst [vmem:[#allocation9_spill] sm:$0xff] %v20966_v40  ;;  %v17717_v44 = vpop.f32.mrf.mxu0  ;;  %18016 = vmatmul.mubr.msk.f32.gmra.mxu0 %vm333_vm1, %v20444_v8  ;;  %18048 = vmatprep.subr.mxu1 %v15156_v14 }
 0x14a   : > { %26601 = vst [vmem:[#allocation10_spill] sm:$0xff] %v20969_v45  ;;  %v17767_v43 = vpop.f32.mrf.mxu1  ;;  %v1599_v4 = vadd.f32 %v17717_v44, %v20769_v7  ;;  %18018 = vmatprep.mubr.msk.f32.mxu0 %vm333_vm1, %v20448_v6  ;;  %18049 = vmatpush3.msra.mxu1 %v15156_v14 }
 0x14b   : > { %v1495_v42 = vpop.f32.mrf.mxu0 }
 0x14c   : > { %v20981_v3 = vpop.f32.mrf.mxu1  ;;  %v20984_v22 = vadd.f32 %v1495_v42, %v20775_v53  ;;  %v20986_v8 = vadd.f32 %v17767_v43, %v1599_v4  ;;  %v3587_v53 = vld [vmem:[#allocation2 + $0x122] sm:$0xff] }
 0x14d   : > { %26602 = vst [vmem:[#allocation11_spill] sm:$0xff] %v20981_v3  ;;  %v17720_v7 = vpop.f32.mrf.mxu0  ;;  %18019 = vmatmul.mubr.msk.f32.gmra.mxu0 %vm333_vm1, %v3584_v2 }
 0x14e   : > { %26603 = vst [vmem:[#allocation12_spill] sm:$0xff] %v20984_v22  ;;  %v17770_v6 = vpop.f32.mrf.mxu1  ;;  %v1601_v47 = vadd.f32 %v17720_v7, %v20781_v12  ;;  %18021 = vmatprep.mubr.msk.f32.mxu0 %vm333_vm1, %v3585_v36  ;;  %v3588_v12 = vld [vmem:[#allocation2 + $0x12a] sm:$0xff] }
 0x14f   : > { %v1505_v63 = vpop.f32.mrf.mxu0 }
 0x150   : > { %v20993_v62 = vpop.f32.mrf.mxu1  ;;  %v20995_v59 = vadd.f32 %v1505_v63, %v1148_v49  ;;  %v20997_v39 = vadd.f32 %v17770_v6, %v1601_v47  ;;  %v3590_v6 = vld [vmem:[#allocation2 + $0x142] sm:$0xff] }
 0x151   : > { %26604 = vst [vmem:[#allocation13_spill] sm:$0xff] %v20993_v62  ;;  %v17723_v44 = vpop.f32.mrf.mxu0  ;;  %18022 = vmatmul.mubr.msk.f32.gmra.mxu0 %vm333_vm1, %v3586_v48  ;;  %v3591_v48 = vld [vmem:[#allocation2 + $0x152] sm:$0xff] }
 0x152   : > { %26605 = vst [vmem:[#allocation14_spill] sm:$0xff] %v20995_v59  ;;  %v17773_v43 = vpop.f32.mrf.mxu1  ;;  %v1603_v4 = vadd.f32 %v17723_v44, %v20795_v19  ;;  %18024 = vmatprep.mubr.msk.f32.mxu0 %vm333_vm1, %v3587_v53 }
 0x153   : > { %v21005_v61 = vpop.f32.mrf.mxu0 }
 0x154   : > { %26606 = vst [vmem:[#allocation15_spill] sm:$0xff] %v21005_v61  ;;  %v21007_v2 = vpop.f32.mrf.mxu1  ;;  %v21009_v42 = vadd.f32 %v17773_v43, %v1603_v4  ;;  %v3592_v4 = vld [vmem:[#allocation2 + $0x15a] sm:$0xff] }
 0x155   : > { %26607 = vst [vmem:[#allocation16_spill] sm:$0xff] %v21007_v2  ;;  %v17726_v36 = vpop.f32.mrf.mxu0  ;;  %18025 = vmatmul.mubr.msk.f32.gmra.mxu0 %vm333_vm1, %v3588_v12 }
 0x156   : > { %v17776_v19 = vpop.f32.mrf.mxu1  ;;  %v1605_v7 = vadd.f32 %v17726_v36, %v20809_v23  ;;  %18027 = vmatprep.mubr.msk.f32.mxu0 %vm333_vm1, %v3589_v1  ;;  %v15155_v23 = vld [vmem:[%s26480_s3 + $0x58] sm:$0xff]  ;;  %v3593_v1 = vld [vmem:[#allocation2 + $0x16a] sm:$0xff] }
 0x157   : > { %v21014_v49 = vpop.f32.mrf.mxu0  ;;  %18050 = vmatprep.subr.mxu1 %v15155_v23 }
 0x158   : > { %26608 = vst [vmem:[#allocation17_spill] sm:$0xff] %v21014_v49  ;;  %v21016_v47 = vpop.f32.mrf.mxu1  ;;  %v21018_v63 = vadd.f32 %v17776_v19, %v1605_v7  ;;  %18051 = vmatpush3.msra.mxu1 %v15155_v23 }
 0x159   : > { %26609 = vst [vmem:[#allocation18_spill] sm:$0xff] %v21016_v47  ;;  %v17729_v53 = vpop.f32.mrf.mxu0  ;;  %18028 = vmatmul.mubr.msk.f32.gmra.mxu0 %vm333_vm1, %v3590_v6  ;;  %v3594_v6 = vld [vmem:[#allocation2 + $0x172] sm:$0xff] }
 0x15a   : > { %v17779_v44 = vpop.f32.mrf.mxu1  ;;  %v1607_v43 = vadd.f32 %v17729_v53, %v20823_v27  ;;  %18030 = vmatprep.mubr.msk.f32.mxu0 %vm333_vm1, %v3591_v48 }
 0x15b   : > { %v21026_v12 = vpop.f32.mrf.mxu0 }
 0x15c   : > { %26610 = vst [vmem:[#allocation19_spill] sm:$0xff] %v21026_v12  ;;  %v21028_v14 = vpop.f32.mrf.mxu1  ;;  %v21030_v36 = vadd.f32 %v17779_v44, %v1607_v43 }
 0x15d   : > { %26611 = vst [vmem:[#allocation20_spill] sm:$0xff] %v21028_v14  ;;  %v17732_v19 = vpop.f32.mrf.mxu0  ;;  %18031 = vmatmul.mubr.msk.f32.gmra.mxu0 %vm333_vm1, %v3592_v4 }
 0x15e   : > { %v17782_v27 = vpop.f32.mrf.mxu1  ;;  %v1609_v7 = vadd.f32 %v17732_v19, %v20837_v51  ;;  %18033 = vmatprep.mubr.msk.f32.mxu0 %vm333_vm1, %v3593_v1  ;;  %v15154_v51 = vld [vmem:[%s26480_s3 + $0x50] sm:$0xff]  ;;  %v3597_v1 = vld [vmem:[#allocation2 + $0x19a] sm:$0xff] }
 0x15f   : > { %v21035_v48 = vpop.f32.mrf.mxu0  ;;  %18052 = vmatprep.subr.mxu1 %v15154_v51 }
 0x160   : > { %26612 = vst [vmem:[#allocation21_spill] sm:$0xff] %v21035_v48  ;;  %v21037_v53 = vpop.f32.mrf.mxu1  ;;  %v21039_v12 = vadd.f32 %v17782_v27, %v1609_v7  ;;  %18053 = vmatpush3.msra.mxu1 %v15154_v51  ;;  %v15153_v51 = vld [vmem:[%s26480_s3 + $0x48] sm:$0xff] }
 0x161   : > { %26613 = vst [vmem:[#allocation22_spill] sm:$0xff] %v21037_v53  ;;  %v17735_v14 = vpop.f32.mrf.mxu0  ;;  %18034 = vmatmul.mubr.msk.f32.gmra.mxu0 %vm333_vm1, %v3594_v6  ;;  %18054 = vmatprep.subr.mxu1 %v15153_v51 }
 0x162   : > { %v17785_v44 = vpop.f32.mrf.mxu1  ;;  %v1611_v43 = vadd.f32 %v17735_v14, %v20851_v56  ;;  %18036 = vmatprep.mubr.msk.f32.mxu0 %vm333_vm1, %v20657_v10  ;;  %v3598_v14 = vld [vmem:[#allocation2 + $0x1a2] sm:$0xff]  ;;  %18055 = vmatpush3.msra.mxu1 %v15153_v51 }
 0x163   : > { %v21048_v4 = vpop.f32.mrf.mxu0 }
 0x164   : > { %26614 = vst [vmem:[#allocation23_spill] sm:$0xff] %v21048_v4  ;;  %v21050_v23 = vpop.f32.mrf.mxu1  ;;  %v21052_v19 = vadd.f32 %v17785_v44, %v1611_v43  ;;  %v4100_v44 = vld [vmem:[%s26480_s3 + $0x38] sm:$0xff] }
 0x165   : > { %26615 = vst [vmem:[#allocation24_spill] sm:$0xff] %v21050_v23  ;;  %v17738_v27 = vpop.f32.mrf.mxu0  ;;  %18037 = vmatmul.mubr.msk.f32.gmra.mxu0 %vm333_vm1, %v20669_v20  ;;  %18106 = vmatprep.subr.mxu0 %v4100_v44 }
 0x166   : > { %v17788_v56 = vpop.f32.mrf.mxu1  ;;  %v1613_v10 = vadd.f32 %v17738_v27, %v20865_v16  ;;  %18039 = vmatprep.mubr.msk.f32.mxu0 %vm333_vm1, %v3597_v1  ;;  %18107 = vmatpush3.msra.mxu0 %v4100_v44  ;;  %v4099_v1 = vld [vmem:[%s26480_s3 + $0x30] sm:$0xff] }
 0x167   : > { %v21058_v7 = vpop.f32.mrf.mxu0  ;;  %18108 = vmatprep.subr.mxu0 %v4099_v1 }
 0x168   : > { %26616 = vst [vmem:[#allocation25_spill] sm:$0xff] %v21058_v7  ;;  %v21060_v6 = vpop.f32.mrf.mxu1  ;;  %v21062_v23 = vadd.f32 %v17788_v56, %v1613_v10  ;;  %18109 = vmatpush3.msra.mxu0 %v4099_v1  ;;  %v26620_v1 = vmov 0.0  }
 0x169   : > { %26617 = vst [vmem:[#allocation26_spill] sm:$0xff] %v21060_v6  ;;  %v17741_v43 = vpop.f32.mrf.mxu0  ;;  %18040 = vmatmul.mubr.msk.f32.gmra.mxu0 %vm333_vm1, %v3598_v14  ;;  %395 = vst.msk [vmem:[#allocation3 + $0x20] sm:$0xff] %vm389_vm3, %v26620_v1 }
 0x16a   : > { %v17791_v20 = vpop.f32.mrf.mxu1  ;;  %v1615_v16 = vadd.f32 %v17741_v43, %v20875_v55  ;;  %v4098_v55 = vld [vmem:[%s26480_s3 + $0x28] sm:$0xff]  ;;  %396 = vst.msk [vmem:[#allocation3 + $0x28] sm:$0x3] %vm392_vm4, %v26620_v1  ;;  %393 = vst.msk [vmem:[#allocation3 + $0x10] sm:$0x3] %vm392_vm4, %v26620_v1 }
 0x16b   : > { %v21075_v27 = vpop.f32.mrf.mxu0  ;;  %18110 = vmatprep.subr.mxu0 %v4098_v55  ;;  %390 = vst.msk [vmem:[#allocation3] sm:$0xff] %vm389_vm3, %v26620_v1  ;;  %391 = vst.msk [vmem:[#allocation3 + $0x8] sm:$0xff] %vm389_vm3, %v26620_v1 }
 0x16c   : > { %26618 = vst [vmem:[#allocation27_spill] sm:$0xff] %v21075_v27  ;;  %v21077_v56 = vpop.f32.mrf.mxu1  ;;  %v21079_v10 = vadd.f32 %v17791_v20, %v1615_v16  ;;  %18111 = vmatpush3.msra.mxu0 %v4098_v55  ;;  %v4097_v20 = vld [vmem:[%s26480_s3 + $0x20] sm:$0xff]  ;;  %394 = vst.msk [vmem:[#allocation3 + $0x18] sm:$0xff] %vm389_vm3, %v26620_v1  ;;  %v4095_v27 = vld [vmem:[%s26480_s3 + $0x10] sm:$0xff] }
 0x16d   : > { %26619 = vst [vmem:[#allocation28_spill] sm:$0xff] %v21077_v56  ;;  %v17796_v14 = vpop.f32.mrf.mxu0  ;;  %397 = vst.msk [vmem:[#allocation3 + $0x30] sm:$0xff] %vm389_vm3, %v26620_v1  ;;  %18112 = vmatprep.subr.mxu0 %v4097_v20 }
 0x16e   : > { %v21084_v44 = vpop.f32.mrf.mxu1  ;;  %v21087_v43 = vadd.f32 %v17796_v14, %v20893_v31  ;;  %398 = vst.msk [vmem:[#allocation3 + $0x38] sm:$0xff] %vm389_vm3, %v26620_v1  ;;  %400 = vst.msk [vmem:[#allocation3 + $0x48] sm:$0xff] %vm389_vm3, %v26620_v1  ;;  %18113 = vmatpush3.msra.mxu0 %v4097_v20  ;;  %v4096_v31 = vld [vmem:[%s26480_s3 + $0x18] sm:$0xff]  ;;  %v4094_v20 = vld [vmem:[%s26480_s3 + $0x8] sm:$0xff] }
 0x16f   : > { %v21092_v16 = vpop.f32.mrf.mxu0  ;;  %399 = vst.msk [vmem:[#allocation3 + $0x40] sm:$0x3] %vm392_vm4, %v26620_v1  ;;  %402 = vst.msk [vmem:[#allocation3 + $0x58] sm:$0x3] %vm392_vm4, %v26620_v1  ;;  %18114 = vmatprep.subr.mxu0 %v4096_v31 }
 0x170   : > { %v21094_v51 = vpop.f32.mrf.mxu1  ;;  %401 = vst.msk [vmem:[#allocation3 + $0x50] sm:$0xff] %vm389_vm3, %v26620_v1  ;;  %403 = vst.msk [vmem:[#allocation3 + $0x60] sm:$0xff] %vm389_vm3, %v26620_v1  ;;  %18115 = vmatpush3.msra.mxu0 %v4096_v31  ;;  %v15152_v31 = vld [vmem:[%s26480_s3 + $0x40] sm:$0xff] }
 0x171   : > { %404 = vst.msk [vmem:[#allocation3 + $0x68] sm:$0xff] %vm389_vm3, %v26620_v1  ;;  %406 = vst.msk [vmem:[#allocation3 + $0x78] sm:$0xff] %vm389_vm3, %v26620_v1  ;;  %v17799_v55 = vpop.f32.mrf.mxu0  ;;  %18116 = vmatprep.subr.mxu0 %v4095_v27  ;;  %18056 = vmatprep.subr.mxu1 %v15152_v31 }
 0x172   : > { %405 = vst.msk [vmem:[#allocation3 + $0x70] sm:$0x3] %vm392_vm4, %v26620_v1  ;;  %408 = vst.msk [vmem:[#allocation3 + $0x88] sm:$0x3] %vm392_vm4, %v26620_v1  ;;  %v21207_v14 = vpop.f32.mrf.mxu1  ;;  %v21210_v56 = vadd.f32 %v17799_v55, %v20905_v58  ;;  %18117 = vmatpush3.msra.mxu0 %v4095_v27  ;;  %v4093_v27 = vld [vmem:[%s26480_s3] sm:$0xff]  ;;  %v4101_v48 = vld [vmem:[#allocation3 + $0x1] sm:$0xff]  ;;  %18057 = vmatpush3.msra.mxu1 %v15152_v31 }
 0x173   : > { %407 = vst.msk [vmem:[#allocation3 + $0x80] sm:$0xff] %vm389_vm3, %v26620_v1  ;;  %409 = vst.msk [vmem:[#allocation3 + $0x90] sm:$0xff] %vm389_vm3, %v26620_v1  ;;  %v21215_v6 = vpop.f32.mrf.mxu0  ;;  %18118 = vmatprep.subr.mxu0 %v4094_v20  ;;  %v4061_v47 = vld [vmem:[#allocation3] sm:$0xff]  ;;  %18058 = vmatprep.mubr.msk.f32.mxu1 %vm389_vm3, %v4101_v48 }
 0x174   : > { %410 = vst.msk [vmem:[#allocation3 + $0x98] sm:$0xff] %vm389_vm3, %v26620_v1  ;;  %412 = vst.msk [vmem:[#allocation3 + $0xa8] sm:$0xff] %vm389_vm3, %v26620_v1  ;;  %18119 = vmatpush3.msra.mxu0 %v4094_v20  ;;  %18122 = vmatprep.mubr.msk.f32.mxu0 %vm389_vm3, %v4061_v47 }
 0x175   : > { %411 = vst.msk [vmem:[#allocation3 + $0xa0] sm:$0x3] %vm392_vm4, %v26620_v1  ;;  %414 = vst.msk [vmem:[#allocation3 + $0xb8] sm:$0x3] %vm392_vm4, %v26620_v1  ;;  %v17802_v7 = vpop.f32.mrf.mxu0  ;;  %18120 = vmatprep.subr.mxu0 %v4093_v27 }
 0x176   : > { %413 = vst.msk [vmem:[#allocation3 + $0xb0] sm:$0xff] %vm389_vm3, %v26620_v1  ;;  %415 = vst.msk [vmem:[#allocation3 + $0xc0] sm:$0xff] %vm389_vm3, %v26620_v1  ;;  %v21225_v58 = vadd.f32 %v17802_v7, %v20917_v26  ;;  %v4102_v26 = vld [vmem:[#allocation3 + $0x9] sm:$0xff]  ;;  %18121 = vmatpush3.msra.mxu0 %v4093_v27 }
 0x177   : > { %416 = vst.msk [vmem:[#allocation3 + $0xc8] sm:$0xff] %vm389_vm3, %v26620_v1  ;;  %418 = vst.msk [vmem:[#allocation3 + $0xd8] sm:$0xff] %vm389_vm3, %v26620_v1  ;;  %v21233_v55 = vpop.f32.mrf.mxu0  ;;  %v4062_v7 = vld [vmem:[#allocation3 + $0x8] sm:$0xff]  ;;  %18059 = vmatmul.mubr.msk.f32.vlgmr.msra.gmra.mxu1 %vm389_vm3, %v4102_v26 }
 0x178   : > { %417 = vst.msk [vmem:[#allocation3 + $0xd0] sm:$0x3] %vm392_vm4, %v26620_v1  ;;  %420 = vst.msk [vmem:[#allocation3 + $0xe8] sm:$0x3] %vm392_vm4, %v26620_v1  ;;  %18123 = vmatmul.mubr.msk.f32.vlgmr.msra.gmra.mxu0 %vm389_vm3, %v4062_v7 }
 0x179   : > { %419 = vst.msk [vmem:[#allocation3 + $0xe0] sm:$0xff] %vm389_vm3, %v26620_v1  ;;  %421 = vst.msk [vmem:[#allocation3 + $0xf0] sm:$0xff] %vm389_vm3, %v26620_v1  ;;  %v17805_v49 = vpop.f32.mrf.mxu0 }
 0x17a   : > { %422 = vst.msk [vmem:[#allocation3 + $0xf8] sm:$0xff] %vm389_vm3, %v26620_v1  ;;  %424 = vst.msk [vmem:[#allocation3 + $0x108] sm:$0xff] %vm389_vm3, %v26620_v1  ;;  %v21242_v20 = vadd.f32 %v17805_v49, %v20932_v28  ;;  %v15231_v28 = vld [vmem:[%s26480_s3 + $0xb8] sm:$0xff] }
 0x17b   : > { %423 = vst.msk [vmem:[#allocation3 + $0x100] sm:$0x3] %vm392_vm4, %v26620_v1  ;;  %426 = vst.msk [vmem:[#allocation3 + $0x118] sm:$0x3] %vm392_vm4, %v26620_v1  ;;  %v21246_v61 = vpop.f32.mrf.mxu0  ;;  %18170 = vmatprep.subr.mxu1 %v15231_v28 }
 0x17c   : > { %425 = vst.msk [vmem:[#allocation3 + $0x110] sm:$0xff] %vm389_vm3, %v26620_v1  ;;  %427 = vst.msk [vmem:[#allocation3 + $0x120] sm:$0xff] %vm389_vm3, %v26620_v1  ;;  %18171 = vmatpush3.msra.mxu1 %v15231_v28 }
 0x17d   : > { %428 = vst.msk [vmem:[#allocation3 + $0x128] sm:$0xff] %vm389_vm3, %v26620_v1  ;;  %430 = vst.msk [vmem:[#allocation3 + $0x138] sm:$0xff] %vm389_vm3, %v26620_v1  ;;  %v17808_v48 = vpop.f32.mrf.mxu0 }
 0x17e   : > { %429 = vst.msk [vmem:[#allocation3 + $0x130] sm:$0x3] %vm392_vm4, %v26620_v1  ;;  %432 = vst.msk [vmem:[#allocation3 + $0x148] sm:$0x3] %vm392_vm4, %v26620_v1  ;;  %v21253_v59 = vadd.f32 %v17808_v48, %v20944_v38 }
 0x17f   : > { %431 = vst.msk [vmem:[#allocation3 + $0x140] sm:$0xff] %vm389_vm3, %v26620_v1  ;;  %433 = vst.msk [vmem:[#allocation3 + $0x150] sm:$0xff] %vm389_vm3, %v26620_v1  ;;  %v21255_v27 = vpop.f32.mrf.mxu0 }
 0x180   : > { %434 = vst.msk [vmem:[#allocation3 + $0x158] sm:$0xff] %vm389_vm3, %v26620_v1  ;;  %436 = vst.msk [vmem:[#allocation3 + $0x168] sm:$0xff] %vm389_vm3, %v26620_v1 }
 0x181   : > { %435 = vst.msk [vmem:[#allocation3 + $0x160] sm:$0x3] %vm392_vm4, %v26620_v1  ;;  %438 = vst.msk [vmem:[#allocation3 + $0x178] sm:$0x3] %vm392_vm4, %v26620_v1  ;;  %v17811_v49 = vpop.f32.mrf.mxu0 }
 0x182   : > { %437 = vst.msk [vmem:[#allocation3 + $0x170] sm:$0xff] %vm389_vm3, %v26620_v1  ;;  %439 = vst.msk [vmem:[#allocation3 + $0x180] sm:$0xff] %vm389_vm3, %v26620_v1  ;;  %v21265_v7 = vadd.f32 %v17811_v49, %v20959_v41  ;;  %v15230_v41 = vld [vmem:[%s26480_s3 + $0xb0] sm:$0xff] }
 0x183   : > { %440 = vst.msk [vmem:[#allocation3 + $0x188] sm:$0xff] %vm389_vm3, %v26620_v1  ;;  %442 = vst.msk [vmem:[#allocation3 + $0x198] sm:$0xff] %vm389_vm3, %v26620_v1  ;;  %v21267_v3 = vpop.f32.mrf.mxu0  ;;  %18172 = vmatprep.subr.mxu1 %v15230_v41 }
 0x184   : > { %441 = vst.msk [vmem:[#allocation3 + $0x190] sm:$0x3] %vm392_vm4, %v26620_v1  ;;  %444 = vst.msk [vmem:[#allocation3 + $0x1a8] sm:$0x3] %vm392_vm4, %v26620_v1  ;;  %18173 = vmatpush3.msra.mxu1 %v15230_v41 }
 0x185   : > { %443 = vst.msk [vmem:[#allocation3 + $0x1a0] sm:$0xff] %vm389_vm3, %v26620_v1  ;;  %v21217_v1 = vpop.f32.mrf.mxu1  ;;  %26622 = vst [vmem:[#allocation32_spill] sm:$0xff] %v21265_v7  ;;  %v17814_v48 = vpop.f32.mrf.mxu0 }
 0x186   : > { %26623 = vst [vmem:[#allocation33_spill] sm:$0xff] %v21267_v3  ;;  %v21274_v15 = vadd.f32 %v17814_v48, %v20971_v50 }
 0x187   : > { %v21222_v4 = vpop.f32.mrf.mxu1  ;;  %v21276_v46 = vpop.f32.mrf.mxu0 }
 0x188   : > { %26626 = vst [vmem:[#allocation36_spill] sm:$0xff] %v21274_v15  ;;  %26627 = vst [vmem:[#allocation37_spill] sm:$0xff] %v21276_v46 }
 0x189   : > { %v21235_v53 = vpop.f32.mrf.mxu1  ;;  %v17817_v49 = vpop.f32.mrf.mxu0 }
 0x18b   : > { %v21238_v2 = vpop.f32.mrf.mxu1 }
 0x18d   : > { %v21248_v31 = vpop.f32.mrf.mxu1 }
 0x18f   : > { %v21250_v62 = vpop.f32.mrf.mxu1 }
 0x191   : > { %v21257_v47 = vpop.f32.mrf.mxu1 }
 0x193   : > { %v21262_v26 = vpop.f32.mrf.mxu1 }
 0x194   : > { %26621 = vst [vmem:[#allocation29_spill] sm:$0xff] %v21262_v26 }
 0x195   : > { %v21269_v38 = vpop.f32.mrf.mxu1 }
 0x196   : > { %26624 = vst [vmem:[#allocation34_spill] sm:$0xff] %v21269_v38  ;;  %v21286_v38 = vadd.f32 %v17817_v49, %v20986_v8  ;;  %v15229_v8 = vld [vmem:[%s26480_s3 + $0xa8] sm:$0xff] }
 0x197   : > { %v21271_v22 = vpop.f32.mrf.mxu1  ;;  %18174 = vmatprep.subr.mxu1 %v15229_v8 }
 0x198   : > { %26625 = vst [vmem:[#allocation35_spill] sm:$0xff] %v21271_v22  ;;  %26630 = vst [vmem:[#allocation40_spill] sm:$0xff] %v21286_v38  ;;  %v21288_v22 = vpop.f32.mrf.mxu0  ;;  %18175 = vmatpush3.msra.mxu1 %v15229_v8 }
 0x199   : > { %v21278_v35 = vpop.f32.mrf.mxu1  ;;  %26631 = vst [vmem:[#allocation41_spill] sm:$0xff] %v21288_v22 }
 0x19a   : > { %26628 = vst [vmem:[#allocation38_spill] sm:$0xff] %v21278_v35  ;;  %v17820_v48 = vpop.f32.mrf.mxu0 }
 0x19b   : > { %v21283_v28 = vpop.f32.mrf.mxu1  ;;  %v21295_v35 = vadd.f32 %v17820_v48, %v20997_v39 }
 0x19c   : > { %26629 = vst [vmem:[#allocation39_spill] sm:$0xff] %v21283_v28  ;;  %v21297_v46 = vpop.f32.mrf.mxu0 }
 0x19d   : > { %v21290_v50 = vpop.f32.mrf.mxu1  ;;  %26634 = vst [vmem:[#allocation44_spill] sm:$0xff] %v21295_v35  ;;  %26635 = vst [vmem:[#allocation45_spill] sm:$0xff] %v21297_v46 }
 0x19e   : > { %26632 = vst [vmem:[#allocation42_spill] sm:$0xff] %v21290_v50  ;;  %v17823_v49 = vpop.f32.mrf.mxu0 }
 0x19f   : > { %v21292_v15 = vpop.f32.mrf.mxu1  ;;  %v21307_v50 = vadd.f32 %v17823_v49, %v21009_v42  ;;  %v15228_v42 = vld [vmem:[%s26480_s3 + $0xa0] sm:$0xff] }
 0x1a0   : > { %26633 = vst [vmem:[#allocation43_spill] sm:$0xff] %v21292_v15  ;;  %v21309_v15 = vpop.f32.mrf.mxu0  ;;  %18176 = vmatprep.subr.mxu1 %v15228_v42 }
 0x1a1   : > { %v21299_v26 = vpop.f32.mrf.mxu1  ;;  %26638 = vst [vmem:[#allocation48_spill] sm:$0xff] %v21307_v50  ;;  %26639 = vst [vmem:[#allocation49_spill] sm:$0xff] %v21309_v15  ;;  %18177 = vmatpush3.msra.mxu1 %v15228_v42 }
 0x1a2   : > { %26636 = vst [vmem:[#allocation46_spill] sm:$0xff] %v21299_v26  ;;  %v17826_v48 = vpop.f32.mrf.mxu0 }
 0x1a3   : > { %v21304_v41 = vpop.f32.mrf.mxu1  ;;  %v21316_v26 = vadd.f32 %v17826_v48, %v21018_v63 }
 0x1a4   : > { %26637 = vst [vmem:[#allocation47_spill] sm:$0xff] %v21304_v41  ;;  %v21318_v46 = vpop.f32.mrf.mxu0 }
 0x1a5   : > { %v21311_v39 = vpop.f32.mrf.mxu1  ;;  %26642 = vst [vmem:[#allocation52_spill] sm:$0xff] %v21316_v26  ;;  %26643 = vst [vmem:[#allocation53_spill] sm:$0xff] %v21318_v46 }
 0x1a6   : > { %26640 = vst [vmem:[#allocation50_spill] sm:$0xff] %v21311_v39  ;;  %v17829_v49 = vpop.f32.mrf.mxu0 }
 0x1a7   : > { %v21313_v35 = vpop.f32.mrf.mxu1  ;;  %v21328_v39 = vadd.f32 %v17829_v49, %v21030_v36  ;;  %v15227_v36 = vld [vmem:[%s26480_s3 + $0x98] sm:$0xff] }
 0x1a8   : > { %26641 = vst [vmem:[#allocation51_spill] sm:$0xff] %v21313_v35  ;;  %v21330_v35 = vpop.f32.mrf.mxu0  ;;  %18178 = vmatprep.subr.mxu1 %v15227_v36 }
 0x1a9   : > { %v21320_v28 = vpop.f32.mrf.mxu1  ;;  %26646 = vst [vmem:[#allocation56_spill] sm:$0xff] %v21328_v39  ;;  %26647 = vst [vmem:[#allocation57_spill] sm:$0xff] %v21330_v35  ;;  %18179 = vmatpush3.msra.mxu1 %v15227_v36  ;;  %v15264_v39 = vld [vmem:[%s26480_s3 + $0xc0] sm:$0xff] }
 0x1aa   : > { %26644 = vst [vmem:[#allocation54_spill] sm:$0xff] %v21320_v28  ;;  %v17832_v48 = vpop.f32.mrf.mxu0 }
 0x1ab   : > { %v21325_v8 = vpop.f32.mrf.mxu1  ;;  %v21337_v28 = vadd.f32 %v17832_v48, %v21039_v12 }
 0x1ac   : > { %26645 = vst [vmem:[#allocation55_spill] sm:$0xff] %v21325_v8  ;;  %v21339_v46 = vpop.f32.mrf.mxu0 }
 0x1ad   : > { %v21332_v63 = vpop.f32.mrf.mxu1  ;;  %26650 = vst [vmem:[#allocation60_spill] sm:$0xff] %v21337_v28  ;;  %26651 = vst [vmem:[#allocation61_spill] sm:$0xff] %v21339_v46 }
 0x1ae   : > { %26648 = vst [vmem:[#allocation58_spill] sm:$0xff] %v21332_v63  ;;  %v17835_v49 = vpop.f32.mrf.mxu0 }
 0x1af   : > { %v21334_v26 = vpop.f32.mrf.mxu1  ;;  %v21349_v63 = vadd.f32 %v17835_v49, %v21052_v19  ;;  %v15226_v19 = vld [vmem:[%s26480_s3 + $0x90] sm:$0xff] }
 0x1b0   : > { %26649 = vst [vmem:[#allocation59_spill] sm:$0xff] %v21334_v26  ;;  %v21351_v26 = vpop.f32.mrf.mxu0  ;;  %18180 = vmatprep.subr.mxu1 %v15226_v19 }
 0x1b1   : > { %v21341_v41 = vpop.f32.mrf.mxu1  ;;  %26654 = vst [vmem:[#allocation64_spill] sm:$0xff] %v21349_v63  ;;  %26655 = vst [vmem:[#allocation65_spill] sm:$0xff] %v21351_v26  ;;  %18181 = vmatpush3.msra.mxu1 %v15226_v19 }
 0x1b2   : > { %26652 = vst [vmem:[#allocation62_spill] sm:$0xff] %v21341_v41  ;;  %v17838_v48 = vpop.f32.mrf.mxu0 }
 0x1b3   : > { %v21346_v42 = vpop.f32.mrf.mxu1  ;;  %v21358_v41 = vadd.f32 %v17838_v48, %v21062_v23  ;;  %v15271_v23 = vld [vmem:[%s26480_s3 + $0xf8] sm:$0xff] }
 0x1b4   : > { %26653 = vst [vmem:[#allocation63_spill] sm:$0xff] %v21346_v42  ;;  %v21360_v46 = vpop.f32.mrf.mxu0  ;;  %18234 = vmatprep.subr.mxu0 %v15271_v23  ;;  %v15266_v42 = vld [vmem:[%s26480_s3 + $0xd0] sm:$0xff] }
 0x1b5   : > { %v21353_v12 = vpop.f32.mrf.mxu1  ;;  %26658 = vst [vmem:[#allocation68_spill] sm:$0xff] %v21358_v41  ;;  %26659 = vst [vmem:[#allocation69_spill] sm:$0xff] %v21360_v46  ;;  %18235 = vmatpush3.msra.mxu0 %v15271_v23  ;;  %v15225_v23 = vld [vmem:[%s26480_s3 + $0x88] sm:$0xff] }
 0x1b6   : > { %26656 = vst [vmem:[#allocation66_spill] sm:$0xff] %v21353_v12  ;;  %v17841_v49 = vpop.f32.mrf.mxu0  ;;  %18182 = vmatprep.subr.mxu1 %v15225_v23 }
 0x1b7   : > { %v21355_v28 = vpop.f32.mrf.mxu1  ;;  %v21370_v12 = vadd.f32 %v17841_v49, %v21079_v10  ;;  %v15269_v10 = vld [vmem:[%s26480_s3 + $0xe8] sm:$0xff]  ;;  %18183 = vmatpush3.msra.mxu1 %v15225_v23 }
 0x1b8   : > { %26657 = vst [vmem:[#allocation67_spill] sm:$0xff] %v21355_v28  ;;  %v21375_v48 = vpop.f32.mrf.mxu0 }
 0x1b9   : > { %v21362_v8 = vpop.f32.mrf.mxu1  ;;  %26662 = vst [vmem:[#allocation72_spill] sm:$0xff] %v21370_v12  ;;  %26663 = vst [vmem:[#allocation73_spill] sm:$0xff] %v21375_v48  ;;  %v15267_v48 = vld [vmem:[%s26480_s3 + $0xd8] sm:$0xff] }
 0x1ba   : > { %26660 = vst [vmem:[#allocation70_spill] sm:$0xff] %v21362_v8  ;;  %v15270_v8 = vld [vmem:[%s26480_s3 + $0xf0] sm:$0xff] }
 0x1bb   : > { %v21367_v36 = vpop.f32.mrf.mxu1  ;;  %18236 = vmatprep.subr.mxu0 %v15270_v8 }
 0x1bc   : > { %26661 = vst [vmem:[#allocation71_spill] sm:$0xff] %v21367_v36  ;;  %v21382_v36 = vpop.f32.mrf.mxu0  ;;  %18237 = vmatpush3.msra.mxu0 %v15270_v8  ;;  %v15224_v8 = vld [vmem:[%s26480_s3 + $0x80] sm:$0xff] }
 0x1bd   : > { %v21377_v28 = vpop.f32.mrf.mxu1  ;;  %18238 = vmatprep.subr.mxu0 %v15269_v10  ;;  %18184 = vmatprep.subr.mxu1 %v15224_v8 }
 0x1be   : > { %26664 = vst [vmem:[#allocation74_spill] sm:$0xff] %v21377_v28  ;;  %v21389_v19 = vpop.f32.mrf.mxu0  ;;  %18239 = vmatpush3.msra.mxu0 %v15269_v10  ;;  %v15268_v28 = vld [vmem:[%s26480_s3 + $0xe0] sm:$0xff]  ;;  %18185 = vmatpush3.msra.mxu1 %v15224_v8 }
 0x1bf   : > { %v21384_v41 = vpop.f32.mrf.mxu1  ;;  %18240 = vmatprep.subr.mxu0 %v15268_v28 }
 0x1c0   : > { %v21399_v12 = vpop.f32.mrf.mxu0  ;;  %18241 = vmatpush3.msra.mxu0 %v15268_v28  ;;  %v15265_v28 = vld [vmem:[%s26480_s3 + $0xc8] sm:$0xff] }
 0x1c1   : > { %v21391_v49 = vpop.f32.mrf.mxu1  ;;  %18242 = vmatprep.subr.mxu0 %v15267_v48 }
 0x1c2   : > { %v21407_v46 = vpop.f32.mrf.mxu0  ;;  %18243 = vmatpush3.msra.mxu0 %v15267_v48  ;;  %v21429_v48 = vld [vmem:[%s26480_s3 + $0x138] sm:$0xff] }
 0x1c3   : > { %v21409_v10 = vpop.f32.mrf.mxu1  ;;  %18244 = vmatprep.subr.mxu0 %v15266_v42  ;;  %26665 = vst [vmem:[#allocation75_spill] sm:$0xff] %v21429_v48  ;;  %18298 = vmatprep.subr.mxu1 %v21429_v48 }
 0x1c4   : > { %v21414_v23 = vpop.f32.mrf.mxu0  ;;  %18245 = vmatpush3.msra.mxu0 %v15266_v42 }
 0x1c5   : > { %v21419_v63 = vpop.f32.mrf.mxu1  ;;  %18246 = vmatprep.subr.mxu0 %v15265_v28 }
 0x1c6   : > { %v21421_v26 = vpop.f32.mrf.mxu0  ;;  %18247 = vmatpush3.msra.mxu0 %v15265_v28 }
 0x1c7   : > { %18248 = vmatprep.subr.mxu0 %v15264_v39  ;;  %v21434_v8 = vpop.f32.mrf.mxu1 }
 0x1c8   : > { %v21431_v42 = vpop.f32.mrf.mxu0  ;;  %18249 = vmatpush3.msra.mxu0 %v15264_v39 }
 0x1c9   : > { %v21440_v50 = vpop.f32.mrf.mxu1 }
 0x1ca   : > { %v21436_v35 = vpop.f32.mrf.mxu0 }
 0x1cb   : > { %v21446_v22 = vpop.f32.mrf.mxu1 }
 0x1cc   : > { %v21438_v28 = vpop.f32.mrf.mxu0  ;;  %26669 = vst [vmem:[#allocation79_spill] sm:$0xff] %v21446_v22 }
 0x1cd   : > { %26666 = vst [vmem:[#allocation76_spill] sm:$0xff] %v21438_v28  ;;  %v21452_v48 = vpop.f32.mrf.mxu1 }
 0x1ce   : > { %v21442_v15 = vpop.f32.mrf.mxu0  ;;  %26672 = vst [vmem:[#allocation82_spill] sm:$0xff] %v21452_v48 }
 0x1cf   : > { %26667 = vst [vmem:[#allocation77_spill] sm:$0xff] %v21442_v15  ;;  %v21458_v60 = vpop.f32.mrf.mxu1 }
 0x1d0   : > { %v21444_v38 = vpop.f32.mrf.mxu0  ;;  %26675 = vst [vmem:[#allocation85_spill] sm:$0xff] %v21458_v60 }
 0x1d1   : > { %26668 = vst [vmem:[#allocation78_spill] sm:$0xff] %v21444_v38  ;;  %v21464_v15 = vpop.f32.mrf.mxu1 }
 0x1d2   : > { %v21448_v7 = vpop.f32.mrf.mxu0  ;;  %26678 = vst [vmem:[#allocation88_spill] sm:$0xff] %v21464_v15 }
 0x1d3   : > { %26670 = vst [vmem:[#allocation80_spill] sm:$0xff] %v21448_v7  ;;  %v21470_v7 = vpop.f32.mrf.mxu1 }
 0x1d4   : > { %v21450_v40 = vpop.f32.mrf.mxu0  ;;  %26681 = vst [vmem:[#allocation91_spill] sm:$0xff] %v21470_v7 }
 0x1d5   : > { %26671 = vst [vmem:[#allocation81_spill] sm:$0xff] %v21450_v40 }
 0x1d6   : > { %v21454_v39 = vpop.f32.mrf.mxu0 }
 0x1d7   : > { %26673 = vst [vmem:[#allocation83_spill] sm:$0xff] %v21454_v39  ;;  %v21476_v39 = vpop.f32.mrf.mxu1 }
 0x1d8   : > { %v21456_v45 = vpop.f32.mrf.mxu0 }
 0x1d9   : > { %26674 = vst [vmem:[#allocation84_spill] sm:$0xff] %v21456_v45 }
 0x1da   : > { %v21460_v28 = vpop.f32.mrf.mxu0 }
 0x1db   : > { %26676 = vst [vmem:[#allocation86_spill] sm:$0xff] %v21460_v28  ;;  %v21482_v28 = vpop.f32.mrf.mxu1 }
 0x1dc   : > { %v21462_v3 = vpop.f32.mrf.mxu0  ;;  %26686 = vst [vmem:[#allocation96_spill] sm:$0xff] %v21482_v28 }
 0x1dd   : > { %26677 = vst [vmem:[#allocation87_spill] sm:$0xff] %v21462_v3 }
 0x1de   : > { %v21466_v38 = vpop.f32.mrf.mxu0 }
 0x1df   : > { %26679 = vst [vmem:[#allocation89_spill] sm:$0xff] %v21466_v38  ;;  %v21488_v38 = vpop.f32.mrf.mxu1 }
 0x1e0   : > { %v21468_v22 = vpop.f32.mrf.mxu0 }
 0x1e1   : > { %26680 = vst [vmem:[#allocation90_spill] sm:$0xff] %v21468_v22 }
 0x1e2   : > { %v21472_v40 = vpop.f32.mrf.mxu0 }
 0x1e3   : > { %26682 = vst [vmem:[#allocation92_spill] sm:$0xff] %v21472_v40  ;;  %v21496_v40 = vpop.f32.mrf.mxu1 }
 0x1e4   : > { %v21474_v48 = vpop.f32.mrf.mxu0 }
 0x1e5   : > { %26683 = vst [vmem:[#allocation93_spill] sm:$0xff] %v21474_v48  ;;  %v1974_v48 = vadd.f32 %v20888_v30, %v20891_v32 }
 0x1e6   : > { %v21478_v45 = vpop.f32.mrf.mxu0 }
 0x1e7   : > { %26684 = vst [vmem:[#allocation94_spill] sm:$0xff] %v21478_v45 }
 0x1e8   : > { %v21480_v60 = vpop.f32.mrf.mxu0 }
 0x1e9   : > { %26685 = vst [vmem:[#allocation95_spill] sm:$0xff] %v21480_v60  ;;  %v2364_v60 = vadd.f32 %v21092_v16, %v1974_v48  ;;  %v1978_v16 = vadd.f32 %v20912_v37, %v20915_v13 }
 0x1ea   : > { %v21484_v3 = vpop.f32.mrf.mxu0 }
 0x1eb   : > { %26687 = vst [vmem:[#allocation97_spill] sm:$0xff] %v21484_v3  ;;  %v2755_v3 = vadd.f32 %v21084_v44, %v21087_v43  ;;  %v2754_v30 = vadd.f32 %v21094_v51, %v2364_v60  ;;  %v2368_v44 = vadd.f32 %v21233_v55, %v1978_v16  ;;  %v21529_v60 = vld [vmem:[%s26480_s3 + $0x178] sm:$0xff]  ;;  %v21542_v51 = vld [vmem:[%s26479_s2] ss:$0 sm:$0xff]  ;;  %v21566_v16 = vadd.f32 %v20817_v5, %v20815_v25 }
 0x1ec   : > { %v21486_v15 = vpop.f32.mrf.mxu0  ;;  %18362 = vmatprep.subr.mxu0 %v21529_v60  ;;  %v21578_v25 = vadd.f32 %v20831_v24, %v20829_v29  ;;  %v1984_v5 = vadd.f32 %v20954_v0, %v20957_v18  ;;  %v26693_v29 = vld [vmem:[#allocation30_spill] sm:$0xff]  ;;  %v26694_v18 = vld [vmem:[#allocation33_spill] sm:$0xff] }
 0x1ed   : > { %26688 = vst [vmem:[#allocation98_spill] sm:$0xff] %v21486_v15  ;;  %v1976_v15 = vadd.f32 %v20900_v33, %v20903_v57  ;;  %v2757_v33 = vadd.f32 %v21207_v14, %v21210_v56  ;;  %v3145_v57 = vadd.f32 %v21389_v19, %v2754_v30  ;;  %v2758_v55 = vadd.f32 %v21235_v53, %v2368_v44 }
 0x1ee   : > { %v21490_v22 = vpop.f32.mrf.mxu0  ;;  %v21555_v19 = vadd.f32 %v20803_v9, %v20801_v21  ;;  %v21590_v24 = vadd.f32 %v26693_v29, %v20843_v54  ;;  %v26698_v54 = vld [vmem:[#allocation4_spill] sm:$0xff] }
 0x1ef   : > { %26689 = vst [vmem:[#allocation99_spill] sm:$0xff] %v21490_v22  ;;  %v21507_v22 = vpop.f32.mrf.mxu1  ;;  %v2366_v32 = vadd.f32 %v21215_v6, %v1976_v15  ;;  %v3148_v13 = vadd.f32 %v21399_v12, %v2757_v33  ;;  %v2759_v6 = vadd.f32 %v21222_v4, %v21225_v58  ;;  %v3535_v14 = vadd.f32 %v21391_v49, %v3145_v57 }
 0x1f0   : > { %v21492_v7 = vpop.f32.mrf.mxu0  ;;  %v3149_v53 = vadd.f32 %v21421_v26, %v2758_v55  ;;  %v26700_v55 = vld [vmem:[#allocation9_spill] sm:$0xff] }
 0x1f1   : > { %26690 = vst [vmem:[#allocation100_spill] sm:$0xff] %v21492_v7  ;;  %v21522_v43 = vpop.f32.mrf.mxu1  ;;  %v2756_v15 = vadd.f32 %v21217_v1, %v2366_v32  ;;  %v3538_v58 = vadd.f32 %v21409_v10, %v3148_v13 }
 0x1f2   : > { %v21498_v45 = vpop.f32.mrf.mxu0 }
 0x1f3   : > { %26691 = vst [vmem:[#allocation101_spill] sm:$0xff] %v21498_v45  ;;  %v3146_v45 = vadd.f32 %v21382_v36, %v2755_v3  ;;  %v1980_v3 = vadd.f32 %v20927_v11, %v20930_v34  ;;  %v3150_v11 = vadd.f32 %v21414_v23, %v2759_v6  ;;  %v21549_v34 = vpop.f32.mrf.mxu1 }
 0x1f4   : > { %v21501_v28 = vpop.f32.mrf.mxu0 }
 0x1f5   : > { %v3536_v37 = vadd.f32 %v21384_v41, %v3146_v45  ;;  %v3147_v45 = vadd.f32 %v21407_v46, %v2756_v15  ;;  %v2370_v41 = vadd.f32 %v21246_v61, %v1980_v3  ;;  %v1982_v46 = vadd.f32 %v20939_v52, %v20942_v17  ;;  %v21571_v17 = vpop.f32.mrf.mxu1 }
 0x1f6   : > { %v21509_v7 = vpop.f32.mrf.mxu0  ;;  %v2761_v61 = vadd.f32 %v21238_v2, %v21242_v20  ;;  %v3540_v52 = vadd.f32 %v21434_v8, %v3150_v11  ;;  %v26701_v11 = vld [vmem:[#allocation32_spill] sm:$0xff] }
 0x1f7   : > { %26692 = vst [vmem:[#allocation102_spill] sm:$0xff] %v21509_v7  ;;  %v3537_v23 = vadd.f32 %v21419_v63, %v3147_v45  ;;  %v2760_v21 = vadd.f32 %v21248_v31, %v2370_v41  ;;  %v2372_v9 = vadd.f32 %v21255_v27, %v1982_v46  ;;  %v2763_v31 = vadd.f32 %v21250_v62, %v21253_v59  ;;  %v26695_v62 = vld [vmem:[#allocation76_spill] sm:$0xff]  ;;  %v26697_v45 = vld [vmem:[#allocation31_spill] sm:$0xff] }
 0x1f8   : > { %v21516_v48 = vpop.f32.mrf.mxu0  ;;  %v3152_v20 = vadd.f32 %v21431_v42, %v2761_v61  ;;  %v3539_v27 = vadd.f32 %v21440_v50, %v3149_v53  ;;  %v21595_v50 = vpop.f32.mrf.mxu1  ;;  %v26704_v61 = vld [vmem:[#allocation82_spill] sm:$0xff] }
 0x1f9   : > { %v3151_v42 = vadd.f32 %v21436_v35, %v2760_v21  ;;  %v2762_v0 = vadd.f32 %v21257_v47, %v2372_v9  ;;  %v3154_v59 = vadd.f32 %v26695_v62, %v2763_v31  ;;  %v26696_v35 = vld [vmem:[#allocation79_spill] sm:$0xff]  ;;  %v26699_v47 = vld [vmem:[#allocation10_spill] sm:$0xff]  ;;  %v26715_v62 = vld [vmem:[#allocation36_spill] sm:$0xff] }
 0x1fa   : > { %v21524_v7 = vpop.f32.mrf.mxu0  ;;  %v3542_v3 = vadd.f32 %v26696_v35, %v3152_v20  ;;  %v1986_v41 = vadd.f32 %v26700_v55, %v26699_v47  ;;  %v26707_v9 = vld [vmem:[#allocation34_spill] sm:$0xff]  ;;  %v26717_v35 = vld [vmem:[#allocation88_spill] sm:$0xff] }
 0x1fb   : > { %v3541_v53 = vadd.f32 %v26704_v61, %v3151_v42  ;;  %v26710_v31 = vld [vmem:[#allocation78_spill] sm:$0xff]  ;;  %v26721_v61 = vld [vmem:[#allocation81_spill] sm:$0xff] }
 0x1fc   : > { %v17996_v56 = vpop.f32.mrf.mxu0 }
 0x1fd   : > { %v3926_v1 = vadd.f32 %v17996_v56, %v3536_v37  ;;  %v2374_v37 = vadd.f32 %v26694_v18, %v1984_v5  ;;  %v26714_v18 = vld [vmem:[#allocation11_spill] sm:$0xff] }
 0x1fe   : > { %v3766_v4 = vpop.f32.mrf.mxu0 }
 0x1ff   : > { %v3965_v12 = vadd.f32 %v21542_v51, %v3926_v1  ;;  %v3925_v36 = vadd.f32 %v3766_v4, %v3535_v14  ;;  %v21602_v1 = vadd.f32 %v26698_v54, %v26697_v45  ;;  %v26702_v4 = vld [vmem:[#allocation29_spill] sm:$0xff]  ;;  %v26718_v54 = vld [vmem:[#allocation80_spill] sm:$0xff] }
 0x200   : > { %v17999_v49 = vpop.f32.mrf.mxu0 }
 0x201   : > { %v3997_v30 = vmax.f32 %v3965_v12, 0.0  ;;  %v3964_v10 = vadd.f32 %v21542_v51, %v3925_v36  ;;  %v3928_v32 = vadd.f32 %v17999_v49, %v3538_v58  ;;  %v2765_v58 = vadd.f32 %v26702_v4, %v26701_v11  ;;  %v26703_v12 = vld [vmem:[#allocation77_spill] sm:$0xff] }
 0x202   : > { %v3776_v2 = vpop.f32.mrf.mxu0  ;;  %v3153_v36 = vadd.f32 %v26703_v12, %v2762_v0  ;;  %v26713_v0 = vld [vmem:[#allocation12_spill] sm:$0xff] }
 0x203   : > { %4030 = vst.msk [vmem:[#allocation3 + $0x21] sm:$0xff] %vm389_vm3, %v3997_v30  ;;  %v3996_v26 = vmax.f32 %v3964_v10, 0.0  ;;  %v3967_v63 = vadd.f32 %v21542_v51, %v3928_v32  ;;  %v3927_v33 = vadd.f32 %v3776_v2, %v3537_v23  ;;  %v26705_v10 = vld [vmem:[#allocation5_spill] sm:$0xff]  ;;  %v26706_v32 = vld [vmem:[#allocation6_spill] sm:$0xff] }
 0x204   : > { %v18002_v8 = vpop.f32.mrf.mxu0  ;;  %v21614_v21 = vadd.f32 %v26706_v32, %v26705_v10  ;;  %v26708_v2 = vld [vmem:[#allocation37_spill] sm:$0xff] }
 0x205   : > { %4029 = vst.msk [vmem:[#allocation3 + $0x19] sm:$0xff] %vm389_vm3, %v3996_v26  ;;  %v3999_v57 = vmax.f32 %v3967_v63, 0.0  ;;  %v3966_v44 = vadd.f32 %v21542_v51, %v3927_v33  ;;  %v3930_v15 = vadd.f32 %v18002_v8, %v3540_v52  ;;  %v2764_v52 = vadd.f32 %v26707_v9, %v2374_v37  ;;  %v26709_v26 = vld [vmem:[#allocation85_spill] sm:$0xff]  ;;  %v21619_v33 = vpop.f32.mrf.mxu1 }
 0x206   : > { %v3786_v13 = vpop.f32.mrf.mxu0  ;;  %v2376_v20 = vadd.f32 %v26708_v2, %v1986_v41  ;;  %v3544_v63 = vadd.f32 %v26709_v26, %v3154_v59  ;;  %v1988_v37 = vadd.f32 %v26714_v18, %v26713_v0  ;;  %v26716_v59 = vld [vmem:[#allocation35_spill] sm:$0xff]  ;;  %v26723_v2 = vld [vmem:[#allocation14_spill] sm:$0xff] }
 0x207   : > { %4032 = vst.msk [vmem:[#allocation3 + $0x39] sm:$0xff] %vm389_vm3, %v3999_v57  ;;  %v3998_v6 = vmax.f32 %v3966_v44, 0.0  ;;  %v3969_v56 = vadd.f32 %v21542_v51, %v3930_v15  ;;  %v3929_v14 = vadd.f32 %v3786_v13, %v3539_v27  ;;  %v3156_v27 = vadd.f32 %v26710_v31, %v2765_v58  ;;  %v26711_v44 = vld [vmem:[#allocation7_spill] sm:$0xff]  ;;  %v26712_v15 = vld [vmem:[#allocation8_spill] sm:$0xff]  ;;  %v26719_v58 = vld [vmem:[#allocation38_spill] sm:$0xff] }
 0x208   : > { %v18005_v46 = vpop.f32.mrf.mxu0  ;;  %v21626_v29 = vadd.f32 %v26712_v15, %v26711_v44  ;;  %v2767_v13 = vadd.f32 %v26716_v59, %v26715_v62  ;;  %v3155_v47 = vadd.f32 %v26718_v54, %v2764_v52  ;;  %v2766_v12 = vadd.f32 %v26719_v58, %v2376_v20  ;;  %v26724_v20 = vld [vmem:[#allocation13_spill] sm:$0xff]  ;;  %v26726_v31 = vld [vmem:[#allocation40_spill] sm:$0xff] }
 0x209   : > { %4031 = vst.msk [vmem:[#allocation3 + $0x31] sm:$0xff] %vm389_vm3, %v3998_v6  ;;  %v4001_v49 = vmax.f32 %v3969_v56, 0.0  ;;  %v3968_v23 = vadd.f32 %v21542_v51, %v3929_v14  ;;  %v3932_v30 = vadd.f32 %v18005_v46, %v3542_v3  ;;  %v3543_v3 = vadd.f32 %v26717_v35, %v3153_v36  ;;  %v26720_v36 = vld [vmem:[#allocation41_spill] sm:$0xff]  ;;  %v26729_v35 = vld [vmem:[#allocation42_spill] sm:$0xff] }
 0x20a   : > { %v3796_v5 = vpop.f32.mrf.mxu0  ;;  %v21646_v4 = vld [vmem:[#allocation3 + $0x21] sm:$0xff]  ;;  %v2378_v46 = vadd.f32 %v26720_v36, %v1988_v37  ;;  %v1990_v26 = vadd.f32 %v26724_v20, %v26723_v2  ;;  %v3545_v37 = vadd.f32 %v21476_v39, %v3155_v47 }
 0x20b   : > { %4034 = vst.msk [vmem:[#allocation3 + $0x51] sm:$0xff] %vm389_vm3, %v4001_v49  ;;  %v4000_v8 = vmax.f32 %v3968_v23, 0.0  ;;  %v3971_v42 = vadd.f32 %v21542_v51, %v3932_v30  ;;  %v3931_v57 = vadd.f32 %v3796_v5, %v3541_v53  ;;  %v3158_v53 = vadd.f32 %v26721_v61, %v2767_v13  ;;  %v21651_v49 = vpop.f32.mrf.mxu1  ;;  %v26722_v30 = vld [vmem:[#allocation91_spill] sm:$0xff]  ;;  %v26733_v61 = vld [vmem:[#allocation16_spill] sm:$0xff] }
 0x20c   : > { %v18008_v6 = vpop.f32.mrf.mxu0  ;;  %v21633_v56 = vld [vmem:[#allocation3 + $0x19] sm:$0xff]  ;;  %v3546_v10 = vadd.f32 %v26722_v30, %v3156_v27 }
 0x20d   : > { %v21635_v14 = vld [vmem:[#allocation3 + $0x18] sm:$0xff]  ;;  %v21637_v45 = vld [vmem:[#allocation3 + $0x20] sm:$0xff]  ;;  %4033 = vst.msk [vmem:[#allocation3 + $0x49] sm:$0xff] %vm389_vm3, %v4000_v8  ;;  %v4003_v55 = vmax.f32 %v3971_v42, 0.0  ;;  %v3970_v41 = vadd.f32 %v21542_v51, %v3931_v57  ;;  %v3934_v11 = vadd.f32 %v18008_v6, %v3544_v63  ;;  %18061 = vmatprep.mubr.msk.f32.mxu1 %vm389_vm3, %v21633_v56  ;;  %v26725_v63 = vld [vmem:[#allocation15_spill] sm:$0xff]  ;;  %v21685_v47 = vpop.f32.mrf.mxu1 }
 0x20e   : > { %18125 = vmatprep.mubr.msk.f32.mxu0 %vm389_vm3, %v21635_v14  ;;  %v3806_v23 = vpop.f32.mrf.mxu0  ;;  %18062 = vmatmul.mubr.msk.f32.gmra.mxu1 %vm389_vm3, %v21646_v4  ;;  %v1602_v5 = vadd.f32 %v26725_v63, %v21555_v19  ;;  %v26727_v8 = vld [vmem:[#allocation39_spill] sm:$0xff]  ;;  %v21680_v13 = vld [vmem:[#allocation3 + $0x39] sm:$0xff] }
 0x20f   : > { %18126 = vmatmul.mubr.msk.f32.gmra.mxu0 %vm389_vm3, %v21637_v45  ;;  %4036 = vst.msk [vmem:[#allocation3 + $0x69] sm:$0xff] %vm389_vm3, %v4003_v55  ;;  %v4002_v32 = vmax.f32 %v3970_v41, 0.0  ;;  %v3973_v9 = vadd.f32 %v21542_v51, %v3934_v11  ;;  %v3933_v52 = vadd.f32 %v3806_v23, %v3543_v3  ;;  %v2769_v42 = vadd.f32 %v26727_v8, %v26726_v31  ;;  %v26728_v57 = vld [vmem:[#allocation83_spill] sm:$0xff]  ;;  %v26730_v6 = vld [vmem:[#allocation45_spill] sm:$0xff]  ;;  %v26731_v55 = vld [vmem:[#allocation96_spill] sm:$0xff] }
 0x210   : > { %v3157_v44 = vadd.f32 %v26728_v57, %v2766_v12  ;;  %v18011_v15 = vpop.f32.mrf.mxu0  ;;  %v21667_v0 = vld [vmem:[#allocation3 + $0x31] sm:$0xff]  ;;  %v2768_v3 = vadd.f32 %v26729_v35, %v2378_v46  ;;  %v2380_v54 = vadd.f32 %v26730_v6, %v1990_v26  ;;  %v3548_v39 = vadd.f32 %v26731_v55, %v3158_v53  ;;  %v26737_v31 = vld [vmem:[#allocation86_spill] sm:$0xff] }
 0x211   : > { %v21669_v27 = vld [vmem:[#allocation3 + $0x30] sm:$0xff]  ;;  %v21671_v18 = vld [vmem:[#allocation3 + $0x38] sm:$0xff]  ;;  %4035 = vst.msk [vmem:[#allocation3 + $0x61] sm:$0xff] %vm389_vm3, %v4002_v32  ;;  %v4005_v62 = vmax.f32 %v3973_v9, 0.0  ;;  %v3972_v59 = vadd.f32 %v21542_v51, %v3933_v52  ;;  %v3936_v19 = vadd.f32 %v18011_v15, %v3546_v10  ;;  %18064 = vmatprep.mubr.msk.f32.mxu1 %vm389_vm3, %v21667_v0  ;;  %v1992_v23 = vadd.f32 %v26733_v61, %v1602_v5  ;;  %v26736_v32 = vld [vmem:[#allocation43_spill] sm:$0xff] }
 0x212   : > { %18128 = vmatprep.mubr.msk.f32.mxu0 %vm389_vm3, %v21669_v27  ;;  %v3816_v41 = vpop.f32.mrf.mxu0  ;;  %18065 = vmatmul.mubr.msk.f32.gmra.mxu1 %vm389_vm3, %v21680_v13  ;;  %v26732_v11 = vld [vmem:[#allocation84_spill] sm:$0xff]  ;;  %v26734_v53 = vld [vmem:[#allocation17_spill] sm:$0xff]  ;;  %v3547_v52 = vadd.f32 %v21488_v38, %v3157_v44  ;;  %v3159_v8 = vadd.f32 %v26737_v31, %v2768_v3  ;;  %v26738_v57 = vld [vmem:[#allocation46_spill] sm:$0xff] }
 0x213   : > { %18129 = vmatmul.mubr.msk.f32.gmra.mxu0 %vm389_vm3, %v21671_v18  ;;  %v3160_v58 = vadd.f32 %v26732_v11, %v2769_v42  ;;  %4038 = vst.msk [vmem:[#allocation3 + $0x81] sm:$0xff] %vm389_vm3, %v4005_v62  ;;  %v4004_v12 = vmax.f32 %v3972_v59, 0.0  ;;  %v3975_v36 = vadd.f32 %v21542_v51, %v3936_v19  ;;  %v3935_v46 = vadd.f32 %v3816_v41, %v3545_v37  ;;  %v26735_v10 = vld [vmem:[#allocation44_spill] sm:$0xff]  ;;  %v26739_v15 = vld [vmem:[#allocation49_spill] sm:$0xff]  ;;  %v26740_v62 = vld [vmem:[#allocation87_spill] sm:$0xff]  ;;  %v21718_v19 = vpop.f32.mrf.mxu1 }
 0x214   : > { %v1604_v30 = vadd.f32 %v26734_v53, %v21566_v16  ;;  %v2771_v9 = vadd.f32 %v26736_v32, %v26735_v10  ;;  %v18014_v2 = vpop.f32.mrf.mxu0  ;;  %v21700_v20 = vld [vmem:[#allocation3 + $0x49] sm:$0xff]  ;;  %v21713_v38 = vld [vmem:[#allocation3 + $0x51] sm:$0xff]  ;;  %v2770_v44 = vadd.f32 %v26738_v57, %v2380_v54  ;;  %v2382_v37 = vadd.f32 %v26739_v15, %v1992_v23  ;;  %v26746_v31 = vld [vmem:[#allocation50_spill] sm:$0xff] }
 0x215   : > { %v21702_v26 = vld [vmem:[#allocation3 + $0x48] sm:$0xff]  ;;  %v21704_v63 = vld [vmem:[#allocation3 + $0x50] sm:$0xff]  ;;  %4037 = vst.msk [vmem:[#allocation3 + $0x79] sm:$0xff] %vm389_vm3, %v4004_v12  ;;  %v4007_v5 = vmax.f32 %v3975_v36, 0.0  ;;  %v3974_v42 = vadd.f32 %v21542_v51, %v3935_v46  ;;  %v3938_v16 = vadd.f32 %v18014_v2, %v3548_v39  ;;  %18067 = vmatprep.mubr.msk.f32.mxu1 %vm389_vm3, %v21700_v20  ;;  %v3550_v3 = vadd.f32 %v21496_v40, %v3160_v58  ;;  %v26741_v39 = vld [vmem:[#allocation18_spill] sm:$0xff] }
 0x216   : > { %18131 = vmatprep.mubr.msk.f32.mxu0 %vm389_vm3, %v21702_v26  ;;  %v3162_v59 = vadd.f32 %v26740_v62, %v2771_v9  ;;  %v3826_v35 = vpop.f32.mrf.mxu0  ;;  %18068 = vmatmul.mubr.msk.f32.gmra.mxu1 %vm389_vm3, %v21713_v38  ;;  %v1994_v41 = vadd.f32 %v26741_v39, %v1604_v30  ;;  %v26742_v11 = vld [vmem:[#allocation19_spill] sm:$0xff]  ;;  %v26743_v36 = vld [vmem:[#allocation48_spill] sm:$0xff]  ;;  %v26745_v23 = vld [vmem:[#allocation89_spill] sm:$0xff]  ;;  %v3549_v9 = vadd.f32 %v21507_v22, %v3159_v8  ;;  %v21751_v8 = vpop.f32.mrf.mxu1 }
 0x217   : > { %18132 = vmatmul.mubr.msk.f32.gmra.mxu0 %vm389_vm3, %v21704_v63  ;;  %4040 = vst.msk [vmem:[#allocation3 + $0x99] sm:$0xff] %vm389_vm3, %v4007_v5  ;;  %v4006_v6 = vmax.f32 %v3974_v42, 0.0  ;;  %v3977_v54 = vadd.f32 %v21542_v51, %v3938_v16  ;;  %v3937_v55 = vadd.f32 %v3826_v35, %v3547_v52  ;;  %v1606_v12 = vadd.f32 %v26742_v11, %v21578_v25  ;;  %v26744_v46 = vld [vmem:[#allocation47_spill] sm:$0xff]  ;;  %v26747_v42 = vld [vmem:[#allocation53_spill] sm:$0xff] }
 0x218   : > { %v2773_v61 = vadd.f32 %v26744_v46, %v26743_v36  ;;  %v3161_v53 = vadd.f32 %v26745_v23, %v2770_v44  ;;  %v18017_v10 = vpop.f32.mrf.mxu0  ;;  %v21733_v32 = vld [vmem:[#allocation3 + $0x61] sm:$0xff]  ;;  %v21746_v2 = vld [vmem:[#allocation3 + $0x69] sm:$0xff]  ;;  %v2772_v5 = vadd.f32 %v26746_v31, %v2382_v37  ;;  %v2384_v16 = vadd.f32 %v26747_v42, %v1994_v41  ;;  %v26756_v31 = vld [vmem:[#allocation93_spill] sm:$0xff]  ;;  %v21784_v42 = vpop.f32.mrf.mxu1 }
 0x219   : > { %v21735_v40 = vld [vmem:[#allocation3 + $0x60] sm:$0xff]  ;;  %v21737_v58 = vld [vmem:[#allocation3 + $0x68] sm:$0xff]  ;;  %4039 = vst.msk [vmem:[#allocation3 + $0x91] sm:$0xff] %vm389_vm3, %v4006_v6  ;;  %v4009_v30 = vmax.f32 %v3977_v54, 0.0  ;;  %v3976_v52 = vadd.f32 %v21542_v51, %v3937_v55  ;;  %v3940_v25 = vadd.f32 %v18017_v10, %v3550_v3  ;;  %18070 = vmatprep.mubr.msk.f32.mxu1 %vm389_vm3, %v21733_v32  ;;  %v3552_v22 = vadd.f32 %v21522_v43, %v3162_v59  ;;  %v26749_v3 = vld [vmem:[#allocation20_spill] sm:$0xff] }
 0x21a   : > { %18134 = vmatprep.mubr.msk.f32.mxu0 %vm389_vm3, %v21735_v40  ;;  %v3836_v57 = vpop.f32.mrf.mxu0  ;;  %18071 = vmatmul.mubr.msk.f32.gmra.mxu1 %vm389_vm3, %v21746_v2  ;;  %v26748_v44 = vld [vmem:[#allocation90_spill] sm:$0xff]  ;;  %v1996_v6 = vadd.f32 %v26749_v3, %v1606_v12  ;;  %v26750_v43 = vld [vmem:[#allocation21_spill] sm:$0xff]  ;;  %v26751_v54 = vld [vmem:[#allocation52_spill] sm:$0xff]  ;;  %v3551_v41 = vadd.f32 %v21549_v34, %v3161_v53 }
 0x21b   : > { %18135 = vmatmul.mubr.msk.f32.gmra.mxu0 %vm389_vm3, %v21737_v58  ;;  %v3164_v15 = vadd.f32 %v26748_v44, %v2773_v61  ;;  %4042 = vst.msk [vmem:[#allocation3 + $0xb1] sm:$0xff] %vm389_vm3, %v4009_v30  ;;  %v4008_v62 = vmax.f32 %v3976_v52, 0.0  ;;  %v3979_v37 = vadd.f32 %v21542_v51, %v3940_v25  ;;  %v3939_v35 = vadd.f32 %v3836_v57, %v3549_v9  ;;  %v26752_v55 = vld [vmem:[#allocation51_spill] sm:$0xff]  ;;  %v26753_v23 = vld [vmem:[#allocation92_spill] sm:$0xff]  ;;  %v26754_v53 = vld [vmem:[#allocation54_spill] sm:$0xff] }
 0x21c   : > { %v1608_v59 = vadd.f32 %v26750_v43, %v21590_v24  ;;  %v2775_v39 = vadd.f32 %v26752_v55, %v26751_v54  ;;  %v18020_v11 = vpop.f32.mrf.mxu0  ;;  %v21766_v36 = vld [vmem:[#allocation3 + $0x79] sm:$0xff]  ;;  %v3163_v10 = vadd.f32 %v26753_v23, %v2772_v5  ;;  %v21779_v34 = vld [vmem:[#allocation3 + $0x81] sm:$0xff]  ;;  %v2774_v30 = vadd.f32 %v26754_v53, %v2384_v16  ;;  %v26759_v43 = vld [vmem:[#allocation56_spill] sm:$0xff] }
 0x21d   : > { %v21768_v46 = vld [vmem:[#allocation3 + $0x78] sm:$0xff]  ;;  %v21770_v61 = vld [vmem:[#allocation3 + $0x80] sm:$0xff]  ;;  %4041 = vst.msk [vmem:[#allocation3 + $0xa9] sm:$0xff] %vm389_vm3, %v4008_v62  ;;  %v4011_v12 = vmax.f32 %v3979_v37, 0.0  ;;  %v3978_v9 = vadd.f32 %v21542_v51, %v3939_v35  ;;  %v3942_v24 = vadd.f32 %v18020_v11, %v3552_v22  ;;  %18073 = vmatprep.mubr.msk.f32.mxu1 %vm389_vm3, %v21766_v36  ;;  %v3554_v22 = vadd.f32 %v21571_v17, %v3164_v15  ;;  %v26758_v3 = vld [vmem:[#allocation23_spill] sm:$0xff] }
 0x21e   : > { %18137 = vmatprep.mubr.msk.f32.mxu0 %vm389_vm3, %v21768_v46  ;;  %v26755_v52 = vld [vmem:[#allocation57_spill] sm:$0xff]  ;;  %v3166_v5 = vadd.f32 %v26756_v31, %v2775_v39  ;;  %v3846_v57 = vpop.f32.mrf.mxu0  ;;  %18074 = vmatmul.mubr.msk.f32.gmra.mxu1 %vm389_vm3, %v21779_v34  ;;  %v26757_v37 = vld [vmem:[#allocation22_spill] sm:$0xff]  ;;  %v26760_v54 = vld [vmem:[#allocation55_spill] sm:$0xff] }
 0x21f   : > { %v2386_v25 = vadd.f32 %v26755_v52, %v1996_v6  ;;  %18138 = vmatmul.mubr.msk.f32.gmra.mxu0 %vm389_vm3, %v21770_v61  ;;  %4044 = vst.msk [vmem:[#allocation3 + $0xc9] sm:$0xff] %vm389_vm3, %v4011_v12  ;;  %v4010_v44 = vmax.f32 %v3978_v9, 0.0  ;;  %v3981_v16 = vadd.f32 %v21542_v51, %v3942_v24  ;;  %v3941_v62 = vadd.f32 %v3846_v57, %v3551_v41  ;;  %v26761_v39 = vld [vmem:[#allocation94_spill] sm:$0xff]  ;;  %v26763_v52 = vld [vmem:[#allocation61_spill] sm:$0xff] }
 0x220   : > { %v1998_v35 = vadd.f32 %v26757_v37, %v1608_v59  ;;  %v1610_v6 = vadd.f32 %v26758_v3, %v21602_v1  ;;  %v2777_v55 = vadd.f32 %v26760_v54, %v26759_v43  ;;  %v3165_v11 = vadd.f32 %v26761_v39, %v2774_v30  ;;  %v18023_v23 = vpop.f32.mrf.mxu0  ;;  %v21799_v53 = vld [vmem:[#allocation3 + $0x91] sm:$0xff]  ;;  %v21812_v9 = vld [vmem:[#allocation3 + $0x99] sm:$0xff]  ;;  %v26768_v43 = vld [vmem:[#allocation59_spill] sm:$0xff] }
 0x221   : > { %v21801_v17 = vld [vmem:[#allocation3 + $0x90] sm:$0xff]  ;;  %v21803_v15 = vld [vmem:[#allocation3 + $0x98] sm:$0xff]  ;;  %v3553_v12 = vadd.f32 %v21595_v50, %v3163_v10  ;;  %4043 = vst.msk [vmem:[#allocation3 + $0xc1] sm:$0xff] %vm389_vm3, %v4010_v44  ;;  %v4013_v59 = vmax.f32 %v3981_v16, 0.0  ;;  %v3980_v41 = vadd.f32 %v21542_v51, %v3941_v62  ;;  %v3944_v1 = vadd.f32 %v18023_v23, %v3554_v22  ;;  %18076 = vmatprep.mubr.msk.f32.mxu1 %vm389_vm3, %v21799_v53  ;;  %v26762_v24 = vld [vmem:[#allocation58_spill] sm:$0xff]  ;;  %v21817_v10 = vpop.f32.mrf.mxu1 }
 0x222   : > { %18140 = vmatprep.mubr.msk.f32.mxu0 %vm389_vm3, %v21801_v17  ;;  %v2776_v30 = vadd.f32 %v26762_v24, %v2386_v25  ;;  %v2388_v31 = vadd.f32 %v26763_v52, %v1998_v35  ;;  %v3556_v50 = vadd.f32 %v21619_v33, %v3166_v5  ;;  %v3856_v57 = vpop.f32.mrf.mxu0  ;;  %18077 = vmatmul.mubr.msk.f32.gmra.mxu1 %vm389_vm3, %v21812_v9  ;;  %v26764_v22 = vld [vmem:[#allocation95_spill] sm:$0xff]  ;;  %v26765_v37 = vld [vmem:[#allocation24_spill] sm:$0xff]  ;;  %v26766_v33 = vld [vmem:[#allocation25_spill] sm:$0xff] }
 0x223   : > { %18141 = vmatmul.mubr.msk.f32.gmra.mxu0 %vm389_vm3, %v21803_v15  ;;  %v3168_v44 = vadd.f32 %v26764_v22, %v2777_v55  ;;  %4046 = vst.msk [vmem:[#allocation3 + $0xe1] sm:$0xff] %vm389_vm3, %v4013_v59  ;;  %v4012_v16 = vmax.f32 %v3980_v41, 0.0  ;;  %v3983_v25 = vadd.f32 %v21542_v51, %v3944_v1  ;;  %v3943_v62 = vadd.f32 %v3856_v57, %v3553_v12  ;;  %v26767_v3 = vld [vmem:[#allocation60_spill] sm:$0xff]  ;;  %v26770_v41 = vld [vmem:[#allocation97_spill] sm:$0xff] }
 0x224   : > { %v2000_v35 = vadd.f32 %v26765_v37, %v1610_v6  ;;  %v1612_v5 = vadd.f32 %v26766_v33, %v21614_v21  ;;  %v2779_v54 = vadd.f32 %v26768_v43, %v26767_v3  ;;  %v3555_v39 = vadd.f32 %v21651_v49, %v3165_v11  ;;  %v18026_v23 = vpop.f32.mrf.mxu0  ;;  %v21832_v24 = vld [vmem:[#allocation3 + $0xa9] sm:$0xff]  ;;  %v21845_v49 = vld [vmem:[#allocation3 + $0xb1] sm:$0xff]  ;;  %v26772_v11 = vld [vmem:[#allocation62_spill] sm:$0xff]  ;;  %v21850_v33 = vpop.f32.mrf.mxu1 }
 0x225   : > { %26769 = vst [vmem:[#allocation30_spill] sm:$0xff] %v21832_v24  ;;  %v21834_v55 = vld [vmem:[#allocation3 + $0xa8] sm:$0xff]  ;;  %v21836_v59 = vld [vmem:[#allocation3 + $0xb0] sm:$0xff]  ;;  %v3167_v1 = vadd.f32 %v26770_v41, %v2776_v30  ;;  %4045 = vst.msk [vmem:[#allocation3 + $0xd9] sm:$0xff] %vm389_vm3, %v4012_v16  ;;  %v4015_v6 = vmax.f32 %v3983_v25, 0.0  ;;  %v3982_v12 = vadd.f32 %v21542_v51, %v3943_v62  ;;  %v3946_v21 = vadd.f32 %v18026_v23, %v3556_v50 }
 0x226   : > { %18079 = vmatprep.mubr.msk.f32.mxu1 %vm389_vm3, %v21832_v24  ;;  %18143 = vmatprep.mubr.msk.f32.mxu0 %vm389_vm3, %v21834_v55  ;;  %26771 = vst [vmem:[#allocation33_spill] sm:$0xff] %v21845_v49  ;;  %v2778_v52 = vadd.f32 %v26772_v11, %v2388_v31  ;;  %v26773_v57 = vld [vmem:[#allocation65_spill] sm:$0xff]  ;;  %v26774_v37 = vld [vmem:[#allocation98_spill] sm:$0xff]  ;;  %v3866_v16 = vpop.f32.mrf.mxu0  ;;  %v3558_v50 = vadd.f32 %v21685_v47, %v3168_v44  ;;  %v26776_v43 = vld [vmem:[#allocation27_spill] sm:$0xff] }
 0x227   : > { %v2390_v22 = vadd.f32 %v26773_v57, %v2000_v35  ;;  %v3170_v30 = vadd.f32 %v26774_v37, %v2779_v54  ;;  %18080 = vmatmul.mubr.msk.f32.gmra.mxu1 %vm389_vm3, %v21845_v49  ;;  %18144 = vmatmul.mubr.msk.f32.gmra.mxu0 %vm389_vm3, %v21836_v59  ;;  %4048 = vst.msk [vmem:[#allocation3 + $0xf9] sm:$0xff] %vm389_vm3, %v4015_v6  ;;  %v4014_v25 = vmax.f32 %v3982_v12, 0.0  ;;  %v26775_v35 = vld [vmem:[#allocation26_spill] sm:$0xff]  ;;  %v26777_v23 = vld [vmem:[#allocation64_spill] sm:$0xff]  ;;  %v26778_v41 = vld [vmem:[#allocation63_spill] sm:$0xff] }
 0x228   : > { %v3985_v31 = vadd.f32 %v21542_v51, %v3946_v21  ;;  %v3945_v62 = vadd.f32 %v3866_v16, %v3555_v39  ;;  %v2002_v3 = vadd.f32 %v26775_v35, %v1612_v5  ;;  %v1614_v54 = vadd.f32 %v26776_v43, %v21626_v29  ;;  %v26779_v57 = vld [vmem:[#allocation99_spill] sm:$0xff]  ;;  %v18029_v49 = vpop.f32.mrf.mxu0  ;;  %v21867_v47 = vld [vmem:[#allocation3 + $0xc0] sm:$0xff]  ;;  %v26782_v16 = vld [vmem:[#allocation69_spill] sm:$0xff] }
 0x229   : > { %v2781_v11 = vadd.f32 %v26778_v41, %v26777_v23  ;;  %v3169_v37 = vadd.f32 %v26779_v57, %v2778_v52  ;;  %v21865_v24 = vld [vmem:[#allocation3 + $0xc1] sm:$0xff]  ;;  %v3557_v6 = vadd.f32 %v21718_v19, %v3167_v1  ;;  %4047 = vst.msk [vmem:[#allocation3 + $0xf1] sm:$0xff] %vm389_vm3, %v4014_v25  ;;  %v3948_v29 = vadd.f32 %v18029_v49, %v3558_v50  ;;  %v21878_v12 = vld [vmem:[#allocation3 + $0xc9] sm:$0xff]  ;;  %v17988_v1 = vpop.f32.mrf.mxu1 }
 0x22a   : > { %v21869_v44 = vld [vmem:[#allocation3 + $0xc8] sm:$0xff]  ;;  %v4017_v5 = vmax.f32 %v3985_v31, 0.0  ;;  %v3984_v39 = vadd.f32 %v21542_v51, %v3945_v62  ;;  %18082 = vmatprep.mubr.msk.f32.mxu1 %vm389_vm3, %v21865_v24  ;;  %18146 = vmatprep.mubr.msk.f32.mxu0 %vm389_vm3, %v21867_v47  ;;  %26780 = vst [vmem:[#allocation76_spill] sm:$0xff] %v21878_v12  ;;  %v26781_v21 = vld [vmem:[#allocation66_spill] sm:$0xff]  ;;  %v2392_v35 = vadd.f32 %v26782_v16, %v2002_v3  ;;  %v3876_v25 = vpop.f32.mrf.mxu0  ;;  %v26783_v49 = vld [vmem:[#allocation100_spill] sm:$0xff] }
 0x22b   : > { %v2780_v52 = vadd.f32 %v26781_v21, %v2390_v22  ;;  %v3560_v19 = vadd.f32 %v21751_v8, %v3170_v30  ;;  %18083 = vmatmul.mubr.msk.f32.gmra.mxu1 %vm389_vm3, %v21878_v12  ;;  %18147 = vmatmul.mubr.msk.f32.gmra.mxu0 %vm389_vm3, %v21869_v44  ;;  %v3172_v50 = vadd.f32 %v26783_v49, %v2781_v11  ;;  %v26784_v43 = vld [vmem:[#allocation28_spill] sm:$0xff]  ;;  %v26786_v8 = vld [vmem:[#allocation67_spill] sm:$0xff]  ;;  %v26787_v11 = vld [vmem:[#allocation101_spill] sm:$0xff] }
 0x22c   : > { %4050 = vst.msk [vmem:[#allocation3 + $0x111] sm:$0xff] %vm389_vm3, %v4017_v5  ;;  %v4016_v31 = vmax.f32 %v3984_v39, 0.0  ;;  %v3987_v62 = vadd.f32 %v21542_v51, %v3948_v29  ;;  %v3947_v22 = vadd.f32 %v3876_v25, %v3557_v6  ;;  %v2004_v3 = vadd.f32 %v26784_v43, %v1614_v54  ;;  %v26785_v23 = vld [vmem:[#allocation68_spill] sm:$0xff]  ;;  %v18032_v57 = vpop.f32.mrf.mxu0  ;;  %v21894_v21 = vld [vmem:[#allocation3 + $0xd9] sm:$0xff]  ;;  %v3516_v43 = vpop.f32.mrf.mxu1 }
 0x22d   : > { %v2783_v30 = vadd.f32 %v26786_v8, %v26785_v23  ;;  %v3559_v41 = vadd.f32 %v21784_v42, %v3169_v37  ;;  %v21896_v16 = vld [vmem:[#allocation3 + $0xd8] sm:$0xff]  ;;  %v21898_v12 = vld [vmem:[#allocation3 + $0xe0] sm:$0xff]  ;;  %v3171_v5 = vadd.f32 %v26787_v11, %v2780_v52  ;;  %v3950_v54 = vadd.f32 %v18032_v57, %v3560_v19  ;;  %18085 = vmatprep.mubr.msk.f32.mxu1 %vm389_vm3, %v21894_v21  ;;  %v26790_v23 = vld [vmem:[#allocation72_spill] sm:$0xff] }
 0x22e   : > { %4049 = vst.msk [vmem:[#allocation3 + $0x109] sm:$0xff] %vm389_vm3, %v4016_v31  ;;  %v4019_v39 = vmax.f32 %v3987_v62, 0.0  ;;  %v3986_v6 = vadd.f32 %v21542_v51, %v3947_v22  ;;  %18149 = vmatprep.mubr.msk.f32.mxu0 %vm389_vm3, %v21896_v16  ;;  %v21907_v42 = vld [vmem:[#allocation3 + $0xe1] sm:$0xff]  ;;  %v26789_v25 = vld [vmem:[#allocation73_spill] sm:$0xff]  ;;  %v3886_v31 = vpop.f32.mrf.mxu0  ;;  %v3562_v19 = vadd.f32 %v21817_v10, %v3172_v50 }
 0x22f   : > { %v26788_v37 = vld [vmem:[#allocation70_spill] sm:$0xff]  ;;  %v2394_v49 = vadd.f32 %v26789_v25, %v2004_v3  ;;  %v3174_v52 = vadd.f32 %v21501_v28, %v2783_v30  ;;  %18086 = vmatmul.mubr.msk.f32.gmra.mxu1 %vm389_vm3, %v21907_v42  ;;  %18150 = vmatmul.mubr.msk.f32.gmra.mxu0 %vm389_vm3, %v21898_v12  ;;  %v3989_v22 = vadd.f32 %v21542_v51, %v3950_v54  ;;  %v26791_v3 = vld [vmem:[#allocation71_spill] sm:$0xff] }
 0x230   : > { %v2782_v29 = vadd.f32 %v26788_v37, %v2392_v35  ;;  %4052 = vst.msk [vmem:[#allocation3 + $0x129] sm:$0xff] %vm389_vm3, %v4019_v39  ;;  %v4018_v62 = vmax.f32 %v3986_v6, 0.0  ;;  %v3949_v35 = vadd.f32 %v3886_v31, %v3559_v41  ;;  %v2785_v8 = vadd.f32 %v26791_v3, %v26790_v23  ;;  %v26792_v28 = vld [vmem:[#allocation102_spill] sm:$0xff]  ;;  %v18035_v57 = vpop.f32.mrf.mxu0  ;;  %v21922_v11 = vld [vmem:[#allocation3 + $0xf1] sm:$0xff]  ;;  %v17991_v23 = vpop.f32.mrf.mxu1 }
 0x231   : > { %v21924_v37 = vld [vmem:[#allocation3 + $0xf0] sm:$0xff]  ;;  %v21926_v25 = vld [vmem:[#allocation3 + $0xf8] sm:$0xff]  ;;  %v3561_v10 = vadd.f32 %v21850_v33, %v3171_v5  ;;  %v4021_v50 = vmax.f32 %v3989_v22, 0.0  ;;  %v3952_v41 = vadd.f32 %v18035_v57, %v3562_v19  ;;  %18088 = vmatprep.mubr.msk.f32.mxu1 %vm389_vm3, %v21922_v11  ;;  %v26793_v54 = vld [vmem:[#allocation74_spill] sm:$0xff]  ;;  %v3564_v31 = vadd.f32 %v17988_v1, %v3174_v52 }
 0x232   : > { %v3173_v30 = vadd.f32 %v26792_v28, %v2782_v29  ;;  %4051 = vst.msk [vmem:[#allocation3 + $0x121] sm:$0xff] %vm389_vm3, %v4018_v62  ;;  %v3988_v39 = vadd.f32 %v21542_v51, %v3949_v35  ;;  %18152 = vmatprep.mubr.msk.f32.mxu0 %vm389_vm3, %v21924_v37  ;;  %v21935_v6 = vld [vmem:[#allocation3 + $0xf9] sm:$0xff]  ;;  %v2784_v29 = vadd.f32 %v26793_v54, %v2394_v49  ;;  %v3896_v3 = vpop.f32.mrf.mxu0 }
 0x233   : > { %18089 = vmatmul.mubr.msk.f32.gmra.mxu1 %vm389_vm3, %v21935_v6  ;;  %18153 = vmatmul.mubr.msk.f32.gmra.mxu0 %vm389_vm3, %v21926_v25  ;;  %v3176_v33 = vadd.f32 %v21516_v48, %v2785_v8  ;;  %4054 = vst.msk [vmem:[#allocation3 + $0x141] sm:$0xff] %vm389_vm3, %v4021_v50  ;;  %v3991_v19 = vadd.f32 %v21542_v51, %v3952_v41 }
 0x234   : > { %v4020_v5 = vmax.f32 %v3988_v39, 0.0  ;;  %v3951_v62 = vadd.f32 %v3896_v3, %v3561_v10  ;;  %v3563_v22 = vadd.f32 %v3516_v43, %v3173_v30  ;;  %v18038_v35 = vpop.f32.mrf.mxu0  ;;  %v3175_v28 = vadd.f32 %v21524_v7, %v2784_v29  ;;  %v21958_v43 = vld [vmem:[#allocation3 + $0x111] sm:$0xff]  ;;  %v3526_v30 = vpop.f32.mrf.mxu1 }
 0x235   : > { %v21945_v49 = vld [vmem:[#allocation3 + $0x109] sm:$0xff]  ;;  %v4023_v57 = vmax.f32 %v3991_v19, 0.0  ;;  %v3954_v8 = vadd.f32 %v18038_v35, %v3564_v31  ;;  %v3566_v7 = vadd.f32 %v17991_v23, %v3176_v33 }
 0x236   : > { %v21947_v1 = vld [vmem:[#allocation3 + $0x108] sm:$0xff]  ;;  %v21949_v52 = vld [vmem:[#allocation3 + $0x110] sm:$0xff]  ;;  %4053 = vst.msk [vmem:[#allocation3 + $0x139] sm:$0xff] %vm389_vm3, %v4020_v5  ;;  %v3990_v48 = vadd.f32 %v21542_v51, %v3951_v62  ;;  %18091 = vmatprep.mubr.msk.f32.mxu1 %vm389_vm3, %v21945_v49  ;;  %v3906_v10 = vpop.f32.mrf.mxu0  ;;  %v3565_v5 = vadd.f32 %v3526_v30, %v3175_v28 }
 0x237   : > { %18155 = vmatprep.mubr.msk.f32.mxu0 %vm389_vm3, %v21947_v1  ;;  %18092 = vmatmul.mubr.msk.f32.gmra.mxu1 %vm389_vm3, %v21958_v43  ;;  %4056 = vst.msk [vmem:[#allocation3 + $0x159] sm:$0xff] %vm389_vm3, %v4023_v57  ;;  %v3993_v39 = vadd.f32 %v21542_v51, %v3954_v8  ;;  %v3953_v41 = vadd.f32 %v3906_v10, %v3563_v22  ;;  %v21978_v33 = vld [vmem:[#allocation3 + $0x129] sm:$0xff] }
 0x238   : > { %18156 = vmatmul.mubr.msk.f32.gmra.mxu0 %vm389_vm3, %v21949_v52  ;;  %v4022_v50 = vmax.f32 %v3990_v48, 0.0  ;;  %v18041_v54 = vpop.f32.mrf.mxu0 }
 0x239   : > { %v21966_v29 = vld [vmem:[#allocation3 + $0x121] sm:$0xff]  ;;  %v4025_v19 = vmax.f32 %v3993_v39, 0.0  ;;  %v3992_v62 = vadd.f32 %v21542_v51, %v3953_v41  ;;  %v3956_v23 = vadd.f32 %v18041_v54, %v3566_v7 }
 0x23a   : > { %v21968_v31 = vld [vmem:[#allocation3 + $0x120] sm:$0xff]  ;;  %v21970_v3 = vld [vmem:[#allocation3 + $0x128] sm:$0xff]  ;;  %4055 = vst.msk [vmem:[#allocation3 + $0x151] sm:$0xff] %vm389_vm3, %v4022_v50  ;;  %18094 = vmatprep.mubr.msk.f32.mxu1 %vm389_vm3, %v21966_v29  ;;  %v3916_v22 = vpop.f32.mrf.mxu0 }
 0x23b   : > { %18158 = vmatprep.mubr.msk.f32.mxu0 %vm389_vm3, %v21968_v31  ;;  %18095 = vmatmul.mubr.msk.f32.gmra.mxu1 %vm389_vm3, %v21978_v33  ;;  %4058 = vst.msk [vmem:[#allocation3 + $0x171] sm:$0xff] %vm389_vm3, %v4025_v19  ;;  %v4024_v35 = vmax.f32 %v3992_v62, 0.0  ;;  %v3995_v28 = vadd.f32 %v21542_v51, %v3956_v23  ;;  %v3955_v57 = vadd.f32 %v3916_v22, %v3565_v5  ;;  %v21998_v50 = vld [vmem:[#allocation3 + $0x141] sm:$0xff] }
 0x23c   : > { %18159 = vmatmul.mubr.msk.f32.gmra.mxu0 %vm389_vm3, %v21970_v3  ;;  %v4784_v19 = vld [vmem:[#allocation3 + $0x2] sm:$0xff] }
 0x23d   : > { %v21986_v48 = vld [vmem:[#allocation3 + $0x139] sm:$0xff]  ;;  %4057 = vst.msk [vmem:[#allocation3 + $0x169] sm:$0xff] %vm389_vm3, %v4024_v35  ;;  %v4027_v10 = vmax.f32 %v3995_v28, 0.0  ;;  %v3994_v7 = vadd.f32 %v21542_v51, %v3955_v57  ;;  %v4785_v28 = vld [vmem:[#allocation3 + $0xa] sm:$0xff] }
 0x23e   : > { %v21988_v8 = vld [vmem:[#allocation3 + $0x138] sm:$0xff]  ;;  %v21990_v30 = vld [vmem:[#allocation3 + $0x140] sm:$0xff]  ;;  %18097 = vmatprep.mubr.msk.f32.mxu1 %vm389_vm3, %v21986_v48 }
 0x23f   : > { %18161 = vmatprep.mubr.msk.f32.mxu0 %vm389_vm3, %v21988_v8  ;;  %18098 = vmatmul.mubr.msk.f32.gmra.mxu1 %vm389_vm3, %v21998_v50  ;;  %4060 = vst.msk [vmem:[#allocation3 + $0x189] sm:$0xff] %vm389_vm3, %v4027_v10  ;;  %v4026_v39 = vmax.f32 %v3994_v7, 0.0  ;;  %v22016_v5 = vld [vmem:[#allocation3 + $0x159] sm:$0xff]  ;;  %v18060_v10 = vpop.f32.mrf.mxu1  ;;  %v18124_v7 = vpop.f32.mrf.mxu0 }
 0x240   : > { %18162 = vmatmul.mubr.msk.f32.gmra.mxu0 %vm389_vm3, %v21990_v30  ;;  %v15310_v57 = vld [vmem:[%s26480_s3 + $0x130] sm:$0xff] }
 0x241   : > { %v22005_v41 = vld [vmem:[#allocation3 + $0x151] sm:$0xff]  ;;  %4059 = vst.msk [vmem:[#allocation3 + $0x181] sm:$0xff] %vm389_vm3, %v4026_v39  ;;  %v22047_v39 = vld [vmem:[#allocation3 + $0x1a] sm:$0xff] }
 0x242   : > { %v22007_v51 = vld [vmem:[#allocation3 + $0x150] sm:$0xff]  ;;  %v22009_v54 = vld [vmem:[#allocation3 + $0x158] sm:$0xff]  ;;  %18100 = vmatprep.mubr.msk.f32.mxu1 %vm389_vm3, %v22005_v41 }
 0x243   : > { %18164 = vmatprep.mubr.msk.f32.mxu0 %vm389_vm3, %v22007_v51  ;;  %18101 = vmatmul.mubr.msk.f32.gmra.mxu1 %vm389_vm3, %v22016_v5  ;;  %v22032_v35 = vld [vmem:[#allocation3 + $0x171] sm:$0xff] }
 0x244   : > { %18165 = vmatmul.mubr.msk.f32.gmra.mxu0 %vm389_vm3, %v22009_v54  ;;  %v22022_v62 = vld [vmem:[#allocation3 + $0x169] sm:$0xff]  ;;  %26795 = vst [vmem:[#allocation31_spill] sm:$0xff] %v22032_v35 }
 0x245   : > { %26794 = vst [vmem:[#allocation79_spill] sm:$0xff] %v22022_v62  ;;  %v22024_v23 = vld [vmem:[#allocation3 + $0x168] sm:$0xff]  ;;  %v22026_v22 = vld [vmem:[#allocation3 + $0x170] sm:$0xff]  ;;  %18103 = vmatprep.mubr.msk.f32.mxu1 %vm389_vm3, %v22022_v62 }
 0x246   : > { %18167 = vmatprep.mubr.msk.f32.mxu0 %vm389_vm3, %v22024_v23  ;;  %v26796_v62 = vld [vmem:[#allocation75_spill] sm:$0xff] }
 0x247   : > { %18104 = vmatmul.mubr.msk.f32.gmra.mxu1 %vm389_vm3, %v22032_v35  ;;  %v22049_v35 = vadd.f32 %v18124_v7, %v18060_v10  ;;  %v22111_v10 = vld [vmem:[#allocation3 + $0x6a] sm:$0xff]  ;;  %v15306_v7 = vld [vmem:[%s26480_s3 + $0x110] sm:$0xff] }
 0x248   : > { %18168 = vmatmul.mubr.msk.f32.gmra.mxu0 %vm389_vm3, %v22026_v22  ;;  %18186 = vmatprep.mubr.msk.f32.mxu1 %vm389_vm3, %v4784_v19  ;;  %v15350_v19 = vld [vmem:[%s26480_s3 + $0x170] sm:$0xff] }
 0x249   : > { %18250 = vmatprep.mubr.msk.f32.mxu0 %vm389_vm3, %v21635_v14  ;;  %v22056_v14 = vld [vmem:[#allocation3 + $0x22] sm:$0xff] }
 0x24b   : > { %18187 = vmatmul.mubr.msk.f32.vlgmr.msra.gmra.mxu1 %vm389_vm3, %v4785_v28  ;;  %v22093_v28 = vld [vmem:[#allocation3 + $0x52] sm:$0xff] }
 0x24c   : > { %18251 = vmatmul.mubr.msk.f32.vlgmr.msra.gmra.mxu0 %vm389_vm3, %v21637_v45  ;;  %18299 = vmatpush3.msra.mxu1 %v26796_v62  ;;  %v15309_v45 = vld [vmem:[%s26480_s3 + $0x128] sm:$0xff]  ;;  %v15308_v62 = vld [vmem:[%s26480_s3 + $0x120] sm:$0xff] }
 0x24d   : > { %18189 = vmatprep.mubr.msk.f32.mxu1 %vm389_vm3, %v22047_v39  ;;  %18253 = vmatprep.mubr.msk.f32.mxu0 %vm389_vm3, %v21669_v27  ;;  %v22069_v27 = vld [vmem:[#allocation3 + $0x32] sm:$0xff] }
 0x24e   : > { %18300 = vmatprep.subr.mxu1 %v15310_v57  ;;  %18363 = vmatpush3.msra.mxu0 %v21529_v60  ;;  %v22075_v60 = vld [vmem:[#allocation3 + $0x3a] sm:$0xff] }
 0x24f   : > { %18301 = vmatpush3.msra.mxu1 %v15310_v57  ;;  %18364 = vmatprep.subr.mxu0 %v15350_v19  ;;  %v15307_v57 = vld [vmem:[%s26480_s3 + $0x118] sm:$0xff] }
 0x250   : > { %18190 = vmatmul.mubr.msk.f32.gmra.mxu1 %vm389_vm3, %v22056_v14  ;;  %18254 = vmatmul.mubr.msk.f32.gmra.mxu0 %vm389_vm3, %v21671_v18  ;;  %v15349_v18 = vld [vmem:[%s26480_s3 + $0x168] sm:$0xff] }
 0x251   : > { %18192 = vmatprep.mubr.msk.f32.mxu1 %vm389_vm3, %v22069_v27  ;;  %18256 = vmatprep.mubr.msk.f32.mxu0 %vm389_vm3, %v21702_v26  ;;  %v22087_v26 = vld [vmem:[#allocation3 + $0x4a] sm:$0xff] }
 0x252   : > { %18302 = vmatprep.subr.mxu1 %v15309_v45  ;;  %18365 = vmatpush3.msra.mxu0 %v15350_v19  ;;  %v15305_v19 = vld [vmem:[%s26480_s3 + $0x108] sm:$0xff] }
 0x253   : > { %18303 = vmatpush3.msra.mxu1 %v15309_v45  ;;  %18366 = vmatprep.subr.mxu0 %v15349_v18  ;;  %v22129_v45 = vld [vmem:[#allocation3 + $0x82] sm:$0xff] }
 0x254   : > { %18193 = vmatmul.mubr.msk.f32.gmra.mxu1 %vm389_vm3, %v22075_v60  ;;  %18257 = vmatmul.mubr.msk.f32.gmra.mxu0 %vm389_vm3, %v21704_v63  ;;  %v15348_v63 = vld [vmem:[%s26480_s3 + $0x160] sm:$0xff] }
 0x255   : > { %18195 = vmatprep.mubr.msk.f32.mxu1 %vm389_vm3, %v22087_v26  ;;  %18259 = vmatprep.mubr.msk.f32.mxu0 %vm389_vm3, %v21735_v40  ;;  %v22105_v40 = vld [vmem:[#allocation3 + $0x62] sm:$0xff] }
 0x256   : > { %18304 = vmatprep.subr.mxu1 %v15308_v62  ;;  %18367 = vmatpush3.msra.mxu0 %v15349_v18  ;;  %v15304_v18 = vld [vmem:[%s26480_s3 + $0x100] sm:$0xff] }
 0x257   : > { %18305 = vmatpush3.msra.mxu1 %v15308_v62  ;;  %18368 = vmatprep.subr.mxu0 %v15348_v63  ;;  %v22147_v62 = vld [vmem:[#allocation3 + $0x9a] sm:$0xff] }
 0x258   : > { %18196 = vmatmul.mubr.msk.f32.gmra.mxu1 %vm389_vm3, %v22093_v28  ;;  %18260 = vmatmul.mubr.msk.f32.gmra.mxu0 %vm389_vm3, %v21737_v58  ;;  %v15347_v58 = vld [vmem:[%s26480_s3 + $0x158] sm:$0xff] }
 0x259   : > { %18198 = vmatprep.mubr.msk.f32.mxu1 %vm389_vm3, %v22105_v40  ;;  %18262 = vmatprep.mubr.msk.f32.mxu0 %vm389_vm3, %v21768_v46  ;;  %v22123_v46 = vld [vmem:[#allocation3 + $0x7a] sm:$0xff] }
 0x25a   : > { %18306 = vmatprep.subr.mxu1 %v15307_v57  ;;  %18369 = vmatpush3.msra.mxu0 %v15348_v63  ;;  %v15344_v63 = vld [vmem:[%s26480_s3 + $0x140] sm:$0xff] }
 0x25b   : > { %18307 = vmatpush3.msra.mxu1 %v15307_v57  ;;  %18370 = vmatprep.subr.mxu0 %v15347_v58  ;;  %v22165_v57 = vld [vmem:[#allocation3 + $0xb2] sm:$0xff] }
 0x25c   : > { %18199 = vmatmul.mubr.msk.f32.gmra.mxu1 %vm389_vm3, %v22111_v10  ;;  %18263 = vmatmul.mubr.msk.f32.gmra.mxu0 %vm389_vm3, %v21770_v61  ;;  %v15346_v61 = vld [vmem:[%s26480_s3 + $0x150] sm:$0xff] }
 0x25d   : > { %18201 = vmatprep.mubr.msk.f32.mxu1 %vm389_vm3, %v22123_v46  ;;  %18265 = vmatprep.mubr.msk.f32.mxu0 %vm389_vm3, %v21801_v17  ;;  %v22141_v17 = vld [vmem:[#allocation3 + $0x92] sm:$0xff] }
 0x25e   : > { %18308 = vmatprep.subr.mxu1 %v15306_v7  ;;  %18371 = vmatpush3.msra.mxu0 %v15347_v58  ;;  %v15431_v58 = vld [vmem:[%s26480_s3 + $0x1f8] sm:$0xff] }
 0x25f   : > { %18309 = vmatpush3.msra.mxu1 %v15306_v7  ;;  %18372 = vmatprep.subr.mxu0 %v15346_v61  ;;  %v22186_v7 = vld [vmem:[#allocation3 + $0xca] sm:$0xff] }
 0x260   : > { %18202 = vmatmul.mubr.msk.f32.gmra.mxu1 %vm389_vm3, %v22129_v45  ;;  %18266 = vmatmul.mubr.msk.f32.gmra.mxu0 %vm389_vm3, %v21803_v15  ;;  %v15345_v15 = vld [vmem:[%s26480_s3 + $0x148] sm:$0xff] }
 0x261   : > { %18204 = vmatprep.mubr.msk.f32.mxu1 %vm389_vm3, %v22141_v17  ;;  %18268 = vmatprep.mubr.msk.f32.mxu0 %vm389_vm3, %v21834_v55  ;;  %v22159_v55 = vld [vmem:[#allocation3 + $0xaa] sm:$0xff] }
 0x262   : > { %18310 = vmatprep.subr.mxu1 %v15305_v19  ;;  %18373 = vmatpush3.msra.mxu0 %v15346_v61  ;;  %v22269_v61 = vld [vmem:[#allocation3 + $0x180] sm:$0xff] }
 0x263   : > { %18311 = vmatpush3.msra.mxu1 %v15305_v19  ;;  %18374 = vmatprep.subr.mxu0 %v15345_v15  ;;  %v22207_v19 = vld [vmem:[#allocation3 + $0xf2] sm:$0xff] }
 0x264   : > { %18205 = vmatmul.mubr.msk.f32.gmra.mxu1 %vm389_vm3, %v22147_v62  ;;  %18269 = vmatmul.mubr.msk.f32.gmra.mxu0 %vm389_vm3, %v21836_v59  ;;  %v22173_v59 = vld [vmem:[%s26480_s3 + $0x1b8] sm:$0xff] }
 0x265   : > { %18207 = vmatprep.mubr.msk.f32.mxu1 %vm389_vm3, %v22159_v55  ;;  %18271 = vmatprep.mubr.msk.f32.mxu0 %vm389_vm3, %v21867_v47  ;;  %v22179_v47 = vld [vmem:[#allocation3 + $0xc2] sm:$0xff] }
 0x266   : > { %18312 = vmatprep.subr.mxu1 %v15304_v18  ;;  %18375 = vmatpush3.msra.mxu0 %v15345_v15  ;;  %v6759_v15 = vld [vmem:[#allocation3 + $0x61] sm:$0xff] }
 0x267   : > { %18313 = vmatpush3.msra.mxu1 %v15304_v18  ;;  %18376 = vmatprep.subr.mxu0 %v15344_v63  ;;  %v6365_v18 = vld [vmem:[#allocation3 + $0x60] sm:$0xff] }
 0x268   : > { %18208 = vmatmul.mubr.msk.f32.gmra.mxu1 %vm389_vm3, %v22165_v57  ;;  %18272 = vmatmul.mubr.msk.f32.gmra.mxu0 %vm389_vm3, %v21869_v44  ;;  %v22195_v44 = vld [vmem:[#allocation3 + $0xda] sm:$0xff] }
 0x269   : > { %18210 = vmatprep.mubr.msk.f32.mxu1 %vm389_vm3, %v22179_v47  ;;  %18274 = vmatprep.mubr.msk.f32.mxu0 %vm389_vm3, %v21896_v16  ;;  %v22201_v16 = vld [vmem:[#allocation3 + $0xe2] sm:$0xff] }
 0x26a   : > { %18426 = vmatprep.subr.mxu1 %v22173_v59  ;;  %18377 = vmatpush3.msra.mxu0 %v15344_v63 }
 0x26b   : > { %18490 = vmatprep.subr.mxu0 %v15431_v58 }
 0x26c   : > { %18211 = vmatmul.mubr.msk.f32.gmra.mxu1 %vm389_vm3, %v22186_v7  ;;  %18275 = vmatmul.mubr.msk.f32.gmra.mxu0 %vm389_vm3, %v21898_v12  ;;  %v22213_v12 = vld [vmem:[#allocation3 + $0xfa] sm:$0xff] }
 0x26d   : > { %18213 = vmatprep.mubr.msk.f32.mxu1 %vm389_vm3, %v22195_v44  ;;  %18277 = vmatprep.mubr.msk.f32.mxu0 %vm389_vm3, %v21924_v37  ;;  %v22219_v37 = vld [vmem:[#allocation3 + $0x10a] sm:$0xff] }
 0x270   : > { %18214 = vmatmul.mubr.msk.f32.gmra.mxu1 %vm389_vm3, %v22201_v16  ;;  %18278 = vmatmul.mubr.msk.f32.gmra.mxu0 %vm389_vm3, %v21926_v25  ;;  %v22225_v25 = vld [vmem:[#allocation3 + $0x112] sm:$0xff] }
 0x271   : > { %18216 = vmatprep.mubr.msk.f32.mxu1 %vm389_vm3, %v22207_v19  ;;  %18280 = vmatprep.mubr.msk.f32.mxu0 %vm389_vm3, %v21947_v1  ;;  %v22231_v1 = vld [vmem:[#allocation3 + $0x122] sm:$0xff] }
 0x274   : > { %18217 = vmatmul.mubr.msk.f32.gmra.mxu1 %vm389_vm3, %v22213_v12  ;;  %18281 = vmatmul.mubr.msk.f32.gmra.mxu0 %vm389_vm3, %v21949_v52  ;;  %v22237_v52 = vld [vmem:[#allocation3 + $0x12a] sm:$0xff] }
 0x275   : > { %18219 = vmatprep.mubr.msk.f32.mxu1 %vm389_vm3, %v22219_v37  ;;  %18283 = vmatprep.mubr.msk.f32.mxu0 %vm389_vm3, %v21968_v31  ;;  %v22243_v31 = vld [vmem:[#allocation3 + $0x13a] sm:$0xff] }
 0x278   : > { %18220 = vmatmul.mubr.msk.f32.gmra.mxu1 %vm389_vm3, %v22225_v25  ;;  %18284 = vmatmul.mubr.msk.f32.gmra.mxu0 %vm389_vm3, %v21970_v3  ;;  %v22249_v3 = vld [vmem:[#allocation3 + $0x142] sm:$0xff] }
 0x279   : > { %18222 = vmatprep.mubr.msk.f32.mxu1 %vm389_vm3, %v22231_v1  ;;  %18286 = vmatprep.mubr.msk.f32.mxu0 %vm389_vm3, %v21988_v8  ;;  %v22255_v8 = vld [vmem:[#allocation3 + $0x152] sm:$0xff] }
 0x27c   : > { %18223 = vmatmul.mubr.msk.f32.gmra.mxu1 %vm389_vm3, %v22237_v52  ;;  %18287 = vmatmul.mubr.msk.f32.gmra.mxu0 %vm389_vm3, %v21990_v30  ;;  %v22261_v30 = vld [vmem:[#allocation3 + $0x15a] sm:$0xff] }
 0x27d   : > { %18225 = vmatprep.mubr.msk.f32.mxu1 %vm389_vm3, %v22243_v31  ;;  %18289 = vmatprep.mubr.msk.f32.mxu0 %vm389_vm3, %v22007_v51  ;;  %v22267_v51 = vld [vmem:[#allocation3 + $0x16a] sm:$0xff] }
 0x280   : > { %18226 = vmatmul.mubr.msk.f32.gmra.mxu1 %vm389_vm3, %v22249_v3  ;;  %18290 = vmatmul.mubr.msk.f32.gmra.mxu0 %vm389_vm3, %v22009_v54  ;;  %v22275_v54 = vld [vmem:[#allocation3 + $0x172] sm:$0xff] }
 0x281   : > { %18228 = vmatprep.mubr.msk.f32.mxu1 %vm389_vm3, %v22255_v8  ;;  %18292 = vmatprep.mubr.msk.f32.mxu0 %vm389_vm3, %v22024_v23  ;;  %v22277_v23 = vld [vmem:[#allocation3 + $0x188] sm:$0xff] }
 0x284   : > { %18229 = vmatmul.mubr.msk.f32.gmra.mxu1 %vm389_vm3, %v22261_v30  ;;  %18293 = vmatmul.mubr.msk.f32.gmra.mxu0 %vm389_vm3, %v22026_v22  ;;  %v15390_v22 = vld [vmem:[%s26480_s3 + $0x1b0] sm:$0xff] }
 0x285   : > { %18231 = vmatprep.mubr.msk.f32.mxu1 %vm389_vm3, %v22267_v51  ;;  %18295 = vmatprep.mubr.msk.f32.mxu0 %vm389_vm3, %v22269_v61 }
 0x288   : > { %18232 = vmatmul.mubr.msk.f32.gmra.mxu1 %vm389_vm3, %v22275_v54  ;;  %18296 = vmatmul.mubr.msk.f32.gmra.mxu0 %vm389_vm3, %v22277_v23 }
 0x289   : > { %18314 = vmatprep.mubr.msk.f32.mxu1 %vm389_vm3, %v21633_v56  ;;  %18378 = vmatprep.mubr.msk.f32.mxu0 %vm389_vm3, %v22047_v39  ;;  %v15389_v56 = vld [vmem:[%s26480_s3 + $0x1a8] sm:$0xff]  ;;  %v15384_v39 = vld [vmem:[%s26480_s3 + $0x180] sm:$0xff] }
 0x28c   : > { %18315 = vmatmul.mubr.msk.f32.vlgmr.msra.gmra.mxu1 %vm389_vm3, %v21646_v4  ;;  %18379 = vmatmul.mubr.msk.f32.vlgmr.msra.gmra.mxu0 %vm389_vm3, %v22056_v14  ;;  %v15430_v4 = vld [vmem:[%s26480_s3 + $0x1f0] sm:$0xff]  ;;  %v26798_v14 = vld [vmem:[#allocation33_spill] sm:$0xff] }
 0x28d   : > { %18427 = vmatpush3.msra.mxu1 %v22173_v59  ;;  %18317 = vmatprep.mubr.msk.f32.mxu1 %vm389_vm3, %v21667_v0  ;;  %v15388_v0 = vld [vmem:[%s26480_s3 + $0x1a0] sm:$0xff] }
 0x28e   : > { %18381 = vmatprep.mubr.msk.f32.mxu0 %vm389_vm3, %v22069_v27  ;;  %18428 = vmatprep.subr.mxu1 %v15390_v22  ;;  %v15424_v27 = vld [vmem:[%s26480_s3 + $0x1c0] sm:$0xff] }
 0x28f   : > { %18429 = vmatpush3.msra.mxu1 %v15390_v22  ;;  %18491 = vmatpush3.msra.mxu0 %v15431_v58  ;;  %v15468_v58 = vld [vmem:[%s26480_s3 + $0x220] sm:$0xff] }
 0x290   : > { %18318 = vmatmul.mubr.msk.f32.gmra.mxu1 %vm389_vm3, %v21680_v13  ;;  %18382 = vmatmul.mubr.msk.f32.gmra.mxu0 %vm389_vm3, %v22075_v60  ;;  %v15429_v13 = vld [vmem:[%s26480_s3 + $0x1e8] sm:$0xff]  ;;  %v15471_v60 = vld [vmem:[%s26480_s3 + $0x238] sm:$0xff] }
 0x291   : > { %18320 = vmatprep.mubr.msk.f32.mxu1 %vm389_vm3, %v21700_v20  ;;  %18384 = vmatprep.mubr.msk.f32.mxu0 %vm389_vm3, %v22087_v26  ;;  %v15387_v20 = vld [vmem:[%s26480_s3 + $0x198] sm:$0xff]  ;;  %v26799_v26 = vld [vmem:[#allocation76_spill] sm:$0xff] }
 0x292   : > { %18430 = vmatprep.subr.mxu1 %v15389_v56  ;;  %18492 = vmatprep.subr.mxu0 %v15430_v4  ;;  %v6763_v22 = vld [vmem:[#allocation3 + $0x91] sm:$0xff] }
 0x293   : > { %18431 = vmatpush3.msra.mxu1 %v15389_v56  ;;  %18493 = vmatpush3.msra.mxu0 %v15430_v4 }
 0x294   : > { %18321 = vmatmul.mubr.msk.f32.gmra.mxu1 %vm389_vm3, %v21713_v38  ;;  %18385 = vmatmul.mubr.msk.f32.gmra.mxu0 %vm389_vm3, %v22093_v28  ;;  %v15428_v38 = vld [vmem:[%s26480_s3 + $0x1e0] sm:$0xff]  ;;  %v22473_v28 = vpop.f32.mrf.mxu1 }
 0x295   : > { %18323 = vmatprep.mubr.msk.f32.mxu1 %vm389_vm3, %v21733_v32  ;;  %18387 = vmatprep.mubr.msk.f32.mxu0 %vm389_vm3, %v22105_v40  ;;  %v15386_v32 = vld [vmem:[%s26480_s3 + $0x190] sm:$0xff]  ;;  %v22475_v40 = vpop.f32.mrf.mxu0 }
 0x296   : > { %18432 = vmatprep.subr.mxu1 %v15388_v0  ;;  %18494 = vmatprep.subr.mxu0 %v15429_v13 }
 0x297   : > { %18433 = vmatpush3.msra.mxu1 %v15388_v0  ;;  %18495 = vmatpush3.msra.mxu0 %v15429_v13 }
 0x298   : > { %18324 = vmatmul.mubr.msk.f32.gmra.mxu1 %vm389_vm3, %v21746_v2  ;;  %18388 = vmatmul.mubr.msk.f32.gmra.mxu0 %vm389_vm3, %v22111_v10  ;;  %v15427_v2 = vld [vmem:[%s26480_s3 + $0x1d8] sm:$0xff]  ;;  %v6364_v10 = vld [vmem:[#allocation3 + $0x50] sm:$0xff] }
 0x299   : > { %18326 = vmatprep.mubr.msk.f32.mxu1 %vm389_vm3, %v21766_v36  ;;  %18390 = vmatprep.mubr.msk.f32.mxu0 %vm389_vm3, %v22123_v46  ;;  %v15385_v36 = vld [vmem:[%s26480_s3 + $0x188] sm:$0xff] }
 0x29a   : > { %18434 = vmatprep.subr.mxu1 %v15387_v20  ;;  %18496 = vmatprep.subr.mxu0 %v15428_v38  ;;  %v6758_v46 = vld [vmem:[#allocation3 + $0x51] sm:$0xff] }
 0x29b   : > { %18435 = vmatpush3.msra.mxu1 %v15387_v20  ;;  %18497 = vmatpush3.msra.mxu0 %v15428_v38  ;;  %v6370_v20 = vld [vmem:[#allocation3 + $0x98] sm:$0xff] }
 0x29c   : > { %18327 = vmatmul.mubr.msk.f32.gmra.mxu1 %vm389_vm3, %v21779_v34  ;;  %18391 = vmatmul.mubr.msk.f32.gmra.mxu0 %vm389_vm3, %v22129_v45  ;;  %v15426_v34 = vld [vmem:[%s26480_s3 + $0x1d0] sm:$0xff]  ;;  %v15469_v45 = vld [vmem:[%s26480_s3 + $0x228] sm:$0xff] }
 0x29d   : > { %18329 = vmatprep.mubr.msk.f32.mxu1 %vm389_vm3, %v21799_v53  ;;  %18393 = vmatprep.mubr.msk.f32.mxu0 %vm389_vm3, %v22141_v17  ;;  %v26797_v53 = vld [vmem:[#allocation30_spill] sm:$0xff] }
 0x29e   : > { %18436 = vmatprep.subr.mxu1 %v15386_v32  ;;  %18498 = vmatprep.subr.mxu0 %v15427_v2  ;;  %v6764_v38 = vld [vmem:[#allocation3 + $0x99] sm:$0xff] }
 0x29f   : > { %18437 = vmatpush3.msra.mxu1 %v15386_v32  ;;  %18499 = vmatpush3.msra.mxu0 %v15427_v2  ;;  %v15466_v32 = vld [vmem:[%s26480_s3 + $0x210] sm:$0xff] }
 0x2a0   : > { %18330 = vmatmul.mubr.msk.f32.gmra.mxu1 %vm389_vm3, %v21812_v9  ;;  %18394 = vmatmul.mubr.msk.f32.gmra.mxu0 %vm389_vm3, %v22147_v62  ;;  %v15425_v9 = vld [vmem:[%s26480_s3 + $0x1c8] sm:$0xff] }
 0x2a1   : > { %18332 = vmatprep.mubr.msk.f32.mxu1 %vm389_vm3, %v26797_v53  ;;  %18396 = vmatprep.mubr.msk.f32.mxu0 %vm389_vm3, %v22159_v55  ;;  %v6765_v53 = vld [vmem:[#allocation3 + $0xa9] sm:$0xff] }
 0x2a2   : > { %18438 = vmatprep.subr.mxu1 %v15385_v36  ;;  %18500 = vmatprep.subr.mxu0 %v15426_v34 }
 0x2a3   : > { %18439 = vmatpush3.msra.mxu1 %v15385_v36  ;;  %18501 = vmatpush3.msra.mxu0 %v15426_v34  ;;  %v6371_v34 = vld [vmem:[#allocation3 + $0xa8] sm:$0xff] }
 0x2a4   : > { %18333 = vmatmul.mubr.msk.f32.gmra.mxu1 %vm389_vm3, %v26798_v14  ;;  %18397 = vmatmul.mubr.msk.f32.gmra.mxu0 %vm389_vm3, %v22165_v57 }
 0x2a5   : > { %18335 = vmatprep.mubr.msk.f32.mxu1 %vm389_vm3, %v21865_v24  ;;  %18399 = vmatprep.mubr.msk.f32.mxu0 %vm389_vm3, %v22179_v47  ;;  %v26800_v24 = vld [vmem:[#allocation79_spill] sm:$0xff] }
 0x2a6   : > { %18440 = vmatprep.subr.mxu1 %v15384_v39  ;;  %18502 = vmatprep.subr.mxu0 %v15425_v9  ;;  %v6366_v47 = vld [vmem:[#allocation3 + $0x68] sm:$0xff] }
 0x2a7   : > { %18441 = vmatpush3.msra.mxu1 %v15384_v39  ;;  %18503 = vmatpush3.msra.mxu0 %v15425_v9 }
 0x2a8   : > { %18336 = vmatmul.mubr.msk.f32.gmra.mxu1 %vm389_vm3, %v26799_v26  ;;  %18400 = vmatmul.mubr.msk.f32.gmra.mxu0 %vm389_vm3, %v22186_v7  ;;  %v6760_v7 = vld [vmem:[#allocation3 + $0x69] sm:$0xff]  ;;  %v6766_v26 = vld [vmem:[#allocation3 + $0xb1] sm:$0xff] }
 0x2a9   : > { %18338 = vmatprep.mubr.msk.f32.mxu1 %vm389_vm3, %v21894_v21  ;;  %18402 = vmatprep.mubr.msk.f32.mxu0 %vm389_vm3, %v22195_v44  ;;  %v26801_v21 = vld [vmem:[#allocation31_spill] sm:$0xff] }
 0x2aa   : > { %18504 = vmatprep.subr.mxu0 %v15424_v27  ;;  %18554 = vmatprep.subr.mxu1 %v15471_v60 }
 0x2ab   : > { %18505 = vmatpush3.msra.mxu0 %v15424_v27 }
 0x2ac   : > { %18339 = vmatmul.mubr.msk.f32.gmra.mxu1 %vm389_vm3, %v21907_v42  ;;  %18403 = vmatmul.mubr.msk.f32.gmra.mxu0 %vm389_vm3, %v22201_v16  ;;  %v22449_v42 = vld [vmem:[#allocation3 + $0x181] sm:$0xff] }
 0x2ad   : > { %18341 = vmatprep.mubr.msk.f32.mxu1 %vm389_vm3, %v21922_v11  ;;  %18405 = vmatprep.mubr.msk.f32.mxu0 %vm389_vm3, %v22207_v19  ;;  %v22451_v11 = vld [vmem:[#allocation3 + $0x182] sm:$0xff]  ;;  %v6367_v19 = vld [vmem:[#allocation3 + $0x78] sm:$0xff] }
 0x2b0   : > { %18342 = vmatmul.mubr.msk.f32.gmra.mxu1 %vm389_vm3, %v21935_v6  ;;  %18406 = vmatmul.mubr.msk.f32.gmra.mxu0 %vm389_vm3, %v22213_v12  ;;  %v22457_v6 = vld [vmem:[#allocation3 + $0x189] sm:$0xff]  ;;  %v6761_v12 = vld [vmem:[#allocation3 + $0x79] sm:$0xff] }
 0x2b1   : > { %18344 = vmatprep.mubr.msk.f32.mxu1 %vm389_vm3, %v21945_v49  ;;  %18408 = vmatprep.mubr.msk.f32.mxu0 %vm389_vm3, %v22219_v37  ;;  %v22459_v49 = vld [vmem:[#allocation3 + $0x18a] sm:$0xff] }
 0x2b4   : > { %18345 = vmatmul.mubr.msk.f32.gmra.mxu1 %vm389_vm3, %v21958_v43  ;;  %18409 = vmatmul.mubr.msk.f32.gmra.mxu0 %vm389_vm3, %v22225_v25  ;;  %v6361_v43 = vld [vmem:[#allocation3 + $0x30] sm:$0xff] }
 0x2b5   : > { %18347 = vmatprep.mubr.msk.f32.mxu1 %vm389_vm3, %v21966_v29  ;;  %18411 = vmatprep.mubr.msk.f32.mxu0 %vm389_vm3, %v22231_v1  ;;  %v6755_v29 = vld [vmem:[#allocation3 + $0x31] sm:$0xff] }
 0x2b8   : > { %18348 = vmatmul.mubr.msk.f32.gmra.mxu1 %vm389_vm3, %v21978_v33  ;;  %18412 = vmatmul.mubr.msk.f32.gmra.mxu0 %vm389_vm3, %v22237_v52  ;;  %v6362_v33 = vld [vmem:[#allocation3 + $0x38] sm:$0xff] }
 0x2b9   : > { %18350 = vmatprep.mubr.msk.f32.mxu1 %vm389_vm3, %v21986_v48  ;;  %18414 = vmatprep.mubr.msk.f32.mxu0 %vm389_vm3, %v22243_v31  ;;  %v6756_v48 = vld [vmem:[#allocation3 + $0x39] sm:$0xff] }
 0x2ba   : > { %v6368_v31 = vld [vmem:[#allocation3 + $0x80] sm:$0xff] }
 0x2bc   : > { %18351 = vmatmul.mubr.msk.f32.gmra.mxu1 %vm389_vm3, %v21998_v50  ;;  %18415 = vmatmul.mubr.msk.f32.gmra.mxu0 %vm389_vm3, %v22249_v3  ;;  %v15470_v50 = vld [vmem:[%s26480_s3 + $0x230] sm:$0xff] }
 0x2bd   : > { %18353 = vmatprep.mubr.msk.f32.mxu1 %vm389_vm3, %v22005_v41  ;;  %18417 = vmatprep.mubr.msk.f32.mxu0 %vm389_vm3, %v22255_v8  ;;  %v6363_v41 = vld [vmem:[#allocation3 + $0x48] sm:$0xff] }
 0x2be   : > { %v6762_v3 = vld [vmem:[#allocation3 + $0x81] sm:$0xff] }
 0x2bf   : > { %v15467_v8 = vld [vmem:[%s26480_s3 + $0x218] sm:$0xff] }
 0x2c0   : > { %18354 = vmatmul.mubr.msk.f32.gmra.mxu1 %vm389_vm3, %v22016_v5  ;;  %18418 = vmatmul.mubr.msk.f32.gmra.mxu0 %vm389_vm3, %v22261_v30  ;;  %v6757_v5 = vld [vmem:[#allocation3 + $0x49] sm:$0xff] }
 0x2c1   : > { %18356 = vmatprep.mubr.msk.f32.mxu1 %vm389_vm3, %v26800_v24  ;;  %18420 = vmatprep.mubr.msk.f32.mxu0 %vm389_vm3, %v22267_v51  ;;  %v15465_v24 = vld [vmem:[%s26480_s3 + $0x208] sm:$0xff] }
 0x2c4   : > { %18357 = vmatmul.mubr.msk.f32.gmra.mxu1 %vm389_vm3, %v26801_v21  ;;  %18421 = vmatmul.mubr.msk.f32.gmra.mxu0 %vm389_vm3, %v22275_v54  ;;  %v6369_v54 = vld [vmem:[#allocation3 + $0x90] sm:$0xff] }
 0x2c5   : > { %18359 = vmatprep.mubr.msk.f32.mxu1 %vm389_vm3, %v22449_v42  ;;  %18423 = vmatprep.mubr.msk.f32.mxu0 %vm389_vm3, %v22451_v11 }
 0x2c8   : > { %18360 = vmatmul.mubr.msk.f32.gmra.mxu1 %vm389_vm3, %v22457_v6  ;;  %18424 = vmatmul.mubr.msk.f32.gmra.mxu0 %vm389_vm3, %v22459_v49 }
 0x2c9   : > { %18442 = vmatprep.mubr.msk.f32.mxu1 %vm389_vm3, %v6361_v43  ;;  %18506 = vmatprep.mubr.msk.f32.mxu0 %vm389_vm3, %v6755_v29  ;;  %v6373_v29 = vld [vmem:[#allocation3 + $0xc0] sm:$0xff] }
 0x2cc   : > { %18443 = vmatmul.mubr.msk.f32.vlgmr.msra.gmra.mxu1 %vm389_vm3, %v6362_v33  ;;  %18507 = vmatmul.mubr.msk.f32.vlgmr.msra.gmra.mxu0 %vm389_vm3, %v6756_v48  ;;  %v6767_v33 = vld [vmem:[#allocation3 + $0xc1] sm:$0xff] }
 0x2cd   : > { %18555 = vmatpush3.msra.mxu1 %v15471_v60  ;;  %18445 = vmatprep.mubr.msk.f32.mxu1 %vm389_vm3, %v6363_v41  ;;  %v6372_v60 = vld [vmem:[#allocation3 + $0xb0] sm:$0xff] }
 0x2ce   : > { %18509 = vmatprep.mubr.msk.f32.mxu0 %vm389_vm3, %v6757_v5  ;;  %18556 = vmatprep.subr.mxu1 %v15470_v50  ;;  %v18063_v17 = vpop.f32.mrf.mxu1 }
 0x2cf   : > { %18557 = vmatpush3.msra.mxu1 %v15470_v50  ;;  %v18127_v62 = vpop.f32.mrf.mxu0 }
 0x2d0   : > { %18446 = vmatmul.mubr.msk.f32.gmra.mxu1 %vm389_vm3, %v6364_v10  ;;  %18510 = vmatmul.mubr.msk.f32.gmra.mxu0 %vm389_vm3, %v6758_v46  ;;  %v22483_v55 = vadd.f32 %v18127_v62, %v18063_v17  ;;  %v4314_v57 = vpop.f32.mrf.mxu1  ;;  %v6374_v10 = vld [vmem:[#allocation3 + $0xc8] sm:$0xff] }
 0x2d1   : > { %18448 = vmatprep.mubr.msk.f32.mxu1 %vm389_vm3, %v6365_v18  ;;  %18512 = vmatprep.mubr.msk.f32.mxu0 %vm389_vm3, %v6759_v15  ;;  %v4635_v63 = vpop.f32.mrf.mxu0  ;;  %v6768_v46 = vld [vmem:[#allocation3 + $0xc9] sm:$0xff]  ;;  %v6375_v18 = vld [vmem:[#allocation3 + $0xd8] sm:$0xff] }
 0x2d2   : > { %18558 = vmatprep.subr.mxu1 %v15469_v45  ;;  %v22487_v59 = vadd.f32 %v4635_v63, %v4314_v57  ;;  %v18066_v44 = vpop.f32.mrf.mxu1  ;;  %v6769_v15 = vld [vmem:[#allocation3 + $0xd9] sm:$0xff] }
 0x2d3   : > { %18559 = vmatpush3.msra.mxu1 %v15469_v45  ;;  %v18130_v16 = vpop.f32.mrf.mxu0  ;;  %v15464_v45 = vld [vmem:[%s26480_s3 + $0x200] sm:$0xff] }
 0x2d4   : > { %18449 = vmatmul.mubr.msk.f32.gmra.mxu1 %vm389_vm3, %v6366_v47  ;;  %18513 = vmatmul.mubr.msk.f32.gmra.mxu0 %vm389_vm3, %v6760_v7  ;;  %v22494_v37 = vadd.f32 %v18130_v16, %v18066_v44  ;;  %v4324_v25 = vpop.f32.mrf.mxu1  ;;  %v6770_v44 = vld [vmem:[#allocation3 + $0xe1] sm:$0xff] }
 0x2d5   : > { %18451 = vmatprep.mubr.msk.f32.mxu1 %vm389_vm3, %v6367_v19  ;;  %18515 = vmatprep.mubr.msk.f32.mxu0 %vm389_vm3, %v6761_v12  ;;  %v4645_v1 = vpop.f32.mrf.mxu0  ;;  %v6377_v12 = vld [vmem:[#allocation3 + $0xf0] sm:$0xff] }
 0x2d6   : > { %18560 = vmatprep.subr.mxu1 %v15468_v58  ;;  %v22498_v52 = vadd.f32 %v4645_v1, %v4324_v25  ;;  %v18069_v30 = vpop.f32.mrf.mxu1  ;;  %v6771_v25 = vld [vmem:[#allocation3 + $0xf1] sm:$0xff] }
 0x2d7   : > { %18561 = vmatpush3.msra.mxu1 %v15468_v58  ;;  %v18133_v51 = vpop.f32.mrf.mxu0  ;;  %v6376_v58 = vld [vmem:[#allocation3 + $0xe0] sm:$0xff] }
 0x2d8   : > { %18452 = vmatmul.mubr.msk.f32.gmra.mxu1 %vm389_vm3, %v6368_v31  ;;  %18516 = vmatmul.mubr.msk.f32.gmra.mxu0 %vm389_vm3, %v6762_v3  ;;  %v22505_v56 = vadd.f32 %v18133_v51, %v18069_v30  ;;  %v4334_v4 = vpop.f32.mrf.mxu1  ;;  %v6378_v30 = vld [vmem:[#allocation3 + $0xf8] sm:$0xff] }
 0x2d9   : > { %18454 = vmatprep.mubr.msk.f32.mxu1 %vm389_vm3, %v6369_v54  ;;  %18518 = vmatprep.mubr.msk.f32.mxu0 %vm389_vm3, %v6763_v22  ;;  %v4655_v0 = vpop.f32.mrf.mxu0  ;;  %v6772_v51 = vld [vmem:[#allocation3 + $0xf9] sm:$0xff] }
 0x2da   : > { %18562 = vmatprep.subr.mxu1 %v15467_v8  ;;  %v22509_v13 = vadd.f32 %v4655_v0, %v4334_v4  ;;  %v18072_v2 = vpop.f32.mrf.mxu1  ;;  %v6379_v4 = vld [vmem:[#allocation3 + $0x108] sm:$0xff] }
 0x2db   : > { %18563 = vmatpush3.msra.mxu1 %v15467_v8  ;;  %v18136_v36 = vpop.f32.mrf.mxu0  ;;  %v6773_v0 = vld [vmem:[#allocation3 + $0x109] sm:$0xff] }
 0x2dc   : > { %18455 = vmatmul.mubr.msk.f32.gmra.mxu1 %vm389_vm3, %v6370_v20  ;;  %18519 = vmatmul.mubr.msk.f32.gmra.mxu0 %vm389_vm3, %v6764_v38  ;;  %v22516_v39 = vadd.f32 %v18136_v36, %v18072_v2  ;;  %v4344_v9 = vpop.f32.mrf.mxu1  ;;  %v6380_v2 = vld [vmem:[#allocation3 + $0x110] sm:$0xff] }
 0x2dd   : > { %18457 = vmatprep.mubr.msk.f32.mxu1 %vm389_vm3, %v6371_v34  ;;  %18521 = vmatprep.mubr.msk.f32.mxu0 %vm389_vm3, %v6765_v53  ;;  %v4665_v14 = vpop.f32.mrf.mxu0  ;;  %v6774_v36 = vld [vmem:[#allocation3 + $0x111] sm:$0xff] }
 0x2de   : > { %18564 = vmatprep.subr.mxu1 %v15466_v32  ;;  %v22520_v27 = vadd.f32 %v4665_v14, %v4344_v9  ;;  %v18075_v21 = vpop.f32.mrf.mxu1  ;;  %v6381_v9 = vld [vmem:[#allocation3 + $0x120] sm:$0xff] }
 0x2df   : > { %18565 = vmatpush3.msra.mxu1 %v15466_v32  ;;  %v18139_v43 = vpop.f32.mrf.mxu0  ;;  %v6775_v14 = vld [vmem:[#allocation3 + $0x121] sm:$0xff] }
 0x2e0   : > { %18458 = vmatmul.mubr.msk.f32.gmra.mxu1 %vm389_vm3, %v6372_v60  ;;  %18522 = vmatmul.mubr.msk.f32.gmra.mxu0 %vm389_vm3, %v6766_v26  ;;  %v22527_v48 = vadd.f32 %v18139_v43, %v18075_v21  ;;  %v4354_v50 = vpop.f32.mrf.mxu1  ;;  %v6382_v21 = vld [vmem:[#allocation3 + $0x128] sm:$0xff] }
 0x2e1   : > { %18460 = vmatprep.mubr.msk.f32.mxu1 %vm389_vm3, %v6373_v29  ;;  %18524 = vmatprep.mubr.msk.f32.mxu0 %vm389_vm3, %v6767_v33  ;;  %v4675_v41 = vpop.f32.mrf.mxu0  ;;  %v6776_v43 = vld [vmem:[#allocation3 + $0x129] sm:$0xff] }
 0x2e2   : > { %18566 = vmatprep.subr.mxu1 %v15465_v24  ;;  %v22531_v5 = vadd.f32 %v4675_v41, %v4354_v50  ;;  %v18078_v17 = vpop.f32.mrf.mxu1  ;;  %v6383_v50 = vld [vmem:[#allocation3 + $0x138] sm:$0xff] }
 0x2e3   : > { %18567 = vmatpush3.msra.mxu1 %v15465_v24  ;;  %v18142_v62 = vpop.f32.mrf.mxu0  ;;  %v6777_v41 = vld [vmem:[#allocation3 + $0x139] sm:$0xff] }
 0x2e4   : > { %18461 = vmatmul.mubr.msk.f32.gmra.mxu1 %vm389_vm3, %v6374_v10  ;;  %18525 = vmatmul.mubr.msk.f32.gmra.mxu0 %vm389_vm3, %v6768_v46  ;;  %v22538_v57 = vadd.f32 %v18142_v62, %v18078_v17  ;;  %v4364_v63 = vpop.f32.mrf.mxu1  ;;  %v6384_v17 = vld [vmem:[#allocation3 + $0x140] sm:$0xff] }
 0x2e5   : > { %18463 = vmatprep.mubr.msk.f32.mxu1 %vm389_vm3, %v6375_v18  ;;  %18527 = vmatprep.mubr.msk.f32.mxu0 %vm389_vm3, %v6769_v15  ;;  %v4685_v47 = vpop.f32.mrf.mxu0  ;;  %v6778_v62 = vld [vmem:[#allocation3 + $0x141] sm:$0xff] }
 0x2e6   : > { %18568 = vmatprep.subr.mxu1 %v15464_v45  ;;  %v22542_v7 = vadd.f32 %v4685_v47, %v4364_v63  ;;  %v6385_v63 = vld [vmem:[#allocation3 + $0x150] sm:$0xff] }
 0x2e7   : > { %18569 = vmatpush3.msra.mxu1 %v15464_v45  ;;  %v18081_v16 = vpop.f32.mrf.mxu1  ;;  %v18145_v19 = vpop.f32.mrf.mxu0  ;;  %v6779_v47 = vld [vmem:[#allocation3 + $0x151] sm:$0xff] }
 0x2e8   : > { %18464 = vmatmul.mubr.msk.f32.gmra.mxu1 %vm389_vm3, %v6376_v58  ;;  %18528 = vmatmul.mubr.msk.f32.gmra.mxu0 %vm389_vm3, %v6770_v44  ;;  %v22546_v1 = vadd.f32 %v18145_v19, %v18081_v16  ;;  %v6386_v19 = vld [vmem:[#allocation3 + $0x158] sm:$0xff] }
 0x2e9   : > { %18466 = vmatprep.mubr.msk.f32.mxu1 %vm389_vm3, %v6377_v12  ;;  %18530 = vmatprep.mubr.msk.f32.mxu0 %vm389_vm3, %v6771_v25  ;;  %v4374_v31 = vpop.f32.mrf.mxu1  ;;  %v4695_v3 = vpop.f32.mrf.mxu0  ;;  %v6780_v12 = vld [vmem:[#allocation3 + $0x159] sm:$0xff] }
 0x2ea   : > { %v22550_v8 = vadd.f32 %v4695_v3, %v4374_v31  ;;  %v6387_v3 = vld [vmem:[#allocation3 + $0x168] sm:$0xff] }
 0x2eb   : > { %v18084_v54 = vpop.f32.mrf.mxu1  ;;  %v18148_v22 = vpop.f32.mrf.mxu0 }
 0x2ec   : > { %18467 = vmatmul.mubr.msk.f32.gmra.mxu1 %vm389_vm3, %v6378_v30  ;;  %18531 = vmatmul.mubr.msk.f32.gmra.mxu0 %vm389_vm3, %v6772_v51  ;;  %v22554_v20 = vadd.f32 %v18148_v22, %v18084_v54  ;;  %v6781_v30 = vld [vmem:[#allocation3 + $0x169] sm:$0xff] }
 0x2ed   : > { %18469 = vmatprep.mubr.msk.f32.mxu1 %vm389_vm3, %v6379_v4  ;;  %18533 = vmatprep.mubr.msk.f32.mxu0 %vm389_vm3, %v6773_v0  ;;  %v22558_v38 = vpop.f32.mrf.mxu1  ;;  %v22560_v32 = vpop.f32.mrf.mxu0  ;;  %v6388_v4 = vld [vmem:[#allocation3 + $0x170] sm:$0xff] }
 0x2ee   : > { %v6782_v0 = vld [vmem:[#allocation3 + $0x171] sm:$0xff] }
 0x2ef   : > { %v18087_v34 = vpop.f32.mrf.mxu1  ;;  %v18151_v53 = vpop.f32.mrf.mxu0 }
 0x2f0   : > { %18470 = vmatmul.mubr.msk.f32.gmra.mxu1 %vm389_vm3, %v6380_v2  ;;  %18534 = vmatmul.mubr.msk.f32.gmra.mxu0 %vm389_vm3, %v6774_v36  ;;  %v22564_v60 = vadd.f32 %v18151_v53, %v18087_v34 }
 0x2f1   : > { %18472 = vmatprep.mubr.msk.f32.mxu1 %vm389_vm3, %v6381_v9  ;;  %18536 = vmatprep.mubr.msk.f32.mxu0 %vm389_vm3, %v6775_v14  ;;  %v22568_v26 = vpop.f32.mrf.mxu1  ;;  %v22570_v24 = vpop.f32.mrf.mxu0  ;;  %v6391_v14 = vld [vmem:[#allocation3 + $0x198] sm:$0xff] }
 0x2f3   : > { %v18090_v29 = vpop.f32.mrf.mxu1  ;;  %v18154_v33 = vpop.f32.mrf.mxu0 }
 0x2f4   : > { %18473 = vmatmul.mubr.msk.f32.gmra.mxu1 %vm389_vm3, %v6382_v21  ;;  %18537 = vmatmul.mubr.msk.f32.gmra.mxu0 %vm389_vm3, %v6776_v43  ;;  %v22574_v10 = vadd.f32 %v18154_v33, %v18090_v29  ;;  %v6785_v21 = vld [vmem:[#allocation3 + $0x199] sm:$0xff] }
 0x2f5   : > { %18475 = vmatprep.mubr.msk.f32.mxu1 %vm389_vm3, %v6383_v50  ;;  %18539 = vmatprep.mubr.msk.f32.mxu0 %vm389_vm3, %v6777_v41  ;;  %v22578_v46 = vpop.f32.mrf.mxu1  ;;  %v22580_v45 = vpop.f32.mrf.mxu0 }
 0x2f7   : > { %v18093_v18 = vpop.f32.mrf.mxu1 }
 0x2f8   : > { %v18157_v15 = vpop.f32.mrf.mxu0  ;;  %18476 = vmatmul.mubr.msk.f32.gmra.mxu1 %vm389_vm3, %v6384_v17  ;;  %18540 = vmatmul.mubr.msk.f32.gmra.mxu0 %vm389_vm3, %v6778_v62 }
 0x2f9   : > { %v22584_v58 = vadd.f32 %v18157_v15, %v18093_v18  ;;  %18478 = vmatprep.mubr.msk.f32.mxu1 %vm389_vm3, %v6385_v63  ;;  %18542 = vmatprep.mubr.msk.f32.mxu0 %vm389_vm3, %v6779_v47  ;;  %v22588_v44 = vpop.f32.mrf.mxu1  ;;  %v7150_v63 = vld [vmem:[#allocation3 + $0x3a] sm:$0xff] }
 0x2fa   : > { %v22590_v16 = vpop.f32.mrf.mxu0 }
 0x2fb   : > { %v18096_v25 = vpop.f32.mrf.mxu1 }
 0x2fc   : > { %v18160_v31 = vpop.f32.mrf.mxu0  ;;  %18479 = vmatmul.mubr.msk.f32.gmra.mxu1 %vm389_vm3, %v6386_v19  ;;  %18543 = vmatmul.mubr.msk.f32.gmra.mxu0 %vm389_vm3, %v6780_v12  ;;  %v7151_v12 = vld [vmem:[#allocation3 + $0x4a] sm:$0xff] }
 0x2fd   : > { %v22594_v51 = vadd.f32 %v18160_v31, %v18096_v25  ;;  %18481 = vmatprep.mubr.msk.f32.mxu1 %vm389_vm3, %v6387_v3  ;;  %18545 = vmatprep.mubr.msk.f32.mxu0 %vm389_vm3, %v6781_v30  ;;  %v22598_v54 = vpop.f32.mrf.mxu1 }
 0x2fe   : > { %26802 = vst [vmem:[#allocation4_spill] sm:$0xff] %v22598_v54  ;;  %v22600_v22 = vpop.f32.mrf.mxu0 }
 0x2ff   : > { %26803 = vst [vmem:[#allocation10_spill] sm:$0xff] %v22600_v22  ;;  %v18099_v2 = vpop.f32.mrf.mxu1 }
 0x300   : > { %v18163_v36 = vpop.f32.mrf.mxu0  ;;  %18482 = vmatmul.mubr.msk.f32.gmra.mxu1 %vm389_vm3, %v6388_v4  ;;  %18546 = vmatmul.mubr.msk.f32.gmra.mxu0 %vm389_vm3, %v6782_v0  ;;  %v7152_v4 = vld [vmem:[#allocation3 + $0x52] sm:$0xff] }
 0x301   : > { %v22604_v34 = vadd.f32 %v18163_v36, %v18099_v2  ;;  %18484 = vmatprep.mubr.msk.f32.mxu1 %vm389_vm3, %v22269_v61  ;;  %18548 = vmatprep.mubr.msk.f32.mxu0 %vm389_vm3, %v22449_v42  ;;  %v22610_v53 = vpop.f32.mrf.mxu1  ;;  %v6392_v61 = vld [vmem:[#allocation3 + $0x1a0] sm:$0xff] }
 0x302   : > { %26804 = vst [vmem:[#allocation9_spill] sm:$0xff] %v22610_v53  ;;  %v22612_v9 = vpop.f32.mrf.mxu0  ;;  %v6786_v42 = vld [vmem:[#allocation3 + $0x1a1] sm:$0xff] }
 0x303   : > { %26805 = vst [vmem:[#allocation32_spill] sm:$0xff] %v22612_v9  ;;  %v18102_v43 = vpop.f32.mrf.mxu1  ;;  %v7153_v36 = vld [vmem:[#allocation3 + $0x62] sm:$0xff] }
 0x304   : > { %v18166_v29 = vpop.f32.mrf.mxu0  ;;  %18485 = vmatmul.mubr.msk.f32.gmra.mxu1 %vm389_vm3, %v22277_v23  ;;  %18549 = vmatmul.mubr.msk.f32.gmra.mxu0 %vm389_vm3, %v22457_v6  ;;  %v7149_v23 = vld [vmem:[#allocation3 + $0x32] sm:$0xff] }
 0x305   : > { %v22618_v33 = vadd.f32 %v18166_v29, %v18102_v43  ;;  %18487 = vmatprep.mubr.msk.f32.mxu1 %vm389_vm3, %v6391_v14  ;;  %18551 = vmatprep.mubr.msk.f32.mxu0 %vm389_vm3, %v6785_v21  ;;  %v22622_v50 = vpop.f32.mrf.mxu1 }
 0x306   : > { %26806 = vst [vmem:[#allocation29_spill] sm:$0xff] %v22622_v50  ;;  %v22624_v41 = vpop.f32.mrf.mxu0  ;;  %v7687_v50 = vld [vmem:[#allocation3 + $0x9] sm:$0xff] }
 0x307   : > { %26807 = vst [vmem:[#allocation77_spill] sm:$0xff] %v22624_v41  ;;  %v18105_v17 = vpop.f32.mrf.mxu1 }
 0x308   : > { %v18169_v62 = vpop.f32.mrf.mxu0  ;;  %18488 = vmatmul.mubr.msk.f32.gmra.mxu1 %vm389_vm3, %v6392_v61  ;;  %18552 = vmatmul.mubr.msk.f32.gmra.mxu0 %vm389_vm3, %v6786_v42  ;;  %v7154_v61 = vld [vmem:[#allocation3 + $0x6a] sm:$0xff] }
 0x309   : > { %v22628_v6 = vadd.f32 %v18169_v62, %v18105_v17  ;;  %18570 = vmatprep.mubr.msk.f32.mxu1 %vm389_vm3, %v7149_v23  ;;  %v22631_v18 = vpop.f32.mrf.mxu1  ;;  %v7155_v62 = vld [vmem:[#allocation3 + $0x7a] sm:$0xff] }
 0x30a   : > { %26808 = vst [vmem:[#allocation82_spill] sm:$0xff] %v22631_v18  ;;  %v22633_v15 = vpop.f32.mrf.mxu0 }
 0x30b   : > { %26809 = vst [vmem:[#allocation5_spill] sm:$0xff] %v22633_v15  ;;  %v18188_v47 = vpop.f32.mrf.mxu1 }
 0x30c   : > { %v18252_v19 = vpop.f32.mrf.mxu0  ;;  %18571 = vmatmul.mubr.msk.f32.vlgmr.msra.gmra.mxu1 %vm389_vm3, %v7150_v63  ;;  %v5147_v25 = vadd.f32 %v18188_v47, %v22049_v35 }
 0x30d   : > { %18573 = vmatprep.mubr.msk.f32.mxu1 %vm389_vm3, %v7151_v12  ;;  %v22638_v31 = vpop.f32.mrf.mxu1 }
 0x30e   : > { %v22640_v3 = vpop.f32.mrf.mxu0  ;;  %v22642_v30 = vadd.f32 %v18252_v19, %v5147_v25 }
 0x310   : > { %v18191_v0 = vpop.f32.mrf.mxu1  ;;  %v18255_v2 = vpop.f32.mrf.mxu0  ;;  %18574 = vmatmul.mubr.msk.f32.gmra.mxu1 %vm389_vm3, %v7152_v4  ;;  %v7157_v4 = vld [vmem:[#allocation3 + $0x92] sm:$0xff] }
 0x311   : > { %v5149_v14 = vadd.f32 %v18191_v0, %v22483_v55  ;;  %18576 = vmatprep.mubr.msk.f32.mxu1 %vm389_vm3, %v7153_v36 }
 0x312   : > { %v4997_v21 = vpop.f32.mrf.mxu1  ;;  %v22647_v35 = vpop.f32.mrf.mxu0 }
 0x313   : > { %v22649_v43 = vadd.f32 %v18255_v2, %v5149_v14  ;;  %v22652_v29 = vadd.f32 %v4997_v21, %v22487_v59  ;;  %v7156_v59 = vld [vmem:[#allocation3 + $0x82] sm:$0xff] }
 0x314   : > { %v18194_v42 = vpop.f32.mrf.mxu1  ;;  %v18258_v17 = vpop.f32.mrf.mxu0  ;;  %18577 = vmatmul.mubr.msk.f32.gmra.mxu1 %vm389_vm3, %v7154_v61  ;;  %v15512_v21 = vld [vmem:[%s26482_s5 + $0x78] sm:$0xff] }
 0x315   : > { %v5151_v23 = vadd.f32 %v18194_v42, %v22494_v37  ;;  %18579 = vmatprep.mubr.msk.f32.mxu1 %vm389_vm3, %v7155_v62  ;;  %18618 = vmatprep.subr.mxu0 %v15512_v21 }
 0x316   : > { %v5007_v55 = vpop.f32.mrf.mxu1  ;;  %v22657_v63 = vpop.f32.mrf.mxu0  ;;  %18619 = vmatpush3.msra.mxu0 %v15512_v21 }
 0x317   : > { %v22659_v47 = vadd.f32 %v18258_v17, %v5151_v23  ;;  %v22662_v19 = vadd.f32 %v5007_v55, %v22498_v52  ;;  %v7158_v52 = vld [vmem:[#allocation3 + $0x9a] sm:$0xff] }
 0x318   : > { %v18197_v12 = vpop.f32.mrf.mxu1  ;;  %v18261_v25 = vpop.f32.mrf.mxu0  ;;  %18580 = vmatmul.mubr.msk.f32.gmra.mxu1 %vm389_vm3, %v7156_v59  ;;  %v7160_v59 = vld [vmem:[#allocation3 + $0xb2] sm:$0xff] }
 0x319   : > { %v5153_v0 = vadd.f32 %v18197_v12, %v22505_v56  ;;  %18582 = vmatprep.mubr.msk.f32.mxu1 %vm389_vm3, %v7157_v4  ;;  %v7159_v56 = vld [vmem:[#allocation3 + $0xaa] sm:$0xff]  ;;  %v7161_v4 = vld [vmem:[#allocation3 + $0xc2] sm:$0xff] }
 0x31a   : > { %v5017_v37 = vpop.f32.mrf.mxu1  ;;  %v22667_v2 = vpop.f32.mrf.mxu0 }
 0x31b   : > { %v22669_v36 = vadd.f32 %v18261_v25, %v5153_v0  ;;  %v22672_v14 = vadd.f32 %v5017_v37, %v22509_v13 }
 0x31c   : > { %v18200_v61 = vpop.f32.mrf.mxu1  ;;  %v18264_v42 = vpop.f32.mrf.mxu0  ;;  %18583 = vmatmul.mubr.msk.f32.gmra.mxu1 %vm389_vm3, %v7158_v52 }
 0x31d   : > { %v5155_v17 = vadd.f32 %v18200_v61, %v22516_v39  ;;  %18585 = vmatprep.mubr.msk.f32.mxu1 %vm389_vm3, %v7159_v56  ;;  %v15511_v61 = vld [vmem:[%s26482_s5 + $0x70] sm:$0xff] }
 0x31e   : > { %v5027_v62 = vpop.f32.mrf.mxu1  ;;  %v22680_v23 = vpop.f32.mrf.mxu0  ;;  %18620 = vmatprep.subr.mxu0 %v15511_v61 }
 0x31f   : > { %v22682_v13 = vadd.f32 %v18264_v42, %v5155_v17  ;;  %v22685_v55 = vadd.f32 %v5027_v62, %v22520_v27  ;;  %v7162_v27 = vld [vmem:[#allocation3 + $0xca] sm:$0xff]  ;;  %18621 = vmatpush3.msra.mxu0 %v15511_v61 }
 0x320   : > { %v18203_v12 = vpop.f32.mrf.mxu1  ;;  %v18267_v25 = vpop.f32.mrf.mxu0  ;;  %18586 = vmatmul.mubr.msk.f32.gmra.mxu1 %vm389_vm3, %v7160_v59 }
 0x321   : > { %v5157_v0 = vadd.f32 %v18203_v12, %v22527_v48  ;;  %18588 = vmatprep.mubr.msk.f32.mxu1 %vm389_vm3, %v7161_v4  ;;  %v7163_v48 = vld [vmem:[#allocation3 + $0xda] sm:$0xff] }
 0x322   : > { %v5037_v39 = vpop.f32.mrf.mxu1  ;;  %v22690_v37 = vpop.f32.mrf.mxu0 }
 0x323   : > { %v22692_v52 = vadd.f32 %v18267_v25, %v5157_v0  ;;  %v22695_v21 = vadd.f32 %v5037_v39, %v22531_v5  ;;  %v7164_v25 = vld [vmem:[#allocation3 + $0xe2] sm:$0xff]  ;;  %v7165_v39 = vld [vmem:[#allocation3 + $0xf2] sm:$0xff] }
 0x324   : > { %v18206_v42 = vpop.f32.mrf.mxu1  ;;  %v18270_v56 = vpop.f32.mrf.mxu0  ;;  %18589 = vmatmul.mubr.msk.f32.gmra.mxu1 %vm389_vm3, %v7162_v27 }
 0x325   : > { %v5159_v17 = vadd.f32 %v18206_v42, %v22538_v57  ;;  %18591 = vmatprep.mubr.msk.f32.mxu1 %vm389_vm3, %v7163_v48  ;;  %v15510_v48 = vld [vmem:[%s26482_s5 + $0x68] sm:$0xff] }
 0x326   : > { %v5047_v62 = vpop.f32.mrf.mxu1  ;;  %v22703_v59 = vpop.f32.mrf.mxu0  ;;  %18622 = vmatprep.subr.mxu0 %v15510_v48 }
 0x327   : > { %26810 = vst [vmem:[#allocation6_spill] sm:$0xff] %v22703_v59  ;;  %v22705_v5 = vadd.f32 %v18270_v56, %v5159_v17  ;;  %v22708_v12 = vadd.f32 %v5047_v62, %v22542_v7  ;;  %v7166_v7 = vld [vmem:[#allocation3 + $0xfa] sm:$0xff]  ;;  %18623 = vmatpush3.msra.mxu0 %v15510_v48 }
 0x328   : > { %v18209_v4 = vpop.f32.mrf.mxu1  ;;  %v18273_v0 = vpop.f32.mrf.mxu0  ;;  %18592 = vmatmul.mubr.msk.f32.gmra.mxu1 %vm389_vm3, %v7164_v25  ;;  %v4706_v25 = vadd.f32 %v22560_v32, %v22558_v38 }
 0x329   : > { %26811 = vst [vmem:[#allocation34_spill] sm:$0xff] %v22708_v12  ;;  %v5161_v27 = vadd.f32 %v18209_v4, %v22546_v1  ;;  %18594 = vmatprep.mubr.msk.f32.mxu1 %vm389_vm3, %v7165_v39  ;;  %v7167_v1 = vld [vmem:[#allocation3 + $0x10a] sm:$0xff] }
 0x32a   : > { %v5057_v57 = vpop.f32.mrf.mxu1  ;;  %v22713_v61 = vpop.f32.mrf.mxu0 }
 0x32b   : > { %26812 = vst [vmem:[#allocation37_spill] sm:$0xff] %v22713_v61  ;;  %v22715_v42 = vadd.f32 %v18273_v0, %v5161_v27  ;;  %v22718_v56 = vadd.f32 %v5057_v57, %v22550_v8  ;;  %v7168_v57 = vld [vmem:[#allocation3 + $0x112] sm:$0xff] }
 0x32c   : > { %v18212_v17 = vpop.f32.mrf.mxu1  ;;  %v18276_v62 = vpop.f32.mrf.mxu0  ;;  %18595 = vmatmul.mubr.msk.f32.gmra.mxu1 %vm389_vm3, %v7166_v7 }
 0x32d   : > { %26813 = vst [vmem:[#allocation85_spill] sm:$0xff] %v22718_v56  ;;  %v5163_v4 = vadd.f32 %v18212_v17, %v22554_v20  ;;  %18597 = vmatprep.mubr.msk.f32.mxu1 %vm389_vm3, %v7167_v1  ;;  %v7169_v56 = vld [vmem:[#allocation3 + $0x122] sm:$0xff]  ;;  %v7170_v17 = vld [vmem:[#allocation3 + $0x12a] sm:$0xff] }
 0x32e   : > { %v5067_v8 = vpop.f32.mrf.mxu1  ;;  %v22728_v0 = vpop.f32.mrf.mxu0 }
 0x32f   : > { %26814 = vst [vmem:[#allocation78_spill] sm:$0xff] %v22728_v0  ;;  %v22730_v39 = vadd.f32 %v18276_v62, %v5163_v4  ;;  %v22732_v27 = vadd.f32 %v5067_v8, %v4706_v25  ;;  %v15509_v62 = vld [vmem:[%s26482_s5 + $0x60] sm:$0xff]  ;;  %v7171_v4 = vld [vmem:[#allocation3 + $0x13a] sm:$0xff] }
 0x330   : > { %v18215_v61 = vpop.f32.mrf.mxu1  ;;  %v18279_v7 = vpop.f32.mrf.mxu0  ;;  %18598 = vmatmul.mubr.msk.f32.gmra.mxu1 %vm389_vm3, %v7168_v57  ;;  %18624 = vmatprep.subr.mxu0 %v15509_v62  ;;  %v7172_v57 = vld [vmem:[#allocation3 + $0x142] sm:$0xff] }
 0x331   : > { %26815 = vst [vmem:[#allocation7_spill] sm:$0xff] %v22732_v27  ;;  %v5165_v38 = vadd.f32 %v18215_v61, %v22564_v60  ;;  %18600 = vmatprep.mubr.msk.f32.mxu1 %vm389_vm3, %v7169_v56  ;;  %18625 = vmatpush3.msra.mxu0 %v15509_v62  ;;  %v7679_v27 = vld [vmem:[%s26482_s5 + $0x8] sm:$0xff] }
 0x332   : > { %v22737_v20 = vpop.f32.mrf.mxu1  ;;  %v22739_v32 = vpop.f32.mrf.mxu0 }
 0x333   : > { %26816 = vst [vmem:[#allocation8_spill] sm:$0xff] %v22737_v20  ;;  %26817 = vst [vmem:[#allocation12_spill] sm:$0xff] %v22739_v32  ;;  %v22741_v48 = vadd.f32 %v18279_v7, %v5165_v38  ;;  %v7173_v32 = vld [vmem:[#allocation3 + $0x152] sm:$0xff] }
 0x334   : > { %v18218_v1 = vpop.f32.mrf.mxu1  ;;  %v18282_v25 = vpop.f32.mrf.mxu0  ;;  %18601 = vmatmul.mubr.msk.f32.gmra.mxu1 %vm389_vm3, %v7170_v17 }
 0x335   : > { %v5167_v60 = vadd.f32 %v18218_v1, %v22574_v10  ;;  %18603 = vmatprep.mubr.msk.f32.mxu1 %vm389_vm3, %v7171_v4  ;;  %v7174_v4 = vld [vmem:[#allocation3 + $0x15a] sm:$0xff] }
 0x336   : > { %v22749_v61 = vpop.f32.mrf.mxu1  ;;  %v22751_v56 = vpop.f32.mrf.mxu0 }
 0x337   : > { %26818 = vst [vmem:[#allocation11_spill] sm:$0xff] %v22749_v61  ;;  %26819 = vst [vmem:[#allocation36_spill] sm:$0xff] %v22751_v56  ;;  %v22753_v8 = vadd.f32 %v18282_v25, %v5167_v60  ;;  %v15508_v25 = vld [vmem:[%s26482_s5 + $0x58] sm:$0xff] }
 0x338   : > { %v18221_v7 = vpop.f32.mrf.mxu1  ;;  %v18285_v38 = vpop.f32.mrf.mxu0  ;;  %18604 = vmatmul.mubr.msk.f32.gmra.mxu1 %vm389_vm3, %v7172_v57  ;;  %v7175_v57 = vld [vmem:[#allocation3 + $0x16a] sm:$0xff]  ;;  %18626 = vmatprep.subr.mxu0 %v15508_v25 }
 0x339   : > { %v5169_v17 = vadd.f32 %v18221_v7, %v22584_v58  ;;  %18606 = vmatprep.mubr.msk.f32.mxu1 %vm389_vm3, %v7173_v32  ;;  %18627 = vmatpush3.msra.mxu0 %v15508_v25  ;;  %v7179_v25 = vld [vmem:[#allocation3 + $0x19a] sm:$0xff] }
 0x33a   : > { %v22758_v10 = vpop.f32.mrf.mxu1  ;;  %v22760_v1 = vpop.f32.mrf.mxu0 }
 0x33b   : > { %26820 = vst [vmem:[#allocation35_spill] sm:$0xff] %v22758_v10  ;;  %26821 = vst [vmem:[#allocation88_spill] sm:$0xff] %v22760_v1  ;;  %v22762_v62 = vadd.f32 %v18285_v38, %v5169_v17  ;;  %v7176_v17 = vld [vmem:[#allocation3 + $0x172] sm:$0xff] }
 0x33c   : > { %v18224_v60 = vpop.f32.mrf.mxu1  ;;  %v18288_v56 = vpop.f32.mrf.mxu0  ;;  %18607 = vmatmul.mubr.msk.f32.gmra.mxu1 %vm389_vm3, %v7174_v4 }
 0x33d   : > { %v5171_v58 = vadd.f32 %v18224_v60, %v22594_v51  ;;  %18609 = vmatprep.mubr.msk.f32.mxu1 %vm389_vm3, %v7175_v57 }
 0x33e   : > { %v22770_v32 = vpop.f32.mrf.mxu1  ;;  %v22772_v7 = vpop.f32.mrf.mxu0 }
 0x33f   : > { %26822 = vst [vmem:[#allocation80_spill] sm:$0xff] %v22770_v32  ;;  %26823 = vst [vmem:[#allocation38_spill] sm:$0xff] %v22772_v7  ;;  %v22774_v38 = vadd.f32 %v18288_v56, %v5171_v58  ;;  %v15507_v56 = vld [vmem:[%s26482_s5 + $0x50] sm:$0xff]  ;;  %v7681_v32 = vld [vmem:[%s26482_s5 + $0x18] sm:$0xff] }
 0x340   : > { %v18227_v1 = vpop.f32.mrf.mxu1  ;;  %v18291_v10 = vpop.f32.mrf.mxu0  ;;  %18610 = vmatmul.mubr.msk.f32.gmra.mxu1 %vm389_vm3, %v7176_v17  ;;  %18628 = vmatprep.subr.mxu0 %v15507_v56 }
 0x341   : > { %v5173_v4 = vadd.f32 %v18227_v1, %v22604_v34  ;;  %18612 = vmatprep.mubr.msk.f32.mxu1 %vm389_vm3, %v22451_v11  ;;  %v7180_v11 = vld [vmem:[#allocation3 + $0x1a2] sm:$0xff]  ;;  %18629 = vmatpush3.msra.mxu0 %v15507_v56 }
 0x342   : > { %v22780_v51 = vpop.f32.mrf.mxu1  ;;  %v22782_v60 = vpop.f32.mrf.mxu0 }
 0x343   : > { %26824 = vst [vmem:[#allocation41_spill] sm:$0xff] %v22780_v51  ;;  %26825 = vst [vmem:[#allocation81_spill] sm:$0xff] %v22782_v60  ;;  %v22784_v57 = vadd.f32 %v18291_v10, %v5173_v4 }
 0x344   : > { %v18230_v58 = vpop.f32.mrf.mxu1  ;;  %v18294_v7 = vpop.f32.mrf.mxu0  ;;  %18613 = vmatmul.mubr.msk.f32.gmra.mxu1 %vm389_vm3, %v22459_v49  ;;  %v7685_v49 = vld [vmem:[%s26482_s5 + $0x38] sm:$0xff] }
 0x345   : > { %v5175_v34 = vadd.f32 %v18230_v58, %v22618_v33  ;;  %18615 = vmatprep.mubr.msk.f32.mxu1 %vm389_vm3, %v7179_v25  ;;  %v15506_v33 = vld [vmem:[%s26482_s5 + $0x48] sm:$0xff]  ;;  %18682 = vmatprep.subr.mxu1 %v7685_v49 }
 0x346   : > { %v22793_v1 = vpop.f32.mrf.mxu1  ;;  %v22795_v10 = vpop.f32.mrf.mxu0  ;;  %18630 = vmatprep.subr.mxu0 %v15506_v33  ;;  %18683 = vmatpush3.msra.mxu1 %v7685_v49 }
 0x347   : > { %26826 = vst [vmem:[#allocation91_spill] sm:$0xff] %v22793_v1  ;;  %26827 = vst [vmem:[#allocation14_spill] sm:$0xff] %v22795_v10  ;;  %v22797_v17 = vadd.f32 %v18294_v7, %v5175_v34  ;;  %18631 = vmatpush3.msra.mxu0 %v15506_v33 }
 0x348   : > { %v18233_v4 = vpop.f32.mrf.mxu1  ;;  %v18297_v60 = vpop.f32.mrf.mxu0  ;;  %18616 = vmatmul.mubr.msk.f32.gmra.mxu1 %vm389_vm3, %v7180_v11 }
 0x349   : > { %v5177_v51 = vadd.f32 %v18233_v4, %v22628_v6  ;;  %v7684_v6 = vld [vmem:[%s26482_s5 + $0x30] sm:$0xff] }
 0x34a   : > { %v22807_v25 = vpop.f32.mrf.mxu1  ;;  %v22809_v56 = vpop.f32.mrf.mxu0  ;;  %18684 = vmatprep.subr.mxu1 %v7684_v6 }
 0x34b   : > { %26828 = vst [vmem:[#allocation13_spill] sm:$0xff] %v22807_v25  ;;  %26829 = vst [vmem:[#allocation15_spill] sm:$0xff] %v22809_v56  ;;  %v22811_v7 = vadd.f32 %v18297_v60, %v5177_v51  ;;  %18685 = vmatpush3.msra.mxu1 %v7684_v6 }
 0x34c   : > { %v18316_v58 = vpop.f32.mrf.mxu1  ;;  %v22816_v34 = vpop.f32.mrf.mxu0 }
 0x34d   : > { %v22819_v11 = vadd.f32 %v18316_v58, %v22642_v30  ;;  %v7683_v30 = vld [vmem:[%s26482_s5 + $0x28] sm:$0xff] }
 0x34e   : > { %v22821_v4 = vpop.f32.mrf.mxu1  ;;  %v22823_v56 = vpop.f32.mrf.mxu0  ;;  %18686 = vmatprep.subr.mxu1 %v7683_v30 }
 0x34f   : > { %18687 = vmatpush3.msra.mxu1 %v7683_v30 }
 0x350   : > { %v18319_v51 = vpop.f32.mrf.mxu1  ;;  %v22825_v60 = vpop.f32.mrf.mxu0 }
 0x351   : > { %v22828_v49 = vadd.f32 %v18319_v51, %v22649_v43  ;;  %v7682_v43 = vld [vmem:[%s26482_s5 + $0x20] sm:$0xff] }
 0x352   : > { %v22830_v33 = vpop.f32.mrf.mxu1  ;;  %v22832_v25 = vpop.f32.mrf.mxu0  ;;  %18688 = vmatprep.subr.mxu1 %v7682_v43 }
 0x353   : > { %18689 = vmatpush3.msra.mxu1 %v7682_v43  ;;  %v7680_v43 = vld [vmem:[%s26482_s5 + $0x10] sm:$0xff] }
 0x354   : > { %v18322_v58 = vpop.f32.mrf.mxu1  ;;  %v22837_v6 = vpop.f32.mrf.mxu0  ;;  %18690 = vmatprep.subr.mxu1 %v7681_v32 }
 0x355   : > { %v22840_v10 = vadd.f32 %v18322_v58, %v22659_v47  ;;  %v15505_v47 = vld [vmem:[%s26482_s5 + $0x40] sm:$0xff]  ;;  %18691 = vmatpush3.msra.mxu1 %v7681_v32 }
 0x356   : > { %v22845_v51 = vpop.f32.mrf.mxu1  ;;  %v22847_v1 = vpop.f32.mrf.mxu0  ;;  %18632 = vmatprep.subr.mxu0 %v15505_v47  ;;  %18692 = vmatprep.subr.mxu1 %v7680_v43  ;;  %v7678_v32 = vld [vmem:[%s26482_s5] sm:$0xff] }
 0x357   : > { %18633 = vmatpush3.msra.mxu0 %v15505_v47  ;;  %18693 = vmatpush3.msra.mxu1 %v7680_v43  ;;  %v7686_v47 = vld [vmem:[#allocation3 + $0x1] sm:$0xff] }
 0x358   : > { %v18325_v58 = vpop.f32.mrf.mxu1  ;;  %v22855_v30 = vpop.f32.mrf.mxu0  ;;  %18694 = vmatprep.subr.mxu1 %v7679_v27  ;;  %18634 = vmatprep.mubr.msk.f32.mxu0 %vm389_vm3, %v7686_v47 }
 0x359   : > { %v22858_v61 = vadd.f32 %v18325_v58, %v22669_v36  ;;  %18695 = vmatpush3.msra.mxu1 %v7679_v27  ;;  %v7646_v58 = vld [vmem:[#allocation3] sm:$0xff]  ;;  %18635 = vmatmul.mubr.msk.f32.vlgmr.msra.gmra.mxu0 %vm389_vm3, %v7687_v50 }
 0x35a   : > { %v22863_v20 = vpop.f32.mrf.mxu1  ;;  %v22865_v0 = vpop.f32.mrf.mxu0  ;;  %18696 = vmatprep.subr.mxu1 %v7678_v32  ;;  %18698 = vmatprep.mubr.msk.f32.mxu1 %vm389_vm3, %v7646_v58 }
 0x35b   : > { %18697 = vmatpush3.msra.mxu1 %v7678_v32 }
 0x35c   : > { %v18328_v15 = vpop.f32.mrf.mxu1  ;;  %v22870_v18 = vpop.f32.mrf.mxu0 }
 0x35d   : > { %v22873_v36 = vadd.f32 %v18328_v15, %v22682_v13  ;;  %v7647_v15 = vld [vmem:[#allocation3 + $0x8] sm:$0xff] }
 0x35e   : > { %v22878_v41 = vpop.f32.mrf.mxu1  ;;  %v22880_v43 = vpop.f32.mrf.mxu0  ;;  %v15584_v13 = vld [vmem:[%s26482_s5 + $0xb8] sm:$0xff]  ;;  %18699 = vmatmul.mubr.msk.f32.vlgmr.msra.gmra.mxu1 %vm389_vm3, %v7647_v15 }
 0x35f   : > { %26830 = vst [vmem:[#allocation40_spill] sm:$0xff] %v22880_v43  ;;  %18746 = vmatprep.subr.mxu0 %v15584_v13 }
 0x360   : > { %v18331_v27 = vpop.f32.mrf.mxu1  ;;  %v22887_v59 = vpop.f32.mrf.mxu0  ;;  %18747 = vmatpush3.msra.mxu0 %v15584_v13 }
 0x361   : > { %26831 = vst [vmem:[#allocation39_spill] sm:$0xff] %v22887_v59  ;;  %v22892_v12 = vadd.f32 %v18331_v27, %v22692_v52  ;;  %v15583_v52 = vld [vmem:[%s26482_s5 + $0xb0] sm:$0xff] }
 0x362   : > { %v22894_v32 = vpop.f32.mrf.mxu1  ;;  %v22896_v47 = vpop.f32.mrf.mxu0  ;;  %18748 = vmatprep.subr.mxu0 %v15583_v52 }
 0x363   : > { %26832 = vst [vmem:[#allocation83_spill] sm:$0xff] %v22892_v12  ;;  %26833 = vst [vmem:[#allocation42_spill] sm:$0xff] %v22894_v32  ;;  %18749 = vmatpush3.msra.mxu0 %v15583_v52 }
 0x364   : > { %26834 = vst [vmem:[#allocation45_spill] sm:$0xff] %v22896_v47  ;;  %v18334_v58 = vpop.f32.mrf.mxu1  ;;  %v22898_v9 = vpop.f32.mrf.mxu0 }
 0x365   : > { %26835 = vst [vmem:[#allocation96_spill] sm:$0xff] %v22898_v9  ;;  %v22901_v53 = vadd.f32 %v18334_v58, %v22705_v5 }
 0x366   : > { %v22903_v59 = vpop.f32.mrf.mxu1  ;;  %v22905_v50 = vpop.f32.mrf.mxu0 }
 0x367   : > { %26836 = vst [vmem:[#allocation84_spill] sm:$0xff] %v22901_v53  ;;  %26837 = vst [vmem:[#allocation16_spill] sm:$0xff] %v22903_v59 }
 0x368   : > { %26838 = vst [vmem:[#allocation17_spill] sm:$0xff] %v22905_v50  ;;  %v18337_v15 = vpop.f32.mrf.mxu1  ;;  %v22910_v27 = vpop.f32.mrf.mxu0 }
 0x369   : > { %26839 = vst [vmem:[#allocation44_spill] sm:$0xff] %v22910_v27  ;;  %v22913_v13 = vadd.f32 %v18337_v15, %v22715_v42  ;;  %v15582_v42 = vld [vmem:[%s26482_s5 + $0xa8] sm:$0xff] }
 0x36a   : > { %v22915_v9 = vpop.f32.mrf.mxu1  ;;  %v22917_v5 = vpop.f32.mrf.mxu0  ;;  %18750 = vmatprep.subr.mxu0 %v15582_v42 }
 0x36b   : > { %26840 = vst [vmem:[#allocation43_spill] sm:$0xff] %v22913_v13  ;;  %26841 = vst [vmem:[#allocation86_spill] sm:$0xff] %v22915_v9  ;;  %18751 = vmatpush3.msra.mxu0 %v15582_v42 }
 0x36c   : > { %26842 = vst [vmem:[#allocation46_spill] sm:$0xff] %v22917_v5  ;;  %v18340_v58 = vpop.f32.mrf.mxu1  ;;  %v22919_v53 = vpop.f32.mrf.mxu0 }
 0x36d   : > { %26843 = vst [vmem:[#allocation49_spill] sm:$0xff] %v22919_v53  ;;  %v22922_v50 = vadd.f32 %v18340_v58, %v22730_v39 }
 0x36e   : > { %v22924_v59 = vpop.f32.mrf.mxu1  ;;  %v22926_v47 = vpop.f32.mrf.mxu0 }
 0x36f   : > { %26844 = vst [vmem:[#allocation87_spill] sm:$0xff] %v22922_v50  ;;  %26845 = vst [vmem:[#allocation18_spill] sm:$0xff] %v22924_v59 }
 0x370   : > { %26846 = vst [vmem:[#allocation19_spill] sm:$0xff] %v22926_v47  ;;  %v18343_v15 = vpop.f32.mrf.mxu1  ;;  %v22931_v52 = vpop.f32.mrf.mxu0 }
 0x371   : > { %26847 = vst [vmem:[#allocation48_spill] sm:$0xff] %v22931_v52  ;;  %v22934_v5 = vadd.f32 %v18343_v15, %v22741_v48  ;;  %v15581_v48 = vld [vmem:[%s26482_s5 + $0xa0] sm:$0xff] }
 0x372   : > { %v22936_v53 = vpop.f32.mrf.mxu1  ;;  %v22938_v39 = vpop.f32.mrf.mxu0  ;;  %18752 = vmatprep.subr.mxu0 %v15581_v48 }
 0x373   : > { %26848 = vst [vmem:[#allocation47_spill] sm:$0xff] %v22934_v5  ;;  %26849 = vst [vmem:[#allocation89_spill] sm:$0xff] %v22936_v53  ;;  %18753 = vmatpush3.msra.mxu0 %v15581_v48  ;;  %v15618_v5 = vld [vmem:[%s26482_s5 + $0xc8] sm:$0xff] }
 0x374   : > { %26850 = vst [vmem:[#allocation50_spill] sm:$0xff] %v22938_v39  ;;  %v18346_v58 = vpop.f32.mrf.mxu1  ;;  %v22940_v50 = vpop.f32.mrf.mxu0 }
 0x375   : > { %26851 = vst [vmem:[#allocation53_spill] sm:$0xff] %v22940_v50  ;;  %v22943_v47 = vadd.f32 %v18346_v58, %v22753_v8 }
 0x376   : > { %v22945_v59 = vpop.f32.mrf.mxu1  ;;  %v22947_v27 = vpop.f32.mrf.mxu0 }
 0x377   : > { %26852 = vst [vmem:[#allocation90_spill] sm:$0xff] %v22943_v47  ;;  %26853 = vst [vmem:[#allocation20_spill] sm:$0xff] %v22945_v59 }
 0x378   : > { %26854 = vst [vmem:[#allocation21_spill] sm:$0xff] %v22947_v27  ;;  %v18349_v15 = vpop.f32.mrf.mxu1  ;;  %v22952_v42 = vpop.f32.mrf.mxu0 }
 0x379   : > { %26855 = vst [vmem:[#allocation52_spill] sm:$0xff] %v22952_v42  ;;  %v22955_v39 = vadd.f32 %v18349_v15, %v22762_v62  ;;  %v15580_v62 = vld [vmem:[%s26482_s5 + $0x98] sm:$0xff] }
 0x37a   : > { %v22957_v50 = vpop.f32.mrf.mxu1  ;;  %v22959_v8 = vpop.f32.mrf.mxu0  ;;  %18754 = vmatprep.subr.mxu0 %v15580_v62 }
 0x37b   : > { %26856 = vst [vmem:[#allocation51_spill] sm:$0xff] %v22955_v39  ;;  %26857 = vst [vmem:[#allocation92_spill] sm:$0xff] %v22957_v50  ;;  %18755 = vmatpush3.msra.mxu0 %v15580_v62  ;;  %v23045_v39 = vld [vmem:[%s26482_s5 + $0x138] sm:$0xff] }
 0x37c   : > { %26858 = vst [vmem:[#allocation54_spill] sm:$0xff] %v22959_v8  ;;  %v18352_v58 = vpop.f32.mrf.mxu1  ;;  %v22961_v47 = vpop.f32.mrf.mxu0  ;;  %26875 = vst [vmem:[#allocation65_spill] sm:$0xff] %v23045_v39 }
 0x37d   : > { %26859 = vst [vmem:[#allocation57_spill] sm:$0xff] %v22961_v47  ;;  %v22964_v27 = vadd.f32 %v18352_v58, %v22774_v38 }
 0x37e   : > { %v22966_v59 = vpop.f32.mrf.mxu1  ;;  %v22968_v52 = vpop.f32.mrf.mxu0 }
 0x37f   : > { %26860 = vst [vmem:[#allocation93_spill] sm:$0xff] %v22964_v27  ;;  %26861 = vst [vmem:[#allocation22_spill] sm:$0xff] %v22966_v59 }
 0x380   : > { %26862 = vst [vmem:[#allocation23_spill] sm:$0xff] %v22968_v52  ;;  %v18355_v15 = vpop.f32.mrf.mxu1  ;;  %v22973_v48 = vpop.f32.mrf.mxu0 }
 0x381   : > { %26863 = vst [vmem:[#allocation56_spill] sm:$0xff] %v22973_v48  ;;  %v22976_v8 = vadd.f32 %v18355_v15, %v22784_v57  ;;  %v15579_v57 = vld [vmem:[%s26482_s5 + $0x90] sm:$0xff] }
 0x382   : > { %v22978_v47 = vpop.f32.mrf.mxu1  ;;  %v22980_v38 = vpop.f32.mrf.mxu0  ;;  %18756 = vmatprep.subr.mxu0 %v15579_v57 }
 0x383   : > { %26864 = vst [vmem:[#allocation55_spill] sm:$0xff] %v22976_v8  ;;  %26865 = vst [vmem:[#allocation94_spill] sm:$0xff] %v22978_v47  ;;  %18757 = vmatpush3.msra.mxu0 %v15579_v57  ;;  %v15623_v57 = vld [vmem:[%s26482_s5 + $0xf0] sm:$0xff]  ;;  %v15621_v8 = vld [vmem:[%s26482_s5 + $0xe0] sm:$0xff] }
 0x384   : > { %26866 = vst [vmem:[#allocation58_spill] sm:$0xff] %v22980_v38  ;;  %v18358_v58 = vpop.f32.mrf.mxu1  ;;  %v22982_v27 = vpop.f32.mrf.mxu0 }
 0x385   : > { %26867 = vst [vmem:[#allocation61_spill] sm:$0xff] %v22982_v27  ;;  %v22985_v52 = vadd.f32 %v18358_v58, %v22797_v17 }
 0x386   : > { %v22987_v59 = vpop.f32.mrf.mxu1  ;;  %v22989_v42 = vpop.f32.mrf.mxu0 }
 0x387   : > { %26868 = vst [vmem:[#allocation95_spill] sm:$0xff] %v22985_v52  ;;  %26869 = vst [vmem:[#allocation24_spill] sm:$0xff] %v22987_v59  ;;  %v15578_v59 = vld [vmem:[%s26482_s5 + $0x88] sm:$0xff] }
 0x388   : > { %26870 = vst [vmem:[#allocation25_spill] sm:$0xff] %v22989_v42  ;;  %v18361_v15 = vpop.f32.mrf.mxu1  ;;  %v22994_v62 = vpop.f32.mrf.mxu0  ;;  %18758 = vmatprep.subr.mxu0 %v15578_v59 }
 0x389   : > { %26871 = vst [vmem:[#allocation60_spill] sm:$0xff] %v22994_v62  ;;  %v22997_v38 = vadd.f32 %v18361_v15, %v22811_v7  ;;  %18759 = vmatpush3.msra.mxu0 %v15578_v59  ;;  %v15624_v7 = vld [vmem:[%s26482_s5 + $0xf8] sm:$0xff]  ;;  %v15622_v59 = vld [vmem:[%s26482_s5 + $0xe8] sm:$0xff] }
 0x38a   : > { %v22999_v27 = vpop.f32.mrf.mxu1  ;;  %v23001_v17 = vpop.f32.mrf.mxu0  ;;  %18810 = vmatprep.subr.mxu1 %v15624_v7 }
 0x38b   : > { %26872 = vst [vmem:[#allocation59_spill] sm:$0xff] %v22997_v38  ;;  %26873 = vst [vmem:[#allocation97_spill] sm:$0xff] %v22999_v27  ;;  %18811 = vmatpush3.msra.mxu1 %v15624_v7  ;;  %v15620_v7 = vld [vmem:[%s26482_s5 + $0xd8] sm:$0xff] }
 0x38c   : > { %26874 = vst [vmem:[#allocation62_spill] sm:$0xff] %v23001_v17  ;;  %v23003_v58 = vpop.f32.mrf.mxu1  ;;  %v23005_v52 = vpop.f32.mrf.mxu0  ;;  %v15577_v17 = vld [vmem:[%s26482_s5 + $0x80] sm:$0xff]  ;;  %18812 = vmatprep.subr.mxu1 %v15623_v57 }
 0x38d   : > { %18760 = vmatprep.subr.mxu0 %v15577_v17  ;;  %18813 = vmatpush3.msra.mxu1 %v15623_v57  ;;  %v15619_v57 = vld [vmem:[%s26482_s5 + $0xd0] sm:$0xff] }
 0x38e   : > { %v23007_v42 = vpop.f32.mrf.mxu1  ;;  %v23012_v62 = vpop.f32.mrf.mxu0  ;;  %18761 = vmatpush3.msra.mxu0 %v15577_v17  ;;  %18814 = vmatprep.subr.mxu1 %v15622_v59 }
 0x38f   : > { %18815 = vmatpush3.msra.mxu1 %v15622_v59  ;;  %18874 = vmatprep.subr.mxu0 %v23045_v39 }
 0x390   : > { %v23014_v48 = vpop.f32.mrf.mxu1  ;;  %v23030_v38 = vpop.f32.mrf.mxu0  ;;  %18816 = vmatprep.subr.mxu1 %v15621_v8 }
 0x391   : > { %18817 = vmatpush3.msra.mxu1 %v15621_v8  ;;  %v15617_v8 = vld [vmem:[%s26482_s5 + $0xc0] sm:$0xff] }
 0x392   : > { %v23022_v15 = vpop.f32.mrf.mxu1  ;;  %v23047_v50 = vpop.f32.mrf.mxu0  ;;  %18818 = vmatprep.subr.mxu1 %v15620_v7 }
 0x393   : > { %18819 = vmatpush3.msra.mxu1 %v15620_v7 }
 0x394   : > { %v23032_v27 = vpop.f32.mrf.mxu1  ;;  %v23060_v53 = vpop.f32.mrf.mxu0  ;;  %18820 = vmatprep.subr.mxu1 %v15619_v57 }
 0x395   : > { %18821 = vmatpush3.msra.mxu1 %v15619_v57 }
 0x396   : > { %v23037_v47 = vpop.f32.mrf.mxu1  ;;  %18822 = vmatprep.subr.mxu1 %v15618_v5  ;;  %v23069_v9 = vpop.f32.mrf.mxu0 }
 0x397   : > { %18823 = vmatpush3.msra.mxu1 %v15618_v5 }
 0x398   : > { %v23049_v17 = vpop.f32.mrf.mxu1  ;;  %18824 = vmatprep.subr.mxu1 %v15617_v8  ;;  %v23075_v32 = vpop.f32.mrf.mxu0 }
 0x399   : > { %18825 = vmatpush3.msra.mxu1 %v15617_v8  ;;  %26880 = vst [vmem:[#allocation63_spill] sm:$0xff] %v23075_v32 }
 0x39a   : > { %v23055_v59 = vpop.f32.mrf.mxu1  ;;  %v23081_v43 = vpop.f32.mrf.mxu0 }
 0x39b   : > { %26883 = vst [vmem:[#allocation69_spill] sm:$0xff] %v23081_v43 }
 0x39c   : > { %v23062_v13 = vpop.f32.mrf.mxu1  ;;  %v23087_v5 = vpop.f32.mrf.mxu0 }
 0x39d   : > { %26876 = vst [vmem:[#allocation98_spill] sm:$0xff] %v23062_v13  ;;  %26886 = vst [vmem:[#allocation68_spill] sm:$0xff] %v23087_v5 }
 0x39e   : > { %v23067_v39 = vpop.f32.mrf.mxu1  ;;  %v23093_v8 = vpop.f32.mrf.mxu0 }
 0x39f   : > { %26877 = vst [vmem:[#allocation26_spill] sm:$0xff] %v23067_v39  ;;  %26889 = vst [vmem:[#allocation70_spill] sm:$0xff] %v23093_v8 }
 0x3a0   : > { %v23071_v7 = vpop.f32.mrf.mxu1 }
 0x3a1   : > { %26878 = vst [vmem:[#allocation27_spill] sm:$0xff] %v23071_v7 }
 0x3a2   : > { %v23073_v12 = vpop.f32.mrf.mxu1 }
 0x3a3   : > { %26879 = vst [vmem:[#allocation64_spill] sm:$0xff] %v23073_v12 }
 0x3a4   : > { %v23077_v13 = vpop.f32.mrf.mxu1 }
 0x3a5   : > { %26881 = vst [vmem:[#allocation99_spill] sm:$0xff] %v23077_v13  ;;  %v23099_v13 = vpop.f32.mrf.mxu0 }
 0x3a6   : > { %v23079_v57 = vpop.f32.mrf.mxu1  ;;  %26892 = vst [vmem:[#allocation71_spill] sm:$0xff] %v23099_v13 }
 0x3a7   : > { %26882 = vst [vmem:[#allocation66_spill] sm:$0xff] %v23079_v57 }
 0x3a8   : > { %v23083_v22 = vpop.f32.mrf.mxu1 }
 0x3a9   : > { %26884 = vst [vmem:[#allocation100_spill] sm:$0xff] %v23083_v22  ;;  %v23105_v22 = vpop.f32.mrf.mxu0 }
 0x3aa   : > { %v23085_v39 = vpop.f32.mrf.mxu1  ;;  %26895 = vst [vmem:[#allocation75_spill] sm:$0xff] %v23105_v22 }
 0x3ab   : > { %26885 = vst [vmem:[#allocation28_spill] sm:$0xff] %v23085_v39 }
 0x3ac   : > { %v23089_v54 = vpop.f32.mrf.mxu1 }
 0x3ad   : > { %26887 = vst [vmem:[#allocation67_spill] sm:$0xff] %v23089_v54  ;;  %v23113_v54 = vpop.f32.mrf.mxu0 }
 0x3ae   : > { %v23091_v7 = vpop.f32.mrf.mxu1 }
 0x3af   : > { %26888 = vst [vmem:[#allocation101_spill] sm:$0xff] %v23091_v7  ;;  %v4626_v7 = vadd.f32 %v22475_v40, %v22473_v28  ;;  %v5542_v40 = vadd.f32 %v22647_v35, %v22652_v29  ;;  %v6331_v35 = vadd.f32 %v22825_v60, %v22828_v49  ;;  %v5546_v60 = vadd.f32 %v22667_v2, %v22672_v14 }
 0x3b0   : > { %v23095_v12 = vpop.f32.mrf.mxu1  ;;  %v6333_v49 = vadd.f32 %v22837_v6, %v22840_v10 }
 0x3b1   : > { %26890 = vst [vmem:[#allocation73_spill] sm:$0xff] %v23095_v12  ;;  %v5940_v2 = vadd.f32 %v22863_v20, %v5546_v60 }
 0x3b2   : > { %v23097_v32 = vpop.f32.mrf.mxu1  ;;  %v6728_v14 = vadd.f32 %v23032_v27, %v6333_v49 }
 0x3b3   : > { %26891 = vst [vmem:[#allocation72_spill] sm:$0xff] %v23097_v32  ;;  %v5146_v32 = vadd.f32 %v22638_v31, %v4626_v7  ;;  %v6329_v31 = vadd.f32 %v22816_v34, %v22819_v11 }
 0x3b4   : > { %v23101_v57 = vpop.f32.mrf.mxu1 }
 0x3b5   : > { %26893 = vst [vmem:[#allocation102_spill] sm:$0xff] %v23101_v57  ;;  %v23120_v57 = vpop.f32.mrf.mxu0  ;;  %v5540_v22 = vadd.f32 %v22640_v3, %v5146_v32  ;;  %v5936_v3 = vadd.f32 %v22830_v33, %v5542_v40  ;;  %v6724_v32 = vadd.f32 %v23003_v58, %v6329_v31  ;;  %v6726_v33 = vadd.f32 %v23014_v48, %v6331_v35 }
 0x3b6   : > { %v23103_v43 = vpop.f32.mrf.mxu1  ;;  %v23182_v31 = vadd.f32 %v22570_v24, %v22568_v26  ;;  %v23195_v26 = vadd.f32 %v22580_v45, %v22578_v46  ;;  %v6334_v24 = vadd.f32 %v22865_v0, %v5940_v2  ;;  %v5550_v46 = vadd.f32 %v22690_v37, %v22695_v21  ;;  %v26902_v37 = vld [vmem:[#allocation40_spill] sm:$0xff] }
 0x3b7   : > { %26894 = vst [vmem:[#allocation74_spill] sm:$0xff] %v23103_v43  ;;  %v23128_v8 = vpop.f32.mrf.mxu0  ;;  %v7120_v6 = vadd.f32 %v23030_v38, %v6726_v33  ;;  %v6337_v45 = vadd.f32 %v22870_v18, %v22873_v36  ;;  %v26903_v18 = vld [vmem:[#allocation42_spill] sm:$0xff]  ;;  %v26907_v2 = vld [vmem:[#allocation32_spill] sm:$0xff] }
 0x3b8   : > { %v23107_v39 = vpop.f32.mrf.mxu1  ;;  %v5944_v36 = vadd.f32 %v26903_v18, %v5550_v46  ;;  %v26917_v46 = vld [vmem:[#allocation16_spill] sm:$0xff] }
 0x3b9   : > { %26896 = vst [vmem:[#allocation30_spill] sm:$0xff] %v23107_v39 }
 0x3ba   : > { %v23109_v5 = vpop.f32.mrf.mxu1 }
 0x3bb   : > { %26897 = vst [vmem:[#allocation33_spill] sm:$0xff] %v23109_v5  ;;  %v5934_v5 = vadd.f32 %v22821_v4, %v5540_v22  ;;  %v5544_v22 = vadd.f32 %v22657_v63, %v22662_v19  ;;  %v23143_v4 = vpop.f32.mrf.mxu0  ;;  %v6330_v63 = vadd.f32 %v22832_v25, %v5936_v3  ;;  %v7118_v19 = vadd.f32 %v23005_v52, %v6724_v32 }
 0x3bc   : > { %v23115_v12 = vpop.f32.mrf.mxu1 }
 0x3bd   : > { %v5938_v34 = vadd.f32 %v22845_v51, %v5544_v22  ;;  %v23166_v51 = vpop.f32.mrf.mxu0  ;;  %v6725_v52 = vadd.f32 %v23022_v15, %v6330_v63 }
 0x3be   : > { %v23118_v13 = vpop.f32.mrf.mxu1 }
 0x3bf   : > { %v6332_v58 = vadd.f32 %v22847_v1, %v5938_v34  ;;  %v6335_v1 = vadd.f32 %v22855_v30, %v22858_v61  ;;  %v23189_v15 = vpop.f32.mrf.mxu0  ;;  %v7119_v38 = vadd.f32 %v23047_v50, %v6725_v52 }
 0x3c0   : > { %v23122_v43 = vpop.f32.mrf.mxu1 }
 0x3c1   : > { %26898 = vst [vmem:[#allocation76_spill] sm:$0xff] %v23122_v43  ;;  %v6328_v43 = vadd.f32 %v22823_v56, %v5934_v5  ;;  %v23156_v56 = vld [vmem:[%s26482_s5 + $0x178] sm:$0xff]  ;;  %v6727_v20 = vadd.f32 %v23037_v47, %v6332_v58  ;;  %v6730_v30 = vadd.f32 %v23049_v17, %v6335_v1  ;;  %v6729_v17 = vadd.f32 %v23055_v59, %v6334_v24  ;;  %v26906_v58 = vld [vmem:[#allocation9_spill] sm:$0xff] }
 0x3c2   : > { %v23125_v39 = vpop.f32.mrf.mxu1  ;;  %18938 = vmatprep.subr.mxu1 %v23156_v56 }
 0x3c3   : > { %v6723_v29 = vadd.f32 %v23007_v42, %v6328_v43  ;;  %v23171_v42 = vld [vmem:[%s26481_s4] ss:$0 sm:$0xff] }
 0x3c4   : > { %v23130_v28 = vpop.f32.mrf.mxu1 }
 0x3c5   : > { %26899 = vst [vmem:[#allocation79_spill] sm:$0xff] %v23130_v28  ;;  %v7117_v25 = vadd.f32 %v23012_v62, %v6723_v29  ;;  %v5548_v62 = vadd.f32 %v22680_v23, %v22685_v55  ;;  %v7122_v55 = vadd.f32 %v23060_v53, %v6728_v14  ;;  %v23205_v29 = vadd.f32 %v22590_v16, %v22588_v44  ;;  %v26900_v16 = vld [vmem:[#allocation4_spill] sm:$0xff] }
 0x3c6   : > { %v23136_v7 = vpop.f32.mrf.mxu1  ;;  %v7121_v53 = vadd.f32 %v23069_v9, %v6727_v20  ;;  %v26904_v9 = vld [vmem:[#allocation98_spill] sm:$0xff]  ;;  %v23229_v14 = vadd.f32 %v26907_v2, %v26906_v58 }
 0x3c7   : > { %v5942_v23 = vadd.f32 %v22878_v41, %v5548_v62  ;;  %v23212_v41 = vpop.f32.mrf.mxu0  ;;  %v6732_v60 = vadd.f32 %v26904_v9, %v6337_v45  ;;  %v26911_v62 = vld [vmem:[#allocation39_spill] sm:$0xff]  ;;  %v26912_v20 = vld [vmem:[#allocation26_spill] sm:$0xff]  ;;  %v26922_v9 = vld [vmem:[#allocation85_spill] sm:$0xff] }
 0x3c8   : > { %v23145_v28 = vpop.f32.mrf.mxu1 }
 0x3c9   : > { %v6336_v21 = vadd.f32 %v26902_v37, %v5942_v23  ;;  %v26920_v37 = vld [vmem:[#allocation82_spill] sm:$0xff] }
 0x3ca   : > { %v23151_v11 = vpop.f32.mrf.mxu1 }
 0x3cc   : > { %v18572_v43 = vpop.f32.mrf.mxu1 }
 0x3cd   : > { %v7512_v48 = vadd.f32 %v18572_v43, %v7118_v19  ;;  %v26901_v19 = vld [vmem:[#allocation10_spill] sm:$0xff]  ;;  %v26905_v43 = vld [vmem:[#allocation63_spill] sm:$0xff] }
 0x3ce   : > { %v7352_v10 = vpop.f32.mrf.mxu1  ;;  %v23219_v33 = vadd.f32 %v26901_v19, %v26900_v16 }
 0x3cf   : > { %v7551_v5 = vadd.f32 %v23171_v42, %v7512_v48  ;;  %v7511_v40 = vadd.f32 %v7352_v10, %v7117_v25  ;;  %v7124_v25 = vadd.f32 %v26905_v43, %v6730_v30  ;;  %v26908_v10 = vld [vmem:[#allocation34_spill] sm:$0xff]  ;;  %v26915_v30 = vld [vmem:[#allocation77_spill] sm:$0xff]  ;;  %v26924_v43 = vld [vmem:[#allocation84_spill] sm:$0xff] }
 0x3d0   : > { %v18575_v27 = vpop.f32.mrf.mxu1 }
 0x3d1   : > { %v7583_v3 = vmax.f32 %v7551_v5, 0.0  ;;  %v7550_v32 = vadd.f32 %v23171_v42, %v7511_v40  ;;  %v7514_v22 = vadd.f32 %v18575_v27, %v7120_v6  ;;  %v26909_v6 = vld [vmem:[#allocation6_spill] sm:$0xff]  ;;  %v26910_v40 = vld [vmem:[#allocation83_spill] sm:$0xff]  ;;  %v6731_v27 = vadd.f32 %v26912_v20, %v6336_v21  ;;  %v26921_v21 = vld [vmem:[#allocation5_spill] sm:$0xff] }
 0x3d2   : > { %v7362_v61 = vpop.f32.mrf.mxu1  ;;  %v5552_v5 = vadd.f32 %v26909_v6, %v26908_v10  ;;  %v6339_v1 = vadd.f32 %v26911_v62, %v26910_v40  ;;  %v23253_v18 = vadd.f32 %v26921_v21, %v26920_v37  ;;  %v26937_v21 = vld [vmem:[#allocation66_spill] sm:$0xff] }
 0x3d3   : > { %7615 = vst.msk [vmem:[#allocation3 + $0x21] sm:$0xff] %vm389_vm3, %v7583_v3  ;;  %v7582_v47 = vmax.f32 %v7550_v32, 0.0  ;;  %v7553_v50 = vadd.f32 %v23171_v42, %v7514_v22  ;;  %v7513_v35 = vadd.f32 %v7362_v61, %v7119_v38  ;;  %v23236_v38 = vpop.f32.mrf.mxu0  ;;  %v26913_v32 = vld [vmem:[#allocation69_spill] sm:$0xff] }
 0x3d4   : > { %v18578_v0 = vpop.f32.mrf.mxu1  ;;  %v7123_v22 = vadd.f32 %v26913_v32, %v6729_v17  ;;  %v26914_v61 = vld [vmem:[#allocation29_spill] sm:$0xff]  ;;  %v5946_v45 = vadd.f32 %v26917_v46, %v5552_v5  ;;  %v26927_v5 = vld [vmem:[#allocation64_spill] sm:$0xff] }
 0x3d5   : > { %7614 = vst.msk [vmem:[#allocation3 + $0x19] sm:$0xff] %vm389_vm3, %v7582_v47  ;;  %v7585_v34 = vmax.f32 %v7553_v50, 0.0  ;;  %v7552_v63 = vadd.f32 %v23171_v42, %v7513_v35  ;;  %v7516_v44 = vadd.f32 %v18578_v0, %v7122_v55  ;;  %v23243_v47 = vadd.f32 %v26915_v30, %v26914_v61  ;;  %v26916_v50 = vld [vmem:[#allocation45_spill] sm:$0xff]  ;;  %v26931_v30 = vld [vmem:[#allocation71_spill] sm:$0xff] }
 0x3d6   : > { %v7372_v49 = vpop.f32.mrf.mxu1  ;;  %v6338_v35 = vadd.f32 %v26916_v50, %v5944_v36 }
 0x3d7   : > { %7617 = vst.msk [vmem:[#allocation3 + $0x39] sm:$0xff] %vm389_vm3, %v7585_v34  ;;  %v7584_v59 = vmax.f32 %v7552_v63, 0.0  ;;  %v7555_v52 = vadd.f32 %v23171_v42, %v7516_v44  ;;  %v7515_v48 = vadd.f32 %v7372_v49, %v7121_v53  ;;  %v26918_v53 = vld [vmem:[#allocation68_spill] sm:$0xff]  ;;  %v26919_v63 = vld [vmem:[#allocation27_spill] sm:$0xff]  ;;  %v26923_v49 = vld [vmem:[#allocation37_spill] sm:$0xff] }
 0x3d8   : > { %v18581_v3 = vpop.f32.mrf.mxu1  ;;  %v7126_v0 = vadd.f32 %v26918_v53, %v6732_v60  ;;  %v6734_v44 = vadd.f32 %v26919_v63, %v6339_v1  ;;  %v5554_v36 = vadd.f32 %v26923_v49, %v26922_v9  ;;  %v26926_v60 = vld [vmem:[#allocation70_spill] sm:$0xff]  ;;  %v6733_v40 = vadd.f32 %v26927_v5, %v6338_v35  ;;  %v26934_v63 = vld [vmem:[#allocation8_spill] sm:$0xff] }
 0x3d9   : > { %7616 = vst.msk [vmem:[#allocation3 + $0x31] sm:$0xff] %vm389_vm3, %v7584_v59  ;;  %v7587_v24 = vmax.f32 %v7555_v52, 0.0  ;;  %v7554_v23 = vadd.f32 %v23171_v42, %v7515_v48  ;;  %v7518_v55 = vadd.f32 %v18581_v3, %v7124_v25  ;;  %v26925_v25 = vld [vmem:[#allocation96_spill] sm:$0xff]  ;;  %v7125_v52 = vadd.f32 %v26926_v60, %v6731_v27  ;;  %v23260_v48 = vpop.f32.mrf.mxu0  ;;  %v26928_v3 = vld [vmem:[#allocation17_spill] sm:$0xff] }
 0x3da   : > { %v7382_v34 = vpop.f32.mrf.mxu1  ;;  %v6341_v59 = vadd.f32 %v26925_v25, %v26924_v43  ;;  %v23275_v27 = vld [vmem:[#allocation3 + $0x21] sm:$0xff]  ;;  %v6340_v32 = vadd.f32 %v26928_v3, %v5946_v45  ;;  %v7128_v50 = vadd.f32 %v26931_v30, %v6734_v44 }
 0x3db   : > { %7619 = vst.msk [vmem:[#allocation3 + $0x51] sm:$0xff] %vm389_vm3, %v7587_v24  ;;  %v7586_v17 = vmax.f32 %v7554_v23, 0.0  ;;  %v7557_v16 = vadd.f32 %v23171_v42, %v7518_v55  ;;  %v7517_v19 = vadd.f32 %v7382_v34, %v7123_v22  ;;  %v26929_v22 = vld [vmem:[#allocation86_spill] sm:$0xff]  ;;  %v26930_v23 = vld [vmem:[#allocation99_spill] sm:$0xff]  ;;  %v23294_v49 = vpop.f32.mrf.mxu0 }
 0x3dc   : > { %v18584_v58 = vpop.f32.mrf.mxu1  ;;  %v23262_v2 = vld [vmem:[#allocation3 + $0x19] sm:$0xff]  ;;  %v5948_v24 = vadd.f32 %v26929_v22, %v5554_v36  ;;  %v6736_v55 = vadd.f32 %v26930_v23, %v6341_v59  ;;  %v26932_v45 = vld [vmem:[#allocation7_spill] sm:$0xff]  ;;  %v6735_v9 = vadd.f32 %v26937_v21, %v6340_v32  ;;  %v26941_v22 = vld [vmem:[#allocation100_spill] sm:$0xff] }
 0x3dd   : > { %v23264_v10 = vld [vmem:[#allocation3 + $0x18] sm:$0xff]  ;;  %v23266_v6 = vld [vmem:[#allocation3 + $0x20] sm:$0xff]  ;;  %7618 = vst.msk [vmem:[#allocation3 + $0x49] sm:$0xff] %vm389_vm3, %v7586_v17  ;;  %v7589_v62 = vmax.f32 %v7557_v16, 0.0  ;;  %v7556_v1 = vadd.f32 %v23171_v42, %v7517_v19  ;;  %v7520_v20 = vadd.f32 %v18584_v58, %v7126_v0  ;;  %18637 = vmatprep.mubr.msk.f32.mxu0 %vm389_vm3, %v23262_v2  ;;  %v5164_v17 = vadd.f32 %v26934_v63, %v23182_v31  ;;  %v26935_v16 = vld [vmem:[#allocation43_spill] sm:$0xff] }
 0x3de   : > { %18701 = vmatprep.mubr.msk.f32.mxu1 %vm389_vm3, %v23264_v10  ;;  %v7392_v61 = vpop.f32.mrf.mxu1  ;;  %18638 = vmatmul.mubr.msk.f32.gmra.mxu0 %vm389_vm3, %v23275_v27  ;;  %v26933_v0 = vld [vmem:[#allocation78_spill] sm:$0xff]  ;;  %v26936_v19 = vld [vmem:[#allocation44_spill] sm:$0xff]  ;;  %v26938_v59 = vld [vmem:[#allocation75_spill] sm:$0xff] }
 0x3df   : > { %18702 = vmatmul.mubr.msk.f32.gmra.mxu1 %vm389_vm3, %v23266_v6  ;;  %7621 = vst.msk [vmem:[#allocation3 + $0x69] sm:$0xff] %vm389_vm3, %v7589_v62  ;;  %v7588_v35 = vmax.f32 %v7556_v1, 0.0  ;;  %v7559_v46 = vadd.f32 %v23171_v42, %v7520_v20  ;;  %v7519_v53 = vadd.f32 %v7392_v61, %v7125_v52  ;;  %v5556_v34 = vadd.f32 %v26933_v0, %v26932_v45  ;;  %v23309_v5 = vld [vmem:[#allocation3 + $0x39] sm:$0xff]  ;;  %v26946_v21 = vld [vmem:[#allocation28_spill] sm:$0xff] }
 0x3e0   : > { %v6343_v37 = vadd.f32 %v26936_v19, %v26935_v16  ;;  %v18587_v44 = vpop.f32.mrf.mxu1  ;;  %v23296_v36 = vld [vmem:[#allocation3 + $0x31] sm:$0xff]  ;;  %v7127_v60 = vadd.f32 %v26938_v59, %v6733_v40  ;;  %v26939_v62 = vld [vmem:[#allocation46_spill] sm:$0xff]  ;;  %v7130_v40 = vadd.f32 %v23113_v54, %v6736_v55  ;;  %v26944_v55 = vld [vmem:[#allocation87_spill] sm:$0xff]  ;;  %v7129_v0 = vadd.f32 %v23120_v57, %v6735_v9 }
 0x3e1   : > { %v23298_v43 = vld [vmem:[#allocation3 + $0x30] sm:$0xff]  ;;  %v23300_v25 = vld [vmem:[#allocation3 + $0x38] sm:$0xff]  ;;  %7620 = vst.msk [vmem:[#allocation3 + $0x61] sm:$0xff] %vm389_vm3, %v7588_v35  ;;  %v7591_v52 = vmax.f32 %v7559_v46, 0.0  ;;  %v7558_v31 = vadd.f32 %v23171_v42, %v7519_v53  ;;  %v7522_v58 = vadd.f32 %v18587_v44, %v7128_v50  ;;  %18640 = vmatprep.mubr.msk.f32.mxu0 %vm389_vm3, %v23296_v36  ;;  %v6342_v1 = vadd.f32 %v26939_v62, %v5948_v24  ;;  %v26940_v20 = vld [vmem:[#allocation18_spill] sm:$0xff] }
 0x3e2   : > { %18704 = vmatprep.mubr.msk.f32.mxu1 %vm389_vm3, %v23298_v43  ;;  %v5950_v3 = vadd.f32 %v26940_v20, %v5556_v34  ;;  %v7402_v32 = vpop.f32.mrf.mxu1  ;;  %18641 = vmatmul.mubr.msk.f32.gmra.mxu0 %vm389_vm3, %v23309_v5  ;;  %v6738_v23 = vadd.f32 %v26941_v22, %v6343_v37  ;;  %v26942_v24 = vld [vmem:[#allocation12_spill] sm:$0xff]  ;;  %v26943_v46 = vld [vmem:[#allocation11_spill] sm:$0xff]  ;;  %v26945_v53 = vld [vmem:[#allocation49_spill] sm:$0xff]  ;;  %v23327_v34 = vpop.f32.mrf.mxu0 }
 0x3e3   : > { %18705 = vmatmul.mubr.msk.f32.gmra.mxu1 %vm389_vm3, %v23300_v25  ;;  %7623 = vst.msk [vmem:[#allocation3 + $0x81] sm:$0xff] %vm389_vm3, %v7591_v52  ;;  %v7590_v61 = vmax.f32 %v7558_v31, 0.0  ;;  %v7561_v30 = vadd.f32 %v23171_v42, %v7522_v58  ;;  %v7521_v50 = vadd.f32 %v7402_v32, %v7127_v60  ;;  %v5558_v35 = vadd.f32 %v26942_v24, %v5164_v17  ;;  %v23342_v57 = vld [vmem:[#allocation3 + $0x51] sm:$0xff]  ;;  %v26947_v9 = vld [vmem:[#allocation19_spill] sm:$0xff] }
 0x3e4   : > { %v5166_v54 = vadd.f32 %v26943_v46, %v23195_v26  ;;  %v6345_v45 = vadd.f32 %v26945_v53, %v26944_v55  ;;  %v18590_v63 = vpop.f32.mrf.mxu1  ;;  %v23329_v16 = vld [vmem:[#allocation3 + $0x49] sm:$0xff]  ;;  %v6737_v44 = vadd.f32 %v26946_v21, %v6342_v1  ;;  %v6344_v60 = vadd.f32 %v26947_v9, %v5950_v3  ;;  %v26948_v52 = vld [vmem:[#allocation89_spill] sm:$0xff] }
 0x3e5   : > { %v23331_v19 = vld [vmem:[#allocation3 + $0x48] sm:$0xff]  ;;  %v23333_v37 = vld [vmem:[#allocation3 + $0x50] sm:$0xff]  ;;  %7622 = vst.msk [vmem:[#allocation3 + $0x79] sm:$0xff] %vm389_vm3, %v7590_v61  ;;  %v7593_v17 = vmax.f32 %v7561_v30, 0.0  ;;  %v7560_v26 = vadd.f32 %v23171_v42, %v7521_v50  ;;  %v7524_v59 = vadd.f32 %v18590_v63, %v7130_v40  ;;  %18643 = vmatprep.mubr.msk.f32.mxu0 %vm389_vm3, %v23329_v16  ;;  %v5952_v31 = vadd.f32 %v26948_v52, %v5558_v35  ;;  %v26954_v55 = vld [vmem:[#allocation101_spill] sm:$0xff] }
 0x3e6   : > { %18707 = vmatprep.mubr.msk.f32.mxu1 %vm389_vm3, %v23331_v19  ;;  %v26949_v58 = vld [vmem:[#allocation67_spill] sm:$0xff]  ;;  %v7412_v1 = vpop.f32.mrf.mxu1  ;;  %18644 = vmatmul.mubr.msk.f32.gmra.mxu0 %vm389_vm3, %v23342_v57  ;;  %v7132_v20 = vadd.f32 %v23128_v8, %v6738_v23  ;;  %v26950_v3 = vld [vmem:[#allocation36_spill] sm:$0xff]  ;;  %v6739_v53 = vadd.f32 %v26954_v55, %v6344_v60 }
 0x3e7   : > { %v6740_v62 = vadd.f32 %v26949_v58, %v6345_v45  ;;  %18708 = vmatmul.mubr.msk.f32.gmra.mxu1 %vm389_vm3, %v23333_v37  ;;  %7625 = vst.msk [vmem:[#allocation3 + $0x99] sm:$0xff] %vm389_vm3, %v7593_v17  ;;  %v7592_v40 = vmax.f32 %v7560_v26, 0.0  ;;  %v7563_v32 = vadd.f32 %v23171_v42, %v7524_v59  ;;  %v7523_v22 = vadd.f32 %v7412_v1, %v7129_v0  ;;  %v26951_v30 = vld [vmem:[#allocation35_spill] sm:$0xff]  ;;  %v26953_v35 = vld [vmem:[#allocation48_spill] sm:$0xff]  ;;  %v23360_v45 = vpop.f32.mrf.mxu0  ;;  %v26955_v59 = vld [vmem:[#allocation50_spill] sm:$0xff] }
 0x3e8   : > { %v5560_v61 = vadd.f32 %v26950_v3, %v5166_v54  ;;  %v5168_v50 = vadd.f32 %v26951_v30, %v23205_v29  ;;  %v26952_v24 = vld [vmem:[#allocation47_spill] sm:$0xff]  ;;  %v18593_v63 = vpop.f32.mrf.mxu1  ;;  %v23364_v23 = vld [vmem:[#allocation3 + $0x60] sm:$0xff]  ;;  %v7131_v0 = vadd.f32 %v23143_v4, %v6737_v44  ;;  %v6346_v9 = vadd.f32 %v26955_v59, %v5952_v31  ;;  %v26956_v60 = vld [vmem:[#allocation20_spill] sm:$0xff] }
 0x3e9   : > { %v6347_v46 = vadd.f32 %v26953_v35, %v26952_v24  ;;  %v23362_v8 = vld [vmem:[#allocation3 + $0x61] sm:$0xff]  ;;  %7624 = vst.msk [vmem:[#allocation3 + $0x91] sm:$0xff] %vm389_vm3, %v7592_v40  ;;  %v7595_v54 = vmax.f32 %v7563_v32, 0.0  ;;  %v7562_v29 = vadd.f32 %v23171_v42, %v7523_v22  ;;  %v7526_v17 = vadd.f32 %v18593_v63, %v7132_v20  ;;  %18710 = vmatprep.mubr.msk.f32.mxu1 %vm389_vm3, %v23364_v23  ;;  %v23375_v26 = vld [vmem:[#allocation3 + $0x69] sm:$0xff]  ;;  %v26957_v58 = vld [vmem:[#allocation73_spill] sm:$0xff]  ;;  %v23393_v35 = vpop.f32.mrf.mxu0 }
 0x3ea   : > { %v23366_v21 = vld [vmem:[#allocation3 + $0x68] sm:$0xff]  ;;  %18646 = vmatprep.mubr.msk.f32.mxu0 %vm389_vm3, %v23362_v8  ;;  %v5954_v52 = vadd.f32 %v26956_v60, %v5560_v61  ;;  %v7134_v4 = vadd.f32 %v23166_v51, %v6740_v62  ;;  %v7422_v44 = vpop.f32.mrf.mxu1  ;;  %v26958_v31 = vld [vmem:[#allocation88_spill] sm:$0xff]  ;;  %v26960_v62 = vld [vmem:[#allocation90_spill] sm:$0xff]  ;;  %v7133_v24 = vadd.f32 %v23189_v15, %v6739_v53 }
 0x3eb   : > { %18647 = vmatmul.mubr.msk.f32.gmra.mxu0 %vm389_vm3, %v23375_v26  ;;  %18711 = vmatmul.mubr.msk.f32.gmra.mxu1 %vm389_vm3, %v23366_v21  ;;  %v6742_v1 = vadd.f32 %v26957_v58, %v6347_v46  ;;  %7627 = vst.msk [vmem:[#allocation3 + $0xb1] sm:$0xff] %vm389_vm3, %v7595_v54  ;;  %v7594_v20 = vmax.f32 %v7562_v29, 0.0  ;;  %v7565_v40 = vadd.f32 %v23171_v42, %v7526_v17  ;;  %v26959_v3 = vld [vmem:[#allocation80_spill] sm:$0xff]  ;;  %v26961_v61 = vld [vmem:[#allocation53_spill] sm:$0xff]  ;;  %v23408_v15 = vld [vmem:[#allocation3 + $0x81] sm:$0xff] }
 0x3ec   : > { %v7525_v32 = vadd.f32 %v7422_v44, %v7131_v0  ;;  %v5562_v22 = vadd.f32 %v26958_v31, %v5168_v50  ;;  %v5170_v51 = vadd.f32 %v26959_v3, %v23219_v33  ;;  %v6349_v30 = vadd.f32 %v26961_v61, %v26960_v62  ;;  %v18596_v55 = vpop.f32.mrf.mxu1  ;;  %v23395_v46 = vld [vmem:[#allocation3 + $0x79] sm:$0xff]  ;;  %v26962_v0 = vld [vmem:[#allocation72_spill] sm:$0xff]  ;;  %v26968_v61 = vld [vmem:[#allocation51_spill] sm:$0xff] }
 0x3ed   : > { %v23397_v63 = vld [vmem:[#allocation3 + $0x78] sm:$0xff]  ;;  %v23399_v54 = vld [vmem:[#allocation3 + $0x80] sm:$0xff]  ;;  %v6741_v29 = vadd.f32 %v26962_v0, %v6346_v9  ;;  %7626 = vst.msk [vmem:[#allocation3 + $0xa9] sm:$0xff] %vm389_vm3, %v7594_v20  ;;  %v7597_v50 = vmax.f32 %v7565_v40, 0.0  ;;  %v7528_v17 = vadd.f32 %v18596_v55, %v7134_v4  ;;  %18649 = vmatprep.mubr.msk.f32.mxu0 %vm389_vm3, %v23395_v46  ;;  %v26964_v60 = vld [vmem:[#allocation92_spill] sm:$0xff]  ;;  %v7136_v4 = vadd.f32 %v23212_v41, %v6742_v1 }
 0x3ee   : > { %v7564_v33 = vadd.f32 %v23171_v42, %v7525_v32  ;;  %18713 = vmatprep.mubr.msk.f32.mxu1 %vm389_vm3, %v23397_v63  ;;  %v26963_v53 = vld [vmem:[#allocation21_spill] sm:$0xff]  ;;  %v5956_v44 = vadd.f32 %v26964_v60, %v5562_v22  ;;  %v26965_v58 = vld [vmem:[#allocation102_spill] sm:$0xff]  ;;  %v7432_v31 = vpop.f32.mrf.mxu1  ;;  %v23426_v60 = vpop.f32.mrf.mxu0 }
 0x3ef   : > { %v6348_v59 = vadd.f32 %v26963_v53, %v5954_v52  ;;  %v6744_v9 = vadd.f32 %v26965_v58, %v6349_v30  ;;  %18650 = vmatmul.mubr.msk.f32.gmra.mxu0 %vm389_vm3, %v23408_v15  ;;  %18714 = vmatmul.mubr.msk.f32.gmra.mxu1 %vm389_vm3, %v23399_v54  ;;  %7629 = vst.msk [vmem:[#allocation3 + $0xc9] sm:$0xff] %vm389_vm3, %v7597_v50  ;;  %v26966_v52 = vld [vmem:[#allocation38_spill] sm:$0xff]  ;;  %v26967_v22 = vld [vmem:[#allocation41_spill] sm:$0xff]  ;;  %v26969_v30 = vld [vmem:[#allocation52_spill] sm:$0xff] }
 0x3f0   : > { %v7596_v20 = vmax.f32 %v7564_v33, 0.0  ;;  %v7567_v40 = vadd.f32 %v23171_v42, %v7528_v17  ;;  %v7527_v32 = vadd.f32 %v7432_v31, %v7133_v24  ;;  %v5564_v3 = vadd.f32 %v26966_v52, %v5170_v51  ;;  %v26970_v0 = vld [vmem:[#allocation74_spill] sm:$0xff]  ;;  %v18599_v58 = vpop.f32.mrf.mxu1  ;;  %v23428_v41 = vld [vmem:[#allocation3 + $0x91] sm:$0xff] }
 0x3f1   : > { %v5172_v62 = vadd.f32 %v26967_v22, %v23229_v14  ;;  %v6351_v55 = vadd.f32 %v26969_v30, %v26968_v61  ;;  %v6743_v53 = vadd.f32 %v26970_v0, %v6348_v59  ;;  %v23430_v1 = vld [vmem:[#allocation3 + $0x90] sm:$0xff]  ;;  %v23432_v50 = vld [vmem:[#allocation3 + $0x98] sm:$0xff]  ;;  %v7135_v24 = vadd.f32 %v23236_v38, %v6741_v29  ;;  %18652 = vmatprep.mubr.msk.f32.mxu0 %vm389_vm3, %v23428_v41  ;;  %v26972_v59 = vld [vmem:[#allocation54_spill] sm:$0xff] }
 0x3f2   : > { %7628 = vst.msk [vmem:[#allocation3 + $0xc1] sm:$0xff] %vm389_vm3, %v7596_v20  ;;  %v7599_v51 = vmax.f32 %v7567_v40, 0.0  ;;  %v7566_v14 = vadd.f32 %v23171_v42, %v7527_v32  ;;  %v7530_v33 = vadd.f32 %v18599_v58, %v7136_v4  ;;  %18716 = vmatprep.mubr.msk.f32.mxu1 %vm389_vm3, %v23430_v1  ;;  %v23441_v17 = vld [vmem:[#allocation3 + $0x99] sm:$0xff]  ;;  %v6350_v31 = vadd.f32 %v26972_v59, %v5956_v44  ;;  %v7442_v29 = vpop.f32.mrf.mxu1 }
 0x3f3   : > { %26971 = vst [vmem:[#allocation31_spill] sm:$0xff] %v23441_v17  ;;  %v26973_v52 = vld [vmem:[#allocation22_spill] sm:$0xff]  ;;  %v7138_v38 = vadd.f32 %v23260_v48, %v6744_v9  ;;  %18653 = vmatmul.mubr.msk.f32.gmra.mxu0 %vm389_vm3, %v23441_v17  ;;  %18717 = vmatmul.mubr.msk.f32.gmra.mxu1 %vm389_vm3, %v23432_v50  ;;  %v7529_v61 = vadd.f32 %v7442_v29, %v7135_v24  ;;  %v26975_v44 = vld [vmem:[#allocation81_spill] sm:$0xff] }
 0x3f4   : > { %v5958_v22 = vadd.f32 %v26973_v52, %v5564_v3  ;;  %v26974_v4 = vld [vmem:[#allocation30_spill] sm:$0xff]  ;;  %7631 = vst.msk [vmem:[#allocation3 + $0xe1] sm:$0xff] %vm389_vm3, %v7599_v51  ;;  %v7598_v40 = vmax.f32 %v7566_v14, 0.0  ;;  %v7569_v32 = vadd.f32 %v23171_v42, %v7530_v33  ;;  %v5566_v30 = vadd.f32 %v26975_v44, %v5172_v62  ;;  %v26976_v3 = vld [vmem:[#allocation91_spill] sm:$0xff]  ;;  %v26977_v9 = vld [vmem:[#allocation93_spill] sm:$0xff]  ;;  %v23459_v52 = vpop.f32.mrf.mxu0  ;;  %v18602_v17 = vpop.f32.mrf.mxu1 }
 0x3f5   : > { %v6746_v20 = vadd.f32 %v26974_v4, %v6351_v55  ;;  %v5174_v48 = vadd.f32 %v26976_v3, %v23243_v47  ;;  %v26978_v0 = vld [vmem:[#allocation57_spill] sm:$0xff]  ;;  %v7137_v59 = vadd.f32 %v23294_v49, %v6743_v53  ;;  %v23461_v55 = vld [vmem:[#allocation3 + $0xa9] sm:$0xff]  ;;  %v7568_v47 = vadd.f32 %v23171_v42, %v7529_v61  ;;  %v26983_v44 = vld [vmem:[#allocation94_spill] sm:$0xff] }
 0x3f6   : > { %v6353_v58 = vadd.f32 %v26978_v0, %v26977_v9  ;;  %26979 = vst [vmem:[#allocation4_spill] sm:$0xff] %v23461_v55  ;;  %v23463_v51 = vld [vmem:[#allocation3 + $0xa8] sm:$0xff]  ;;  %v23465_v14 = vld [vmem:[#allocation3 + $0xb0] sm:$0xff]  ;;  %v26980_v24 = vld [vmem:[#allocation33_spill] sm:$0xff]  ;;  %v7601_v62 = vmax.f32 %v7569_v32, 0.0  ;;  %v7532_v29 = vadd.f32 %v18602_v17, %v7138_v38  ;;  %18655 = vmatprep.mubr.msk.f32.mxu0 %vm389_vm3, %v23461_v55  ;;  %v5960_v3 = vadd.f32 %v26983_v44, %v5566_v30  ;;  %v7452_v9 = vpop.f32.mrf.mxu1  ;;  %v7088_v44 = vpop.f32.mrf.mxu0 }
 0x3f7   : > { %v6745_v33 = vadd.f32 %v26980_v24, %v6350_v31  ;;  %7630 = vst.msk [vmem:[#allocation3 + $0xd9] sm:$0xff] %vm389_vm3, %v7598_v40  ;;  %18719 = vmatprep.mubr.msk.f32.mxu1 %vm389_vm3, %v23463_v51  ;;  %v23474_v49 = vld [vmem:[#allocation3 + $0xb1] sm:$0xff]  ;;  %v26982_v53 = vld [vmem:[#allocation23_spill] sm:$0xff]  ;;  %v7140_v17 = vadd.f32 %v23327_v34, %v6746_v20  ;;  %v7600_v38 = vmax.f32 %v7568_v47, 0.0  ;;  %v7531_v32 = vadd.f32 %v7452_v9, %v7137_v59  ;;  %v26988_v47 = vld [vmem:[#allocation58_spill] sm:$0xff] }
 0x3f8   : > { %26981 = vst [vmem:[#allocation10_spill] sm:$0xff] %v23474_v49  ;;  %v6352_v4 = vadd.f32 %v26982_v53, %v5958_v22  ;;  %v6748_v31 = vadd.f32 %v23115_v12, %v6353_v58  ;;  %18656 = vmatmul.mubr.msk.f32.gmra.mxu0 %vm389_vm3, %v23474_v49  ;;  %18720 = vmatmul.mubr.msk.f32.gmra.mxu1 %vm389_vm3, %v23465_v14  ;;  %7633 = vst.msk [vmem:[#allocation3 + $0xf9] sm:$0xff] %vm389_vm3, %v7601_v62  ;;  %v26984_v22 = vld [vmem:[#allocation14_spill] sm:$0xff]  ;;  %v26985_v30 = vld [vmem:[#allocation13_spill] sm:$0xff]  ;;  %v18605_v49 = vpop.f32.mrf.mxu1 }
 0x3f9   : > { %v7571_v40 = vadd.f32 %v23171_v42, %v7532_v29  ;;  %v5568_v61 = vadd.f32 %v26984_v22, %v5174_v48  ;;  %v5176_v12 = vadd.f32 %v26985_v30, %v23253_v18  ;;  %v26986_v0 = vld [vmem:[#allocation55_spill] sm:$0xff]  ;;  %v26987_v58 = vld [vmem:[#allocation56_spill] sm:$0xff]  ;;  %v23494_v34 = vld [vmem:[#allocation3 + $0xc0] sm:$0xff]  ;;  %v7139_v59 = vadd.f32 %v23360_v45, %v6745_v33  ;;  %7632 = vst.msk [vmem:[#allocation3 + $0xf1] sm:$0xff] %vm389_vm3, %v7600_v38 }
 0x3fa   : > { %v6355_v24 = vadd.f32 %v26987_v58, %v26986_v0  ;;  %v6747_v53 = vadd.f32 %v23118_v13, %v6352_v4  ;;  %v23492_v55 = vld [vmem:[#allocation3 + $0xc1] sm:$0xff]  ;;  %v7570_v18 = vadd.f32 %v23171_v42, %v7531_v32  ;;  %v7534_v62 = vadd.f32 %v18605_v49, %v7140_v17  ;;  %18722 = vmatprep.mubr.msk.f32.mxu1 %vm389_vm3, %v23494_v34  ;;  %v23505_v13 = vld [vmem:[#allocation3 + $0xc9] sm:$0xff]  ;;  %v7462_v33 = vpop.f32.mrf.mxu1  ;;  %v26993_v30 = vld [vmem:[#allocation61_spill] sm:$0xff]  ;;  %v18550_v0 = vpop.f32.mrf.mxu0 }
 0x3fb   : > { %v23496_v20 = vld [vmem:[#allocation3 + $0xc8] sm:$0xff]  ;;  %v7603_v48 = vmax.f32 %v7571_v40, 0.0  ;;  %18658 = vmatprep.mubr.msk.f32.mxu0 %vm389_vm3, %v23492_v55  ;;  %v6354_v29 = vadd.f32 %v26988_v47, %v5960_v3  ;;  %v26989_v4 = vld [vmem:[#allocation24_spill] sm:$0xff]  ;;  %v7142_v45 = vadd.f32 %v23393_v35, %v6748_v31  ;;  %v7533_v32 = vadd.f32 %v7462_v33, %v7139_v59  ;;  %v26995_v33 = vld [vmem:[#allocation97_spill] sm:$0xff] }
 0x3fc   : > { %v5962_v9 = vadd.f32 %v26989_v4, %v5568_v61  ;;  %18659 = vmatmul.mubr.msk.f32.gmra.mxu0 %vm389_vm3, %v23505_v13  ;;  %18723 = vmatmul.mubr.msk.f32.gmra.mxu1 %vm389_vm3, %v23496_v20  ;;  %v26990_v49 = vld [vmem:[#allocation76_spill] sm:$0xff]  ;;  %v7602_v38 = vmax.f32 %v7570_v18, 0.0  ;;  %v7573_v40 = vadd.f32 %v23171_v42, %v7534_v62  ;;  %v26991_v3 = vld [vmem:[#allocation15_spill] sm:$0xff]  ;;  %v7141_v31 = vadd.f32 %v23426_v60, %v6747_v53  ;;  %v18608_v58 = vpop.f32.mrf.mxu1  ;;  %v26994_v53 = vld [vmem:[#allocation25_spill] sm:$0xff] }
 0x3fd   : > { %v6750_v17 = vadd.f32 %v26990_v49, %v6355_v24  ;;  %7635 = vst.msk [vmem:[#allocation3 + $0x111] sm:$0xff] %vm389_vm3, %v7603_v48  ;;  %v5570_v22 = vadd.f32 %v26991_v3, %v5176_v12  ;;  %v26992_v61 = vld [vmem:[#allocation95_spill] sm:$0xff]  ;;  %v6749_v48 = vadd.f32 %v23125_v39, %v6354_v29  ;;  %v7572_v12 = vadd.f32 %v23171_v42, %v7533_v32 }
 0x3fe   : > { %v6357_v35 = vadd.f32 %v26993_v30, %v26992_v61  ;;  %v23521_v47 = vld [vmem:[#allocation3 + $0xd9] sm:$0xff]  ;;  %7634 = vst.msk [vmem:[#allocation3 + $0x109] sm:$0xff] %vm389_vm3, %v7602_v38  ;;  %v7605_v59 = vmax.f32 %v7573_v40, 0.0  ;;  %v7536_v18 = vadd.f32 %v18608_v58, %v7142_v45  ;;  %v23534_v60 = vld [vmem:[#allocation3 + $0xe1] sm:$0xff]  ;;  %v6356_v62 = vadd.f32 %v26994_v53, %v5962_v9  ;;  %v7472_v29 = vpop.f32.mrf.mxu1  ;;  %v26998_v61 = vld [vmem:[#allocation60_spill] sm:$0xff] }
 0x3ff   : > { %v23523_v4 = vld [vmem:[#allocation3 + $0xd8] sm:$0xff]  ;;  %v23525_v24 = vld [vmem:[#allocation3 + $0xe0] sm:$0xff]  ;;  %18661 = vmatprep.mubr.msk.f32.mxu0 %vm389_vm3, %v23521_v47  ;;  %v5964_v49 = vadd.f32 %v26995_v33, %v5570_v22  ;;  %v26996_v3 = vld [vmem:[#allocation79_spill] sm:$0xff]  ;;  %v7144_v45 = vadd.f32 %v23459_v52, %v6750_v17  ;;  %v7604_v38 = vmax.f32 %v7572_v12, 0.0  ;;  %v7535_v32 = vadd.f32 %v7472_v29, %v7141_v31 }
 0x400   : > { %18725 = vmatprep.mubr.msk.f32.mxu1 %vm389_vm3, %v23523_v4  ;;  %v6752_v39 = vadd.f32 %v26996_v3, %v6357_v35  ;;  %18662 = vmatmul.mubr.msk.f32.gmra.mxu0 %vm389_vm3, %v23534_v60  ;;  %7637 = vst.msk [vmem:[#allocation3 + $0x129] sm:$0xff] %vm389_vm3, %v7605_v59  ;;  %v7575_v40 = vadd.f32 %v23171_v42, %v7536_v18  ;;  %v26997_v9 = vld [vmem:[#allocation59_spill] sm:$0xff]  ;;  %v7098_v35 = vpop.f32.mrf.mxu0  ;;  %v18611_v58 = vpop.f32.mrf.mxu1  ;;  %v23549_v53 = vld [vmem:[#allocation3 + $0xf1] sm:$0xff]  ;;  %v26999_v12 = vld [vmem:[#allocation62_spill] sm:$0xff] }
 0x401   : > { %18726 = vmatmul.mubr.msk.f32.gmra.mxu1 %vm389_vm3, %v23525_v24  ;;  %v6359_v22 = vadd.f32 %v26998_v61, %v26997_v9  ;;  %v6751_v30 = vadd.f32 %v23136_v7, %v6356_v62  ;;  %v23551_v33 = vld [vmem:[#allocation3 + $0xf0] sm:$0xff]  ;;  %v23553_v3 = vld [vmem:[#allocation3 + $0xf8] sm:$0xff]  ;;  %v7143_v52 = vadd.f32 %v7088_v44, %v6749_v48  ;;  %7636 = vst.msk [vmem:[#allocation3 + $0x121] sm:$0xff] %vm389_vm3, %v7604_v38 }
 0x402   : > { %v7607_v17 = vmax.f32 %v7575_v40, 0.0  ;;  %v7574_v59 = vadd.f32 %v23171_v42, %v7535_v32  ;;  %v7538_v31 = vadd.f32 %v18611_v58, %v7144_v45  ;;  %18664 = vmatprep.mubr.msk.f32.mxu0 %vm389_vm3, %v23549_v53  ;;  %18728 = vmatprep.mubr.msk.f32.mxu1 %vm389_vm3, %v23551_v33  ;;  %v23561_v7 = vld [vmem:[#allocation3 + $0xf9] sm:$0xff]  ;;  %v6358_v18 = vadd.f32 %v26999_v12, %v5964_v49  ;;  %v18553_v29 = vpop.f32.mrf.mxu0  ;;  %v7482_v9 = vpop.f32.mrf.mxu1 }
 0x403   : > { %v7146_v62 = vadd.f32 %v18550_v0, %v6752_v39  ;;  %v6754_v44 = vadd.f32 %v23145_v28, %v6359_v22  ;;  %v7537_v38 = vadd.f32 %v7482_v9, %v7143_v52  ;;  %v7145_v40 = vadd.f32 %v7098_v35, %v6751_v30 }
 0x404   : > { %18665 = vmatmul.mubr.msk.f32.gmra.mxu0 %vm389_vm3, %v23561_v7  ;;  %7639 = vst.msk [vmem:[#allocation3 + $0x141] sm:$0xff] %vm389_vm3, %v7607_v17  ;;  %v7606_v48 = vmax.f32 %v7574_v59, 0.0  ;;  %v7577_v45 = vadd.f32 %v23171_v42, %v7538_v31  ;;  %v18614_v32 = vpop.f32.mrf.mxu1  ;;  %v6753_v61 = vadd.f32 %v23151_v11, %v6358_v18  ;;  %v23584_v30 = vld [vmem:[#allocation3 + $0x111] sm:$0xff]  ;;  %v7108_v35 = vpop.f32.mrf.mxu0 }
 0x405   : > { %18729 = vmatmul.mubr.msk.f32.gmra.mxu1 %vm389_vm3, %v23553_v3  ;;  %v23571_v49 = vld [vmem:[#allocation3 + $0x109] sm:$0xff]  ;;  %v7576_v28 = vadd.f32 %v23171_v42, %v7537_v38  ;;  %v7540_v22 = vadd.f32 %v18614_v32, %v7146_v62  ;;  %v7148_v11 = vadd.f32 %v18553_v29, %v6754_v44 }
 0x406   : > { %v23573_v0 = vld [vmem:[#allocation3 + $0x108] sm:$0xff]  ;;  %v23575_v39 = vld [vmem:[#allocation3 + $0x110] sm:$0xff]  ;;  %7638 = vst.msk [vmem:[#allocation3 + $0x139] sm:$0xff] %vm389_vm3, %v7606_v48  ;;  %v7609_v58 = vmax.f32 %v7577_v45, 0.0  ;;  %18667 = vmatprep.mubr.msk.f32.mxu0 %vm389_vm3, %v23571_v49  ;;  %v7492_v52 = vpop.f32.mrf.mxu1  ;;  %v7147_v48 = vadd.f32 %v7108_v35, %v6753_v61 }
 0x407   : > { %18731 = vmatprep.mubr.msk.f32.mxu1 %vm389_vm3, %v23573_v0  ;;  %v7608_v17 = vmax.f32 %v7576_v28, 0.0  ;;  %v7579_v59 = vadd.f32 %v23171_v42, %v7540_v22  ;;  %v7539_v31 = vadd.f32 %v7492_v52, %v7145_v40  ;;  %v23604_v44 = vld [vmem:[#allocation3 + $0x129] sm:$0xff] }
 0x408   : > { %18668 = vmatmul.mubr.msk.f32.gmra.mxu0 %vm389_vm3, %v23584_v30  ;;  %7641 = vst.msk [vmem:[#allocation3 + $0x159] sm:$0xff] %vm389_vm3, %v7609_v58  ;;  %v18617_v12 = vpop.f32.mrf.mxu1  ;;  %v23592_v18 = vld [vmem:[#allocation3 + $0x121] sm:$0xff] }
 0x409   : > { %18732 = vmatmul.mubr.msk.f32.gmra.mxu1 %vm389_vm3, %v23575_v39  ;;  %v23594_v62 = vld [vmem:[#allocation3 + $0x120] sm:$0xff]  ;;  %v23596_v9 = vld [vmem:[#allocation3 + $0x128] sm:$0xff]  ;;  %7640 = vst.msk [vmem:[#allocation3 + $0x151] sm:$0xff] %vm389_vm3, %v7608_v17  ;;  %v7611_v45 = vmax.f32 %v7579_v59, 0.0  ;;  %v7578_v38 = vadd.f32 %v23171_v42, %v7539_v31  ;;  %v7542_v29 = vadd.f32 %v18617_v12, %v7148_v11  ;;  %18670 = vmatprep.mubr.msk.f32.mxu0 %vm389_vm3, %v23592_v18 }
 0x40a   : > { %18734 = vmatprep.mubr.msk.f32.mxu1 %vm389_vm3, %v23594_v62  ;;  %v7502_v40 = vpop.f32.mrf.mxu1 }
 0x40b   : > { %7643 = vst.msk [vmem:[#allocation3 + $0x171] sm:$0xff] %vm389_vm3, %v7611_v45  ;;  %v7610_v32 = vmax.f32 %v7578_v38, 0.0  ;;  %v7581_v61 = vadd.f32 %v23171_v42, %v7542_v29  ;;  %v7541_v58 = vadd.f32 %v7502_v40, %v7147_v48  ;;  %v23624_v17 = vld [vmem:[#allocation3 + $0x141] sm:$0xff] }
 0x40c   : > { %18671 = vmatmul.mubr.msk.f32.gmra.mxu0 %vm389_vm3, %v23604_v44  ;;  %v8369_v45 = vld [vmem:[#allocation3 + $0x2] sm:$0xff] }
 0x40d   : > { %18735 = vmatmul.mubr.msk.f32.gmra.mxu1 %vm389_vm3, %v23596_v9  ;;  %v23612_v28 = vld [vmem:[#allocation3 + $0x139] sm:$0xff]  ;;  %7642 = vst.msk [vmem:[#allocation3 + $0x169] sm:$0xff] %vm389_vm3, %v7610_v32  ;;  %v7613_v52 = vmax.f32 %v7581_v61, 0.0  ;;  %v7580_v11 = vadd.f32 %v23171_v42, %v7541_v58  ;;  %v8370_v61 = vld [vmem:[#allocation3 + $0xa] sm:$0xff] }
 0x40e   : > { %v23614_v22 = vld [vmem:[#allocation3 + $0x138] sm:$0xff]  ;;  %v23616_v35 = vld [vmem:[#allocation3 + $0x140] sm:$0xff]  ;;  %18673 = vmatprep.mubr.msk.f32.mxu0 %vm389_vm3, %v23612_v28 }
 0x40f   : > { %18737 = vmatprep.mubr.msk.f32.mxu1 %vm389_vm3, %v23614_v22  ;;  %7645 = vst.msk [vmem:[#allocation3 + $0x189] sm:$0xff] %vm389_vm3, %v7613_v52  ;;  %v7612_v59 = vmax.f32 %v7580_v11, 0.0  ;;  %v23642_v48 = vld [vmem:[#allocation3 + $0x159] sm:$0xff] }
 0x410   : > { %18674 = vmatmul.mubr.msk.f32.gmra.mxu0 %vm389_vm3, %v23624_v17  ;;  %v23631_v31 = vld [vmem:[#allocation3 + $0x151] sm:$0xff]  ;;  %v15663_v58 = vld [vmem:[%s26482_s5 + $0x130] sm:$0xff] }
 0x411   : > { %18738 = vmatmul.mubr.msk.f32.gmra.mxu1 %vm389_vm3, %v23616_v35  ;;  %v23633_v42 = vld [vmem:[#allocation3 + $0x150] sm:$0xff]  ;;  %v23635_v12 = vld [vmem:[#allocation3 + $0x158] sm:$0xff]  ;;  %7644 = vst.msk [vmem:[#allocation3 + $0x181] sm:$0xff] %vm389_vm3, %v7612_v59  ;;  %18676 = vmatprep.mubr.msk.f32.mxu0 %vm389_vm3, %v23631_v31 }
 0x412   : > { %18740 = vmatprep.mubr.msk.f32.mxu1 %vm389_vm3, %v23633_v42  ;;  %v23658_v32 = vld [vmem:[#allocation3 + $0x171] sm:$0xff]  ;;  %v23673_v52 = vld [vmem:[#allocation3 + $0x1a] sm:$0xff] }
 0x413   : > { %v27000_v11 = vld [vmem:[#allocation65_spill] sm:$0xff] }
 0x414   : > { %18677 = vmatmul.mubr.msk.f32.gmra.mxu0 %vm389_vm3, %v23642_v48  ;;  %v23648_v38 = vld [vmem:[#allocation3 + $0x169] sm:$0xff]  ;;  %v15662_v59 = vld [vmem:[%s26482_s5 + $0x128] sm:$0xff] }
 0x415   : > { %18741 = vmatmul.mubr.msk.f32.gmra.mxu1 %vm389_vm3, %v23635_v12  ;;  %v23650_v29 = vld [vmem:[#allocation3 + $0x168] sm:$0xff]  ;;  %v23652_v40 = vld [vmem:[#allocation3 + $0x170] sm:$0xff]  ;;  %18679 = vmatprep.mubr.msk.f32.mxu0 %vm389_vm3, %v23648_v38 }
 0x416   : > { %18743 = vmatprep.mubr.msk.f32.mxu1 %vm389_vm3, %v23650_v29 }
 0x418   : > { %18680 = vmatmul.mubr.msk.f32.gmra.mxu0 %vm389_vm3, %v23658_v32 }
 0x419   : > { %18744 = vmatmul.mubr.msk.f32.gmra.mxu1 %vm389_vm3, %v23652_v40  ;;  %18762 = vmatprep.mubr.msk.f32.mxu0 %vm389_vm3, %v8369_v45 }
 0x41a   : > { %18826 = vmatprep.mubr.msk.f32.mxu1 %vm389_vm3, %v23264_v10  ;;  %v23680_v10 = vld [vmem:[#allocation3 + $0x22] sm:$0xff] }
 0x41c   : > { %18763 = vmatmul.mubr.msk.f32.vlgmr.msra.gmra.mxu0 %vm389_vm3, %v8370_v61  ;;  %v23699_v61 = vld [vmem:[#allocation3 + $0x3a] sm:$0xff] }
 0x41d   : > { %18827 = vmatmul.mubr.msk.f32.vlgmr.msra.gmra.mxu1 %vm389_vm3, %v23266_v6  ;;  %18875 = vmatpush3.msra.mxu0 %v27000_v11  ;;  %v15703_v6 = vld [vmem:[%s26482_s5 + $0x170] sm:$0xff] }
 0x41e   : > { %18765 = vmatprep.mubr.msk.f32.mxu0 %vm389_vm3, %v23673_v52  ;;  %18829 = vmatprep.mubr.msk.f32.mxu1 %vm389_vm3, %v23298_v43  ;;  %v23693_v43 = vld [vmem:[#allocation3 + $0x32] sm:$0xff]  ;;  %v18700_v45 = vpop.f32.mrf.mxu1 }
 0x41f   : > { %18876 = vmatprep.subr.mxu0 %v15663_v58  ;;  %18939 = vmatpush3.msra.mxu1 %v23156_v56  ;;  %v18636_v56 = vpop.f32.mrf.mxu0 }
 0x420   : > { %18877 = vmatpush3.msra.mxu0 %v15663_v58  ;;  %18940 = vmatprep.subr.mxu1 %v15703_v6  ;;  %v15661_v58 = vld [vmem:[%s26482_s5 + $0x120] sm:$0xff]  ;;  %v23707_v11 = vadd.f32 %v18700_v45, %v18636_v56  ;;  %v15659_v45 = vld [vmem:[%s26482_s5 + $0x110] sm:$0xff] }
 0x421   : > { %18766 = vmatmul.mubr.msk.f32.gmra.mxu0 %vm389_vm3, %v23680_v10  ;;  %18830 = vmatmul.mubr.msk.f32.gmra.mxu1 %vm389_vm3, %v23300_v25  ;;  %v15702_v25 = vld [vmem:[%s26482_s5 + $0x168] sm:$0xff]  ;;  %v23737_v56 = vld [vmem:[#allocation3 + $0x6a] sm:$0xff] }
 0x422   : > { %18768 = vmatprep.mubr.msk.f32.mxu0 %vm389_vm3, %v23693_v43  ;;  %18832 = vmatprep.mubr.msk.f32.mxu1 %vm389_vm3, %v23331_v19  ;;  %v23713_v19 = vld [vmem:[#allocation3 + $0x4a] sm:$0xff] }
 0x423   : > { %18878 = vmatprep.subr.mxu0 %v15662_v59  ;;  %18941 = vmatpush3.msra.mxu1 %v15703_v6  ;;  %v15660_v6 = vld [vmem:[%s26482_s5 + $0x118] sm:$0xff] }
 0x424   : > { %18879 = vmatpush3.msra.mxu0 %v15662_v59  ;;  %18942 = vmatprep.subr.mxu1 %v15702_v25  ;;  %v23719_v59 = vld [vmem:[#allocation3 + $0x52] sm:$0xff] }
 0x425   : > { %18769 = vmatmul.mubr.msk.f32.gmra.mxu0 %vm389_vm3, %v23699_v61  ;;  %18833 = vmatmul.mubr.msk.f32.gmra.mxu1 %vm389_vm3, %v23333_v37  ;;  %v15701_v37 = vld [vmem:[%s26482_s5 + $0x160] sm:$0xff] }
 0x426   : > { %18771 = vmatprep.mubr.msk.f32.mxu0 %vm389_vm3, %v23713_v19  ;;  %18835 = vmatprep.mubr.msk.f32.mxu1 %vm389_vm3, %v23364_v23  ;;  %v23731_v23 = vld [vmem:[#allocation3 + $0x62] sm:$0xff] }
 0x427   : > { %18880 = vmatprep.subr.mxu0 %v15661_v58  ;;  %18943 = vmatpush3.msra.mxu1 %v15702_v25  ;;  %v15658_v25 = vld [vmem:[%s26482_s5 + $0x108] sm:$0xff] }
 0x428   : > { %18881 = vmatpush3.msra.mxu0 %v15661_v58  ;;  %18944 = vmatprep.subr.mxu1 %v15701_v37  ;;  %v23755_v58 = vld [vmem:[#allocation3 + $0x82] sm:$0xff] }
 0x429   : > { %18772 = vmatmul.mubr.msk.f32.gmra.mxu0 %vm389_vm3, %v23719_v59  ;;  %18836 = vmatmul.mubr.msk.f32.gmra.mxu1 %vm389_vm3, %v23366_v21  ;;  %v15700_v21 = vld [vmem:[%s26482_s5 + $0x158] sm:$0xff] }
 0x42a   : > { %18774 = vmatprep.mubr.msk.f32.mxu0 %vm389_vm3, %v23731_v23  ;;  %18838 = vmatprep.mubr.msk.f32.mxu1 %vm389_vm3, %v23397_v63  ;;  %v23749_v63 = vld [vmem:[#allocation3 + $0x7a] sm:$0xff] }
 0x42b   : > { %18882 = vmatprep.subr.mxu0 %v15660_v6  ;;  %18945 = vmatpush3.msra.mxu1 %v15701_v37  ;;  %v15657_v37 = vld [vmem:[%s26482_s5 + $0x100] sm:$0xff] }
 0x42c   : > { %18883 = vmatpush3.msra.mxu0 %v15660_v6  ;;  %18946 = vmatprep.subr.mxu1 %v15700_v21  ;;  %v23773_v6 = vld [vmem:[#allocation3 + $0x9a] sm:$0xff] }
 0x42d   : > { %18775 = vmatmul.mubr.msk.f32.gmra.mxu0 %vm389_vm3, %v23737_v56  ;;  %18839 = vmatmul.mubr.msk.f32.gmra.mxu1 %vm389_vm3, %v23399_v54  ;;  %v15699_v54 = vld [vmem:[%s26482_s5 + $0x150] sm:$0xff] }
 0x42e   : > { %18777 = vmatprep.mubr.msk.f32.mxu0 %vm389_vm3, %v23749_v63  ;;  %18841 = vmatprep.mubr.msk.f32.mxu1 %vm389_vm3, %v23430_v1  ;;  %v23767_v1 = vld [vmem:[#allocation3 + $0x92] sm:$0xff] }
 0x42f   : > { %18884 = vmatprep.subr.mxu0 %v15659_v45  ;;  %18947 = vmatpush3.msra.mxu1 %v15700_v21  ;;  %v15697_v21 = vld [vmem:[%s26482_s5 + $0x140] sm:$0xff] }
 0x430   : > { %18885 = vmatpush3.msra.mxu0 %v15659_v45  ;;  %18948 = vmatprep.subr.mxu1 %v15699_v54  ;;  %v23791_v45 = vld [vmem:[#allocation3 + $0xb2] sm:$0xff] }
 0x431   : > { %18778 = vmatmul.mubr.msk.f32.gmra.mxu0 %vm389_vm3, %v23755_v58  ;;  %18842 = vmatmul.mubr.msk.f32.gmra.mxu1 %vm389_vm3, %v23432_v50  ;;  %v15698_v50 = vld [vmem:[%s26482_s5 + $0x148] sm:$0xff] }
 0x432   : > { %18780 = vmatprep.mubr.msk.f32.mxu0 %vm389_vm3, %v23767_v1  ;;  %18844 = vmatprep.mubr.msk.f32.mxu1 %vm389_vm3, %v23463_v51  ;;  %v23785_v51 = vld [vmem:[#allocation3 + $0xaa] sm:$0xff] }
 0x433   : > { %18886 = vmatprep.subr.mxu0 %v15658_v25  ;;  %18949 = vmatpush3.msra.mxu1 %v15699_v54  ;;  %v15784_v54 = vld [vmem:[%s26482_s5 + $0x1f8] sm:$0xff] }
 0x434   : > { %18887 = vmatpush3.msra.mxu0 %v15658_v25  ;;  %18950 = vmatprep.subr.mxu1 %v15698_v50  ;;  %v23812_v25 = vld [vmem:[#allocation3 + $0xca] sm:$0xff] }
 0x435   : > { %18781 = vmatmul.mubr.msk.f32.gmra.mxu0 %vm389_vm3, %v23773_v6  ;;  %18845 = vmatmul.mubr.msk.f32.gmra.mxu1 %vm389_vm3, %v23465_v14  ;;  %v23799_v14 = vld [vmem:[%s26482_s5 + $0x1b8] sm:$0xff] }
 0x436   : > { %18783 = vmatprep.mubr.msk.f32.mxu0 %vm389_vm3, %v23785_v51  ;;  %18847 = vmatprep.mubr.msk.f32.mxu1 %vm389_vm3, %v23494_v34  ;;  %v23805_v34 = vld [vmem:[#allocation3 + $0xc2] sm:$0xff] }
 0x437   : > { %18888 = vmatprep.subr.mxu0 %v15657_v37  ;;  %18951 = vmatpush3.msra.mxu1 %v15698_v50  ;;  %v23895_v50 = vld [vmem:[#allocation3 + $0x180] sm:$0xff] }
 0x438   : > { %18889 = vmatpush3.msra.mxu0 %v15657_v37  ;;  %18952 = vmatprep.subr.mxu1 %v15697_v21  ;;  %v23833_v37 = vld [vmem:[#allocation3 + $0xf2] sm:$0xff] }
 0x439   : > { %18784 = vmatmul.mubr.msk.f32.gmra.mxu0 %vm389_vm3, %v23791_v45  ;;  %18848 = vmatmul.mubr.msk.f32.gmra.mxu1 %vm389_vm3, %v23496_v20  ;;  %v23821_v20 = vld [vmem:[#allocation3 + $0xda] sm:$0xff] }
 0x43a   : > { %18786 = vmatprep.mubr.msk.f32.mxu0 %vm389_vm3, %v23805_v34  ;;  %18850 = vmatprep.mubr.msk.f32.mxu1 %vm389_vm3, %v23523_v4  ;;  %v23827_v4 = vld [vmem:[#allocation3 + $0xe2] sm:$0xff] }
 0x43b   : > { %19002 = vmatprep.subr.mxu0 %v23799_v14  ;;  %18953 = vmatpush3.msra.mxu1 %v15697_v21  ;;  %v9950_v21 = vld [vmem:[#allocation3 + $0x68] sm:$0xff] }
 0x43c   : > { %19066 = vmatprep.subr.mxu1 %v15784_v54 }
 0x43d   : > { %18787 = vmatmul.mubr.msk.f32.gmra.mxu0 %vm389_vm3, %v23812_v25  ;;  %18851 = vmatmul.mubr.msk.f32.gmra.mxu1 %vm389_vm3, %v23525_v24  ;;  %v23839_v24 = vld [vmem:[#allocation3 + $0xfa] sm:$0xff] }
 0x43e   : > { %18789 = vmatprep.mubr.msk.f32.mxu0 %vm389_vm3, %v23821_v20  ;;  %18853 = vmatprep.mubr.msk.f32.mxu1 %vm389_vm3, %v23551_v33  ;;  %v23845_v33 = vld [vmem:[#allocation3 + $0x10a] sm:$0xff] }
 0x441   : > { %18790 = vmatmul.mubr.msk.f32.gmra.mxu0 %vm389_vm3, %v23827_v4  ;;  %18854 = vmatmul.mubr.msk.f32.gmra.mxu1 %vm389_vm3, %v23553_v3  ;;  %v23851_v3 = vld [vmem:[#allocation3 + $0x112] sm:$0xff] }
 0x442   : > { %18792 = vmatprep.mubr.msk.f32.mxu0 %vm389_vm3, %v23833_v37  ;;  %18856 = vmatprep.mubr.msk.f32.mxu1 %vm389_vm3, %v23573_v0  ;;  %v23857_v0 = vld [vmem:[#allocation3 + $0x122] sm:$0xff] }
 0x445   : > { %18793 = vmatmul.mubr.msk.f32.gmra.mxu0 %vm389_vm3, %v23839_v24  ;;  %18857 = vmatmul.mubr.msk.f32.gmra.mxu1 %vm389_vm3, %v23575_v39  ;;  %v23863_v39 = vld [vmem:[#allocation3 + $0x12a] sm:$0xff] }
 0x446   : > { %18795 = vmatprep.mubr.msk.f32.mxu0 %vm389_vm3, %v23845_v33  ;;  %18859 = vmatprep.mubr.msk.f32.mxu1 %vm389_vm3, %v23594_v62  ;;  %v23869_v62 = vld [vmem:[#allocation3 + $0x13a] sm:$0xff] }
 0x449   : > { %18796 = vmatmul.mubr.msk.f32.gmra.mxu0 %vm389_vm3, %v23851_v3  ;;  %18860 = vmatmul.mubr.msk.f32.gmra.mxu1 %vm389_vm3, %v23596_v9  ;;  %v23875_v9 = vld [vmem:[#allocation3 + $0x142] sm:$0xff] }
 0x44a   : > { %18798 = vmatprep.mubr.msk.f32.mxu0 %vm389_vm3, %v23857_v0  ;;  %18862 = vmatprep.mubr.msk.f32.mxu1 %vm389_vm3, %v23614_v22  ;;  %v23881_v22 = vld [vmem:[#allocation3 + $0x152] sm:$0xff] }
 0x44d   : > { %18799 = vmatmul.mubr.msk.f32.gmra.mxu0 %vm389_vm3, %v23863_v39  ;;  %18863 = vmatmul.mubr.msk.f32.gmra.mxu1 %vm389_vm3, %v23616_v35  ;;  %v23887_v35 = vld [vmem:[#allocation3 + $0x15a] sm:$0xff] }
 0x44e   : > { %18801 = vmatprep.mubr.msk.f32.mxu0 %vm389_vm3, %v23869_v62  ;;  %18865 = vmatprep.mubr.msk.f32.mxu1 %vm389_vm3, %v23633_v42  ;;  %v23893_v42 = vld [vmem:[#allocation3 + $0x16a] sm:$0xff] }
 0x451   : > { %18802 = vmatmul.mubr.msk.f32.gmra.mxu0 %vm389_vm3, %v23875_v9  ;;  %18866 = vmatmul.mubr.msk.f32.gmra.mxu1 %vm389_vm3, %v23635_v12  ;;  %v23901_v12 = vld [vmem:[#allocation3 + $0x172] sm:$0xff] }
 0x452   : > { %18804 = vmatprep.mubr.msk.f32.mxu0 %vm389_vm3, %v23881_v22  ;;  %18868 = vmatprep.mubr.msk.f32.mxu1 %vm389_vm3, %v23650_v29  ;;  %v23903_v29 = vld [vmem:[#allocation3 + $0x188] sm:$0xff] }
 0x455   : > { %18805 = vmatmul.mubr.msk.f32.gmra.mxu0 %vm389_vm3, %v23887_v35  ;;  %18869 = vmatmul.mubr.msk.f32.gmra.mxu1 %vm389_vm3, %v23652_v40  ;;  %v15743_v40 = vld [vmem:[%s26482_s5 + $0x1b0] sm:$0xff] }
 0x456   : > { %18807 = vmatprep.mubr.msk.f32.mxu0 %vm389_vm3, %v23893_v42  ;;  %18871 = vmatprep.mubr.msk.f32.mxu1 %vm389_vm3, %v23895_v50 }
 0x459   : > { %18808 = vmatmul.mubr.msk.f32.gmra.mxu0 %vm389_vm3, %v23901_v12  ;;  %18872 = vmatmul.mubr.msk.f32.gmra.mxu1 %vm389_vm3, %v23903_v29 }
 0x45a   : > { %18890 = vmatprep.mubr.msk.f32.mxu0 %vm389_vm3, %v23262_v2  ;;  %18954 = vmatprep.mubr.msk.f32.mxu1 %vm389_vm3, %v23673_v52  ;;  %v15742_v2 = vld [vmem:[%s26482_s5 + $0x1a8] sm:$0xff]  ;;  %v27001_v52 = vld [vmem:[#allocation31_spill] sm:$0xff] }
 0x45d   : > { %18891 = vmatmul.mubr.msk.f32.vlgmr.msra.gmra.mxu0 %vm389_vm3, %v23275_v27  ;;  %18955 = vmatmul.mubr.msk.f32.vlgmr.msra.gmra.mxu1 %vm389_vm3, %v23680_v10  ;;  %v15783_v27 = vld [vmem:[%s26482_s5 + $0x1f0] sm:$0xff]  ;;  %v15737_v10 = vld [vmem:[%s26482_s5 + $0x180] sm:$0xff] }
 0x45e   : > { %19003 = vmatpush3.msra.mxu0 %v23799_v14  ;;  %18893 = vmatprep.mubr.msk.f32.mxu0 %vm389_vm3, %v23296_v36  ;;  %v15741_v36 = vld [vmem:[%s26482_s5 + $0x1a0] sm:$0xff] }
 0x45f   : > { %18957 = vmatprep.mubr.msk.f32.mxu1 %vm389_vm3, %v23693_v43  ;;  %19004 = vmatprep.subr.mxu0 %v15743_v40  ;;  %v15778_v43 = vld [vmem:[%s26482_s5 + $0x1c8] sm:$0xff]  ;;  %v10344_v14 = vld [vmem:[#allocation3 + $0x69] sm:$0xff] }
 0x460   : > { %19005 = vmatpush3.msra.mxu0 %v15743_v40  ;;  %19067 = vmatpush3.msra.mxu1 %v15784_v54 }
 0x461   : > { %18894 = vmatmul.mubr.msk.f32.gmra.mxu0 %vm389_vm3, %v23309_v5  ;;  %18958 = vmatmul.mubr.msk.f32.gmra.mxu1 %vm389_vm3, %v23699_v61  ;;  %v15782_v5 = vld [vmem:[%s26482_s5 + $0x1e8] sm:$0xff]  ;;  %v27003_v61 = vld [vmem:[#allocation10_spill] sm:$0xff] }
 0x462   : > { %18896 = vmatprep.mubr.msk.f32.mxu0 %vm389_vm3, %v23329_v16  ;;  %18960 = vmatprep.mubr.msk.f32.mxu1 %vm389_vm3, %v23713_v19  ;;  %v15740_v16 = vld [vmem:[%s26482_s5 + $0x198] sm:$0xff]  ;;  %v15777_v19 = vld [vmem:[%s26482_s5 + $0x1c0] sm:$0xff] }
 0x463   : > { %19006 = vmatprep.subr.mxu0 %v15742_v2  ;;  %19068 = vmatprep.subr.mxu1 %v15783_v27 }
 0x464   : > { %19007 = vmatpush3.msra.mxu0 %v15742_v2  ;;  %19069 = vmatpush3.msra.mxu1 %v15783_v27 }
 0x465   : > { %18897 = vmatmul.mubr.msk.f32.gmra.mxu0 %vm389_vm3, %v23342_v57  ;;  %18961 = vmatmul.mubr.msk.f32.gmra.mxu1 %vm389_vm3, %v23719_v59  ;;  %v15781_v57 = vld [vmem:[%s26482_s5 + $0x1e0] sm:$0xff]  ;;  %v15824_v59 = vld [vmem:[%s26482_s5 + $0x238] sm:$0xff] }
 0x466   : > { %18899 = vmatprep.mubr.msk.f32.mxu0 %vm389_vm3, %v23362_v8  ;;  %18963 = vmatprep.mubr.msk.f32.mxu1 %vm389_vm3, %v23731_v23  ;;  %v15739_v8 = vld [vmem:[%s26482_s5 + $0x190] sm:$0xff] }
 0x467   : > { %19008 = vmatprep.subr.mxu0 %v15741_v36  ;;  %19070 = vmatprep.subr.mxu1 %v15782_v5 }
 0x468   : > { %19009 = vmatpush3.msra.mxu0 %v15741_v36  ;;  %19071 = vmatpush3.msra.mxu1 %v15782_v5  ;;  %v9954_v36 = vld [vmem:[#allocation3 + $0x98] sm:$0xff] }
 0x469   : > { %18900 = vmatmul.mubr.msk.f32.gmra.mxu0 %vm389_vm3, %v23375_v26  ;;  %18964 = vmatmul.mubr.msk.f32.gmra.mxu1 %vm389_vm3, %v23737_v56  ;;  %v15780_v26 = vld [vmem:[%s26482_s5 + $0x1d8] sm:$0xff]  ;;  %v10348_v5 = vld [vmem:[#allocation3 + $0x99] sm:$0xff] }
 0x46a   : > { %18902 = vmatprep.mubr.msk.f32.mxu0 %vm389_vm3, %v23395_v46  ;;  %18966 = vmatprep.mubr.msk.f32.mxu1 %vm389_vm3, %v23749_v63  ;;  %v15738_v46 = vld [vmem:[%s26482_s5 + $0x188] sm:$0xff]  ;;  %v9949_v63 = vld [vmem:[#allocation3 + $0x60] sm:$0xff] }
 0x46b   : > { %19010 = vmatprep.subr.mxu0 %v15740_v16  ;;  %19072 = vmatprep.subr.mxu1 %v15781_v57 }
 0x46c   : > { %19011 = vmatpush3.msra.mxu0 %v15740_v16  ;;  %19073 = vmatpush3.msra.mxu1 %v15781_v57  ;;  %v15819_v16 = vld [vmem:[%s26482_s5 + $0x210] sm:$0xff] }
 0x46d   : > { %18903 = vmatmul.mubr.msk.f32.gmra.mxu0 %vm389_vm3, %v23408_v15  ;;  %18967 = vmatmul.mubr.msk.f32.gmra.mxu1 %vm389_vm3, %v23755_v58  ;;  %v15779_v15 = vld [vmem:[%s26482_s5 + $0x1d0] sm:$0xff] }
 0x46e   : > { %18905 = vmatprep.mubr.msk.f32.mxu0 %vm389_vm3, %v23428_v41  ;;  %18969 = vmatprep.mubr.msk.f32.mxu1 %vm389_vm3, %v23767_v1  ;;  %v27002_v41 = vld [vmem:[#allocation4_spill] sm:$0xff]  ;;  %v10343_v58 = vld [vmem:[#allocation3 + $0x61] sm:$0xff] }
 0x46f   : > { %19012 = vmatprep.subr.mxu0 %v15739_v8  ;;  %19074 = vmatprep.subr.mxu1 %v15780_v26 }
 0x470   : > { %19013 = vmatpush3.msra.mxu0 %v15739_v8  ;;  %19075 = vmatpush3.msra.mxu1 %v15780_v26  ;;  %v9955_v26 = vld [vmem:[#allocation3 + $0xa8] sm:$0xff] }
 0x471   : > { %18906 = vmatmul.mubr.msk.f32.gmra.mxu0 %vm389_vm3, %v27001_v52  ;;  %18970 = vmatmul.mubr.msk.f32.gmra.mxu1 %vm389_vm3, %v23773_v6 }
 0x472   : > { %18908 = vmatprep.mubr.msk.f32.mxu0 %vm389_vm3, %v27002_v41  ;;  %18972 = vmatprep.mubr.msk.f32.mxu1 %vm389_vm3, %v23785_v51 }
 0x473   : > { %19014 = vmatprep.subr.mxu0 %v15738_v46  ;;  %19076 = vmatprep.subr.mxu1 %v15779_v15 }
 0x474   : > { %19015 = vmatpush3.msra.mxu0 %v15738_v46  ;;  %19077 = vmatpush3.msra.mxu1 %v15779_v15  ;;  %v10349_v46 = vld [vmem:[#allocation3 + $0xa9] sm:$0xff] }
 0x475   : > { %18909 = vmatmul.mubr.msk.f32.gmra.mxu0 %vm389_vm3, %v27003_v61  ;;  %18973 = vmatmul.mubr.msk.f32.gmra.mxu1 %vm389_vm3, %v23791_v45  ;;  %v10350_v61 = vld [vmem:[#allocation3 + $0xb1] sm:$0xff] }
 0x476   : > { %18911 = vmatprep.mubr.msk.f32.mxu0 %vm389_vm3, %v23492_v55  ;;  %18975 = vmatprep.mubr.msk.f32.mxu1 %vm389_vm3, %v23805_v34  ;;  %v24075_v55 = vld [vmem:[#allocation3 + $0x181] sm:$0xff]  ;;  %v15821_v34 = vld [vmem:[%s26482_s5 + $0x220] sm:$0xff] }
 0x477   : > { %19016 = vmatprep.subr.mxu0 %v15737_v10  ;;  %19078 = vmatprep.subr.mxu1 %v15778_v43 }
 0x478   : > { %19017 = vmatpush3.msra.mxu0 %v15737_v10  ;;  %19079 = vmatpush3.msra.mxu1 %v15778_v43  ;;  %v9956_v43 = vld [vmem:[#allocation3 + $0xb0] sm:$0xff] }
 0x479   : > { %18912 = vmatmul.mubr.msk.f32.gmra.mxu0 %vm389_vm3, %v23505_v13  ;;  %18976 = vmatmul.mubr.msk.f32.gmra.mxu1 %vm389_vm3, %v23812_v25  ;;  %v24077_v13 = vld [vmem:[#allocation3 + $0x182] sm:$0xff] }
 0x47a   : > { %18914 = vmatprep.mubr.msk.f32.mxu0 %vm389_vm3, %v23521_v47  ;;  %18978 = vmatprep.mubr.msk.f32.mxu1 %vm389_vm3, %v23821_v20  ;;  %v24083_v47 = vld [vmem:[#allocation3 + $0x189] sm:$0xff]  ;;  %v9951_v20 = vld [vmem:[#allocation3 + $0x78] sm:$0xff] }
 0x47b   : > { %19080 = vmatprep.subr.mxu1 %v15777_v19  ;;  %19130 = vmatprep.subr.mxu0 %v15824_v59 }
 0x47c   : > { %19081 = vmatpush3.msra.mxu1 %v15777_v19  ;;  %v15818_v19 = vld [vmem:[%s26482_s5 + $0x208] sm:$0xff] }
 0x47d   : > { %18915 = vmatmul.mubr.msk.f32.gmra.mxu0 %vm389_vm3, %v23534_v60  ;;  %18979 = vmatmul.mubr.msk.f32.gmra.mxu1 %vm389_vm3, %v23827_v4  ;;  %v24085_v60 = vld [vmem:[#allocation3 + $0x18a] sm:$0xff]  ;;  %v10345_v4 = vld [vmem:[#allocation3 + $0x79] sm:$0xff] }
 0x47e   : > { %18917 = vmatprep.mubr.msk.f32.mxu0 %vm389_vm3, %v23549_v53  ;;  %18981 = vmatprep.mubr.msk.f32.mxu1 %vm389_vm3, %v23833_v37  ;;  %v9945_v53 = vld [vmem:[#allocation3 + $0x30] sm:$0xff] }
 0x481   : > { %18918 = vmatmul.mubr.msk.f32.gmra.mxu0 %vm389_vm3, %v23561_v7  ;;  %18982 = vmatmul.mubr.msk.f32.gmra.mxu1 %vm389_vm3, %v23839_v24  ;;  %v10339_v7 = vld [vmem:[#allocation3 + $0x31] sm:$0xff] }
 0x482   : > { %18920 = vmatprep.mubr.msk.f32.mxu0 %vm389_vm3, %v23571_v49  ;;  %18984 = vmatprep.mubr.msk.f32.mxu1 %vm389_vm3, %v23845_v33  ;;  %v9946_v49 = vld [vmem:[#allocation3 + $0x38] sm:$0xff] }
 0x485   : > { %18921 = vmatmul.mubr.msk.f32.gmra.mxu0 %vm389_vm3, %v23584_v30  ;;  %18985 = vmatmul.mubr.msk.f32.gmra.mxu1 %vm389_vm3, %v23851_v3  ;;  %v10340_v30 = vld [vmem:[#allocation3 + $0x39] sm:$0xff] }
 0x486   : > { %18923 = vmatprep.mubr.msk.f32.mxu0 %vm389_vm3, %v23592_v18  ;;  %18987 = vmatprep.mubr.msk.f32.mxu1 %vm389_vm3, %v23857_v0  ;;  %v15823_v18 = vld [vmem:[%s26482_s5 + $0x230] sm:$0xff] }
 0x487   : > { %v9952_v0 = vld [vmem:[#allocation3 + $0x80] sm:$0xff] }
 0x489   : > { %18924 = vmatmul.mubr.msk.f32.gmra.mxu0 %vm389_vm3, %v23604_v44  ;;  %18988 = vmatmul.mubr.msk.f32.gmra.mxu1 %vm389_vm3, %v23863_v39  ;;  %v9947_v44 = vld [vmem:[#allocation3 + $0x48] sm:$0xff] }
 0x48a   : > { %18926 = vmatprep.mubr.msk.f32.mxu0 %vm389_vm3, %v23612_v28  ;;  %18990 = vmatprep.mubr.msk.f32.mxu1 %vm389_vm3, %v23869_v62  ;;  %v10341_v28 = vld [vmem:[#allocation3 + $0x49] sm:$0xff]  ;;  %v10346_v39 = vld [vmem:[#allocation3 + $0x81] sm:$0xff] }
 0x48b   : > { %v15820_v62 = vld [vmem:[%s26482_s5 + $0x218] sm:$0xff] }
 0x48d   : > { %18927 = vmatmul.mubr.msk.f32.gmra.mxu0 %vm389_vm3, %v23624_v17  ;;  %18991 = vmatmul.mubr.msk.f32.gmra.mxu1 %vm389_vm3, %v23875_v9  ;;  %v24099_v17 = vpop.f32.mrf.mxu0 }
 0x48e   : > { %18929 = vmatprep.mubr.msk.f32.mxu0 %vm389_vm3, %v23631_v31  ;;  %18993 = vmatprep.mubr.msk.f32.mxu1 %vm389_vm3, %v23881_v22  ;;  %v24101_v31 = vpop.f32.mrf.mxu1 }
 0x491   : > { %18930 = vmatmul.mubr.msk.f32.gmra.mxu0 %vm389_vm3, %v23642_v48  ;;  %18994 = vmatmul.mubr.msk.f32.gmra.mxu1 %vm389_vm3, %v23887_v35  ;;  %v9948_v48 = vld [vmem:[#allocation3 + $0x50] sm:$0xff] }
 0x492   : > { %18932 = vmatprep.mubr.msk.f32.mxu0 %vm389_vm3, %v23648_v38  ;;  %18996 = vmatprep.mubr.msk.f32.mxu1 %vm389_vm3, %v23893_v42  ;;  %v10342_v38 = vld [vmem:[#allocation3 + $0x51] sm:$0xff] }
 0x493   : > { %v9953_v35 = vld [vmem:[#allocation3 + $0x90] sm:$0xff] }
 0x494   : > { %v10347_v42 = vld [vmem:[#allocation3 + $0x91] sm:$0xff] }
 0x495   : > { %18933 = vmatmul.mubr.msk.f32.gmra.mxu0 %vm389_vm3, %v23658_v32  ;;  %18997 = vmatmul.mubr.msk.f32.gmra.mxu1 %vm389_vm3, %v23901_v12  ;;  %v15822_v32 = vld [vmem:[%s26482_s5 + $0x228] sm:$0xff] }
 0x496   : > { %18935 = vmatprep.mubr.msk.f32.mxu0 %vm389_vm3, %v24075_v55  ;;  %18999 = vmatprep.mubr.msk.f32.mxu1 %vm389_vm3, %v24077_v13 }
 0x499   : > { %18936 = vmatmul.mubr.msk.f32.gmra.mxu0 %vm389_vm3, %v24083_v47  ;;  %19000 = vmatmul.mubr.msk.f32.gmra.mxu1 %vm389_vm3, %v24085_v60 }
 0x49a   : > { %19018 = vmatprep.mubr.msk.f32.mxu0 %vm389_vm3, %v9945_v53  ;;  %19082 = vmatprep.mubr.msk.f32.mxu1 %vm389_vm3, %v10339_v7  ;;  %v9957_v7 = vld [vmem:[#allocation3 + $0xc0] sm:$0xff] }
 0x49d   : > { %19019 = vmatmul.mubr.msk.f32.vlgmr.msra.gmra.mxu0 %vm389_vm3, %v9946_v49  ;;  %19083 = vmatmul.mubr.msk.f32.vlgmr.msra.gmra.mxu1 %vm389_vm3, %v10340_v30  ;;  %v10351_v49 = vld [vmem:[#allocation3 + $0xc1] sm:$0xff] }
 0x49e   : > { %19131 = vmatpush3.msra.mxu0 %v15824_v59  ;;  %19021 = vmatprep.mubr.msk.f32.mxu0 %vm389_vm3, %v9947_v44  ;;  %v18639_v23 = vpop.f32.mrf.mxu0 }
 0x49f   : > { %19085 = vmatprep.mubr.msk.f32.mxu1 %vm389_vm3, %v10341_v28  ;;  %19132 = vmatprep.subr.mxu0 %v15823_v18  ;;  %v18703_v56 = vpop.f32.mrf.mxu1 }
 0x4a0   : > { %19133 = vmatpush3.msra.mxu0 %v15823_v18  ;;  %v24109_v1 = vadd.f32 %v18703_v56, %v18639_v23  ;;  %v7899_v6 = vpop.f32.mrf.mxu0 }
 0x4a1   : > { %19022 = vmatmul.mubr.msk.f32.gmra.mxu0 %vm389_vm3, %v9948_v48  ;;  %19086 = vmatmul.mubr.msk.f32.gmra.mxu1 %vm389_vm3, %v10342_v38  ;;  %v8220_v51 = vpop.f32.mrf.mxu1  ;;  %v9958_v48 = vld [vmem:[#allocation3 + $0xc8] sm:$0xff] }
 0x4a2   : > { %19024 = vmatprep.mubr.msk.f32.mxu0 %vm389_vm3, %v9949_v63  ;;  %19088 = vmatprep.mubr.msk.f32.mxu1 %vm389_vm3, %v10343_v58  ;;  %v24113_v45 = vadd.f32 %v8220_v51, %v7899_v6  ;;  %v18642_v25 = vpop.f32.mrf.mxu0  ;;  %v10352_v38 = vld [vmem:[#allocation3 + $0xc9] sm:$0xff]  ;;  %v9959_v63 = vld [vmem:[#allocation3 + $0xd8] sm:$0xff] }
 0x4a3   : > { %19134 = vmatprep.subr.mxu0 %v15822_v32  ;;  %v18706_v54 = vpop.f32.mrf.mxu1  ;;  %v10353_v58 = vld [vmem:[#allocation3 + $0xd9] sm:$0xff] }
 0x4a4   : > { %19135 = vmatpush3.msra.mxu0 %v15822_v32  ;;  %v24120_v37 = vadd.f32 %v18706_v54, %v18642_v25  ;;  %v7909_v24 = vpop.f32.mrf.mxu0  ;;  %v15817_v32 = vld [vmem:[%s26482_s5 + $0x200] sm:$0xff]  ;;  %v10354_v25 = vld [vmem:[#allocation3 + $0xe1] sm:$0xff] }
 0x4a5   : > { %19025 = vmatmul.mubr.msk.f32.gmra.mxu0 %vm389_vm3, %v9950_v21  ;;  %19089 = vmatmul.mubr.msk.f32.gmra.mxu1 %vm389_vm3, %v10344_v14  ;;  %v8230_v33 = vpop.f32.mrf.mxu1 }
 0x4a6   : > { %19027 = vmatprep.mubr.msk.f32.mxu0 %vm389_vm3, %v9951_v20  ;;  %19091 = vmatprep.mubr.msk.f32.mxu1 %vm389_vm3, %v10345_v4  ;;  %v24124_v3 = vadd.f32 %v8230_v33, %v7909_v24  ;;  %v18645_v9 = vpop.f32.mrf.mxu0  ;;  %v9961_v4 = vld [vmem:[#allocation3 + $0xf0] sm:$0xff] }
 0x4a7   : > { %19136 = vmatprep.subr.mxu0 %v15821_v34  ;;  %v18709_v22 = vpop.f32.mrf.mxu1  ;;  %v10355_v24 = vld [vmem:[#allocation3 + $0xf1] sm:$0xff] }
 0x4a8   : > { %19137 = vmatpush3.msra.mxu0 %v15821_v34  ;;  %v24131_v12 = vadd.f32 %v18709_v22, %v18645_v9  ;;  %v7919_v40 = vpop.f32.mrf.mxu0  ;;  %v9960_v34 = vld [vmem:[#allocation3 + $0xe0] sm:$0xff]  ;;  %v9962_v9 = vld [vmem:[#allocation3 + $0xf8] sm:$0xff] }
 0x4a9   : > { %19028 = vmatmul.mubr.msk.f32.gmra.mxu0 %vm389_vm3, %v9952_v0  ;;  %19092 = vmatmul.mubr.msk.f32.gmra.mxu1 %vm389_vm3, %v10346_v39  ;;  %v8240_v2 = vpop.f32.mrf.mxu1  ;;  %v10356_v22 = vld [vmem:[#allocation3 + $0xf9] sm:$0xff] }
 0x4aa   : > { %19030 = vmatprep.mubr.msk.f32.mxu0 %vm389_vm3, %v9953_v35  ;;  %19094 = vmatprep.mubr.msk.f32.mxu1 %vm389_vm3, %v10347_v42  ;;  %v24135_v27 = vadd.f32 %v8240_v2, %v7919_v40  ;;  %v9963_v40 = vld [vmem:[#allocation3 + $0x108] sm:$0xff] }
 0x4ab   : > { %19138 = vmatprep.subr.mxu0 %v15820_v62  ;;  %v18648_v57 = vpop.f32.mrf.mxu0  ;;  %v18712_v8 = vpop.f32.mrf.mxu1  ;;  %v10357_v2 = vld [vmem:[#allocation3 + $0x109] sm:$0xff] }
 0x4ac   : > { %19139 = vmatpush3.msra.mxu0 %v15820_v62  ;;  %v24142_v15 = vadd.f32 %v18712_v8, %v18648_v57  ;;  %v9964_v57 = vld [vmem:[#allocation3 + $0x110] sm:$0xff] }
 0x4ad   : > { %19031 = vmatmul.mubr.msk.f32.gmra.mxu0 %vm389_vm3, %v9954_v36  ;;  %19095 = vmatmul.mubr.msk.f32.gmra.mxu1 %vm389_vm3, %v10348_v5  ;;  %v7929_v52 = vpop.f32.mrf.mxu0  ;;  %v8250_v41 = vpop.f32.mrf.mxu1  ;;  %v10358_v8 = vld [vmem:[#allocation3 + $0x111] sm:$0xff] }
 0x4ae   : > { %19033 = vmatprep.mubr.msk.f32.mxu0 %vm389_vm3, %v9955_v26  ;;  %19097 = vmatprep.mubr.msk.f32.mxu1 %vm389_vm3, %v10349_v46  ;;  %v24146_v10 = vadd.f32 %v8250_v41, %v7929_v52  ;;  %v9965_v52 = vld [vmem:[#allocation3 + $0x120] sm:$0xff] }
 0x4af   : > { %19140 = vmatprep.subr.mxu0 %v15819_v16  ;;  %v18651_v59 = vpop.f32.mrf.mxu0  ;;  %v18715_v53 = vpop.f32.mrf.mxu1  ;;  %v10359_v41 = vld [vmem:[#allocation3 + $0x121] sm:$0xff] }
 0x4b0   : > { %19141 = vmatpush3.msra.mxu0 %v15819_v16  ;;  %v24153_v30 = vadd.f32 %v18715_v53, %v18651_v59  ;;  %v9966_v59 = vld [vmem:[#allocation3 + $0x128] sm:$0xff] }
 0x4b1   : > { %19034 = vmatmul.mubr.msk.f32.gmra.mxu0 %vm389_vm3, %v9956_v43  ;;  %19098 = vmatmul.mubr.msk.f32.gmra.mxu1 %vm389_vm3, %v10350_v61  ;;  %v7939_v18 = vpop.f32.mrf.mxu0  ;;  %v8260_v44 = vpop.f32.mrf.mxu1  ;;  %v10360_v53 = vld [vmem:[#allocation3 + $0x129] sm:$0xff] }
 0x4b2   : > { %19036 = vmatprep.mubr.msk.f32.mxu0 %vm389_vm3, %v9957_v7  ;;  %19100 = vmatprep.mubr.msk.f32.mxu1 %vm389_vm3, %v10351_v49  ;;  %v24157_v28 = vadd.f32 %v8260_v44, %v7939_v18  ;;  %v9967_v18 = vld [vmem:[#allocation3 + $0x138] sm:$0xff] }
 0x4b3   : > { %19142 = vmatprep.subr.mxu0 %v15818_v19  ;;  %v18654_v23 = vpop.f32.mrf.mxu0  ;;  %v18718_v56 = vpop.f32.mrf.mxu1  ;;  %v10361_v44 = vld [vmem:[#allocation3 + $0x139] sm:$0xff] }
 0x4b4   : > { %19143 = vmatpush3.msra.mxu0 %v15818_v19  ;;  %v24164_v6 = vadd.f32 %v18718_v56, %v18654_v23  ;;  %v9968_v23 = vld [vmem:[#allocation3 + $0x140] sm:$0xff] }
 0x4b5   : > { %19037 = vmatmul.mubr.msk.f32.gmra.mxu0 %vm389_vm3, %v9958_v48  ;;  %19101 = vmatmul.mubr.msk.f32.gmra.mxu1 %vm389_vm3, %v10352_v38  ;;  %v7949_v51 = vpop.f32.mrf.mxu0  ;;  %v8270_v21 = vpop.f32.mrf.mxu1  ;;  %v10362_v56 = vld [vmem:[#allocation3 + $0x141] sm:$0xff] }
 0x4b6   : > { %19039 = vmatprep.mubr.msk.f32.mxu0 %vm389_vm3, %v9959_v63  ;;  %19103 = vmatprep.mubr.msk.f32.mxu1 %vm389_vm3, %v10353_v58  ;;  %v24168_v14 = vadd.f32 %v8270_v21, %v7949_v51  ;;  %v9969_v51 = vld [vmem:[#allocation3 + $0x150] sm:$0xff] }
 0x4b7   : > { %19144 = vmatprep.subr.mxu0 %v15817_v32  ;;  %v10363_v21 = vld [vmem:[#allocation3 + $0x151] sm:$0xff] }
 0x4b8   : > { %19145 = vmatpush3.msra.mxu0 %v15817_v32  ;;  %v18657_v54 = vpop.f32.mrf.mxu0  ;;  %v18721_v20 = vpop.f32.mrf.mxu1 }
 0x4b9   : > { %19040 = vmatmul.mubr.msk.f32.gmra.mxu0 %vm389_vm3, %v9960_v34  ;;  %19104 = vmatmul.mubr.msk.f32.gmra.mxu1 %vm389_vm3, %v10354_v25  ;;  %v24172_v33 = vadd.f32 %v18721_v20, %v18657_v54  ;;  %v9970_v20 = vld [vmem:[#allocation3 + $0x158] sm:$0xff] }
 0x4ba   : > { %19042 = vmatprep.mubr.msk.f32.mxu0 %vm389_vm3, %v9961_v4  ;;  %19106 = vmatprep.mubr.msk.f32.mxu1 %vm389_vm3, %v10355_v24  ;;  %v7959_v0 = vpop.f32.mrf.mxu0  ;;  %v8280_v39 = vpop.f32.mrf.mxu1  ;;  %v10364_v4 = vld [vmem:[#allocation3 + $0x159] sm:$0xff] }
 0x4bb   : > { %v24176_v62 = vadd.f32 %v8280_v39, %v7959_v0  ;;  %v9971_v39 = vld [vmem:[#allocation3 + $0x168] sm:$0xff] }
 0x4bc   : > { %v18660_v35 = vpop.f32.mrf.mxu0  ;;  %v18724_v42 = vpop.f32.mrf.mxu1 }
 0x4bd   : > { %19043 = vmatmul.mubr.msk.f32.gmra.mxu0 %vm389_vm3, %v9962_v9  ;;  %19107 = vmatmul.mubr.msk.f32.gmra.mxu1 %vm389_vm3, %v10356_v22  ;;  %v24180_v36 = vadd.f32 %v18724_v42, %v18660_v35  ;;  %v10365_v9 = vld [vmem:[#allocation3 + $0x169] sm:$0xff] }
 0x4be   : > { %19045 = vmatprep.mubr.msk.f32.mxu0 %vm389_vm3, %v9963_v40  ;;  %19109 = vmatprep.mubr.msk.f32.mxu1 %vm389_vm3, %v10357_v2  ;;  %v24184_v5 = vpop.f32.mrf.mxu0  ;;  %v24186_v16 = vpop.f32.mrf.mxu1  ;;  %v9972_v40 = vld [vmem:[#allocation3 + $0x170] sm:$0xff] }
 0x4bf   : > { %v10366_v2 = vld [vmem:[#allocation3 + $0x171] sm:$0xff] }
 0x4c0   : > { %v18663_v26 = vpop.f32.mrf.mxu0 }
 0x4c1   : > { %v18727_v46 = vpop.f32.mrf.mxu1  ;;  %19046 = vmatmul.mubr.msk.f32.gmra.mxu0 %vm389_vm3, %v9964_v57  ;;  %19110 = vmatmul.mubr.msk.f32.gmra.mxu1 %vm389_vm3, %v10358_v8 }
 0x4c2   : > { %v24190_v43 = vadd.f32 %v18727_v46, %v18663_v26  ;;  %19048 = vmatprep.mubr.msk.f32.mxu0 %vm389_vm3, %v9965_v52  ;;  %19112 = vmatprep.mubr.msk.f32.mxu1 %vm389_vm3, %v10359_v41  ;;  %v24194_v61 = vpop.f32.mrf.mxu0  ;;  %v9975_v41 = vld [vmem:[#allocation3 + $0x198] sm:$0xff] }
 0x4c3   : > { %v24196_v19 = vpop.f32.mrf.mxu1 }
 0x4c4   : > { %v18666_v7 = vpop.f32.mrf.mxu0 }
 0x4c5   : > { %v18730_v49 = vpop.f32.mrf.mxu1  ;;  %19049 = vmatmul.mubr.msk.f32.gmra.mxu0 %vm389_vm3, %v9966_v59  ;;  %19113 = vmatmul.mubr.msk.f32.gmra.mxu1 %vm389_vm3, %v10360_v53  ;;  %v10369_v59 = vld [vmem:[#allocation3 + $0x199] sm:$0xff] }
 0x4c6   : > { %v24200_v48 = vadd.f32 %v18730_v49, %v18666_v7  ;;  %19051 = vmatprep.mubr.msk.f32.mxu0 %vm389_vm3, %v9967_v18  ;;  %19115 = vmatprep.mubr.msk.f32.mxu1 %vm389_vm3, %v10361_v44  ;;  %v24204_v38 = vpop.f32.mrf.mxu0 }
 0x4c7   : > { %v24206_v32 = vpop.f32.mrf.mxu1 }
 0x4c8   : > { %v18669_v63 = vpop.f32.mrf.mxu0 }
 0x4c9   : > { %v18733_v58 = vpop.f32.mrf.mxu1  ;;  %19052 = vmatmul.mubr.msk.f32.gmra.mxu0 %vm389_vm3, %v9968_v23  ;;  %19116 = vmatmul.mubr.msk.f32.gmra.mxu1 %vm389_vm3, %v10362_v56 }
 0x4ca   : > { %v24210_v34 = vadd.f32 %v18733_v58, %v18669_v63  ;;  %19054 = vmatprep.mubr.msk.f32.mxu0 %vm389_vm3, %v9969_v51  ;;  %19118 = vmatprep.mubr.msk.f32.mxu1 %vm389_vm3, %v10363_v21  ;;  %v24214_v25 = vpop.f32.mrf.mxu0  ;;  %v10734_v51 = vld [vmem:[#allocation3 + $0x3a] sm:$0xff] }
 0x4cb   : > { %v24216_v54 = vpop.f32.mrf.mxu1 }
 0x4cc   : > { %v18672_v24 = vpop.f32.mrf.mxu0 }
 0x4cd   : > { %v18736_v0 = vpop.f32.mrf.mxu1  ;;  %19055 = vmatmul.mubr.msk.f32.gmra.mxu0 %vm389_vm3, %v9970_v20  ;;  %19119 = vmatmul.mubr.msk.f32.gmra.mxu1 %vm389_vm3, %v10364_v4  ;;  %v10735_v4 = vld [vmem:[#allocation3 + $0x4a] sm:$0xff] }
 0x4ce   : > { %v24220_v22 = vadd.f32 %v18736_v0, %v18672_v24  ;;  %19057 = vmatprep.mubr.msk.f32.mxu0 %vm389_vm3, %v9971_v39  ;;  %19121 = vmatprep.mubr.msk.f32.mxu1 %vm389_vm3, %v10365_v9  ;;  %v24224_v35 = vpop.f32.mrf.mxu0 }
 0x4cf   : > { %27004 = vst [vmem:[#allocation40_spill] sm:$0xff] %v24224_v35  ;;  %v24226_v42 = vpop.f32.mrf.mxu1 }
 0x4d0   : > { %27005 = vst [vmem:[#allocation42_spill] sm:$0xff] %v24226_v42  ;;  %v18675_v57 = vpop.f32.mrf.mxu0 }
 0x4d1   : > { %v18739_v8 = vpop.f32.mrf.mxu1  ;;  %19058 = vmatmul.mubr.msk.f32.gmra.mxu0 %vm389_vm3, %v9972_v40  ;;  %19122 = vmatmul.mubr.msk.f32.gmra.mxu1 %vm389_vm3, %v10366_v2  ;;  %v10736_v40 = vld [vmem:[#allocation3 + $0x52] sm:$0xff] }
 0x4d2   : > { %v24230_v26 = vadd.f32 %v18739_v8, %v18675_v57  ;;  %19060 = vmatprep.mubr.msk.f32.mxu0 %vm389_vm3, %v23895_v50  ;;  %19124 = vmatprep.mubr.msk.f32.mxu1 %vm389_vm3, %v24075_v55  ;;  %v24236_v46 = vpop.f32.mrf.mxu0  ;;  %v9976_v50 = vld [vmem:[#allocation3 + $0x1a0] sm:$0xff] }
 0x4d3   : > { %27006 = vst [vmem:[#allocation98_spill] sm:$0xff] %v24236_v46  ;;  %v24238_v52 = vpop.f32.mrf.mxu1  ;;  %v10370_v55 = vld [vmem:[#allocation3 + $0x1a1] sm:$0xff] }
 0x4d4   : > { %27007 = vst [vmem:[#allocation63_spill] sm:$0xff] %v24238_v52  ;;  %v18678_v53 = vpop.f32.mrf.mxu0  ;;  %v10737_v8 = vld [vmem:[#allocation3 + $0x62] sm:$0xff] }
 0x4d5   : > { %v18742_v7 = vpop.f32.mrf.mxu1  ;;  %19061 = vmatmul.mubr.msk.f32.gmra.mxu0 %vm389_vm3, %v23903_v29  ;;  %19125 = vmatmul.mubr.msk.f32.gmra.mxu1 %vm389_vm3, %v24083_v47  ;;  %v10733_v29 = vld [vmem:[#allocation3 + $0x32] sm:$0xff] }
 0x4d6   : > { %v24244_v49 = vadd.f32 %v18742_v7, %v18678_v53  ;;  %19063 = vmatprep.mubr.msk.f32.mxu0 %vm389_vm3, %v9975_v41  ;;  %19127 = vmatprep.mubr.msk.f32.mxu1 %vm389_vm3, %v10369_v59  ;;  %v24248_v18 = vpop.f32.mrf.mxu0 }
 0x4d7   : > { %27008 = vst [vmem:[#allocation9_spill] sm:$0xff] %v24248_v18  ;;  %v24250_v44 = vpop.f32.mrf.mxu1  ;;  %v11271_v18 = vld [vmem:[#allocation3 + $0x9] sm:$0xff] }
 0x4d8   : > { %27009 = vst [vmem:[#allocation32_spill] sm:$0xff] %v24250_v44  ;;  %v18681_v23 = vpop.f32.mrf.mxu0 }
 0x4d9   : > { %v18745_v56 = vpop.f32.mrf.mxu1  ;;  %19064 = vmatmul.mubr.msk.f32.gmra.mxu0 %vm389_vm3, %v9976_v50  ;;  %19128 = vmatmul.mubr.msk.f32.gmra.mxu1 %vm389_vm3, %v10370_v55  ;;  %v10738_v50 = vld [vmem:[#allocation3 + $0x6a] sm:$0xff] }
 0x4da   : > { %v24254_v47 = vadd.f32 %v18745_v56, %v18681_v23  ;;  %19146 = vmatprep.mubr.msk.f32.mxu0 %vm389_vm3, %v10733_v29  ;;  %v24257_v63 = vpop.f32.mrf.mxu0  ;;  %v10739_v56 = vld [vmem:[#allocation3 + $0x7a] sm:$0xff] }
 0x4db   : > { %27010 = vst [vmem:[#allocation34_spill] sm:$0xff] %v24257_v63  ;;  %v24259_v58 = vpop.f32.mrf.mxu1 }
 0x4dc   : > { %27011 = vst [vmem:[#allocation6_spill] sm:$0xff] %v24259_v58  ;;  %v18764_v21 = vpop.f32.mrf.mxu0 }
 0x4dd   : > { %v18828_v20 = vpop.f32.mrf.mxu1  ;;  %19147 = vmatmul.mubr.msk.f32.vlgmr.msra.gmra.mxu0 %vm389_vm3, %v10734_v51  ;;  %v8732_v24 = vadd.f32 %v18764_v21, %v23707_v11 }
 0x4de   : > { %19149 = vmatprep.mubr.msk.f32.mxu0 %vm389_vm3, %v10735_v4  ;;  %v24264_v0 = vpop.f32.mrf.mxu0 }
 0x4df   : > { %v24266_v39 = vpop.f32.mrf.mxu1  ;;  %v24268_v9 = vadd.f32 %v18828_v20, %v8732_v24 }
 0x4e1   : > { %v18767_v2 = vpop.f32.mrf.mxu0  ;;  %v18831_v57 = vpop.f32.mrf.mxu1  ;;  %19150 = vmatmul.mubr.msk.f32.gmra.mxu0 %vm389_vm3, %v10736_v40  ;;  %v10741_v40 = vld [vmem:[#allocation3 + $0x92] sm:$0xff] }
 0x4e2   : > { %v8734_v41 = vadd.f32 %v18767_v2, %v24109_v1  ;;  %19152 = vmatprep.mubr.msk.f32.mxu0 %vm389_vm3, %v10737_v8 }
 0x4e3   : > { %v8582_v59 = vpop.f32.mrf.mxu0  ;;  %v24273_v11 = vpop.f32.mrf.mxu1 }
 0x4e4   : > { %v24275_v53 = vadd.f32 %v18831_v57, %v8734_v41  ;;  %v24278_v7 = vadd.f32 %v8582_v59, %v24113_v45  ;;  %v10740_v45 = vld [vmem:[#allocation3 + $0x82] sm:$0xff] }
 0x4e5   : > { %v18770_v55 = vpop.f32.mrf.mxu0  ;;  %v18834_v23 = vpop.f32.mrf.mxu1  ;;  %19153 = vmatmul.mubr.msk.f32.gmra.mxu0 %vm389_vm3, %v10738_v50  ;;  %v15865_v59 = vld [vmem:[%s26484_s7 + $0x78] sm:$0xff] }
 0x4e6   : > { %v8736_v29 = vadd.f32 %v18770_v55, %v24120_v37  ;;  %19155 = vmatprep.mubr.msk.f32.mxu0 %vm389_vm3, %v10739_v56  ;;  %19194 = vmatprep.subr.mxu1 %v15865_v59 }
 0x4e7   : > { %v8592_v1 = vpop.f32.mrf.mxu0  ;;  %v24283_v51 = vpop.f32.mrf.mxu1  ;;  %19195 = vmatpush3.msra.mxu1 %v15865_v59 }
 0x4e8   : > { %v24285_v21 = vadd.f32 %v18834_v23, %v8736_v29  ;;  %v24288_v20 = vadd.f32 %v8592_v1, %v24124_v3  ;;  %v10742_v3 = vld [vmem:[#allocation3 + $0x9a] sm:$0xff] }
 0x4e9   : > { %v18773_v4 = vpop.f32.mrf.mxu0  ;;  %v18837_v24 = vpop.f32.mrf.mxu1  ;;  %19156 = vmatmul.mubr.msk.f32.gmra.mxu0 %vm389_vm3, %v10740_v45  ;;  %v10744_v45 = vld [vmem:[#allocation3 + $0xb2] sm:$0xff] }
 0x4ea   : > { %v8738_v2 = vadd.f32 %v18773_v4, %v24131_v12  ;;  %19158 = vmatprep.mubr.msk.f32.mxu0 %vm389_vm3, %v10741_v40  ;;  %v10743_v12 = vld [vmem:[#allocation3 + $0xaa] sm:$0xff]  ;;  %v10745_v40 = vld [vmem:[#allocation3 + $0xc2] sm:$0xff] }
 0x4eb   : > { %v8602_v37 = vpop.f32.mrf.mxu0  ;;  %v24293_v57 = vpop.f32.mrf.mxu1 }
 0x4ec   : > { %v24295_v8 = vadd.f32 %v18837_v24, %v8738_v2  ;;  %v24298_v41 = vadd.f32 %v8602_v37, %v24135_v27 }
 0x4ed   : > { %v18776_v50 = vpop.f32.mrf.mxu0  ;;  %v18840_v55 = vpop.f32.mrf.mxu1  ;;  %19159 = vmatmul.mubr.msk.f32.gmra.mxu0 %vm389_vm3, %v10742_v3 }
 0x4ee   : > { %v8740_v23 = vadd.f32 %v18776_v50, %v24142_v15  ;;  %19161 = vmatprep.mubr.msk.f32.mxu0 %vm389_vm3, %v10743_v12  ;;  %v15864_v50 = vld [vmem:[%s26484_s7 + $0x70] sm:$0xff] }
 0x4ef   : > { %v8612_v56 = vpop.f32.mrf.mxu0  ;;  %v24306_v29 = vpop.f32.mrf.mxu1  ;;  %19196 = vmatprep.subr.mxu1 %v15864_v50 }
 0x4f0   : > { %v24308_v27 = vadd.f32 %v18840_v55, %v8740_v23  ;;  %v24311_v1 = vadd.f32 %v8612_v56, %v24146_v10  ;;  %v10746_v10 = vld [vmem:[#allocation3 + $0xca] sm:$0xff]  ;;  %19197 = vmatpush3.msra.mxu1 %v15864_v50 }
 0x4f1   : > { %v18779_v4 = vpop.f32.mrf.mxu0  ;;  %v18843_v24 = vpop.f32.mrf.mxu1  ;;  %19162 = vmatmul.mubr.msk.f32.gmra.mxu0 %vm389_vm3, %v10744_v45 }
 0x4f2   : > { %v8742_v2 = vadd.f32 %v18779_v4, %v24153_v30  ;;  %19164 = vmatprep.mubr.msk.f32.mxu0 %vm389_vm3, %v10745_v40  ;;  %v10747_v30 = vld [vmem:[#allocation3 + $0xda] sm:$0xff] }
 0x4f3   : > { %v8622_v15 = vpop.f32.mrf.mxu0  ;;  %v24316_v37 = vpop.f32.mrf.mxu1 }
 0x4f4   : > { %v24318_v3 = vadd.f32 %v18843_v24, %v8742_v2  ;;  %v24321_v59 = vadd.f32 %v8622_v15, %v24157_v28  ;;  %v10748_v24 = vld [vmem:[#allocation3 + $0xe2] sm:$0xff]  ;;  %v10749_v15 = vld [vmem:[#allocation3 + $0xf2] sm:$0xff] }
 0x4f5   : > { %v18782_v55 = vpop.f32.mrf.mxu0  ;;  %v18846_v12 = vpop.f32.mrf.mxu1  ;;  %19165 = vmatmul.mubr.msk.f32.gmra.mxu0 %vm389_vm3, %v10746_v10 }
 0x4f6   : > { %v8744_v23 = vadd.f32 %v18782_v55, %v24164_v6  ;;  %19167 = vmatprep.mubr.msk.f32.mxu0 %vm389_vm3, %v10747_v30  ;;  %v15863_v30 = vld [vmem:[%s26484_s7 + $0x68] sm:$0xff] }
 0x4f7   : > { %v8632_v56 = vpop.f32.mrf.mxu0  ;;  %v24329_v45 = vpop.f32.mrf.mxu1  ;;  %19198 = vmatprep.subr.mxu1 %v15863_v30 }
 0x4f8   : > { %27012 = vst [vmem:[#allocation83_spill] sm:$0xff] %v24329_v45  ;;  %v24331_v28 = vadd.f32 %v18846_v12, %v8744_v23  ;;  %v24334_v4 = vadd.f32 %v8632_v56, %v24168_v14  ;;  %v10750_v14 = vld [vmem:[#allocation3 + $0xfa] sm:$0xff]  ;;  %19199 = vmatpush3.msra.mxu1 %v15863_v30 }
 0x4f9   : > { %v18785_v40 = vpop.f32.mrf.mxu0  ;;  %v18849_v2 = vpop.f32.mrf.mxu1  ;;  %19168 = vmatmul.mubr.msk.f32.gmra.mxu0 %vm389_vm3, %v10748_v24  ;;  %v8291_v24 = vadd.f32 %v24186_v16, %v24184_v5 }
 0x4fa   : > { %27013 = vst [vmem:[#allocation39_spill] sm:$0xff] %v24334_v4  ;;  %v8746_v10 = vadd.f32 %v18785_v40, %v24172_v33  ;;  %19170 = vmatprep.mubr.msk.f32.mxu0 %vm389_vm3, %v10749_v15  ;;  %v10751_v33 = vld [vmem:[#allocation3 + $0x10a] sm:$0xff] }
 0x4fb   : > { %v8642_v6 = vpop.f32.mrf.mxu0  ;;  %v24339_v50 = vpop.f32.mrf.mxu1 }
 0x4fc   : > { %27014 = vst [vmem:[#allocation26_spill] sm:$0xff] %v24339_v50  ;;  %v24341_v55 = vadd.f32 %v18849_v2, %v8746_v10  ;;  %v24344_v12 = vadd.f32 %v8642_v6, %v24176_v62  ;;  %v10752_v6 = vld [vmem:[#allocation3 + $0x112] sm:$0xff] }
 0x4fd   : > { %v18788_v23 = vpop.f32.mrf.mxu0  ;;  %v18852_v56 = vpop.f32.mrf.mxu1  ;;  %19171 = vmatmul.mubr.msk.f32.gmra.mxu0 %vm389_vm3, %v10750_v14 }
 0x4fe   : > { %27015 = vst [vmem:[#allocation69_spill] sm:$0xff] %v24344_v12  ;;  %v8748_v40 = vadd.f32 %v18788_v23, %v24180_v36  ;;  %19173 = vmatprep.mubr.msk.f32.mxu0 %vm389_vm3, %v10751_v33  ;;  %v10753_v12 = vld [vmem:[#allocation3 + $0x122] sm:$0xff]  ;;  %v10754_v23 = vld [vmem:[#allocation3 + $0x12a] sm:$0xff] }
 0x4ff   : > { %v8652_v62 = vpop.f32.mrf.mxu0  ;;  %v24354_v2 = vpop.f32.mrf.mxu1 }
 0x500   : > { %27016 = vst [vmem:[#allocation29_spill] sm:$0xff] %v24354_v2  ;;  %v24356_v15 = vadd.f32 %v18852_v56, %v8748_v40  ;;  %v24358_v10 = vadd.f32 %v8652_v62, %v8291_v24  ;;  %v15862_v56 = vld [vmem:[%s26484_s7 + $0x60] sm:$0xff]  ;;  %v10755_v40 = vld [vmem:[#allocation3 + $0x13a] sm:$0xff] }
 0x501   : > { %v18791_v50 = vpop.f32.mrf.mxu0  ;;  %v18855_v14 = vpop.f32.mrf.mxu1  ;;  %19174 = vmatmul.mubr.msk.f32.gmra.mxu0 %vm389_vm3, %v10752_v6  ;;  %19200 = vmatprep.subr.mxu1 %v15862_v56  ;;  %v10756_v6 = vld [vmem:[#allocation3 + $0x142] sm:$0xff] }
 0x502   : > { %27017 = vst [vmem:[#allocation77_spill] sm:$0xff] %v24358_v10  ;;  %v8750_v5 = vadd.f32 %v18791_v50, %v24190_v43  ;;  %19176 = vmatprep.mubr.msk.f32.mxu0 %vm389_vm3, %v10753_v12  ;;  %19201 = vmatpush3.msra.mxu1 %v15862_v56  ;;  %v11263_v10 = vld [vmem:[%s26484_s7 + $0x8] sm:$0xff] }
 0x503   : > { %v24363_v36 = vpop.f32.mrf.mxu0  ;;  %v24365_v16 = vpop.f32.mrf.mxu1 }
 0x504   : > { %27018 = vst [vmem:[#allocation45_spill] sm:$0xff] %v24363_v36  ;;  %27019 = vst [vmem:[#allocation16_spill] sm:$0xff] %v24365_v16  ;;  %v24367_v30 = vadd.f32 %v18855_v14, %v8750_v5  ;;  %v10757_v16 = vld [vmem:[#allocation3 + $0x152] sm:$0xff] }
 0x505   : > { %v18794_v33 = vpop.f32.mrf.mxu0  ;;  %v18858_v24 = vpop.f32.mrf.mxu1  ;;  %19177 = vmatmul.mubr.msk.f32.gmra.mxu0 %vm389_vm3, %v10754_v23 }
 0x506   : > { %v8752_v43 = vadd.f32 %v18794_v33, %v24200_v48  ;;  %19179 = vmatprep.mubr.msk.f32.mxu0 %vm389_vm3, %v10755_v40  ;;  %v10758_v40 = vld [vmem:[#allocation3 + $0x15a] sm:$0xff] }
 0x507   : > { %v24375_v50 = vpop.f32.mrf.mxu0  ;;  %v24377_v12 = vpop.f32.mrf.mxu1 }
 0x508   : > { %27020 = vst [vmem:[#allocation68_spill] sm:$0xff] %v24375_v50  ;;  %27021 = vst [vmem:[#allocation27_spill] sm:$0xff] %v24377_v12  ;;  %v24379_v62 = vadd.f32 %v18858_v24, %v8752_v43  ;;  %v15861_v24 = vld [vmem:[%s26484_s7 + $0x58] sm:$0xff] }
 0x509   : > { %v18797_v14 = vpop.f32.mrf.mxu0  ;;  %v18861_v5 = vpop.f32.mrf.mxu1  ;;  %19180 = vmatmul.mubr.msk.f32.gmra.mxu0 %vm389_vm3, %v10756_v6  ;;  %v10759_v6 = vld [vmem:[#allocation3 + $0x16a] sm:$0xff]  ;;  %19202 = vmatprep.subr.mxu1 %v15861_v24 }
 0x50a   : > { %v8754_v23 = vadd.f32 %v18797_v14, %v24210_v34  ;;  %19182 = vmatprep.mubr.msk.f32.mxu0 %vm389_vm3, %v10757_v16  ;;  %19203 = vmatpush3.msra.mxu1 %v15861_v24  ;;  %v10763_v24 = vld [vmem:[#allocation3 + $0x19a] sm:$0xff] }
 0x50b   : > { %v24384_v48 = vpop.f32.mrf.mxu0  ;;  %v24386_v33 = vpop.f32.mrf.mxu1 }
 0x50c   : > { %27022 = vst [vmem:[#allocation82_spill] sm:$0xff] %v24384_v48  ;;  %27023 = vst [vmem:[#allocation5_spill] sm:$0xff] %v24386_v33  ;;  %v24388_v56 = vadd.f32 %v18861_v5, %v8754_v23  ;;  %v10760_v23 = vld [vmem:[#allocation3 + $0x172] sm:$0xff] }
 0x50d   : > { %v18800_v43 = vpop.f32.mrf.mxu0  ;;  %v18864_v12 = vpop.f32.mrf.mxu1  ;;  %19183 = vmatmul.mubr.msk.f32.gmra.mxu0 %vm389_vm3, %v10758_v40 }
 0x50e   : > { %v8756_v34 = vadd.f32 %v18800_v43, %v24220_v22  ;;  %19185 = vmatprep.mubr.msk.f32.mxu0 %vm389_vm3, %v10759_v6 }
 0x50f   : > { %v24396_v16 = vpop.f32.mrf.mxu0  ;;  %v24398_v14 = vpop.f32.mrf.mxu1 }
 0x510   : > { %27024 = vst [vmem:[#allocation85_spill] sm:$0xff] %v24396_v16  ;;  %27025 = vst [vmem:[#allocation37_spill] sm:$0xff] %v24398_v14  ;;  %v24400_v5 = vadd.f32 %v18864_v12, %v8756_v34  ;;  %v15860_v12 = vld [vmem:[%s26484_s7 + $0x50] sm:$0xff]  ;;  %v11265_v16 = vld [vmem:[%s26484_s7 + $0x18] sm:$0xff] }
 0x511   : > { %v18803_v33 = vpop.f32.mrf.mxu0  ;;  %v18867_v48 = vpop.f32.mrf.mxu1  ;;  %19186 = vmatmul.mubr.msk.f32.gmra.mxu0 %vm389_vm3, %v10760_v23  ;;  %19204 = vmatprep.subr.mxu1 %v15860_v12 }
 0x512   : > { %v8758_v40 = vadd.f32 %v18803_v33, %v24230_v26  ;;  %19188 = vmatprep.mubr.msk.f32.mxu0 %vm389_vm3, %v24077_v13  ;;  %v10764_v13 = vld [vmem:[#allocation3 + $0x1a2] sm:$0xff]  ;;  %19205 = vmatpush3.msra.mxu1 %v15860_v12 }
 0x513   : > { %v24406_v22 = vpop.f32.mrf.mxu0  ;;  %v24408_v43 = vpop.f32.mrf.mxu1 }
 0x514   : > { %27026 = vst [vmem:[#allocation84_spill] sm:$0xff] %v24406_v22  ;;  %27027 = vst [vmem:[#allocation96_spill] sm:$0xff] %v24408_v43  ;;  %v24410_v6 = vadd.f32 %v18867_v48, %v8758_v40 }
 0x515   : > { %v18806_v34 = vpop.f32.mrf.mxu0  ;;  %v18870_v14 = vpop.f32.mrf.mxu1  ;;  %19189 = vmatmul.mubr.msk.f32.gmra.mxu0 %vm389_vm3, %v24085_v60  ;;  %v11269_v60 = vld [vmem:[%s26484_s7 + $0x38] sm:$0xff] }
 0x516   : > { %v8760_v26 = vadd.f32 %v18806_v34, %v24244_v49  ;;  %19191 = vmatprep.mubr.msk.f32.mxu0 %vm389_vm3, %v10763_v24  ;;  %v15859_v49 = vld [vmem:[%s26484_s7 + $0x48] sm:$0xff]  ;;  %19258 = vmatprep.subr.mxu0 %v11269_v60 }
 0x517   : > { %v24419_v33 = vpop.f32.mrf.mxu0  ;;  %v24421_v48 = vpop.f32.mrf.mxu1  ;;  %19206 = vmatprep.subr.mxu1 %v15859_v49  ;;  %19259 = vmatpush3.msra.mxu0 %v11269_v60 }
 0x518   : > { %27028 = vst [vmem:[#allocation70_spill] sm:$0xff] %v24419_v33  ;;  %27029 = vst [vmem:[#allocation64_spill] sm:$0xff] %v24421_v48  ;;  %v24423_v23 = vadd.f32 %v18870_v14, %v8760_v26  ;;  %19207 = vmatpush3.msra.mxu1 %v15859_v49 }
 0x519   : > { %v18809_v40 = vpop.f32.mrf.mxu0  ;;  %v18873_v43 = vpop.f32.mrf.mxu1  ;;  %19192 = vmatmul.mubr.msk.f32.gmra.mxu0 %vm389_vm3, %v10764_v13 }
 0x51a   : > { %v8762_v22 = vadd.f32 %v18809_v40, %v24254_v47  ;;  %v11268_v47 = vld [vmem:[%s26484_s7 + $0x30] sm:$0xff] }
 0x51b   : > { %v24433_v24 = vpop.f32.mrf.mxu0  ;;  %v24435_v12 = vpop.f32.mrf.mxu1  ;;  %19260 = vmatprep.subr.mxu0 %v11268_v47 }
 0x51c   : > { %27030 = vst [vmem:[#allocation17_spill] sm:$0xff] %v24433_v24  ;;  %27031 = vst [vmem:[#allocation86_spill] sm:$0xff] %v24435_v12  ;;  %v24437_v14 = vadd.f32 %v18873_v43, %v8762_v22  ;;  %19261 = vmatpush3.msra.mxu0 %v11268_v47 }
 0x51d   : > { %v18892_v34 = vpop.f32.mrf.mxu0  ;;  %v24442_v26 = vpop.f32.mrf.mxu1 }
 0x51e   : > { %v24445_v13 = vadd.f32 %v18892_v34, %v24268_v9  ;;  %v11267_v9 = vld [vmem:[%s26484_s7 + $0x28] sm:$0xff] }
 0x51f   : > { %v24447_v40 = vpop.f32.mrf.mxu0  ;;  %v24449_v12 = vpop.f32.mrf.mxu1  ;;  %19262 = vmatprep.subr.mxu0 %v11267_v9 }
 0x520   : > { %19263 = vmatpush3.msra.mxu0 %v11267_v9 }
 0x521   : > { %v18895_v22 = vpop.f32.mrf.mxu0  ;;  %v24451_v43 = vpop.f32.mrf.mxu1 }
 0x522   : > { %v24454_v60 = vadd.f32 %v18895_v22, %v24275_v53  ;;  %v11266_v53 = vld [vmem:[%s26484_s7 + $0x20] sm:$0xff] }
 0x523   : > { %v24456_v49 = vpop.f32.mrf.mxu0  ;;  %v24458_v24 = vpop.f32.mrf.mxu1  ;;  %19264 = vmatprep.subr.mxu0 %v11266_v53 }
 0x524   : > { %19265 = vmatpush3.msra.mxu0 %v11266_v53  ;;  %v11264_v53 = vld [vmem:[%s26484_s7 + $0x10] sm:$0xff] }
 0x525   : > { %v18898_v34 = vpop.f32.mrf.mxu0  ;;  %v24463_v47 = vpop.f32.mrf.mxu1  ;;  %19266 = vmatprep.subr.mxu0 %v11265_v16 }
 0x526   : > { %v24466_v48 = vadd.f32 %v18898_v34, %v24285_v21  ;;  %v15858_v21 = vld [vmem:[%s26484_s7 + $0x40] sm:$0xff]  ;;  %19267 = vmatpush3.msra.mxu0 %v11265_v16 }
 0x527   : > { %v24471_v22 = vpop.f32.mrf.mxu0  ;;  %v24473_v33 = vpop.f32.mrf.mxu1  ;;  %19208 = vmatprep.subr.mxu1 %v15858_v21  ;;  %19268 = vmatprep.subr.mxu0 %v11264_v53  ;;  %v11262_v16 = vld [vmem:[%s26484_s7] sm:$0xff] }
 0x528   : > { %19209 = vmatpush3.msra.mxu1 %v15858_v21  ;;  %19269 = vmatpush3.msra.mxu0 %v11264_v53  ;;  %v11270_v21 = vld [vmem:[#allocation3 + $0x1] sm:$0xff] }
 0x529   : > { %v18901_v34 = vpop.f32.mrf.mxu0  ;;  %v24481_v9 = vpop.f32.mrf.mxu1  ;;  %19270 = vmatprep.subr.mxu0 %v11263_v10  ;;  %19210 = vmatprep.mubr.msk.f32.mxu1 %vm389_vm3, %v11270_v21 }
 0x52a   : > { %v24484_v50 = vadd.f32 %v18901_v34, %v24295_v8  ;;  %19271 = vmatpush3.msra.mxu0 %v11263_v10  ;;  %v11230_v34 = vld [vmem:[#allocation3] sm:$0xff]  ;;  %19211 = vmatmul.mubr.msk.f32.vlgmr.msra.gmra.mxu1 %vm389_vm3, %v11271_v18 }
 0x52b   : > { %v24489_v36 = vpop.f32.mrf.mxu0  ;;  %v24491_v2 = vpop.f32.mrf.mxu1  ;;  %19272 = vmatprep.subr.mxu0 %v11262_v16  ;;  %19274 = vmatprep.mubr.msk.f32.mxu0 %vm389_vm3, %v11230_v34 }
 0x52c   : > { %19273 = vmatpush3.msra.mxu0 %v11262_v16 }
 0x52d   : > { %v18904_v58 = vpop.f32.mrf.mxu0  ;;  %v24496_v63 = vpop.f32.mrf.mxu1 }
 0x52e   : > { %v24499_v8 = vadd.f32 %v18904_v58, %v24308_v27  ;;  %v11231_v58 = vld [vmem:[#allocation3 + $0x8] sm:$0xff] }
 0x52f   : > { %v24504_v44 = vpop.f32.mrf.mxu0  ;;  %v24506_v53 = vpop.f32.mrf.mxu1  ;;  %v15937_v27 = vld [vmem:[%s26484_s7 + $0xb8] sm:$0xff]  ;;  %19275 = vmatmul.mubr.msk.f32.vlgmr.msra.gmra.mxu0 %vm389_vm3, %v11231_v58 }
 0x530   : > { %27032 = vst [vmem:[#allocation99_spill] sm:$0xff] %v24506_v53  ;;  %19322 = vmatprep.subr.mxu1 %v15937_v27 }
 0x531   : > { %v18907_v10 = vpop.f32.mrf.mxu0  ;;  %v24513_v45 = vpop.f32.mrf.mxu1  ;;  %19323 = vmatpush3.msra.mxu1 %v15937_v27 }
 0x532   : > { %27033 = vst [vmem:[#allocation71_spill] sm:$0xff] %v24513_v45  ;;  %v24518_v4 = vadd.f32 %v18907_v10, %v24318_v3  ;;  %v15936_v3 = vld [vmem:[%s26484_s7 + $0xb0] sm:$0xff] }
 0x533   : > { %v24520_v16 = vpop.f32.mrf.mxu0  ;;  %v24522_v21 = vpop.f32.mrf.mxu1  ;;  %19324 = vmatprep.subr.mxu1 %v15936_v3 }
 0x534   : > { %27034 = vst [vmem:[#allocation7_spill] sm:$0xff] %v24518_v4  ;;  %27035 = vst [vmem:[#allocation78_spill] sm:$0xff] %v24520_v16  ;;  %19325 = vmatpush3.msra.mxu1 %v15936_v3 }
 0x535   : > { %27036 = vst [vmem:[#allocation8_spill] sm:$0xff] %v24522_v21  ;;  %v18910_v34 = vpop.f32.mrf.mxu0  ;;  %v24524_v52 = vpop.f32.mrf.mxu1 }
 0x536   : > { %27037 = vst [vmem:[#allocation43_spill] sm:$0xff] %v24524_v52  ;;  %v24527_v46 = vadd.f32 %v18910_v34, %v24331_v28 }
 0x537   : > { %v24529_v45 = vpop.f32.mrf.mxu0  ;;  %v24531_v18 = vpop.f32.mrf.mxu1 }
 0x538   : > { %27038 = vst [vmem:[#allocation44_spill] sm:$0xff] %v24527_v46  ;;  %27039 = vst [vmem:[#allocation66_spill] sm:$0xff] %v24529_v45 }
 0x539   : > { %27040 = vst [vmem:[#allocation75_spill] sm:$0xff] %v24531_v18  ;;  %v18913_v58 = vpop.f32.mrf.mxu0  ;;  %v24536_v10 = vpop.f32.mrf.mxu1 }
 0x53a   : > { %27041 = vst [vmem:[#allocation46_spill] sm:$0xff] %v24536_v10  ;;  %v24539_v27 = vadd.f32 %v18913_v58, %v24341_v55  ;;  %v15935_v55 = vld [vmem:[%s26484_s7 + $0xa8] sm:$0xff] }
 0x53b   : > { %v24541_v52 = vpop.f32.mrf.mxu0  ;;  %v24543_v28 = vpop.f32.mrf.mxu1  ;;  %19326 = vmatprep.subr.mxu1 %v15935_v55 }
 0x53c   : > { %27042 = vst [vmem:[#allocation18_spill] sm:$0xff] %v24539_v27  ;;  %27043 = vst [vmem:[#allocation100_spill] sm:$0xff] %v24541_v52  ;;  %19327 = vmatpush3.msra.mxu1 %v15935_v55 }
 0x53d   : > { %27044 = vst [vmem:[#allocation12_spill] sm:$0xff] %v24543_v28  ;;  %v18916_v34 = vpop.f32.mrf.mxu0  ;;  %v24545_v46 = vpop.f32.mrf.mxu1 }
 0x53e   : > { %27045 = vst [vmem:[#allocation11_spill] sm:$0xff] %v24545_v46  ;;  %v24548_v18 = vadd.f32 %v18916_v34, %v24356_v15 }
 0x53f   : > { %v24550_v45 = vpop.f32.mrf.mxu0  ;;  %v24552_v21 = vpop.f32.mrf.mxu1 }
 0x540   : > { %27046 = vst [vmem:[#allocation87_spill] sm:$0xff] %v24548_v18  ;;  %27047 = vst [vmem:[#allocation49_spill] sm:$0xff] %v24550_v45 }
 0x541   : > { %27048 = vst [vmem:[#allocation28_spill] sm:$0xff] %v24552_v21  ;;  %v18919_v58 = vpop.f32.mrf.mxu0  ;;  %v24557_v3 = vpop.f32.mrf.mxu1 }
 0x542   : > { %27049 = vst [vmem:[#allocation19_spill] sm:$0xff] %v24557_v3  ;;  %v24560_v28 = vadd.f32 %v18919_v58, %v24367_v30  ;;  %v15934_v30 = vld [vmem:[%s26484_s7 + $0xa0] sm:$0xff] }
 0x543   : > { %v24562_v46 = vpop.f32.mrf.mxu0  ;;  %v24564_v15 = vpop.f32.mrf.mxu1  ;;  %19328 = vmatprep.subr.mxu1 %v15934_v30 }
 0x544   : > { %27050 = vst [vmem:[#allocation89_spill] sm:$0xff] %v24560_v28  ;;  %27051 = vst [vmem:[#allocation67_spill] sm:$0xff] %v24562_v46  ;;  %19329 = vmatpush3.msra.mxu1 %v15934_v30  ;;  %v15971_v28 = vld [vmem:[%s26484_s7 + $0xc8] sm:$0xff] }
 0x545   : > { %27052 = vst [vmem:[#allocation36_spill] sm:$0xff] %v24564_v15  ;;  %v18922_v34 = vpop.f32.mrf.mxu0  ;;  %v24566_v18 = vpop.f32.mrf.mxu1 }
 0x546   : > { %27053 = vst [vmem:[#allocation35_spill] sm:$0xff] %v24566_v18  ;;  %v24569_v21 = vadd.f32 %v18922_v34, %v24379_v62 }
 0x547   : > { %v24571_v45 = vpop.f32.mrf.mxu0  ;;  %v24573_v10 = vpop.f32.mrf.mxu1 }
 0x548   : > { %27054 = vst [vmem:[#allocation47_spill] sm:$0xff] %v24569_v21  ;;  %27055 = vst [vmem:[#allocation48_spill] sm:$0xff] %v24571_v45 }
 0x549   : > { %27056 = vst [vmem:[#allocation101_spill] sm:$0xff] %v24573_v10  ;;  %v18925_v58 = vpop.f32.mrf.mxu0  ;;  %v24578_v55 = vpop.f32.mrf.mxu1 }
 0x54a   : > { %27057 = vst [vmem:[#allocation50_spill] sm:$0xff] %v24578_v55  ;;  %v24581_v15 = vadd.f32 %v18925_v58, %v24388_v56  ;;  %v15933_v56 = vld [vmem:[%s26484_s7 + $0x98] sm:$0xff] }
 0x54b   : > { %v24583_v18 = vpop.f32.mrf.mxu0  ;;  %v24585_v62 = vpop.f32.mrf.mxu1  ;;  %19330 = vmatprep.subr.mxu1 %v15933_v56 }
 0x54c   : > { %27058 = vst [vmem:[#allocation20_spill] sm:$0xff] %v24581_v15  ;;  %27059 = vst [vmem:[#allocation73_spill] sm:$0xff] %v24583_v18  ;;  %19331 = vmatpush3.msra.mxu1 %v15933_v56  ;;  %v24671_v15 = vld [vmem:[%s26484_s7 + $0x138] sm:$0xff] }
 0x54d   : > { %27060 = vst [vmem:[#allocation88_spill] sm:$0xff] %v24585_v62  ;;  %v18928_v34 = vpop.f32.mrf.mxu0  ;;  %v24587_v21 = vpop.f32.mrf.mxu1  ;;  %27077 = vst [vmem:[#allocation91_spill] sm:$0xff] %v24671_v15 }
 0x54e   : > { %27061 = vst [vmem:[#allocation80_spill] sm:$0xff] %v24587_v21  ;;  %v24590_v10 = vadd.f32 %v18928_v34, %v24400_v5 }
 0x54f   : > { %v24592_v45 = vpop.f32.mrf.mxu0  ;;  %v24594_v3 = vpop.f32.mrf.mxu1 }
 0x550   : > { %27062 = vst [vmem:[#allocation90_spill] sm:$0xff] %v24590_v10  ;;  %27063 = vst [vmem:[#allocation53_spill] sm:$0xff] %v24592_v45 }
 0x551   : > { %27064 = vst [vmem:[#allocation72_spill] sm:$0xff] %v24594_v3  ;;  %v18931_v58 = vpop.f32.mrf.mxu0  ;;  %v24599_v30 = vpop.f32.mrf.mxu1 }
 0x552   : > { %27065 = vst [vmem:[#allocation21_spill] sm:$0xff] %v24599_v30  ;;  %v24602_v62 = vadd.f32 %v18931_v58, %v24410_v6  ;;  %v15932_v6 = vld [vmem:[%s26484_s7 + $0x90] sm:$0xff] }
 0x553   : > { %v24604_v21 = vpop.f32.mrf.mxu0  ;;  %v24606_v5 = vpop.f32.mrf.mxu1  ;;  %19332 = vmatprep.subr.mxu1 %v15932_v6 }
 0x554   : > { %27066 = vst [vmem:[#allocation92_spill] sm:$0xff] %v24602_v62  ;;  %27067 = vst [vmem:[#allocation102_spill] sm:$0xff] %v24604_v21  ;;  %19333 = vmatpush3.msra.mxu1 %v15932_v6  ;;  %v15976_v6 = vld [vmem:[%s26484_s7 + $0xf0] sm:$0xff]  ;;  %v15974_v62 = vld [vmem:[%s26484_s7 + $0xe0] sm:$0xff] }
 0x555   : > { %27068 = vst [vmem:[#allocation38_spill] sm:$0xff] %v24606_v5  ;;  %v18934_v34 = vpop.f32.mrf.mxu0  ;;  %v24608_v10 = vpop.f32.mrf.mxu1 }
 0x556   : > { %27069 = vst [vmem:[#allocation41_spill] sm:$0xff] %v24608_v10  ;;  %v24611_v3 = vadd.f32 %v18934_v34, %v24423_v23 }
 0x557   : > { %v24613_v45 = vpop.f32.mrf.mxu0  ;;  %v24615_v55 = vpop.f32.mrf.mxu1 }
 0x558   : > { %27070 = vst [vmem:[#allocation51_spill] sm:$0xff] %v24611_v3  ;;  %27071 = vst [vmem:[#allocation52_spill] sm:$0xff] %v24613_v45  ;;  %v15931_v45 = vld [vmem:[%s26484_s7 + $0x88] sm:$0xff] }
 0x559   : > { %27072 = vst [vmem:[#allocation74_spill] sm:$0xff] %v24615_v55  ;;  %v18937_v58 = vpop.f32.mrf.mxu0  ;;  %v24620_v56 = vpop.f32.mrf.mxu1  ;;  %19334 = vmatprep.subr.mxu1 %v15931_v45 }
 0x55a   : > { %27073 = vst [vmem:[#allocation54_spill] sm:$0xff] %v24620_v56  ;;  %v24623_v5 = vadd.f32 %v18937_v58, %v24437_v14  ;;  %19335 = vmatpush3.msra.mxu1 %v15931_v45  ;;  %v15977_v14 = vld [vmem:[%s26484_s7 + $0xf8] sm:$0xff]  ;;  %v15975_v45 = vld [vmem:[%s26484_s7 + $0xe8] sm:$0xff] }
 0x55b   : > { %v24625_v10 = vpop.f32.mrf.mxu0  ;;  %v24627_v23 = vpop.f32.mrf.mxu1  ;;  %19386 = vmatprep.subr.mxu0 %v15977_v14 }
 0x55c   : > { %27074 = vst [vmem:[#allocation22_spill] sm:$0xff] %v24623_v5  ;;  %27075 = vst [vmem:[#allocation30_spill] sm:$0xff] %v24625_v10  ;;  %19387 = vmatpush3.msra.mxu0 %v15977_v14  ;;  %v15973_v14 = vld [vmem:[%s26484_s7 + $0xd8] sm:$0xff] }
 0x55d   : > { %27076 = vst [vmem:[#allocation81_spill] sm:$0xff] %v24627_v23  ;;  %v24629_v34 = vpop.f32.mrf.mxu0  ;;  %v24631_v3 = vpop.f32.mrf.mxu1  ;;  %v15930_v23 = vld [vmem:[%s26484_s7 + $0x80] sm:$0xff]  ;;  %19388 = vmatprep.subr.mxu0 %v15976_v6 }
 0x55e   : > { %19336 = vmatprep.subr.mxu1 %v15930_v23  ;;  %19389 = vmatpush3.msra.mxu0 %v15976_v6  ;;  %v15972_v6 = vld [vmem:[%s26484_s7 + $0xd0] sm:$0xff] }
 0x55f   : > { %v24633_v55 = vpop.f32.mrf.mxu0  ;;  %v24638_v56 = vpop.f32.mrf.mxu1  ;;  %19337 = vmatpush3.msra.mxu1 %v15930_v23  ;;  %19390 = vmatprep.subr.mxu0 %v15975_v45 }
 0x560   : > { %19391 = vmatpush3.msra.mxu0 %v15975_v45  ;;  %19450 = vmatprep.subr.mxu1 %v24671_v15 }
 0x561   : > { %v24640_v30 = vpop.f32.mrf.mxu0  ;;  %v24656_v5 = vpop.f32.mrf.mxu1  ;;  %19392 = vmatprep.subr.mxu0 %v15974_v62 }
 0x562   : > { %19393 = vmatpush3.msra.mxu0 %v15974_v62  ;;  %v15970_v62 = vld [vmem:[%s26484_s7 + $0xc0] sm:$0xff] }
 0x563   : > { %v24648_v58 = vpop.f32.mrf.mxu0  ;;  %v24673_v18 = vpop.f32.mrf.mxu1  ;;  %19394 = vmatprep.subr.mxu0 %v15973_v14 }
 0x564   : > { %19395 = vmatpush3.msra.mxu0 %v15973_v14 }
 0x565   : > { %v24658_v10 = vpop.f32.mrf.mxu0  ;;  %v24686_v46 = vpop.f32.mrf.mxu1  ;;  %19396 = vmatprep.subr.mxu0 %v15972_v6 }
 0x566   : > { %19397 = vmatpush3.msra.mxu0 %v15972_v6 }
 0x567   : > { %v24663_v21 = vpop.f32.mrf.mxu0  ;;  %19398 = vmatprep.subr.mxu0 %v15971_v28  ;;  %v24695_v52 = vpop.f32.mrf.mxu1 }
 0x568   : > { %19399 = vmatpush3.msra.mxu0 %v15971_v28 }
 0x569   : > { %v24675_v23 = vpop.f32.mrf.mxu0  ;;  %19400 = vmatprep.subr.mxu0 %v15970_v62  ;;  %v24701_v16 = vpop.f32.mrf.mxu1 }
 0x56a   : > { %19401 = vmatpush3.msra.mxu0 %v15970_v62  ;;  %27082 = vst [vmem:[#allocation94_spill] sm:$0xff] %v24701_v16 }
 0x56b   : > { %v24681_v45 = vpop.f32.mrf.mxu0  ;;  %v24707_v53 = vpop.f32.mrf.mxu1 }
 0x56c   : > { %27085 = vst [vmem:[#allocation55_spill] sm:$0xff] %v24707_v53 }
 0x56d   : > { %v24688_v27 = vpop.f32.mrf.mxu0  ;;  %v24713_v28 = vpop.f32.mrf.mxu1 }
 0x56e   : > { %27078 = vst [vmem:[#allocation93_spill] sm:$0xff] %v24688_v27  ;;  %27088 = vst [vmem:[#allocation24_spill] sm:$0xff] %v24713_v28 }
 0x56f   : > { %v24693_v15 = vpop.f32.mrf.mxu0  ;;  %v24719_v62 = vpop.f32.mrf.mxu1 }
 0x570   : > { %27079 = vst [vmem:[#allocation57_spill] sm:$0xff] %v24693_v15  ;;  %27091 = vst [vmem:[#allocation95_spill] sm:$0xff] %v24719_v62 }
 0x571   : > { %v24697_v14 = vpop.f32.mrf.mxu0 }
 0x572   : > { %27080 = vst [vmem:[#allocation33_spill] sm:$0xff] %v24697_v14 }
 0x573   : > { %v24699_v4 = vpop.f32.mrf.mxu0 }
 0x574   : > { %27081 = vst [vmem:[#allocation23_spill] sm:$0xff] %v24699_v4 }
 0x575   : > { %v24703_v27 = vpop.f32.mrf.mxu0 }
 0x576   : > { %27083 = vst [vmem:[#allocation14_spill] sm:$0xff] %v24703_v27  ;;  %v24725_v27 = vpop.f32.mrf.mxu1 }
 0x577   : > { %v24705_v6 = vpop.f32.mrf.mxu0  ;;  %27094 = vst [vmem:[#allocation97_spill] sm:$0xff] %v24725_v27 }
 0x578   : > { %27084 = vst [vmem:[#allocation13_spill] sm:$0xff] %v24705_v6 }
 0x579   : > { %v24709_v42 = vpop.f32.mrf.mxu0 }
 0x57a   : > { %27086 = vst [vmem:[#allocation56_spill] sm:$0xff] %v24709_v42  ;;  %v24731_v42 = vpop.f32.mrf.mxu1 }
 0x57b   : > { %v24711_v15 = vpop.f32.mrf.mxu0  ;;  %27097 = vst [vmem:[#allocation60_spill] sm:$0xff] %v24731_v42 }
 0x57c   : > { %27087 = vst [vmem:[#allocation58_spill] sm:$0xff] %v24711_v15 }
 0x57d   : > { %v24715_v35 = vpop.f32.mrf.mxu0 }
 0x57e   : > { %27089 = vst [vmem:[#allocation76_spill] sm:$0xff] %v24715_v35  ;;  %v24739_v35 = vpop.f32.mrf.mxu1 }
 0x57f   : > { %v24717_v14 = vpop.f32.mrf.mxu0 }
 0x580   : > { %27090 = vst [vmem:[#allocation15_spill] sm:$0xff] %v24717_v14  ;;  %v8211_v14 = vadd.f32 %v24101_v31, %v24099_v17  ;;  %v9127_v31 = vadd.f32 %v24273_v11, %v24278_v7  ;;  %v9916_v11 = vadd.f32 %v24451_v43, %v24454_v60  ;;  %v9131_v43 = vadd.f32 %v24293_v57, %v24298_v41 }
 0x581   : > { %v24721_v4 = vpop.f32.mrf.mxu0  ;;  %v9918_v60 = vadd.f32 %v24463_v47, %v24466_v48 }
 0x582   : > { %27092 = vst [vmem:[#allocation61_spill] sm:$0xff] %v24721_v4  ;;  %v9525_v57 = vadd.f32 %v24489_v36, %v9131_v43 }
 0x583   : > { %v24723_v16 = vpop.f32.mrf.mxu0  ;;  %v10312_v41 = vadd.f32 %v24658_v10, %v9918_v60 }
 0x584   : > { %27093 = vst [vmem:[#allocation25_spill] sm:$0xff] %v24723_v16  ;;  %v8731_v16 = vadd.f32 %v24264_v0, %v8211_v14  ;;  %v9914_v0 = vadd.f32 %v24442_v26, %v24445_v13 }
 0x585   : > { %v24727_v6 = vpop.f32.mrf.mxu0 }
 0x586   : > { %27095 = vst [vmem:[#allocation79_spill] sm:$0xff] %v24727_v6  ;;  %v24746_v6 = vpop.f32.mrf.mxu1  ;;  %v9125_v42 = vadd.f32 %v24266_v39, %v8731_v16  ;;  %v9521_v39 = vadd.f32 %v24456_v49, %v9127_v31  ;;  %v10308_v16 = vadd.f32 %v24629_v34, %v9914_v0  ;;  %v10310_v49 = vadd.f32 %v24640_v30, %v9916_v11 }
 0x587   : > { %v24729_v53 = vpop.f32.mrf.mxu0  ;;  %v24808_v0 = vadd.f32 %v24196_v19, %v24194_v61  ;;  %v24821_v61 = vadd.f32 %v24206_v32, %v24204_v38  ;;  %v9919_v19 = vadd.f32 %v24491_v2, %v9525_v57  ;;  %v9135_v38 = vadd.f32 %v24316_v37, %v24321_v59  ;;  %v27104_v37 = vld [vmem:[#allocation99_spill] sm:$0xff] }
 0x588   : > { %27096 = vst [vmem:[#allocation59_spill] sm:$0xff] %v24729_v53  ;;  %v24754_v62 = vpop.f32.mrf.mxu1  ;;  %v10704_v47 = vadd.f32 %v24656_v5, %v10310_v49  ;;  %v9922_v32 = vadd.f32 %v24496_v63, %v24499_v8  ;;  %v27105_v63 = vld [vmem:[#allocation78_spill] sm:$0xff]  ;;  %v27109_v57 = vld [vmem:[#allocation63_spill] sm:$0xff] }
 0x589   : > { %v24733_v15 = vpop.f32.mrf.mxu0  ;;  %v9529_v8 = vadd.f32 %v27105_v63, %v9135_v38  ;;  %v27119_v38 = vld [vmem:[#allocation66_spill] sm:$0xff] }
 0x58a   : > { %27098 = vst [vmem:[#allocation62_spill] sm:$0xff] %v24733_v15 }
 0x58b   : > { %v24735_v28 = vpop.f32.mrf.mxu0 }
 0x58c   : > { %27099 = vst [vmem:[#allocation65_spill] sm:$0xff] %v24735_v28  ;;  %v9519_v28 = vadd.f32 %v24447_v40, %v9125_v42  ;;  %v9129_v42 = vadd.f32 %v24283_v51, %v24288_v20  ;;  %v24769_v40 = vpop.f32.mrf.mxu1  ;;  %v9915_v51 = vadd.f32 %v24458_v24, %v9521_v39  ;;  %v10702_v20 = vadd.f32 %v24631_v3, %v10308_v16 }
 0x58d   : > { %v24741_v4 = vpop.f32.mrf.mxu0 }
 0x58e   : > { %v9523_v26 = vadd.f32 %v24471_v22, %v9129_v42  ;;  %v24792_v22 = vpop.f32.mrf.mxu1  ;;  %v10309_v3 = vadd.f32 %v24648_v58, %v9915_v51 }
 0x58f   : > { %v24744_v27 = vpop.f32.mrf.mxu0 }
 0x590   : > { %v9917_v34 = vadd.f32 %v24473_v33, %v9523_v26  ;;  %v9920_v33 = vadd.f32 %v24481_v9, %v24484_v50  ;;  %v24815_v58 = vpop.f32.mrf.mxu1  ;;  %v10703_v5 = vadd.f32 %v24673_v18, %v10309_v3 }
 0x591   : > { %v24748_v53 = vpop.f32.mrf.mxu0 }
 0x592   : > { %27100 = vst [vmem:[#allocation31_spill] sm:$0xff] %v24748_v53  ;;  %v9913_v53 = vadd.f32 %v24449_v12, %v9519_v28  ;;  %v24782_v12 = vld [vmem:[%s26484_s7 + $0x178] sm:$0xff]  ;;  %v10311_v36 = vadd.f32 %v24663_v21, %v9917_v34  ;;  %v10314_v9 = vadd.f32 %v24675_v23, %v9920_v33  ;;  %v10313_v23 = vadd.f32 %v24681_v45, %v9919_v19  ;;  %v27108_v34 = vld [vmem:[#allocation98_spill] sm:$0xff] }
 0x593   : > { %v24751_v15 = vpop.f32.mrf.mxu0  ;;  %19514 = vmatprep.subr.mxu0 %v24782_v12 }
 0x594   : > { %v10307_v7 = vadd.f32 %v24633_v55, %v9913_v53  ;;  %v24797_v55 = vld [vmem:[%s26483_s6] ss:$0 sm:$0xff] }
 0x595   : > { %v24756_v17 = vpop.f32.mrf.mxu0 }
 0x596   : > { %27101 = vst [vmem:[#allocation4_spill] sm:$0xff] %v24756_v17  ;;  %v10701_v24 = vadd.f32 %v24638_v56, %v10307_v7  ;;  %v9133_v56 = vadd.f32 %v24306_v29, %v24311_v1  ;;  %v10706_v1 = vadd.f32 %v24686_v46, %v10312_v41  ;;  %v24831_v7 = vadd.f32 %v24216_v54, %v24214_v25  ;;  %v27102_v54 = vld [vmem:[#allocation40_spill] sm:$0xff] }
 0x597   : > { %v24762_v14 = vpop.f32.mrf.mxu0  ;;  %v10705_v46 = vadd.f32 %v24695_v52, %v10311_v36  ;;  %v27106_v52 = vld [vmem:[#allocation93_spill] sm:$0xff]  ;;  %v24855_v41 = vadd.f32 %v27109_v57, %v27108_v34 }
 0x598   : > { %v9527_v29 = vadd.f32 %v24504_v44, %v9133_v56  ;;  %v24838_v44 = vpop.f32.mrf.mxu1  ;;  %v10316_v43 = vadd.f32 %v27106_v52, %v9922_v32  ;;  %v27113_v56 = vld [vmem:[#allocation71_spill] sm:$0xff]  ;;  %v27114_v36 = vld [vmem:[#allocation57_spill] sm:$0xff] }
 0x599   : > { %v24771_v17 = vpop.f32.mrf.mxu0  ;;  %v27124_v52 = vld [vmem:[#allocation69_spill] sm:$0xff] }
 0x59a   : > { %v9921_v59 = vadd.f32 %v27104_v37, %v9527_v29  ;;  %v27122_v37 = vld [vmem:[#allocation34_spill] sm:$0xff] }
 0x59b   : > { %v24777_v13 = vpop.f32.mrf.mxu0 }
 0x59d   : > { %v19148_v53 = vpop.f32.mrf.mxu0 }
 0x59e   : > { %v11096_v30 = vadd.f32 %v19148_v53, %v10702_v20  ;;  %v27103_v20 = vld [vmem:[#allocation42_spill] sm:$0xff] }
 0x59f   : > { %v10936_v48 = vpop.f32.mrf.mxu0  ;;  %v24845_v49 = vadd.f32 %v27103_v20, %v27102_v54  ;;  %v27107_v53 = vld [vmem:[#allocation94_spill] sm:$0xff] }
 0x5a0   : > { %v11135_v28 = vadd.f32 %v24797_v55, %v11096_v30  ;;  %v11095_v31 = vadd.f32 %v10936_v48, %v10701_v24  ;;  %v10708_v24 = vadd.f32 %v27107_v53, %v10314_v9  ;;  %v27110_v48 = vld [vmem:[#allocation39_spill] sm:$0xff]  ;;  %v27117_v9 = vld [vmem:[#allocation32_spill] sm:$0xff] }
 0x5a1   : > { %v19151_v10 = vpop.f32.mrf.mxu0  ;;  %v27126_v53 = vld [vmem:[#allocation44_spill] sm:$0xff] }
 0x5a2   : > { %v11167_v39 = vmax.f32 %v11135_v28, 0.0  ;;  %v11134_v16 = vadd.f32 %v24797_v55, %v11095_v31  ;;  %v11098_v42 = vadd.f32 %v19151_v10, %v10704_v47  ;;  %v27111_v47 = vld [vmem:[#allocation83_spill] sm:$0xff]  ;;  %v10315_v10 = vadd.f32 %v27114_v36, %v9921_v59  ;;  %v27123_v59 = vld [vmem:[#allocation6_spill] sm:$0xff] }
 0x5a3   : > { %v10946_v50 = vpop.f32.mrf.mxu0  ;;  %v9137_v28 = vadd.f32 %v27111_v47, %v27110_v48  ;;  %v27112_v31 = vld [vmem:[#allocation7_spill] sm:$0xff]  ;;  %v24879_v63 = vadd.f32 %v27123_v59, %v27122_v37  ;;  %v27139_v59 = vld [vmem:[#allocation13_spill] sm:$0xff] }
 0x5a4   : > { %11199 = vst.msk [vmem:[#allocation3 + $0x21] sm:$0xff] %vm389_vm3, %v11167_v39  ;;  %v11166_v21 = vmax.f32 %v11134_v16, 0.0  ;;  %v11137_v18 = vadd.f32 %v24797_v55, %v11098_v42  ;;  %v11097_v11 = vadd.f32 %v10946_v50, %v10703_v5  ;;  %v9924_v33 = vadd.f32 %v27113_v56, %v27112_v31  ;;  %v24862_v5 = vpop.f32.mrf.mxu1  ;;  %v27115_v16 = vld [vmem:[#allocation55_spill] sm:$0xff]  ;;  %v27116_v50 = vld [vmem:[#allocation9_spill] sm:$0xff] }
 0x5a5   : > { %v19154_v2 = vpop.f32.mrf.mxu0  ;;  %v10707_v42 = vadd.f32 %v27115_v16, %v10313_v23  ;;  %v9531_v32 = vadd.f32 %v27119_v38, %v9137_v28  ;;  %v27129_v28 = vld [vmem:[#allocation23_spill] sm:$0xff] }
 0x5a6   : > { %11198 = vst.msk [vmem:[#allocation3 + $0x19] sm:$0xff] %vm389_vm3, %v11166_v21  ;;  %v11169_v26 = vmax.f32 %v11137_v18, 0.0  ;;  %v11136_v51 = vadd.f32 %v24797_v55, %v11097_v11  ;;  %v11100_v25 = vadd.f32 %v19154_v2, %v10706_v1  ;;  %v24869_v21 = vadd.f32 %v27117_v9, %v27116_v50  ;;  %v27118_v18 = vld [vmem:[#allocation8_spill] sm:$0xff]  ;;  %v27133_v9 = vld [vmem:[#allocation97_spill] sm:$0xff] }
 0x5a7   : > { %v10956_v60 = vpop.f32.mrf.mxu0  ;;  %v9923_v11 = vadd.f32 %v27118_v18, %v9529_v8 }
 0x5a8   : > { %11201 = vst.msk [vmem:[#allocation3 + $0x39] sm:$0xff] %vm389_vm3, %v11169_v26  ;;  %v11168_v45 = vmax.f32 %v11136_v51, 0.0  ;;  %v11139_v3 = vadd.f32 %v24797_v55, %v11100_v25  ;;  %v11099_v30 = vadd.f32 %v10956_v60, %v10705_v46  ;;  %v27120_v46 = vld [vmem:[#allocation24_spill] sm:$0xff]  ;;  %v27121_v51 = vld [vmem:[#allocation33_spill] sm:$0xff]  ;;  %v27125_v60 = vld [vmem:[#allocation26_spill] sm:$0xff] }
 0x5a9   : > { %v19157_v39 = vpop.f32.mrf.mxu0  ;;  %v10710_v2 = vadd.f32 %v27120_v46, %v10316_v43  ;;  %v10318_v25 = vadd.f32 %v27121_v51, %v9924_v33  ;;  %v9139_v8 = vadd.f32 %v27125_v60, %v27124_v52  ;;  %v27128_v43 = vld [vmem:[#allocation95_spill] sm:$0xff]  ;;  %v10317_v31 = vadd.f32 %v27129_v28, %v9923_v11  ;;  %v27136_v51 = vld [vmem:[#allocation45_spill] sm:$0xff] }
 0x5aa   : > { %11200 = vst.msk [vmem:[#allocation3 + $0x31] sm:$0xff] %vm389_vm3, %v11168_v45  ;;  %v11171_v19 = vmax.f32 %v11139_v3, 0.0  ;;  %v11138_v29 = vadd.f32 %v24797_v55, %v11099_v30  ;;  %v11102_v1 = vadd.f32 %v19157_v39, %v10708_v24  ;;  %v27127_v24 = vld [vmem:[#allocation43_spill] sm:$0xff]  ;;  %v10709_v3 = vadd.f32 %v27128_v43, %v10315_v10  ;;  %v24886_v30 = vpop.f32.mrf.mxu1 }
 0x5ab   : > { %v10966_v26 = vpop.f32.mrf.mxu0  ;;  %v9926_v45 = vadd.f32 %v27127_v24, %v27126_v53  ;;  %v24901_v10 = vld [vmem:[#allocation3 + $0x21] sm:$0xff]  ;;  %v10712_v18 = vadd.f32 %v27133_v9, %v10318_v25 }
 0x5ac   : > { %11203 = vst.msk [vmem:[#allocation3 + $0x51] sm:$0xff] %vm389_vm3, %v11171_v19  ;;  %v11170_v23 = vmax.f32 %v11138_v29, 0.0  ;;  %v11141_v54 = vadd.f32 %v24797_v55, %v11102_v1  ;;  %v11101_v20 = vadd.f32 %v10966_v26, %v10707_v42  ;;  %v27130_v39 = vld [vmem:[#allocation75_spill] sm:$0xff]  ;;  %v27131_v42 = vld [vmem:[#allocation100_spill] sm:$0xff]  ;;  %v27132_v29 = vld [vmem:[#allocation14_spill] sm:$0xff]  ;;  %v24920_v60 = vpop.f32.mrf.mxu1 }
 0x5ad   : > { %v19160_v34 = vpop.f32.mrf.mxu0  ;;  %v24888_v57 = vld [vmem:[#allocation3 + $0x19] sm:$0xff]  ;;  %v9925_v16 = vadd.f32 %v27130_v39, %v9531_v32  ;;  %v9533_v19 = vadd.f32 %v27131_v42, %v9139_v8  ;;  %v10320_v1 = vadd.f32 %v27132_v29, %v9926_v45  ;;  %v27140_v45 = vld [vmem:[#allocation60_spill] sm:$0xff] }
 0x5ae   : > { %v24890_v48 = vld [vmem:[#allocation3 + $0x18] sm:$0xff]  ;;  %v24892_v47 = vld [vmem:[#allocation3 + $0x20] sm:$0xff]  ;;  %11202 = vst.msk [vmem:[#allocation3 + $0x49] sm:$0xff] %vm389_vm3, %v11170_v23  ;;  %v11173_v56 = vmax.f32 %v11141_v54, 0.0  ;;  %v11140_v33 = vadd.f32 %v24797_v55, %v11101_v20  ;;  %v11104_v36 = vadd.f32 %v19160_v34, %v10710_v2  ;;  %19213 = vmatprep.mubr.msk.f32.mxu1 %vm389_vm3, %v24888_v57  ;;  %v8749_v23 = vadd.f32 %v27136_v51, %v24808_v0  ;;  %v27143_v42 = vld [vmem:[#allocation56_spill] sm:$0xff] }
 0x5af   : > { %19277 = vmatprep.mubr.msk.f32.mxu0 %vm389_vm3, %v24890_v48  ;;  %v10976_v50 = vpop.f32.mrf.mxu0  ;;  %19214 = vmatmul.mubr.msk.f32.gmra.mxu1 %vm389_vm3, %v24901_v10  ;;  %v27134_v32 = vld [vmem:[#allocation77_spill] sm:$0xff]  ;;  %v27137_v54 = vld [vmem:[#allocation18_spill] sm:$0xff]  ;;  %v10319_v52 = vadd.f32 %v27139_v59, %v9925_v16  ;;  %v10711_v43 = vadd.f32 %v27140_v45, %v10317_v31  ;;  %v10714_v31 = vadd.f32 %v24739_v35, %v10320_v1  ;;  %v27146_v1 = vld [vmem:[#allocation87_spill] sm:$0xff] }
 0x5b0   : > { %19278 = vmatmul.mubr.msk.f32.gmra.mxu0 %vm389_vm3, %v24892_v47  ;;  %11205 = vst.msk [vmem:[#allocation3 + $0x69] sm:$0xff] %vm389_vm3, %v11173_v56  ;;  %v11172_v11 = vmax.f32 %v11140_v33, 0.0  ;;  %v11143_v38 = vadd.f32 %v24797_v55, %v11104_v36  ;;  %v11103_v46 = vadd.f32 %v10976_v50, %v10709_v3  ;;  %v27135_v2 = vld [vmem:[#allocation29_spill] sm:$0xff]  ;;  %v27138_v20 = vld [vmem:[#allocation46_spill] sm:$0xff]  ;;  %v27141_v56 = vld [vmem:[#allocation12_spill] sm:$0xff] }
 0x5b1   : > { %v9141_v26 = vadd.f32 %v27135_v2, %v27134_v32  ;;  %v9928_v37 = vadd.f32 %v27138_v20, %v27137_v54  ;;  %v19163_v25 = vpop.f32.mrf.mxu0  ;;  %v24922_v8 = vld [vmem:[#allocation3 + $0x31] sm:$0xff]  ;;  %v24935_v28 = vld [vmem:[#allocation3 + $0x39] sm:$0xff]  ;;  %v9927_v33 = vadd.f32 %v27141_v56, %v9533_v19  ;;  %v10713_v2 = vadd.f32 %v24746_v6, %v10319_v52 }
 0x5b2   : > { %v24924_v53 = vld [vmem:[#allocation3 + $0x30] sm:$0xff]  ;;  %v24926_v24 = vld [vmem:[#allocation3 + $0x38] sm:$0xff]  ;;  %11204 = vst.msk [vmem:[#allocation3 + $0x61] sm:$0xff] %vm389_vm3, %v11172_v11  ;;  %v11175_v3 = vmax.f32 %v11143_v38, 0.0  ;;  %v11142_v0 = vadd.f32 %v24797_v55, %v11103_v46  ;;  %v11106_v34 = vadd.f32 %v19163_v25, %v10712_v18  ;;  %19216 = vmatprep.mubr.msk.f32.mxu1 %vm389_vm3, %v24922_v8  ;;  %v27147_v46 = vld [vmem:[#allocation11_spill] sm:$0xff] }
 0x5b3   : > { %19280 = vmatprep.mubr.msk.f32.mxu0 %vm389_vm3, %v24924_v53  ;;  %v27142_v36 = vld [vmem:[#allocation49_spill] sm:$0xff]  ;;  %v10986_v16 = vpop.f32.mrf.mxu0  ;;  %19217 = vmatmul.mubr.msk.f32.gmra.mxu1 %vm389_vm3, %v24935_v28  ;;  %v10322_v29 = vadd.f32 %v27143_v42, %v9928_v37  ;;  %v27144_v19 = vld [vmem:[#allocation16_spill] sm:$0xff]  ;;  %v9930_v32 = vadd.f32 %v27147_v46, %v27146_v1  ;;  %v27148_v59 = vld [vmem:[#allocation58_spill] sm:$0xff] }
 0x5b4   : > { %v9535_v39 = vadd.f32 %v27142_v36, %v9141_v26  ;;  %19281 = vmatmul.mubr.msk.f32.gmra.mxu0 %vm389_vm3, %v24926_v24  ;;  %11207 = vst.msk [vmem:[#allocation3 + $0x81] sm:$0xff] %vm389_vm3, %v11175_v3  ;;  %v11174_v50 = vmax.f32 %v11142_v0, 0.0  ;;  %v11145_v9 = vadd.f32 %v24797_v55, %v11106_v34  ;;  %v11105_v18 = vadd.f32 %v10986_v16, %v10711_v43  ;;  %v27145_v38 = vld [vmem:[#allocation68_spill] sm:$0xff]  ;;  %v24953_v26 = vpop.f32.mrf.mxu1  ;;  %v27150_v3 = vld [vmem:[#allocation67_spill] sm:$0xff] }
 0x5b5   : > { %v9143_v11 = vadd.f32 %v27144_v19, %v8749_v23  ;;  %v8751_v35 = vadd.f32 %v27145_v38, %v24821_v61  ;;  %v19166_v51 = vpop.f32.mrf.mxu0  ;;  %v24955_v54 = vld [vmem:[#allocation3 + $0x49] sm:$0xff]  ;;  %v10321_v25 = vadd.f32 %v27148_v59, %v9927_v33  ;;  %v24968_v6 = vld [vmem:[#allocation3 + $0x51] sm:$0xff]  ;;  %v10716_v36 = vadd.f32 %v24754_v62, %v10322_v29 }
 0x5b6   : > { %v24957_v20 = vld [vmem:[#allocation3 + $0x48] sm:$0xff]  ;;  %v24959_v37 = vld [vmem:[#allocation3 + $0x50] sm:$0xff]  ;;  %11206 = vst.msk [vmem:[#allocation3 + $0x79] sm:$0xff] %vm389_vm3, %v11174_v50  ;;  %v11177_v23 = vmax.f32 %v11145_v9, 0.0  ;;  %v11144_v61 = vadd.f32 %v24797_v55, %v11105_v18  ;;  %v11108_v45 = vadd.f32 %v19166_v51, %v10714_v31  ;;  %19219 = vmatprep.mubr.msk.f32.mxu1 %vm389_vm3, %v24955_v54  ;;  %v27153_v9 = vld [vmem:[#allocation82_spill] sm:$0xff] }
 0x5b7   : > { %19283 = vmatprep.mubr.msk.f32.mxu0 %vm389_vm3, %v24957_v20  ;;  %v27149_v52 = vld [vmem:[#allocation28_spill] sm:$0xff]  ;;  %v9537_v0 = vadd.f32 %v27150_v3, %v9143_v11  ;;  %v10996_v33 = vpop.f32.mrf.mxu0  ;;  %19220 = vmatmul.mubr.msk.f32.gmra.mxu1 %vm389_vm3, %v24968_v6  ;;  %v8753_v18 = vadd.f32 %v27153_v9, %v24831_v7  ;;  %v27154_v19 = vld [vmem:[#allocation89_spill] sm:$0xff]  ;;  %v27155_v11 = vld [vmem:[#allocation19_spill] sm:$0xff] }
 0x5b8   : > { %v9929_v43 = vadd.f32 %v27149_v52, %v9535_v39  ;;  %v27151_v34 = vld [vmem:[#allocation76_spill] sm:$0xff]  ;;  %19284 = vmatmul.mubr.msk.f32.gmra.mxu0 %vm389_vm3, %v24959_v37  ;;  %11209 = vst.msk [vmem:[#allocation3 + $0x99] sm:$0xff] %vm389_vm3, %v11177_v23  ;;  %v11176_v31 = vmax.f32 %v11144_v61, 0.0  ;;  %v11147_v16 = vadd.f32 %v24797_v55, %v11108_v45  ;;  %v11107_v42 = vadd.f32 %v10996_v33, %v10713_v2  ;;  %v27152_v39 = vld [vmem:[#allocation27_spill] sm:$0xff] }
 0x5b9   : > { %v10324_v56 = vadd.f32 %v27151_v34, %v9930_v32  ;;  %v9145_v50 = vadd.f32 %v27152_v39, %v8751_v35  ;;  %v9932_v38 = vadd.f32 %v27155_v11, %v27154_v19  ;;  %v27156_v1 = vld [vmem:[#allocation15_spill] sm:$0xff]  ;;  %v24986_v32 = vpop.f32.mrf.mxu1  ;;  %v19169_v51 = vpop.f32.mrf.mxu0  ;;  %v24990_v29 = vld [vmem:[#allocation3 + $0x60] sm:$0xff]  ;;  %v10715_v2 = vadd.f32 %v24769_v40, %v10321_v25  ;;  %v27157_v45 = vld [vmem:[#allocation36_spill] sm:$0xff] }
 0x5ba   : > { %v10323_v46 = vadd.f32 %v27156_v1, %v9929_v43  ;;  %v24988_v62 = vld [vmem:[#allocation3 + $0x61] sm:$0xff]  ;;  %11208 = vst.msk [vmem:[#allocation3 + $0x91] sm:$0xff] %vm389_vm3, %v11176_v31  ;;  %v11179_v35 = vmax.f32 %v11147_v16, 0.0  ;;  %v11146_v7 = vadd.f32 %v24797_v55, %v11107_v42  ;;  %v11110_v23 = vadd.f32 %v19169_v51, %v10716_v36  ;;  %19286 = vmatprep.mubr.msk.f32.mxu0 %vm389_vm3, %v24990_v29  ;;  %v25001_v61 = vld [vmem:[#allocation3 + $0x69] sm:$0xff]  ;;  %v27159_v34 = vld [vmem:[#allocation61_spill] sm:$0xff] }
 0x5bb   : > { %v24992_v59 = vld [vmem:[#allocation3 + $0x68] sm:$0xff]  ;;  %19222 = vmatprep.mubr.msk.f32.mxu1 %vm389_vm3, %v24988_v62  ;;  %v9931_v52 = vadd.f32 %v27157_v45, %v9537_v0  ;;  %v27158_v43 = vld [vmem:[#allocation48_spill] sm:$0xff]  ;;  %v10718_v40 = vadd.f32 %v24792_v22, %v10324_v56  ;;  %v11006_v25 = vpop.f32.mrf.mxu0  ;;  %v10326_v33 = vadd.f32 %v27159_v34, %v9932_v38  ;;  %v27160_v0 = vld [vmem:[#allocation5_spill] sm:$0xff]  ;;  %v25019_v11 = vpop.f32.mrf.mxu1 }
 0x5bc   : > { %v9539_v3 = vadd.f32 %v27158_v43, %v9145_v50  ;;  %19223 = vmatmul.mubr.msk.f32.gmra.mxu1 %vm389_vm3, %v25001_v61  ;;  %19287 = vmatmul.mubr.msk.f32.gmra.mxu0 %vm389_vm3, %v24992_v59  ;;  %11211 = vst.msk [vmem:[#allocation3 + $0xb1] sm:$0xff] %vm389_vm3, %v11179_v35  ;;  %v11178_v36 = vmax.f32 %v11146_v7, 0.0  ;;  %v11149_v31 = vadd.f32 %v24797_v55, %v11110_v23  ;;  %v27161_v39 = vld [vmem:[#allocation85_spill] sm:$0xff]  ;;  %v27162_v56 = vld [vmem:[#allocation47_spill] sm:$0xff] }
 0x5bd   : > { %v11109_v16 = vadd.f32 %v11006_v25, %v10715_v2  ;;  %v9147_v42 = vadd.f32 %v27160_v0, %v8753_v18  ;;  %v8755_v22 = vadd.f32 %v27161_v39, %v24845_v49  ;;  %v27163_v50 = vld [vmem:[#allocation35_spill] sm:$0xff]  ;;  %v10717_v19 = vadd.f32 %v24815_v58, %v10323_v46  ;;  %v19172_v1 = vpop.f32.mrf.mxu0  ;;  %v25021_v38 = vld [vmem:[#allocation3 + $0x79] sm:$0xff] }
 0x5be   : > { %v9934_v9 = vadd.f32 %v27163_v50, %v27162_v56  ;;  %v25023_v51 = vld [vmem:[#allocation3 + $0x78] sm:$0xff]  ;;  %v25025_v35 = vld [vmem:[#allocation3 + $0x80] sm:$0xff]  ;;  %11210 = vst.msk [vmem:[#allocation3 + $0xa9] sm:$0xff] %vm389_vm3, %v11178_v36  ;;  %v11181_v18 = vmax.f32 %v11149_v31, 0.0  ;;  %v11112_v23 = vadd.f32 %v19172_v1, %v10718_v40  ;;  %19225 = vmatprep.mubr.msk.f32.mxu1 %vm389_vm3, %v25021_v38  ;;  %v27167_v34 = vld [vmem:[#allocation79_spill] sm:$0xff]  ;;  %v10720_v40 = vadd.f32 %v24838_v44, %v10326_v33 }
 0x5bf   : > { %v27164_v2 = vld [vmem:[#allocation25_spill] sm:$0xff]  ;;  %v11148_v49 = vadd.f32 %v24797_v55, %v11109_v16  ;;  %19289 = vmatprep.mubr.msk.f32.mxu0 %vm389_vm3, %v25023_v51  ;;  %v25034_v58 = vld [vmem:[#allocation3 + $0x81] sm:$0xff]  ;;  %v11016_v0 = vpop.f32.mrf.mxu0  ;;  %v27170_v50 = vld [vmem:[#allocation20_spill] sm:$0xff] }
 0x5c0   : > { %v10325_v7 = vadd.f32 %v27164_v2, %v9931_v52  ;;  %v27165_v46 = vld [vmem:[#allocation101_spill] sm:$0xff]  ;;  %v10328_v52 = vadd.f32 %v27167_v34, %v9934_v9  ;;  %19226 = vmatmul.mubr.msk.f32.gmra.mxu1 %vm389_vm3, %v25034_v58  ;;  %19290 = vmatmul.mubr.msk.f32.gmra.mxu0 %vm389_vm3, %v25025_v35  ;;  %11213 = vst.msk [vmem:[#allocation3 + $0xc9] sm:$0xff] %vm389_vm3, %v11181_v18  ;;  %v27171_v9 = vld [vmem:[#allocation50_spill] sm:$0xff]  ;;  %v27172_v2 = vld [vmem:[#allocation59_spill] sm:$0xff] }
 0x5c1   : > { %v9933_v45 = vadd.f32 %v27165_v46, %v9539_v3  ;;  %v27166_v43 = vld [vmem:[#allocation73_spill] sm:$0xff]  ;;  %v11180_v36 = vmax.f32 %v11148_v49, 0.0  ;;  %v11151_v31 = vadd.f32 %v24797_v55, %v11112_v23  ;;  %v11111_v16 = vadd.f32 %v11016_v0, %v10717_v19  ;;  %v19175_v34 = vpop.f32.mrf.mxu0  ;;  %v25056_v33 = vld [vmem:[#allocation3 + $0x90] sm:$0xff] }
 0x5c2   : > { %v9541_v25 = vadd.f32 %v27166_v43, %v9147_v42  ;;  %v27168_v3 = vld [vmem:[#allocation37_spill] sm:$0xff]  ;;  %v27169_v42 = vld [vmem:[#allocation84_spill] sm:$0xff]  ;;  %v9936_v1 = vadd.f32 %v27171_v9, %v27170_v50  ;;  %v25052_v43 = vpop.f32.mrf.mxu1  ;;  %v10719_v19 = vadd.f32 %v24862_v5, %v10325_v7  ;;  %v11114_v49 = vadd.f32 %v19175_v34, %v10720_v40  ;;  %19292 = vmatprep.mubr.msk.f32.mxu0 %vm389_vm3, %v25056_v33  ;;  %v27176_v40 = vld [vmem:[#allocation62_spill] sm:$0xff] }
 0x5c3   : > { %v9149_v39 = vadd.f32 %v27168_v3, %v8755_v22  ;;  %v8757_v56 = vadd.f32 %v27169_v42, %v24855_v41  ;;  %v10327_v46 = vadd.f32 %v27172_v2, %v9933_v45  ;;  %v25054_v44 = vld [vmem:[#allocation3 + $0x91] sm:$0xff]  ;;  %11212 = vst.msk [vmem:[#allocation3 + $0xc1] sm:$0xff] %vm389_vm3, %v11180_v36  ;;  %v11183_v22 = vmax.f32 %v11151_v31, 0.0  ;;  %v25067_v23 = vld [vmem:[#allocation3 + $0x99] sm:$0xff]  ;;  %v11026_v7 = vpop.f32.mrf.mxu0 }
 0x5c4   : > { %v25058_v18 = vld [vmem:[#allocation3 + $0x98] sm:$0xff]  ;;  %v11150_v41 = vadd.f32 %v24797_v55, %v11111_v16  ;;  %19228 = vmatprep.mubr.msk.f32.mxu1 %vm389_vm3, %v25054_v44  ;;  %27173 = vst [vmem:[#allocation10_spill] sm:$0xff] %v25067_v23  ;;  %v27174_v45 = vld [vmem:[#allocation88_spill] sm:$0xff]  ;;  %v10722_v5 = vadd.f32 %v24886_v30, %v10328_v52  ;;  %v10330_v36 = vadd.f32 %v27176_v40, %v9936_v1  ;;  %v27179_v52 = vld [vmem:[#allocation90_spill] sm:$0xff] }
 0x5c5   : > { %v9935_v0 = vadd.f32 %v27174_v45, %v9541_v25  ;;  %v27175_v3 = vld [vmem:[#allocation53_spill] sm:$0xff]  ;;  %19229 = vmatmul.mubr.msk.f32.gmra.mxu1 %vm389_vm3, %v25067_v23  ;;  %19293 = vmatmul.mubr.msk.f32.gmra.mxu0 %vm389_vm3, %v25058_v18  ;;  %11215 = vst.msk [vmem:[#allocation3 + $0xe1] sm:$0xff] %vm389_vm3, %v11183_v22  ;;  %v11153_v16 = vadd.f32 %v24797_v55, %v11114_v49  ;;  %v27177_v25 = vld [vmem:[#allocation96_spill] sm:$0xff]  ;;  %v19178_v23 = vpop.f32.mrf.mxu0  ;;  %v25089_v22 = vld [vmem:[#allocation3 + $0xa8] sm:$0xff] }
 0x5c6   : > { %v9543_v42 = vadd.f32 %v27175_v3, %v9149_v39  ;;  %v11182_v31 = vmax.f32 %v11150_v41, 0.0  ;;  %v11113_v50 = vadd.f32 %v11026_v7, %v10719_v19  ;;  %v9151_v9 = vadd.f32 %v27177_v25, %v8757_v56  ;;  %v27178_v39 = vld [vmem:[#allocation70_spill] sm:$0xff]  ;;  %v27180_v2 = vld [vmem:[#allocation80_spill] sm:$0xff]  ;;  %v25085_v3 = vpop.f32.mrf.mxu1  ;;  %v27182_v19 = vld [vmem:[#allocation65_spill] sm:$0xff]  ;;  %19295 = vmatprep.mubr.msk.f32.mxu0 %vm389_vm3, %v25089_v22 }
 0x5c7   : > { %v8759_v30 = vadd.f32 %v27178_v39, %v24869_v21  ;;  %v9938_v34 = vadd.f32 %v27180_v2, %v27179_v52  ;;  %v10721_v45 = vadd.f32 %v24920_v60, %v10327_v46  ;;  %v25087_v1 = vld [vmem:[#allocation3 + $0xa9] sm:$0xff]  ;;  %v10329_v49 = vadd.f32 %v27182_v19, %v9935_v0  ;;  %v25100_v60 = vld [vmem:[#allocation3 + $0xb1] sm:$0xff]  ;;  %v27185_v25 = vld [vmem:[#allocation102_spill] sm:$0xff]  ;;  %v11036_v52 = vpop.f32.mrf.mxu0 }
 0x5c8   : > { %27181 = vst [vmem:[#allocation40_spill] sm:$0xff] %v25087_v1  ;;  %v25091_v41 = vld [vmem:[#allocation3 + $0xb0] sm:$0xff]  ;;  %11214 = vst.msk [vmem:[#allocation3 + $0xd9] sm:$0xff] %vm389_vm3, %v11182_v31  ;;  %v11185_v56 = vmax.f32 %v11153_v16, 0.0  ;;  %v11152_v21 = vadd.f32 %v24797_v55, %v11113_v50  ;;  %v11116_v7 = vadd.f32 %v19178_v23, %v10722_v5  ;;  %19231 = vmatprep.mubr.msk.f32.mxu1 %vm389_vm3, %v25087_v1 }
 0x5c9   : > { %27183 = vst [vmem:[#allocation42_spill] sm:$0xff] %v25100_v60  ;;  %v27184_v46 = vld [vmem:[#allocation72_spill] sm:$0xff]  ;;  %v9545_v39 = vadd.f32 %v27185_v25, %v9151_v9  ;;  %v10332_v0 = vadd.f32 %v24741_v4, %v9938_v34  ;;  %19232 = vmatmul.mubr.msk.f32.gmra.mxu1 %vm389_vm3, %v25100_v60  ;;  %19296 = vmatmul.mubr.msk.f32.gmra.mxu0 %vm389_vm3, %v25091_v41  ;;  %v27187_v9 = vld [vmem:[#allocation17_spill] sm:$0xff]  ;;  %v10672_v25 = vpop.f32.mrf.mxu1  ;;  %v19181_v60 = vpop.f32.mrf.mxu0 }
 0x5ca   : > { %v9937_v40 = vadd.f32 %v27184_v46, %v9543_v42  ;;  %v10724_v23 = vadd.f32 %v24953_v26, %v10330_v36  ;;  %11217 = vst.msk [vmem:[#allocation3 + $0xf9] sm:$0xff] %vm389_vm3, %v11185_v56  ;;  %v11184_v5 = vmax.f32 %v11152_v21, 0.0  ;;  %v11155_v31 = vadd.f32 %v24797_v55, %v11116_v7  ;;  %v27186_v42 = vld [vmem:[#allocation64_spill] sm:$0xff]  ;;  %v27189_v34 = vld [vmem:[#allocation21_spill] sm:$0xff]  ;;  %v25118_v1 = vld [vmem:[#allocation3 + $0xc1] sm:$0xff] }
 0x5cb   : > { %v11115_v16 = vadd.f32 %v11036_v52, %v10721_v45  ;;  %v9153_v50 = vadd.f32 %v27186_v42, %v8759_v30  ;;  %v8761_v4 = vadd.f32 %v27187_v9, %v24879_v63  ;;  %v27188_v2 = vld [vmem:[#allocation92_spill] sm:$0xff]  ;;  %v25120_v26 = vld [vmem:[#allocation3 + $0xc0] sm:$0xff]  ;;  %v25122_v36 = vld [vmem:[#allocation3 + $0xc8] sm:$0xff]  ;;  %v10723_v45 = vadd.f32 %v24986_v32, %v10329_v49  ;;  %19234 = vmatprep.mubr.msk.f32.mxu1 %vm389_vm3, %v25118_v1  ;;  %v11046_v49 = vpop.f32.mrf.mxu0 }
 0x5cc   : > { %v9940_v19 = vadd.f32 %v27189_v34, %v27188_v2  ;;  %v10331_v46 = vadd.f32 %v24744_v27, %v9937_v40  ;;  %11216 = vst.msk [vmem:[#allocation3 + $0xf1] sm:$0xff] %vm389_vm3, %v11184_v5  ;;  %v11187_v30 = vmax.f32 %v11155_v31, 0.0  ;;  %v11118_v56 = vadd.f32 %v19181_v60, %v10724_v23  ;;  %19298 = vmatprep.mubr.msk.f32.mxu0 %vm389_vm3, %v25120_v26  ;;  %v25131_v27 = vld [vmem:[#allocation3 + $0xc9] sm:$0xff]  ;;  %v27190_v21 = vld [vmem:[#allocation38_spill] sm:$0xff]  ;;  %v27195_v9 = vld [vmem:[#allocation41_spill] sm:$0xff]  ;;  %v19126_v2 = vpop.f32.mrf.mxu1 }
 0x5cd   : > { %v11154_v63 = vadd.f32 %v24797_v55, %v11115_v16  ;;  %v9939_v7 = vadd.f32 %v27190_v21, %v9545_v39  ;;  %v27191_v40 = vld [vmem:[#allocation52_spill] sm:$0xff]  ;;  %v10726_v32 = vadd.f32 %v25019_v11, %v10332_v0  ;;  %19235 = vmatmul.mubr.msk.f32.gmra.mxu1 %vm389_vm3, %v25131_v27  ;;  %19299 = vmatmul.mubr.msk.f32.gmra.mxu0 %vm389_vm3, %v25122_v36  ;;  %v27192_v60 = vld [vmem:[#allocation31_spill] sm:$0xff]  ;;  %v27193_v39 = vld [vmem:[#allocation86_spill] sm:$0xff]  ;;  %v19184_v34 = vpop.f32.mrf.mxu0 }
 0x5ce   : > { %v9547_v52 = vadd.f32 %v27191_v40, %v9153_v50  ;;  %v10334_v23 = vadd.f32 %v27192_v60, %v9940_v19  ;;  %11219 = vst.msk [vmem:[#allocation3 + $0x111] sm:$0xff] %vm389_vm3, %v11187_v30  ;;  %v11157_v31 = vadd.f32 %v24797_v55, %v11118_v56  ;;  %v11117_v16 = vadd.f32 %v11046_v49, %v10723_v45  ;;  %v27194_v50 = vld [vmem:[#allocation51_spill] sm:$0xff]  ;;  %v27197_v49 = vld [vmem:[#allocation30_spill] sm:$0xff] }
 0x5cf   : > { %v11186_v5 = vmax.f32 %v11154_v63, 0.0  ;;  %v9155_v42 = vadd.f32 %v27193_v39, %v8761_v4  ;;  %v9942_v11 = vadd.f32 %v27195_v9, %v27194_v50  ;;  %v10725_v0 = vadd.f32 %v25052_v43, %v10331_v46  ;;  %v25147_v21 = vld [vmem:[#allocation3 + $0xd9] sm:$0xff]  ;;  %v25160_v43 = vld [vmem:[#allocation3 + $0xe1] sm:$0xff]  ;;  %v27198_v39 = vld [vmem:[#allocation4_spill] sm:$0xff] }
 0x5d0   : > { %v25149_v40 = vld [vmem:[#allocation3 + $0xd8] sm:$0xff]  ;;  %v25151_v19 = vld [vmem:[#allocation3 + $0xe0] sm:$0xff]  ;;  %v10333_v30 = vadd.f32 %v24751_v15, %v9939_v7  ;;  %v11189_v45 = vmax.f32 %v11157_v31, 0.0  ;;  %v11156_v4 = vadd.f32 %v24797_v55, %v11117_v16  ;;  %v11120_v63 = vadd.f32 %v19184_v34, %v10726_v32  ;;  %19237 = vmatprep.mubr.msk.f32.mxu1 %vm389_vm3, %v25147_v21  ;;  %v11056_v7 = vpop.f32.mrf.mxu0 }
 0x5d1   : > { %11218 = vst.msk [vmem:[#allocation3 + $0x109] sm:$0xff] %vm389_vm3, %v11186_v5  ;;  %19301 = vmatprep.mubr.msk.f32.mxu0 %vm389_vm3, %v25149_v40  ;;  %v27196_v46 = vld [vmem:[#allocation74_spill] sm:$0xff]  ;;  %v9549_v60 = vadd.f32 %v27197_v49, %v9155_v42  ;;  %v10336_v15 = vadd.f32 %v27198_v39, %v9942_v11  ;;  %19238 = vmatmul.mubr.msk.f32.gmra.mxu1 %vm389_vm3, %v25160_v43  ;;  %v10682_v11 = vpop.f32.mrf.mxu1 }
 0x5d2   : > { %v9941_v56 = vadd.f32 %v27196_v46, %v9547_v52  ;;  %19302 = vmatmul.mubr.msk.f32.gmra.mxu0 %vm389_vm3, %v25151_v19  ;;  %v10728_v32 = vadd.f32 %v25085_v3, %v10334_v23  ;;  %11221 = vst.msk [vmem:[#allocation3 + $0x129] sm:$0xff] %vm389_vm3, %v11189_v45  ;;  %v11188_v5 = vmax.f32 %v11156_v4, 0.0  ;;  %v11159_v31 = vadd.f32 %v24797_v55, %v11120_v63  ;;  %v27199_v52 = vld [vmem:[#allocation22_spill] sm:$0xff]  ;;  %v19187_v34 = vpop.f32.mrf.mxu0  ;;  %v27201_v4 = vld [vmem:[#allocation81_spill] sm:$0xff] }
 0x5d3   : > { %v11119_v16 = vadd.f32 %v11056_v7, %v10725_v0  ;;  %v27200_v50 = vld [vmem:[#allocation54_spill] sm:$0xff]  ;;  %v25175_v46 = vld [vmem:[#allocation3 + $0xf1] sm:$0xff]  ;;  %v10727_v3 = vadd.f32 %v10672_v25, %v10333_v30  ;;  %v9943_v63 = vadd.f32 %v27201_v4, %v9549_v60  ;;  %v19129_v7 = vpop.f32.mrf.mxu1 }
 0x5d4   : > { %v9944_v42 = vadd.f32 %v27200_v50, %v27199_v52  ;;  %v10335_v9 = vadd.f32 %v24762_v14, %v9941_v56  ;;  %v25177_v49 = vld [vmem:[#allocation3 + $0xf0] sm:$0xff]  ;;  %v25179_v39 = vld [vmem:[#allocation3 + $0xf8] sm:$0xff]  ;;  %11220 = vst.msk [vmem:[#allocation3 + $0x121] sm:$0xff] %vm389_vm3, %v11188_v5  ;;  %v11191_v23 = vmax.f32 %v11159_v31, 0.0  ;;  %v11122_v0 = vadd.f32 %v19187_v34, %v10728_v32  ;;  %19240 = vmatprep.mubr.msk.f32.mxu1 %vm389_vm3, %v25175_v46  ;;  %v11066_v52 = vpop.f32.mrf.mxu0 }
 0x5d5   : > { %v11158_v45 = vadd.f32 %v24797_v55, %v11119_v16  ;;  %19304 = vmatprep.mubr.msk.f32.mxu0 %vm389_vm3, %v25177_v49  ;;  %v25187_v14 = vld [vmem:[#allocation3 + $0xf9] sm:$0xff]  ;;  %v10730_v56 = vadd.f32 %v19126_v2, %v10336_v15  ;;  %v11121_v5 = vadd.f32 %v11066_v52, %v10727_v3  ;;  %v10337_v50 = vadd.f32 %v24777_v13, %v9943_v63 }
 0x5d6   : > { %19241 = vmatmul.mubr.msk.f32.gmra.mxu1 %vm389_vm3, %v25187_v14  ;;  %19305 = vmatmul.mubr.msk.f32.gmra.mxu0 %vm389_vm3, %v25179_v39  ;;  %v10338_v25 = vadd.f32 %v24771_v17, %v9944_v42  ;;  %11223 = vst.msk [vmem:[#allocation3 + $0x141] sm:$0xff] %vm389_vm3, %v11191_v23  ;;  %v11161_v32 = vadd.f32 %v24797_v55, %v11122_v0  ;;  %v19190_v16 = vpop.f32.mrf.mxu0 }
 0x5d7   : > { %v11190_v30 = vmax.f32 %v11158_v45, 0.0  ;;  %v10729_v31 = vadd.f32 %v10682_v11, %v10335_v9  ;;  %v11160_v17 = vadd.f32 %v24797_v55, %v11121_v5  ;;  %v11124_v42 = vadd.f32 %v19190_v16, %v10730_v56  ;;  %v25210_v9 = vld [vmem:[#allocation3 + $0x111] sm:$0xff]  ;;  %v10692_v11 = vpop.f32.mrf.mxu1 }
 0x5d8   : > { %v25197_v60 = vld [vmem:[#allocation3 + $0x109] sm:$0xff]  ;;  %v11193_v34 = vmax.f32 %v11161_v32, 0.0  ;;  %v11076_v3 = vpop.f32.mrf.mxu0  ;;  %v10732_v13 = vadd.f32 %v19129_v7, %v10338_v25 }
 0x5d9   : > { %v25199_v2 = vld [vmem:[#allocation3 + $0x108] sm:$0xff]  ;;  %v25201_v15 = vld [vmem:[#allocation3 + $0x110] sm:$0xff]  ;;  %11222 = vst.msk [vmem:[#allocation3 + $0x139] sm:$0xff] %vm389_vm3, %v11190_v30  ;;  %19243 = vmatprep.mubr.msk.f32.mxu1 %vm389_vm3, %v25197_v60  ;;  %v11192_v23 = vmax.f32 %v11160_v17, 0.0  ;;  %v11163_v45 = vadd.f32 %v24797_v55, %v11124_v42  ;;  %v11123_v0 = vadd.f32 %v11076_v3, %v10729_v31  ;;  %v10731_v30 = vadd.f32 %v10692_v11, %v10337_v50 }
 0x5da   : > { %19307 = vmatprep.mubr.msk.f32.mxu0 %vm389_vm3, %v25199_v2  ;;  %19244 = vmatmul.mubr.msk.f32.gmra.mxu1 %vm389_vm3, %v25210_v9  ;;  %11225 = vst.msk [vmem:[#allocation3 + $0x159] sm:$0xff] %vm389_vm3, %v11193_v34  ;;  %v19193_v4 = vpop.f32.mrf.mxu0  ;;  %v25230_v25 = vld [vmem:[#allocation3 + $0x129] sm:$0xff] }
 0x5db   : > { %19308 = vmatmul.mubr.msk.f32.gmra.mxu0 %vm389_vm3, %v25201_v15  ;;  %v25218_v63 = vld [vmem:[#allocation3 + $0x121] sm:$0xff]  ;;  %11224 = vst.msk [vmem:[#allocation3 + $0x151] sm:$0xff] %vm389_vm3, %v11192_v23  ;;  %v11195_v32 = vmax.f32 %v11163_v45, 0.0  ;;  %v11162_v5 = vadd.f32 %v24797_v55, %v11123_v0  ;;  %v11126_v7 = vadd.f32 %v19193_v4, %v10732_v13 }
 0x5dc   : > { %v25220_v56 = vld [vmem:[#allocation3 + $0x120] sm:$0xff]  ;;  %v25222_v52 = vld [vmem:[#allocation3 + $0x128] sm:$0xff]  ;;  %19246 = vmatprep.mubr.msk.f32.mxu1 %vm389_vm3, %v25218_v63  ;;  %v11086_v31 = vpop.f32.mrf.mxu0 }
 0x5dd   : > { %19310 = vmatprep.mubr.msk.f32.mxu0 %vm389_vm3, %v25220_v56  ;;  %11227 = vst.msk [vmem:[#allocation3 + $0x171] sm:$0xff] %vm389_vm3, %v11195_v32  ;;  %v11194_v16 = vmax.f32 %v11162_v5, 0.0  ;;  %v11165_v50 = vadd.f32 %v24797_v55, %v11126_v7  ;;  %v11125_v34 = vadd.f32 %v11086_v31, %v10731_v30  ;;  %v25250_v23 = vld [vmem:[#allocation3 + $0x141] sm:$0xff] }
 0x5de   : > { %19247 = vmatmul.mubr.msk.f32.gmra.mxu1 %vm389_vm3, %v25230_v25  ;;  %v11953_v32 = vld [vmem:[#allocation3 + $0x2] sm:$0xff] }
 0x5df   : > { %19311 = vmatmul.mubr.msk.f32.gmra.mxu0 %vm389_vm3, %v25222_v52  ;;  %11226 = vst.msk [vmem:[#allocation3 + $0x169] sm:$0xff] %vm389_vm3, %v11194_v16  ;;  %v11197_v3 = vmax.f32 %v11165_v50, 0.0  ;;  %v11164_v13 = vadd.f32 %v24797_v55, %v11125_v34  ;;  %v11954_v50 = vld [vmem:[#allocation3 + $0xa] sm:$0xff]  ;;  %v16016_v34 = vld [vmem:[%s26484_s7 + $0x130] sm:$0xff] }
 0x5e0   : > { %v25238_v17 = vld [vmem:[#allocation3 + $0x139] sm:$0xff] }
 0x5e1   : > { %v25240_v42 = vld [vmem:[#allocation3 + $0x138] sm:$0xff]  ;;  %v25242_v11 = vld [vmem:[#allocation3 + $0x140] sm:$0xff]  ;;  %19249 = vmatprep.mubr.msk.f32.mxu1 %vm389_vm3, %v25238_v17  ;;  %11229 = vst.msk [vmem:[#allocation3 + $0x189] sm:$0xff] %vm389_vm3, %v11197_v3  ;;  %v11196_v45 = vmax.f32 %v11164_v13, 0.0  ;;  %v27202_v13 = vld [vmem:[#allocation91_spill] sm:$0xff] }
 0x5e2   : > { %19313 = vmatprep.mubr.msk.f32.mxu0 %vm389_vm3, %v25240_v42  ;;  %19250 = vmatmul.mubr.msk.f32.gmra.mxu1 %vm389_vm3, %v25250_v23  ;;  %v25257_v0 = vld [vmem:[#allocation3 + $0x151] sm:$0xff]  ;;  %v25268_v30 = vld [vmem:[#allocation3 + $0x159] sm:$0xff] }
 0x5e3   : > { %19314 = vmatmul.mubr.msk.f32.gmra.mxu0 %vm389_vm3, %v25242_v11  ;;  %v25259_v55 = vld [vmem:[#allocation3 + $0x150] sm:$0xff]  ;;  %v25261_v4 = vld [vmem:[#allocation3 + $0x158] sm:$0xff]  ;;  %11228 = vst.msk [vmem:[#allocation3 + $0x181] sm:$0xff] %vm389_vm3, %v11196_v45  ;;  %19252 = vmatprep.mubr.msk.f32.mxu1 %vm389_vm3, %v25257_v0 }
 0x5e4   : > { %19316 = vmatprep.mubr.msk.f32.mxu0 %vm389_vm3, %v25259_v55  ;;  %v25284_v16 = vld [vmem:[#allocation3 + $0x171] sm:$0xff]  ;;  %v25299_v3 = vld [vmem:[#allocation3 + $0x1a] sm:$0xff] }
 0x5e5   : > { %v16015_v45 = vld [vmem:[%s26484_s7 + $0x128] sm:$0xff] }
 0x5e6   : > { %19253 = vmatmul.mubr.msk.f32.gmra.mxu1 %vm389_vm3, %v25268_v30  ;;  %v25274_v5 = vld [vmem:[#allocation3 + $0x169] sm:$0xff] }
 0x5e7   : > { %19317 = vmatmul.mubr.msk.f32.gmra.mxu0 %vm389_vm3, %v25261_v4  ;;  %v25276_v7 = vld [vmem:[#allocation3 + $0x168] sm:$0xff]  ;;  %v25278_v31 = vld [vmem:[#allocation3 + $0x170] sm:$0xff]  ;;  %19255 = vmatprep.mubr.msk.f32.mxu1 %vm389_vm3, %v25274_v5 }
 0x5e8   : > { %19319 = vmatprep.mubr.msk.f32.mxu0 %vm389_vm3, %v25276_v7 }
 0x5ea   : > { %19256 = vmatmul.mubr.msk.f32.gmra.mxu1 %vm389_vm3, %v25284_v16 }
 0x5eb   : > { %19320 = vmatmul.mubr.msk.f32.gmra.mxu0 %vm389_vm3, %v25278_v31  ;;  %19338 = vmatprep.mubr.msk.f32.mxu1 %vm389_vm3, %v11953_v32 }
 0x5ec   : > { %19402 = vmatprep.mubr.msk.f32.mxu0 %vm389_vm3, %v24890_v48  ;;  %v25306_v48 = vld [vmem:[#allocation3 + $0x22] sm:$0xff] }
 0x5ee   : > { %19339 = vmatmul.mubr.msk.f32.vlgmr.msra.gmra.mxu1 %vm389_vm3, %v11954_v50  ;;  %v25325_v50 = vld [vmem:[#allocation3 + $0x3a] sm:$0xff] }
 0x5ef   : > { %19403 = vmatmul.mubr.msk.f32.vlgmr.msra.gmra.mxu0 %vm389_vm3, %v24892_v47  ;;  %19451 = vmatpush3.msra.mxu1 %v27202_v13  ;;  %v16056_v47 = vld [vmem:[%s26484_s7 + $0x170] sm:$0xff]  ;;  %v19276_v32 = vpop.f32.mrf.mxu0 }
 0x5f0   : > { %19341 = vmatprep.mubr.msk.f32.mxu1 %vm389_vm3, %v25299_v3  ;;  %19405 = vmatprep.mubr.msk.f32.mxu0 %vm389_vm3, %v24924_v53  ;;  %v25319_v53 = vld [vmem:[#allocation3 + $0x32] sm:$0xff] }
 0x5f1   : > { %19452 = vmatprep.subr.mxu1 %v16016_v34  ;;  %19515 = vmatpush3.msra.mxu0 %v24782_v12  ;;  %v19212_v12 = vpop.f32.mrf.mxu1 }
 0x5f2   : > { %19453 = vmatpush3.msra.mxu1 %v16016_v34  ;;  %19516 = vmatprep.subr.mxu0 %v16056_v47  ;;  %v16014_v34 = vld [vmem:[%s26484_s7 + $0x120] sm:$0xff]  ;;  %v25333_v13 = vadd.f32 %v19276_v32, %v19212_v12  ;;  %v16012_v32 = vld [vmem:[%s26484_s7 + $0x110] sm:$0xff] }
 0x5f3   : > { %19342 = vmatmul.mubr.msk.f32.gmra.mxu1 %vm389_vm3, %v25306_v48  ;;  %19406 = vmatmul.mubr.msk.f32.gmra.mxu0 %vm389_vm3, %v24926_v24  ;;  %v16055_v24 = vld [vmem:[%s26484_s7 + $0x168] sm:$0xff]  ;;  %v25363_v12 = vld [vmem:[#allocation3 + $0x6a] sm:$0xff] }
 0x5f4   : > { %19344 = vmatprep.mubr.msk.f32.mxu1 %vm389_vm3, %v25319_v53  ;;  %19408 = vmatprep.mubr.msk.f32.mxu0 %vm389_vm3, %v24957_v20  ;;  %v25339_v20 = vld [vmem:[#allocation3 + $0x4a] sm:$0xff] }
 0x5f5   : > { %19454 = vmatprep.subr.mxu1 %v16015_v45  ;;  %19517 = vmatpush3.msra.mxu0 %v16056_v47  ;;  %v16013_v47 = vld [vmem:[%s26484_s7 + $0x118] sm:$0xff] }
 0x5f6   : > { %19455 = vmatpush3.msra.mxu1 %v16015_v45  ;;  %19518 = vmatprep.subr.mxu0 %v16055_v24  ;;  %v25345_v45 = vld [vmem:[#allocation3 + $0x52] sm:$0xff] }
 0x5f7   : > { %19345 = vmatmul.mubr.msk.f32.gmra.mxu1 %vm389_vm3, %v25325_v50  ;;  %19409 = vmatmul.mubr.msk.f32.gmra.mxu0 %vm389_vm3, %v24959_v37  ;;  %v16054_v37 = vld [vmem:[%s26484_s7 + $0x160] sm:$0xff] }
 0x5f8   : > { %19347 = vmatprep.mubr.msk.f32.mxu1 %vm389_vm3, %v25339_v20  ;;  %19411 = vmatprep.mubr.msk.f32.mxu0 %vm389_vm3, %v24990_v29  ;;  %v25357_v29 = vld [vmem:[#allocation3 + $0x62] sm:$0xff] }
 0x5f9   : > { %19456 = vmatprep.subr.mxu1 %v16014_v34  ;;  %19519 = vmatpush3.msra.mxu0 %v16055_v24  ;;  %v16011_v24 = vld [vmem:[%s26484_s7 + $0x108] sm:$0xff] }
 0x5fa   : > { %19457 = vmatpush3.msra.mxu1 %v16014_v34  ;;  %19520 = vmatprep.subr.mxu0 %v16054_v37  ;;  %v25381_v34 = vld [vmem:[#allocation3 + $0x82] sm:$0xff] }
 0x5fb   : > { %19348 = vmatmul.mubr.msk.f32.gmra.mxu1 %vm389_vm3, %v25345_v45  ;;  %19412 = vmatmul.mubr.msk.f32.gmra.mxu0 %vm389_vm3, %v24992_v59  ;;  %v16053_v59 = vld [vmem:[%s26484_s7 + $0x158] sm:$0xff] }
 0x5fc   : > { %19350 = vmatprep.mubr.msk.f32.mxu1 %vm389_vm3, %v25357_v29  ;;  %19414 = vmatprep.mubr.msk.f32.mxu0 %vm389_vm3, %v25023_v51  ;;  %v25375_v51 = vld [vmem:[#allocation3 + $0x7a] sm:$0xff] }
 0x5fd   : > { %19458 = vmatprep.subr.mxu1 %v16013_v47  ;;  %19521 = vmatpush3.msra.mxu0 %v16054_v37  ;;  %v16010_v37 = vld [vmem:[%s26484_s7 + $0x100] sm:$0xff] }
 0x5fe   : > { %19459 = vmatpush3.msra.mxu1 %v16013_v47  ;;  %19522 = vmatprep.subr.mxu0 %v16053_v59  ;;  %v25399_v47 = vld [vmem:[#allocation3 + $0x9a] sm:$0xff] }
 0x5ff   : > { %19351 = vmatmul.mubr.msk.f32.gmra.mxu1 %vm389_vm3, %v25363_v12  ;;  %19415 = vmatmul.mubr.msk.f32.gmra.mxu0 %vm389_vm3, %v25025_v35  ;;  %v16052_v35 = vld [vmem:[%s26484_s7 + $0x150] sm:$0xff] }
 0x600   : > { %19353 = vmatprep.mubr.msk.f32.mxu1 %vm389_vm3, %v25375_v51  ;;  %19417 = vmatprep.mubr.msk.f32.mxu0 %vm389_vm3, %v25056_v33  ;;  %v25393_v33 = vld [vmem:[#allocation3 + $0x92] sm:$0xff] }
 0x601   : > { %19460 = vmatprep.subr.mxu1 %v16012_v32  ;;  %19523 = vmatpush3.msra.mxu0 %v16053_v59  ;;  %v16050_v59 = vld [vmem:[%s26484_s7 + $0x140] sm:$0xff] }
 0x602   : > { %19461 = vmatpush3.msra.mxu1 %v16012_v32  ;;  %19524 = vmatprep.subr.mxu0 %v16052_v35  ;;  %v25417_v32 = vld [vmem:[#allocation3 + $0xb2] sm:$0xff] }
 0x603   : > { %19354 = vmatmul.mubr.msk.f32.gmra.mxu1 %vm389_vm3, %v25381_v34  ;;  %19418 = vmatmul.mubr.msk.f32.gmra.mxu0 %vm389_vm3, %v25058_v18  ;;  %v16051_v18 = vld [vmem:[%s26484_s7 + $0x148] sm:$0xff] }
 0x604   : > { %19356 = vmatprep.mubr.msk.f32.mxu1 %vm389_vm3, %v25393_v33  ;;  %19420 = vmatprep.mubr.msk.f32.mxu0 %vm389_vm3, %v25089_v22  ;;  %v25411_v22 = vld [vmem:[#allocation3 + $0xaa] sm:$0xff] }
 0x605   : > { %19462 = vmatprep.subr.mxu1 %v16011_v24  ;;  %19525 = vmatpush3.msra.mxu0 %v16052_v35  ;;  %v16137_v35 = vld [vmem:[%s26484_s7 + $0x1f8] sm:$0xff] }
 0x606   : > { %19463 = vmatpush3.msra.mxu1 %v16011_v24  ;;  %19526 = vmatprep.subr.mxu0 %v16051_v18  ;;  %v25438_v24 = vld [vmem:[#allocation3 + $0xca] sm:$0xff] }
 0x607   : > { %19357 = vmatmul.mubr.msk.f32.gmra.mxu1 %vm389_vm3, %v25399_v47  ;;  %19421 = vmatmul.mubr.msk.f32.gmra.mxu0 %vm389_vm3, %v25091_v41  ;;  %v25425_v41 = vld [vmem:[%s26484_s7 + $0x1b8] sm:$0xff] }
 0x608   : > { %19359 = vmatprep.mubr.msk.f32.mxu1 %vm389_vm3, %v25411_v22  ;;  %19423 = vmatprep.mubr.msk.f32.mxu0 %vm389_vm3, %v25120_v26  ;;  %v25431_v26 = vld [vmem:[#allocation3 + $0xc2] sm:$0xff] }
 0x609   : > { %19464 = vmatprep.subr.mxu1 %v16010_v37  ;;  %19527 = vmatpush3.msra.mxu0 %v16051_v18  ;;  %v25521_v18 = vld [vmem:[#allocation3 + $0x180] sm:$0xff] }
 0x60a   : > { %19465 = vmatpush3.msra.mxu1 %v16010_v37  ;;  %19528 = vmatprep.subr.mxu0 %v16050_v59  ;;  %v25459_v37 = vld [vmem:[#allocation3 + $0xf2] sm:$0xff] }
 0x60b   : > { %19360 = vmatmul.mubr.msk.f32.gmra.mxu1 %vm389_vm3, %v25417_v32  ;;  %19424 = vmatmul.mubr.msk.f32.gmra.mxu0 %vm389_vm3, %v25122_v36  ;;  %v25447_v36 = vld [vmem:[#allocation3 + $0xda] sm:$0xff] }
 0x60c   : > { %19362 = vmatprep.mubr.msk.f32.mxu1 %vm389_vm3, %v25431_v26  ;;  %19426 = vmatprep.mubr.msk.f32.mxu0 %vm389_vm3, %v25149_v40  ;;  %v25453_v40 = vld [vmem:[#allocation3 + $0xe2] sm:$0xff] }
 0x60d   : > { %19578 = vmatprep.subr.mxu1 %v25425_v41  ;;  %19529 = vmatpush3.msra.mxu0 %v16050_v59  ;;  %v13534_v59 = vld [vmem:[#allocation3 + $0x68] sm:$0xff] }
 0x60e   : > { %19642 = vmatprep.subr.mxu0 %v16137_v35 }
 0x60f   : > { %19363 = vmatmul.mubr.msk.f32.gmra.mxu1 %vm389_vm3, %v25438_v24  ;;  %19427 = vmatmul.mubr.msk.f32.gmra.mxu0 %vm389_vm3, %v25151_v19  ;;  %v25465_v19 = vld [vmem:[#allocation3 + $0xfa] sm:$0xff] }
 0x610   : > { %19365 = vmatprep.mubr.msk.f32.mxu1 %vm389_vm3, %v25447_v36  ;;  %19429 = vmatprep.mubr.msk.f32.mxu0 %vm389_vm3, %v25177_v49  ;;  %v25471_v49 = vld [vmem:[#allocation3 + $0x10a] sm:$0xff] }
 0x613   : > { %19366 = vmatmul.mubr.msk.f32.gmra.mxu1 %vm389_vm3, %v25453_v40  ;;  %19430 = vmatmul.mubr.msk.f32.gmra.mxu0 %vm389_vm3, %v25179_v39  ;;  %v25477_v39 = vld [vmem:[#allocation3 + $0x112] sm:$0xff] }
 0x614   : > { %19368 = vmatprep.mubr.msk.f32.mxu1 %vm389_vm3, %v25459_v37  ;;  %19432 = vmatprep.mubr.msk.f32.mxu0 %vm389_vm3, %v25199_v2  ;;  %v25483_v2 = vld [vmem:[#allocation3 + $0x122] sm:$0xff] }
 0x617   : > { %19369 = vmatmul.mubr.msk.f32.gmra.mxu1 %vm389_vm3, %v25465_v19  ;;  %19433 = vmatmul.mubr.msk.f32.gmra.mxu0 %vm389_vm3, %v25201_v15  ;;  %v25489_v15 = vld [vmem:[#allocation3 + $0x12a] sm:$0xff] }
 0x618   : > { %19371 = vmatprep.mubr.msk.f32.mxu1 %vm389_vm3, %v25471_v49  ;;  %19435 = vmatprep.mubr.msk.f32.mxu0 %vm389_vm3, %v25220_v56  ;;  %v25495_v56 = vld [vmem:[#allocation3 + $0x13a] sm:$0xff] }
 0x61b   : > { %19372 = vmatmul.mubr.msk.f32.gmra.mxu1 %vm389_vm3, %v25477_v39  ;;  %19436 = vmatmul.mubr.msk.f32.gmra.mxu0 %vm389_vm3, %v25222_v52  ;;  %v25501_v52 = vld [vmem:[#allocation3 + $0x142] sm:$0xff] }
 0x61c   : > { %19374 = vmatprep.mubr.msk.f32.mxu1 %vm389_vm3, %v25483_v2  ;;  %19438 = vmatprep.mubr.msk.f32.mxu0 %vm389_vm3, %v25240_v42  ;;  %v25507_v42 = vld [vmem:[#allocation3 + $0x152] sm:$0xff] }
 0x61f   : > { %19375 = vmatmul.mubr.msk.f32.gmra.mxu1 %vm389_vm3, %v25489_v15  ;;  %19439 = vmatmul.mubr.msk.f32.gmra.mxu0 %vm389_vm3, %v25242_v11  ;;  %v25513_v11 = vld [vmem:[#allocation3 + $0x15a] sm:$0xff] }
 0x620   : > { %19377 = vmatprep.mubr.msk.f32.mxu1 %vm389_vm3, %v25495_v56  ;;  %19441 = vmatprep.mubr.msk.f32.mxu0 %vm389_vm3, %v25259_v55  ;;  %v25519_v55 = vld [vmem:[#allocation3 + $0x16a] sm:$0xff] }
 0x623   : > { %19378 = vmatmul.mubr.msk.f32.gmra.mxu1 %vm389_vm3, %v25501_v52  ;;  %19442 = vmatmul.mubr.msk.f32.gmra.mxu0 %vm389_vm3, %v25261_v4  ;;  %v25527_v4 = vld [vmem:[#allocation3 + $0x172] sm:$0xff] }
 0x624   : > { %19380 = vmatprep.mubr.msk.f32.mxu1 %vm389_vm3, %v25507_v42  ;;  %19444 = vmatprep.mubr.msk.f32.mxu0 %vm389_vm3, %v25276_v7  ;;  %v25529_v7 = vld [vmem:[#allocation3 + $0x188] sm:$0xff] }
 0x627   : > { %19381 = vmatmul.mubr.msk.f32.gmra.mxu1 %vm389_vm3, %v25513_v11  ;;  %19445 = vmatmul.mubr.msk.f32.gmra.mxu0 %vm389_vm3, %v25278_v31  ;;  %v16096_v31 = vld [vmem:[%s26484_s7 + $0x1b0] sm:$0xff] }
 0x628   : > { %19383 = vmatprep.mubr.msk.f32.mxu1 %vm389_vm3, %v25519_v55  ;;  %19447 = vmatprep.mubr.msk.f32.mxu0 %vm389_vm3, %v25521_v18 }
 0x62b   : > { %19384 = vmatmul.mubr.msk.f32.gmra.mxu1 %vm389_vm3, %v25527_v4  ;;  %19448 = vmatmul.mubr.msk.f32.gmra.mxu0 %vm389_vm3, %v25529_v7 }
 0x62c   : > { %19466 = vmatprep.mubr.msk.f32.mxu1 %vm389_vm3, %v24888_v57  ;;  %19530 = vmatprep.mubr.msk.f32.mxu0 %vm389_vm3, %v25299_v3  ;;  %v16095_v57 = vld [vmem:[%s26484_s7 + $0x1a8] sm:$0xff]  ;;  %v27203_v3 = vld [vmem:[#allocation10_spill] sm:$0xff] }
 0x62f   : > { %19467 = vmatmul.mubr.msk.f32.vlgmr.msra.gmra.mxu1 %vm389_vm3, %v24901_v10  ;;  %19531 = vmatmul.mubr.msk.f32.vlgmr.msra.gmra.mxu0 %vm389_vm3, %v25306_v48  ;;  %v16136_v10 = vld [vmem:[%s26484_s7 + $0x1f0] sm:$0xff]  ;;  %v16090_v48 = vld [vmem:[%s26484_s7 + $0x180] sm:$0xff] }
 0x630   : > { %19579 = vmatpush3.msra.mxu1 %v25425_v41  ;;  %19469 = vmatprep.mubr.msk.f32.mxu1 %vm389_vm3, %v24922_v8  ;;  %v16094_v8 = vld [vmem:[%s26484_s7 + $0x1a0] sm:$0xff] }
 0x631   : > { %19533 = vmatprep.mubr.msk.f32.mxu0 %vm389_vm3, %v25319_v53  ;;  %19580 = vmatprep.subr.mxu1 %v16096_v31  ;;  %v16131_v53 = vld [vmem:[%s26484_s7 + $0x1c8] sm:$0xff]  ;;  %v13928_v41 = vld [vmem:[#allocation3 + $0x69] sm:$0xff] }
 0x632   : > { %19581 = vmatpush3.msra.mxu1 %v16096_v31  ;;  %19643 = vmatpush3.msra.mxu0 %v16137_v35 }
 0x633   : > { %19470 = vmatmul.mubr.msk.f32.gmra.mxu1 %vm389_vm3, %v24935_v28  ;;  %19534 = vmatmul.mubr.msk.f32.gmra.mxu0 %vm389_vm3, %v25325_v50  ;;  %v16135_v28 = vld [vmem:[%s26484_s7 + $0x1e8] sm:$0xff]  ;;  %v27205_v50 = vld [vmem:[#allocation42_spill] sm:$0xff] }
 0x634   : > { %19472 = vmatprep.mubr.msk.f32.mxu1 %vm389_vm3, %v24955_v54  ;;  %19536 = vmatprep.mubr.msk.f32.mxu0 %vm389_vm3, %v25339_v20  ;;  %v16093_v54 = vld [vmem:[%s26484_s7 + $0x198] sm:$0xff]  ;;  %v16130_v20 = vld [vmem:[%s26484_s7 + $0x1c0] sm:$0xff] }
 0x635   : > { %19582 = vmatprep.subr.mxu1 %v16095_v57  ;;  %19644 = vmatprep.subr.mxu0 %v16136_v10 }
 0x636   : > { %19583 = vmatpush3.msra.mxu1 %v16095_v57  ;;  %19645 = vmatpush3.msra.mxu0 %v16136_v10 }
 0x637   : > { %19473 = vmatmul.mubr.msk.f32.gmra.mxu1 %vm389_vm3, %v24968_v6  ;;  %19537 = vmatmul.mubr.msk.f32.gmra.mxu0 %vm389_vm3, %v25345_v45  ;;  %v16134_v6 = vld [vmem:[%s26484_s7 + $0x1e0] sm:$0xff]  ;;  %v16177_v45 = vld [vmem:[%s26484_s7 + $0x238] sm:$0xff] }
 0x638   : > { %19475 = vmatprep.mubr.msk.f32.mxu1 %vm389_vm3, %v24988_v62  ;;  %19539 = vmatprep.mubr.msk.f32.mxu0 %vm389_vm3, %v25357_v29  ;;  %v16092_v62 = vld [vmem:[%s26484_s7 + $0x190] sm:$0xff] }
 0x639   : > { %19584 = vmatprep.subr.mxu1 %v16094_v8  ;;  %19646 = vmatprep.subr.mxu0 %v16135_v28 }
 0x63a   : > { %19585 = vmatpush3.msra.mxu1 %v16094_v8  ;;  %19647 = vmatpush3.msra.mxu0 %v16135_v28  ;;  %v13538_v8 = vld [vmem:[#allocation3 + $0x98] sm:$0xff] }
 0x63b   : > { %19476 = vmatmul.mubr.msk.f32.gmra.mxu1 %vm389_vm3, %v25001_v61  ;;  %19540 = vmatmul.mubr.msk.f32.gmra.mxu0 %vm389_vm3, %v25363_v12  ;;  %v16133_v61 = vld [vmem:[%s26484_s7 + $0x1d8] sm:$0xff]  ;;  %v13932_v28 = vld [vmem:[#allocation3 + $0x99] sm:$0xff] }
 0x63c   : > { %19478 = vmatprep.mubr.msk.f32.mxu1 %vm389_vm3, %v25021_v38  ;;  %19542 = vmatprep.mubr.msk.f32.mxu0 %vm389_vm3, %v25375_v51  ;;  %v16091_v38 = vld [vmem:[%s26484_s7 + $0x188] sm:$0xff]  ;;  %v13533_v51 = vld [vmem:[#allocation3 + $0x60] sm:$0xff] }
 0x63d   : > { %19586 = vmatprep.subr.mxu1 %v16093_v54  ;;  %19648 = vmatprep.subr.mxu0 %v16134_v6 }
 0x63e   : > { %19587 = vmatpush3.msra.mxu1 %v16093_v54  ;;  %19649 = vmatpush3.msra.mxu0 %v16134_v6  ;;  %v16172_v54 = vld [vmem:[%s26484_s7 + $0x210] sm:$0xff] }
 0x63f   : > { %19479 = vmatmul.mubr.msk.f32.gmra.mxu1 %vm389_vm3, %v25034_v58  ;;  %19543 = vmatmul.mubr.msk.f32.gmra.mxu0 %vm389_vm3, %v25381_v34  ;;  %v16132_v58 = vld [vmem:[%s26484_s7 + $0x1d0] sm:$0xff] }
 0x640   : > { %19481 = vmatprep.mubr.msk.f32.mxu1 %vm389_vm3, %v25054_v44  ;;  %19545 = vmatprep.mubr.msk.f32.mxu0 %vm389_vm3, %v25393_v33  ;;  %v27204_v44 = vld [vmem:[#allocation40_spill] sm:$0xff]  ;;  %v13927_v34 = vld [vmem:[#allocation3 + $0x61] sm:$0xff] }
 0x641   : > { %19588 = vmatprep.subr.mxu1 %v16092_v62  ;;  %19650 = vmatprep.subr.mxu0 %v16133_v61 }
 0x642   : > { %19589 = vmatpush3.msra.mxu1 %v16092_v62  ;;  %19651 = vmatpush3.msra.mxu0 %v16133_v61  ;;  %v13539_v61 = vld [vmem:[#allocation3 + $0xa8] sm:$0xff] }
 0x643   : > { %19482 = vmatmul.mubr.msk.f32.gmra.mxu1 %vm389_vm3, %v27203_v3  ;;  %19546 = vmatmul.mubr.msk.f32.gmra.mxu0 %vm389_vm3, %v25399_v47 }
 0x644   : > { %19484 = vmatprep.mubr.msk.f32.mxu1 %vm389_vm3, %v27204_v44  ;;  %19548 = vmatprep.mubr.msk.f32.mxu0 %vm389_vm3, %v25411_v22 }
 0x645   : > { %19590 = vmatprep.subr.mxu1 %v16091_v38  ;;  %19652 = vmatprep.subr.mxu0 %v16132_v58 }
 0x646   : > { %19591 = vmatpush3.msra.mxu1 %v16091_v38  ;;  %19653 = vmatpush3.msra.mxu0 %v16132_v58  ;;  %v13933_v38 = vld [vmem:[#allocation3 + $0xa9] sm:$0xff] }
 0x647   : > { %19485 = vmatmul.mubr.msk.f32.gmra.mxu1 %vm389_vm3, %v27205_v50  ;;  %19549 = vmatmul.mubr.msk.f32.gmra.mxu0 %vm389_vm3, %v25417_v32  ;;  %v13934_v50 = vld [vmem:[#allocation3 + $0xb1] sm:$0xff] }
 0x648   : > { %19487 = vmatprep.mubr.msk.f32.mxu1 %vm389_vm3, %v25118_v1  ;;  %19551 = vmatprep.mubr.msk.f32.mxu0 %vm389_vm3, %v25431_v26  ;;  %v25701_v1 = vld [vmem:[#allocation3 + $0x181] sm:$0xff]  ;;  %v16174_v26 = vld [vmem:[%s26484_s7 + $0x220] sm:$0xff] }
 0x649   : > { %19592 = vmatprep.subr.mxu1 %v16090_v48  ;;  %19654 = vmatprep.subr.mxu0 %v16131_v53 }
 0x64a   : > { %19593 = vmatpush3.msra.mxu1 %v16090_v48  ;;  %19655 = vmatpush3.msra.mxu0 %v16131_v53  ;;  %v13540_v53 = vld [vmem:[#allocation3 + $0xb0] sm:$0xff] }
 0x64b   : > { %19488 = vmatmul.mubr.msk.f32.gmra.mxu1 %vm389_vm3, %v25131_v27  ;;  %19552 = vmatmul.mubr.msk.f32.gmra.mxu0 %vm389_vm3, %v25438_v24  ;;  %v25703_v27 = vld [vmem:[#allocation3 + $0x182] sm:$0xff] }
 0x64c   : > { %19490 = vmatprep.mubr.msk.f32.mxu1 %vm389_vm3, %v25147_v21  ;;  %19554 = vmatprep.mubr.msk.f32.mxu0 %vm389_vm3, %v25447_v36  ;;  %v25709_v21 = vld [vmem:[#allocation3 + $0x189] sm:$0xff]  ;;  %v13535_v36 = vld [vmem:[#allocation3 + $0x78] sm:$0xff] }
 0x64d   : > { %19656 = vmatprep.subr.mxu0 %v16130_v20  ;;  %19706 = vmatprep.subr.mxu1 %v16177_v45 }
 0x64e   : > { %19657 = vmatpush3.msra.mxu0 %v16130_v20  ;;  %v16171_v20 = vld [vmem:[%s26484_s7 + $0x208] sm:$0xff] }
 0x64f   : > { %19491 = vmatmul.mubr.msk.f32.gmra.mxu1 %vm389_vm3, %v25160_v43  ;;  %19555 = vmatmul.mubr.msk.f32.gmra.mxu0 %vm389_vm3, %v25453_v40  ;;  %v25711_v43 = vld [vmem:[#allocation3 + $0x18a] sm:$0xff]  ;;  %v13929_v40 = vld [vmem:[#allocation3 + $0x79] sm:$0xff] }
 0x650   : > { %19493 = vmatprep.mubr.msk.f32.mxu1 %vm389_vm3, %v25175_v46  ;;  %19557 = vmatprep.mubr.msk.f32.mxu0 %vm389_vm3, %v25459_v37  ;;  %v13529_v46 = vld [vmem:[#allocation3 + $0x30] sm:$0xff] }
 0x653   : > { %19494 = vmatmul.mubr.msk.f32.gmra.mxu1 %vm389_vm3, %v25187_v14  ;;  %19558 = vmatmul.mubr.msk.f32.gmra.mxu0 %vm389_vm3, %v25465_v19  ;;  %v13923_v14 = vld [vmem:[#allocation3 + $0x31] sm:$0xff] }
 0x654   : > { %19496 = vmatprep.mubr.msk.f32.mxu1 %vm389_vm3, %v25197_v60  ;;  %19560 = vmatprep.mubr.msk.f32.mxu0 %vm389_vm3, %v25471_v49  ;;  %v13530_v60 = vld [vmem:[#allocation3 + $0x38] sm:$0xff] }
 0x657   : > { %19497 = vmatmul.mubr.msk.f32.gmra.mxu1 %vm389_vm3, %v25210_v9  ;;  %19561 = vmatmul.mubr.msk.f32.gmra.mxu0 %vm389_vm3, %v25477_v39  ;;  %v13924_v9 = vld [vmem:[#allocation3 + $0x39] sm:$0xff] }
 0x658   : > { %19499 = vmatprep.mubr.msk.f32.mxu1 %vm389_vm3, %v25218_v63  ;;  %19563 = vmatprep.mubr.msk.f32.mxu0 %vm389_vm3, %v25483_v2  ;;  %v16176_v63 = vld [vmem:[%s26484_s7 + $0x230] sm:$0xff] }
 0x659   : > { %v13536_v2 = vld [vmem:[#allocation3 + $0x80] sm:$0xff] }
 0x65b   : > { %19500 = vmatmul.mubr.msk.f32.gmra.mxu1 %vm389_vm3, %v25230_v25  ;;  %19564 = vmatmul.mubr.msk.f32.gmra.mxu0 %vm389_vm3, %v25489_v15  ;;  %v13531_v25 = vld [vmem:[#allocation3 + $0x48] sm:$0xff] }
 0x65c   : > { %19502 = vmatprep.mubr.msk.f32.mxu1 %vm389_vm3, %v25238_v17  ;;  %19566 = vmatprep.mubr.msk.f32.mxu0 %vm389_vm3, %v25495_v56  ;;  %v13925_v17 = vld [vmem:[#allocation3 + $0x49] sm:$0xff]  ;;  %v13930_v15 = vld [vmem:[#allocation3 + $0x81] sm:$0xff] }
 0x65d   : > { %v16173_v56 = vld [vmem:[%s26484_s7 + $0x218] sm:$0xff] }
 0x65f   : > { %19503 = vmatmul.mubr.msk.f32.gmra.mxu1 %vm389_vm3, %v25250_v23  ;;  %19567 = vmatmul.mubr.msk.f32.gmra.mxu0 %vm389_vm3, %v25501_v52  ;;  %v25725_v23 = vpop.f32.mrf.mxu1 }
 0x660   : > { %19505 = vmatprep.mubr.msk.f32.mxu1 %vm389_vm3, %v25257_v0  ;;  %19569 = vmatprep.mubr.msk.f32.mxu0 %vm389_vm3, %v25507_v42  ;;  %v25727_v0 = vpop.f32.mrf.mxu0 }
 0x663   : > { %19506 = vmatmul.mubr.msk.f32.gmra.mxu1 %vm389_vm3, %v25268_v30  ;;  %19570 = vmatmul.mubr.msk.f32.gmra.mxu0 %vm389_vm3, %v25513_v11  ;;  %v13532_v30 = vld [vmem:[#allocation3 + $0x50] sm:$0xff] }
 0x664   : > { %19508 = vmatprep.mubr.msk.f32.mxu1 %vm389_vm3, %v25274_v5  ;;  %19572 = vmatprep.mubr.msk.f32.mxu0 %vm389_vm3, %v25519_v55  ;;  %v13926_v5 = vld [vmem:[#allocation3 + $0x51] sm:$0xff] }
 0x665   : > { %v13537_v11 = vld [vmem:[#allocation3 + $0x90] sm:$0xff] }
 0x666   : > { %v13931_v55 = vld [vmem:[#allocation3 + $0x91] sm:$0xff] }
 0x667   : > { %19509 = vmatmul.mubr.msk.f32.gmra.mxu1 %vm389_vm3, %v25284_v16  ;;  %19573 = vmatmul.mubr.msk.f32.gmra.mxu0 %vm389_vm3, %v25527_v4  ;;  %v16175_v16 = vld [vmem:[%s26484_s7 + $0x228] sm:$0xff] }
 0x668   : > { %19511 = vmatprep.mubr.msk.f32.mxu1 %vm389_vm3, %v25701_v1  ;;  %19575 = vmatprep.mubr.msk.f32.mxu0 %vm389_vm3, %v25703_v27 }
 0x66b   : > { %19512 = vmatmul.mubr.msk.f32.gmra.mxu1 %vm389_vm3, %v25709_v21  ;;  %19576 = vmatmul.mubr.msk.f32.gmra.mxu0 %vm389_vm3, %v25711_v43 }
 0x66c   : > { %19594 = vmatprep.mubr.msk.f32.mxu1 %vm389_vm3, %v13529_v46  ;;  %19658 = vmatprep.mubr.msk.f32.mxu0 %vm389_vm3, %v13923_v14  ;;  %v13541_v14 = vld [vmem:[#allocation3 + $0xc0] sm:$0xff] }
 0x66f   : > { %19595 = vmatmul.mubr.msk.f32.vlgmr.msra.gmra.mxu1 %vm389_vm3, %v13530_v60  ;;  %19659 = vmatmul.mubr.msk.f32.vlgmr.msra.gmra.mxu0 %vm389_vm3, %v13924_v9  ;;  %v19215_v29 = vpop.f32.mrf.mxu1  ;;  %v13935_v60 = vld [vmem:[#allocation3 + $0xc1] sm:$0xff] }
 0x670   : > { %19707 = vmatpush3.msra.mxu1 %v16177_v45  ;;  %19597 = vmatprep.mubr.msk.f32.mxu1 %vm389_vm3, %v13531_v25  ;;  %v19279_v12 = vpop.f32.mrf.mxu0 }
 0x671   : > { %19661 = vmatprep.mubr.msk.f32.mxu0 %vm389_vm3, %v13925_v17  ;;  %19708 = vmatprep.subr.mxu1 %v16176_v63  ;;  %v25735_v33 = vadd.f32 %v19279_v12, %v19215_v29  ;;  %v11483_v47 = vpop.f32.mrf.mxu1 }
 0x672   : > { %19709 = vmatpush3.msra.mxu1 %v16176_v63  ;;  %v11804_v22 = vpop.f32.mrf.mxu0 }
 0x673   : > { %19598 = vmatmul.mubr.msk.f32.gmra.mxu1 %vm389_vm3, %v13532_v30  ;;  %19662 = vmatmul.mubr.msk.f32.gmra.mxu0 %vm389_vm3, %v13926_v5  ;;  %v25739_v32 = vadd.f32 %v11804_v22, %v11483_v47  ;;  %v19218_v24 = vpop.f32.mrf.mxu1  ;;  %v13542_v30 = vld [vmem:[#allocation3 + $0xc8] sm:$0xff] }
 0x674   : > { %19600 = vmatprep.mubr.msk.f32.mxu1 %vm389_vm3, %v13533_v51  ;;  %19664 = vmatprep.mubr.msk.f32.mxu0 %vm389_vm3, %v13927_v34  ;;  %v19282_v35 = vpop.f32.mrf.mxu0  ;;  %v13936_v5 = vld [vmem:[#allocation3 + $0xc9] sm:$0xff]  ;;  %v13543_v51 = vld [vmem:[#allocation3 + $0xd8] sm:$0xff] }
 0x675   : > { %19710 = vmatprep.subr.mxu1 %v16175_v16  ;;  %v25746_v37 = vadd.f32 %v19282_v35, %v19218_v24  ;;  %v11493_v19 = vpop.f32.mrf.mxu1  ;;  %v13937_v34 = vld [vmem:[#allocation3 + $0xd9] sm:$0xff]  ;;  %v13938_v24 = vld [vmem:[#allocation3 + $0xe1] sm:$0xff] }
 0x676   : > { %19711 = vmatpush3.msra.mxu1 %v16175_v16  ;;  %v11814_v49 = vpop.f32.mrf.mxu0  ;;  %v16170_v16 = vld [vmem:[%s26484_s7 + $0x200] sm:$0xff] }
 0x677   : > { %19601 = vmatmul.mubr.msk.f32.gmra.mxu1 %vm389_vm3, %v13534_v59  ;;  %19665 = vmatmul.mubr.msk.f32.gmra.mxu0 %vm389_vm3, %v13928_v41  ;;  %v25750_v39 = vadd.f32 %v11814_v49, %v11493_v19  ;;  %v19221_v52 = vpop.f32.mrf.mxu1  ;;  %v13939_v19 = vld [vmem:[#allocation3 + $0xf1] sm:$0xff] }
 0x678   : > { %19603 = vmatprep.mubr.msk.f32.mxu1 %vm389_vm3, %v13535_v36  ;;  %19667 = vmatprep.mubr.msk.f32.mxu0 %vm389_vm3, %v13929_v40  ;;  %v19285_v42 = vpop.f32.mrf.mxu0  ;;  %v13545_v40 = vld [vmem:[#allocation3 + $0xf0] sm:$0xff] }
 0x679   : > { %19712 = vmatprep.subr.mxu1 %v16174_v26  ;;  %v25757_v4 = vadd.f32 %v19285_v42, %v19221_v52  ;;  %v11503_v31 = vpop.f32.mrf.mxu1  ;;  %v13546_v52 = vld [vmem:[#allocation3 + $0xf8] sm:$0xff] }
 0x67a   : > { %19713 = vmatpush3.msra.mxu1 %v16174_v26  ;;  %v11824_v57 = vpop.f32.mrf.mxu0  ;;  %v13544_v26 = vld [vmem:[#allocation3 + $0xe0] sm:$0xff] }
 0x67b   : > { %19604 = vmatmul.mubr.msk.f32.gmra.mxu1 %vm389_vm3, %v13536_v2  ;;  %19668 = vmatmul.mubr.msk.f32.gmra.mxu0 %vm389_vm3, %v13930_v15  ;;  %v25761_v10 = vadd.f32 %v11824_v57, %v11503_v31  ;;  %v13940_v42 = vld [vmem:[#allocation3 + $0xf9] sm:$0xff]  ;;  %v13547_v31 = vld [vmem:[#allocation3 + $0x108] sm:$0xff] }
 0x67c   : > { %19606 = vmatprep.mubr.msk.f32.mxu1 %vm389_vm3, %v13537_v11  ;;  %19670 = vmatprep.mubr.msk.f32.mxu0 %vm389_vm3, %v13931_v55  ;;  %v19224_v6 = vpop.f32.mrf.mxu1  ;;  %v19288_v62 = vpop.f32.mrf.mxu0  ;;  %v13941_v57 = vld [vmem:[#allocation3 + $0x109] sm:$0xff] }
 0x67d   : > { %19714 = vmatprep.subr.mxu1 %v16173_v56  ;;  %v25768_v58 = vadd.f32 %v19288_v62, %v19224_v6  ;;  %v13548_v62 = vld [vmem:[#allocation3 + $0x110] sm:$0xff] }
 0x67e   : > { %19715 = vmatpush3.msra.mxu1 %v16173_v56  ;;  %v11513_v3 = vpop.f32.mrf.mxu1  ;;  %v11834_v44 = vpop.f32.mrf.mxu0 }
 0x67f   : > { %19607 = vmatmul.mubr.msk.f32.gmra.mxu1 %vm389_vm3, %v13538_v8  ;;  %19671 = vmatmul.mubr.msk.f32.gmra.mxu0 %vm389_vm3, %v13932_v28  ;;  %v25772_v48 = vadd.f32 %v11834_v44, %v11513_v3  ;;  %v13549_v44 = vld [vmem:[#allocation3 + $0x120] sm:$0xff] }
 0x680   : > { %19609 = vmatprep.mubr.msk.f32.mxu1 %vm389_vm3, %v13539_v61  ;;  %19673 = vmatprep.mubr.msk.f32.mxu0 %vm389_vm3, %v13933_v38  ;;  %v19227_v45 = vpop.f32.mrf.mxu1  ;;  %v19291_v46 = vpop.f32.mrf.mxu0  ;;  %v13942_v61 = vld [vmem:[#allocation3 + $0x111] sm:$0xff] }
 0x681   : > { %19716 = vmatprep.subr.mxu1 %v16172_v54  ;;  %v25779_v9 = vadd.f32 %v19291_v46, %v19227_v45 }
 0x682   : > { %19717 = vmatpush3.msra.mxu1 %v16172_v54  ;;  %v11523_v63 = vpop.f32.mrf.mxu1  ;;  %v11844_v25 = vpop.f32.mrf.mxu0 }
 0x683   : > { %19610 = vmatmul.mubr.msk.f32.gmra.mxu1 %vm389_vm3, %v13540_v53  ;;  %19674 = vmatmul.mubr.msk.f32.gmra.mxu0 %vm389_vm3, %v13934_v50  ;;  %v25783_v17 = vadd.f32 %v11844_v25, %v11523_v63  ;;  %v13943_v53 = vld [vmem:[#allocation3 + $0x121] sm:$0xff] }
 0x684   : > { %19612 = vmatprep.mubr.msk.f32.mxu1 %vm389_vm3, %v13541_v14  ;;  %19676 = vmatprep.mubr.msk.f32.mxu0 %vm389_vm3, %v13935_v60  ;;  %v13550_v14 = vld [vmem:[#allocation3 + $0x128] sm:$0xff] }
 0x685   : > { %19718 = vmatprep.subr.mxu1 %v16171_v20  ;;  %v19230_v29 = vpop.f32.mrf.mxu1  ;;  %v19294_v12 = vpop.f32.mrf.mxu0  ;;  %v13944_v60 = vld [vmem:[#allocation3 + $0x129] sm:$0xff] }
 0x686   : > { %19719 = vmatpush3.msra.mxu1 %v16171_v20  ;;  %v25790_v47 = vadd.f32 %v19294_v12, %v19230_v29 }
 0x687   : > { %19613 = vmatmul.mubr.msk.f32.gmra.mxu1 %vm389_vm3, %v13542_v30  ;;  %19677 = vmatmul.mubr.msk.f32.gmra.mxu0 %vm389_vm3, %v13936_v5  ;;  %v11533_v22 = vpop.f32.mrf.mxu1  ;;  %v11854_v59 = vpop.f32.mrf.mxu0  ;;  %v13551_v30 = vld [vmem:[#allocation3 + $0x138] sm:$0xff] }
 0x688   : > { %19615 = vmatprep.mubr.msk.f32.mxu1 %vm389_vm3, %v13543_v51  ;;  %19679 = vmatprep.mubr.msk.f32.mxu0 %vm389_vm3, %v13937_v34  ;;  %v25794_v41 = vadd.f32 %v11854_v59, %v11533_v22  ;;  %v13945_v5 = vld [vmem:[#allocation3 + $0x139] sm:$0xff]  ;;  %v13946_v22 = vld [vmem:[#allocation3 + $0x141] sm:$0xff] }
 0x689   : > { %19720 = vmatprep.subr.mxu1 %v16170_v16  ;;  %v19233_v35 = vpop.f32.mrf.mxu1  ;;  %v19297_v36 = vpop.f32.mrf.mxu0  ;;  %v13552_v34 = vld [vmem:[#allocation3 + $0x140] sm:$0xff] }
 0x68a   : > { %19721 = vmatpush3.msra.mxu1 %v16170_v16  ;;  %v25798_v49 = vadd.f32 %v19297_v36, %v19233_v35  ;;  %v13947_v35 = vld [vmem:[#allocation3 + $0x151] sm:$0xff] }
 0x68b   : > { %19616 = vmatmul.mubr.msk.f32.gmra.mxu1 %vm389_vm3, %v13544_v26  ;;  %19680 = vmatmul.mubr.msk.f32.gmra.mxu0 %vm389_vm3, %v13938_v24  ;;  %v11543_v2 = vpop.f32.mrf.mxu1  ;;  %v11864_v15 = vpop.f32.mrf.mxu0  ;;  %v13553_v24 = vld [vmem:[#allocation3 + $0x150] sm:$0xff] }
 0x68c   : > { %19618 = vmatprep.mubr.msk.f32.mxu1 %vm389_vm3, %v13545_v40  ;;  %19682 = vmatprep.mubr.msk.f32.mxu0 %vm389_vm3, %v13939_v19  ;;  %v25802_v56 = vadd.f32 %v11864_v15, %v11543_v2  ;;  %v13554_v15 = vld [vmem:[#allocation3 + $0x158] sm:$0xff] }
 0x68d   : > { %v19236_v11 = vpop.f32.mrf.mxu1  ;;  %v19300_v55 = vpop.f32.mrf.mxu0 }
 0x68e   : > { %v25806_v8 = vadd.f32 %v19300_v55, %v19236_v11  ;;  %v13555_v55 = vld [vmem:[#allocation3 + $0x168] sm:$0xff] }
 0x68f   : > { %19619 = vmatmul.mubr.msk.f32.gmra.mxu1 %vm389_vm3, %v13546_v52  ;;  %19683 = vmatmul.mubr.msk.f32.gmra.mxu0 %vm389_vm3, %v13940_v42  ;;  %v11553_v28 = vpop.f32.mrf.mxu1  ;;  %v11874_v54 = vpop.f32.mrf.mxu0  ;;  %v13948_v52 = vld [vmem:[#allocation3 + $0x159] sm:$0xff] }
 0x690   : > { %19621 = vmatprep.mubr.msk.f32.mxu1 %vm389_vm3, %v13547_v31  ;;  %19685 = vmatprep.mubr.msk.f32.mxu0 %vm389_vm3, %v13941_v57  ;;  %v25810_v6 = vadd.f32 %v11874_v54, %v11553_v28  ;;  %v13949_v31 = vld [vmem:[#allocation3 + $0x169] sm:$0xff] }
 0x691   : > { %v19239_v38 = vpop.f32.mrf.mxu1 }
 0x692   : > { %v19303_v3 = vpop.f32.mrf.mxu0 }
 0x693   : > { %19622 = vmatmul.mubr.msk.f32.gmra.mxu1 %vm389_vm3, %v13548_v62  ;;  %19686 = vmatmul.mubr.msk.f32.gmra.mxu0 %vm389_vm3, %v13942_v61  ;;  %v25814_v50 = vadd.f32 %v19303_v3, %v19239_v38  ;;  %v11563_v20 = vpop.f32.mrf.mxu1  ;;  %v13556_v61 = vld [vmem:[#allocation3 + $0x170] sm:$0xff] }
 0x694   : > { %19624 = vmatprep.mubr.msk.f32.mxu1 %vm389_vm3, %v13549_v44  ;;  %19688 = vmatprep.mubr.msk.f32.mxu0 %vm389_vm3, %v13943_v53  ;;  %v11884_v45 = vpop.f32.mrf.mxu0  ;;  %v13950_v38 = vld [vmem:[#allocation3 + $0x171] sm:$0xff] }
 0x695   : > { %v25818_v46 = vadd.f32 %v11884_v45, %v11563_v20 }
 0x696   : > { %v19242_v63 = vpop.f32.mrf.mxu1  ;;  %v19306_v25 = vpop.f32.mrf.mxu0 }
 0x697   : > { %19625 = vmatmul.mubr.msk.f32.gmra.mxu1 %vm389_vm3, %v13550_v14  ;;  %19689 = vmatmul.mubr.msk.f32.gmra.mxu0 %vm389_vm3, %v13944_v60  ;;  %v25822_v16 = vadd.f32 %v19306_v25, %v19242_v63  ;;  %v13559_v14 = vld [vmem:[#allocation3 + $0x198] sm:$0xff] }
 0x698   : > { %19627 = vmatprep.mubr.msk.f32.mxu1 %vm389_vm3, %v13551_v30  ;;  %19691 = vmatprep.mubr.msk.f32.mxu0 %vm389_vm3, %v13945_v5  ;;  %v11573_v29 = vpop.f32.mrf.mxu1  ;;  %v11894_v12 = vpop.f32.mrf.mxu0  ;;  %v13953_v60 = vld [vmem:[#allocation3 + $0x199] sm:$0xff] }
 0x699   : > { %v25826_v51 = vadd.f32 %v11894_v12, %v11573_v29 }
 0x69a   : > { %v19245_v59 = vpop.f32.mrf.mxu1 }
 0x69b   : > { %v19309_v26 = vpop.f32.mrf.mxu0  ;;  %19628 = vmatmul.mubr.msk.f32.gmra.mxu1 %vm389_vm3, %v13552_v34  ;;  %19692 = vmatmul.mubr.msk.f32.gmra.mxu0 %vm389_vm3, %v13946_v22 }
 0x69c   : > { %v25830_v36 = vadd.f32 %v19309_v26, %v19245_v59  ;;  %19630 = vmatprep.mubr.msk.f32.mxu1 %vm389_vm3, %v13553_v24  ;;  %19694 = vmatprep.mubr.msk.f32.mxu0 %vm389_vm3, %v13947_v35  ;;  %v11583_v40 = vpop.f32.mrf.mxu1 }
 0x69d   : > { %v11904_v19 = vpop.f32.mrf.mxu0 }
 0x69e   : > { %v25834_v2 = vadd.f32 %v11904_v19, %v11583_v40  ;;  %v19248_v42 = vpop.f32.mrf.mxu1  ;;  %v14318_v40 = vld [vmem:[#allocation3 + $0x3a] sm:$0xff] }
 0x69f   : > { %v19312_v11 = vpop.f32.mrf.mxu0  ;;  %19631 = vmatmul.mubr.msk.f32.gmra.mxu1 %vm389_vm3, %v13554_v15  ;;  %19695 = vmatmul.mubr.msk.f32.gmra.mxu0 %vm389_vm3, %v13948_v52  ;;  %v14319_v52 = vld [vmem:[#allocation3 + $0x4a] sm:$0xff] }
 0x6a0   : > { %v25838_v57 = vadd.f32 %v19312_v11, %v19248_v42  ;;  %19633 = vmatprep.mubr.msk.f32.mxu1 %vm389_vm3, %v13555_v55  ;;  %19697 = vmatprep.mubr.msk.f32.mxu0 %vm389_vm3, %v13949_v31  ;;  %v11593_v28 = vpop.f32.mrf.mxu1  ;;  %v11795_v42 = vadd.f32 %v25727_v0, %v25725_v23 }
 0x6a1   : > { %v11914_v54 = vpop.f32.mrf.mxu0 }
 0x6a2   : > { %v25842_v62 = vadd.f32 %v11914_v54, %v11593_v28  ;;  %v19251_v3 = vpop.f32.mrf.mxu1 }
 0x6a3   : > { %v19315_v44 = vpop.f32.mrf.mxu0  ;;  %19634 = vmatmul.mubr.msk.f32.gmra.mxu1 %vm389_vm3, %v13556_v61  ;;  %19698 = vmatmul.mubr.msk.f32.gmra.mxu0 %vm389_vm3, %v13950_v38  ;;  %v14320_v61 = vld [vmem:[#allocation3 + $0x52] sm:$0xff] }
 0x6a4   : > { %v25846_v53 = vadd.f32 %v19315_v44, %v19251_v3  ;;  %19636 = vmatprep.mubr.msk.f32.mxu1 %vm389_vm3, %v25521_v18  ;;  %19700 = vmatprep.mubr.msk.f32.mxu0 %vm389_vm3, %v25701_v1  ;;  %v11603_v20 = vpop.f32.mrf.mxu1  ;;  %v13560_v18 = vld [vmem:[#allocation3 + $0x1a0] sm:$0xff] }
 0x6a5   : > { %v11924_v45 = vpop.f32.mrf.mxu0  ;;  %v13954_v1 = vld [vmem:[#allocation3 + $0x1a1] sm:$0xff] }
 0x6a6   : > { %v25852_v63 = vadd.f32 %v11924_v45, %v11603_v20  ;;  %v19254_v25 = vpop.f32.mrf.mxu1  ;;  %v14321_v44 = vld [vmem:[#allocation3 + $0x62] sm:$0xff] }
 0x6a7   : > { %v19318_v30 = vpop.f32.mrf.mxu0  ;;  %19637 = vmatmul.mubr.msk.f32.gmra.mxu1 %vm389_vm3, %v25529_v7  ;;  %19701 = vmatmul.mubr.msk.f32.gmra.mxu0 %vm389_vm3, %v25709_v21  ;;  %v14317_v7 = vld [vmem:[#allocation3 + $0x32] sm:$0xff] }
 0x6a8   : > { %v25858_v5 = vadd.f32 %v19318_v30, %v19254_v25  ;;  %19639 = vmatprep.mubr.msk.f32.mxu1 %vm389_vm3, %v13559_v14  ;;  %19703 = vmatprep.mubr.msk.f32.mxu0 %vm389_vm3, %v13953_v60  ;;  %v11613_v29 = vpop.f32.mrf.mxu1  ;;  %v14322_v60 = vld [vmem:[#allocation3 + $0x6a] sm:$0xff] }
 0x6a9   : > { %v11934_v12 = vpop.f32.mrf.mxu0 }
 0x6aa   : > { %v25862_v34 = vadd.f32 %v11934_v12, %v11613_v29  ;;  %v19257_v22 = vpop.f32.mrf.mxu1 }
 0x6ab   : > { %v19321_v59 = vpop.f32.mrf.mxu0  ;;  %19640 = vmatmul.mubr.msk.f32.gmra.mxu1 %vm389_vm3, %v13560_v18  ;;  %19704 = vmatmul.mubr.msk.f32.gmra.mxu0 %vm389_vm3, %v13954_v1  ;;  %v14323_v18 = vld [vmem:[#allocation3 + $0x7a] sm:$0xff] }
 0x6ac   : > { %v25866_v21 = vadd.f32 %v19321_v59, %v19257_v22  ;;  %19722 = vmatprep.mubr.msk.f32.mxu1 %vm389_vm3, %v14317_v7  ;;  %v11623_v26 = vpop.f32.mrf.mxu1  ;;  %v14324_v7 = vld [vmem:[#allocation3 + $0x82] sm:$0xff] }
 0x6ad   : > { %v11944_v24 = vpop.f32.mrf.mxu0 }
 0x6ae   : > { %v25869_v35 = vadd.f32 %v11944_v24, %v11623_v26  ;;  %v19340_v19 = vpop.f32.mrf.mxu1  ;;  %v14325_v24 = vld [vmem:[#allocation3 + $0x92] sm:$0xff] }
 0x6af   : > { %v19404_v15 = vpop.f32.mrf.mxu0  ;;  %19723 = vmatmul.mubr.msk.f32.vlgmr.msra.gmra.mxu1 %vm389_vm3, %v14318_v40  ;;  %v12316_v11 = vadd.f32 %v19340_v19, %v25333_v13 }
 0x6b0   : > { %19725 = vmatprep.mubr.msk.f32.mxu1 %vm389_vm3, %v14319_v52  ;;  %v12156_v55 = vpop.f32.mrf.mxu1 }
 0x6b1   : > { %v12550_v31 = vpop.f32.mrf.mxu0  ;;  %v25876_v28 = vadd.f32 %v19404_v15, %v12316_v11  ;;  %v12315_v54 = vadd.f32 %v12156_v55, %v11795_v42  ;;  %v14326_v11 = vld [vmem:[#allocation3 + $0x9a] sm:$0xff] }
 0x6b3   : > { %v19343_v38 = vpop.f32.mrf.mxu1  ;;  %v19407_v3 = vpop.f32.mrf.mxu0  ;;  %19726 = vmatmul.mubr.msk.f32.gmra.mxu1 %vm389_vm3, %v14320_v61  ;;  %v25879_v20 = vadd.f32 %v12550_v31, %v12315_v54  ;;  %v14327_v31 = vld [vmem:[#allocation3 + $0xaa] sm:$0xff] }
 0x6b4   : > { %v12318_v45 = vadd.f32 %v19343_v38, %v25735_v33  ;;  %19728 = vmatprep.mubr.msk.f32.mxu1 %vm389_vm3, %v14321_v44 }
 0x6b5   : > { %v12166_v13 = vpop.f32.mrf.mxu1  ;;  %v12560_v23 = vpop.f32.mrf.mxu0 }
 0x6b6   : > { %v25883_v0 = vadd.f32 %v19407_v3, %v12318_v45  ;;  %v12317_v14 = vadd.f32 %v12166_v13, %v25739_v32  ;;  %v14328_v45 = vld [vmem:[#allocation3 + $0xb2] sm:$0xff] }
 0x6b7   : > { %v19346_v25 = vpop.f32.mrf.mxu1  ;;  %v19410_v30 = vpop.f32.mrf.mxu0  ;;  %19729 = vmatmul.mubr.msk.f32.gmra.mxu1 %vm389_vm3, %v14322_v60 }
 0x6b8   : > { %v25887_v1 = vadd.f32 %v12560_v23, %v12317_v14  ;;  %v12320_v29 = vadd.f32 %v19346_v25, %v25746_v37  ;;  %19731 = vmatprep.mubr.msk.f32.mxu1 %vm389_vm3, %v14323_v18  ;;  %v14329_v23 = vld [vmem:[#allocation3 + $0xc2] sm:$0xff] }
 0x6b9   : > { %v12176_v33 = vpop.f32.mrf.mxu1  ;;  %v12570_v12 = vpop.f32.mrf.mxu0 }
 0x6ba   : > { %v25891_v22 = vadd.f32 %v19410_v30, %v12320_v29  ;;  %v12319_v59 = vadd.f32 %v12176_v33, %v25750_v39  ;;  %v14330_v29 = vld [vmem:[#allocation3 + $0xca] sm:$0xff] }
 0x6bb   : > { %v19349_v32 = vpop.f32.mrf.mxu1  ;;  %v19413_v26 = vpop.f32.mrf.mxu0  ;;  %19732 = vmatmul.mubr.msk.f32.gmra.mxu1 %vm389_vm3, %v14324_v7 }
 0x6bc   : > { %v25895_v40 = vadd.f32 %v12570_v12, %v12319_v59  ;;  %v12322_v19 = vadd.f32 %v19349_v32, %v25757_v4  ;;  %19734 = vmatprep.mubr.msk.f32.mxu1 %vm389_vm3, %v14325_v24  ;;  %v14331_v12 = vld [vmem:[#allocation3 + $0xda] sm:$0xff] }
 0x6bd   : > { %v12186_v37 = vpop.f32.mrf.mxu1  ;;  %v12580_v15 = vpop.f32.mrf.mxu0 }
 0x6be   : > { %v25899_v52 = vadd.f32 %v19413_v26, %v12322_v19  ;;  %v12321_v42 = vadd.f32 %v12186_v37, %v25761_v10  ;;  %v14332_v19 = vld [vmem:[#allocation3 + $0xe2] sm:$0xff] }
 0x6bf   : > { %v19352_v39 = vpop.f32.mrf.mxu1  ;;  %v19416_v55 = vpop.f32.mrf.mxu0  ;;  %19735 = vmatmul.mubr.msk.f32.gmra.mxu1 %vm389_vm3, %v14326_v11 }
 0x6c0   : > { %v25903_v54 = vadd.f32 %v12580_v15, %v12321_v42  ;;  %v12324_v61 = vadd.f32 %v19352_v39, %v25768_v58  ;;  %19737 = vmatprep.mubr.msk.f32.mxu1 %vm389_vm3, %v14327_v31  ;;  %v14333_v15 = vld [vmem:[#allocation3 + $0xf2] sm:$0xff] }
 0x6c1   : > { %v12196_v4 = vpop.f32.mrf.mxu1  ;;  %v12590_v38 = vpop.f32.mrf.mxu0 }
 0x6c2   : > { %v25907_v3 = vadd.f32 %v19416_v55, %v12324_v61  ;;  %v12323_v44 = vadd.f32 %v12196_v4, %v25772_v48  ;;  %v14334_v61 = vld [vmem:[#allocation3 + $0xfa] sm:$0xff] }
 0x6c3   : > { %v19355_v10 = vpop.f32.mrf.mxu1  ;;  %v19419_v13 = vpop.f32.mrf.mxu0  ;;  %19738 = vmatmul.mubr.msk.f32.gmra.mxu1 %vm389_vm3, %v14328_v45 }
 0x6c4   : > { %v25911_v14 = vadd.f32 %v12590_v38, %v12323_v44  ;;  %v12326_v60 = vadd.f32 %v19355_v10, %v25779_v9  ;;  %19740 = vmatprep.mubr.msk.f32.mxu1 %vm389_vm3, %v14329_v23  ;;  %v14335_v38 = vld [vmem:[#allocation3 + $0x10a] sm:$0xff] }
 0x6c5   : > { %v12206_v58 = vpop.f32.mrf.mxu1  ;;  %v12600_v25 = vpop.f32.mrf.mxu0 }
 0x6c6   : > { %v25915_v30 = vadd.f32 %v19419_v13, %v12326_v60  ;;  %v12325_v18 = vadd.f32 %v12206_v58, %v25783_v17  ;;  %v14336_v60 = vld [vmem:[#allocation3 + $0x112] sm:$0xff] }
 0x6c7   : > { %v19358_v48 = vpop.f32.mrf.mxu1  ;;  %v19422_v33 = vpop.f32.mrf.mxu0  ;;  %19741 = vmatmul.mubr.msk.f32.gmra.mxu1 %vm389_vm3, %v14330_v29 }
 0x6c8   : > { %v25919_v59 = vadd.f32 %v12600_v25, %v12325_v18  ;;  %v12328_v7 = vadd.f32 %v19358_v48, %v25790_v47  ;;  %19743 = vmatprep.mubr.msk.f32.mxu1 %vm389_vm3, %v14331_v12  ;;  %v14337_v25 = vld [vmem:[#allocation3 + $0x122] sm:$0xff] }
 0x6c9   : > { %v12216_v9 = vpop.f32.mrf.mxu1  ;;  %v12610_v32 = vpop.f32.mrf.mxu0 }
 0x6ca   : > { %v25923_v26 = vadd.f32 %v19422_v33, %v12328_v7  ;;  %v12327_v24 = vadd.f32 %v12216_v9, %v25794_v41  ;;  %v14338_v7 = vld [vmem:[#allocation3 + $0x12a] sm:$0xff] }
 0x6cb   : > { %v19361_v17 = vpop.f32.mrf.mxu1  ;;  %v19425_v37 = vpop.f32.mrf.mxu0  ;;  %19744 = vmatmul.mubr.msk.f32.gmra.mxu1 %vm389_vm3, %v14332_v19 }
 0x6cc   : > { %v25927_v42 = vadd.f32 %v12610_v32, %v12327_v24  ;;  %v12330_v11 = vadd.f32 %v19361_v17, %v25798_v49  ;;  %19746 = vmatprep.mubr.msk.f32.mxu1 %vm389_vm3, %v14333_v15  ;;  %v14339_v32 = vld [vmem:[#allocation3 + $0x13a] sm:$0xff] }
 0x6cd   : > { %v12226_v47 = vpop.f32.mrf.mxu1  ;;  %v12620_v39 = vpop.f32.mrf.mxu0 }
 0x6ce   : > { %v25931_v55 = vadd.f32 %v19425_v37, %v12330_v11  ;;  %v12329_v31 = vadd.f32 %v12226_v47, %v25802_v56  ;;  %v14340_v11 = vld [vmem:[#allocation3 + $0x142] sm:$0xff] }
 0x6cf   : > { %v19364_v41 = vpop.f32.mrf.mxu1  ;;  %v19428_v4 = vpop.f32.mrf.mxu0  ;;  %19747 = vmatmul.mubr.msk.f32.gmra.mxu1 %vm389_vm3, %v14334_v61 }
 0x6d0   : > { %v25935_v44 = vadd.f32 %v12620_v39, %v12329_v31  ;;  %v12332_v45 = vadd.f32 %v19364_v41, %v25806_v8  ;;  %19749 = vmatprep.mubr.msk.f32.mxu1 %vm389_vm3, %v14335_v38  ;;  %v14341_v39 = vld [vmem:[#allocation3 + $0x152] sm:$0xff] }
 0x6d1   : > { %v12236_v49 = vpop.f32.mrf.mxu1  ;;  %v12630_v10 = vpop.f32.mrf.mxu0 }
 0x6d2   : > { %v25939_v13 = vadd.f32 %v19428_v4, %v12332_v45  ;;  %v12331_v23 = vadd.f32 %v12236_v49, %v25810_v6  ;;  %v14342_v45 = vld [vmem:[#allocation3 + $0x15a] sm:$0xff] }
 0x6d3   : > { %v19367_v56 = vpop.f32.mrf.mxu1  ;;  %v19431_v58 = vpop.f32.mrf.mxu0  ;;  %19750 = vmatmul.mubr.msk.f32.gmra.mxu1 %vm389_vm3, %v14336_v60 }
 0x6d4   : > { %v25943_v18 = vadd.f32 %v12630_v10, %v12331_v23  ;;  %v12334_v29 = vadd.f32 %v19367_v56, %v25814_v50  ;;  %19752 = vmatprep.mubr.msk.f32.mxu1 %vm389_vm3, %v14337_v25  ;;  %v14343_v10 = vld [vmem:[#allocation3 + $0x16a] sm:$0xff] }
 0x6d5   : > { %v12246_v8 = vpop.f32.mrf.mxu1  ;;  %v12640_v48 = vpop.f32.mrf.mxu0 }
 0x6d6   : > { %v25947_v33 = vadd.f32 %v19431_v58, %v12334_v29  ;;  %v12333_v12 = vadd.f32 %v12246_v8, %v25818_v46  ;;  %v14344_v29 = vld [vmem:[#allocation3 + $0x172] sm:$0xff] }
 0x6d7   : > { %v19370_v6 = vpop.f32.mrf.mxu1  ;;  %v19434_v9 = vpop.f32.mrf.mxu0  ;;  %19753 = vmatmul.mubr.msk.f32.gmra.mxu1 %vm389_vm3, %v14338_v7 }
 0x6d8   : > { %v25951_v24 = vadd.f32 %v12640_v48, %v12333_v12  ;;  %v12336_v19 = vadd.f32 %v19370_v6, %v25822_v16  ;;  %19755 = vmatprep.mubr.msk.f32.mxu1 %vm389_vm3, %v14339_v32  ;;  %v14347_v6 = vld [vmem:[#allocation3 + $0x19a] sm:$0xff] }
 0x6d9   : > { %v12256_v50 = vpop.f32.mrf.mxu1  ;;  %v12650_v17 = vpop.f32.mrf.mxu0 }
 0x6da   : > { %v25955_v37 = vadd.f32 %v19434_v9, %v12336_v19  ;;  %v12335_v15 = vadd.f32 %v12256_v50, %v25826_v51 }
 0x6db   : > { %v19373_v46 = vpop.f32.mrf.mxu1  ;;  %v19437_v47 = vpop.f32.mrf.mxu0  ;;  %19756 = vmatmul.mubr.msk.f32.gmra.mxu1 %vm389_vm3, %v14340_v11 }
 0x6dc   : > { %v25959_v31 = vadd.f32 %v12650_v17, %v12335_v15  ;;  %v12338_v61 = vadd.f32 %v19373_v46, %v25830_v36  ;;  %19758 = vmatprep.mubr.msk.f32.mxu1 %vm389_vm3, %v14341_v39 }
 0x6dd   : > { %v12266_v16 = vpop.f32.mrf.mxu1  ;;  %v12660_v41 = vpop.f32.mrf.mxu0 }
 0x6de   : > { %v25963_v4 = vadd.f32 %v19437_v47, %v12338_v61  ;;  %v12337_v38 = vadd.f32 %v12266_v16, %v25834_v2 }
 0x6df   : > { %v19376_v51 = vpop.f32.mrf.mxu1  ;;  %v19440_v49 = vpop.f32.mrf.mxu0  ;;  %19759 = vmatmul.mubr.msk.f32.gmra.mxu1 %vm389_vm3, %v14342_v45 }
 0x6e0   : > { %v25967_v23 = vadd.f32 %v12660_v41, %v12337_v38  ;;  %v12340_v60 = vadd.f32 %v19376_v51, %v25838_v57  ;;  %19761 = vmatprep.mubr.msk.f32.mxu1 %vm389_vm3, %v14343_v10 }
 0x6e1   : > { %v12276_v36 = vpop.f32.mrf.mxu1  ;;  %v12670_v56 = vpop.f32.mrf.mxu0 }
 0x6e2   : > { %v25971_v58 = vadd.f32 %v19440_v49, %v12340_v60  ;;  %v12339_v25 = vadd.f32 %v12276_v36, %v25842_v62 }
 0x6e3   : > { %v19379_v2 = vpop.f32.mrf.mxu1  ;;  %v19443_v8 = vpop.f32.mrf.mxu0  ;;  %19762 = vmatmul.mubr.msk.f32.gmra.mxu1 %vm389_vm3, %v14344_v29 }
 0x6e4   : > { %v25975_v48 = vadd.f32 %v12670_v56, %v12339_v25  ;;  %v12342_v12 = vadd.f32 %v19379_v2, %v25846_v53  ;;  %19764 = vmatprep.mubr.msk.f32.mxu1 %vm389_vm3, %v25703_v27  ;;  %v14348_v53 = vld [vmem:[#allocation3 + $0x1a2] sm:$0xff] }
 0x6e5   : > { %v12286_v57 = vpop.f32.mrf.mxu1  ;;  %v12680_v7 = vpop.f32.mrf.mxu0 }
 0x6e6   : > { %v25980_v9 = vadd.f32 %v19443_v8, %v12342_v12  ;;  %v12341_v32 = vadd.f32 %v12286_v57, %v25852_v63 }
 0x6e7   : > { %v19382_v62 = vpop.f32.mrf.mxu1  ;;  %v19446_v19 = vpop.f32.mrf.mxu0  ;;  %19765 = vmatmul.mubr.msk.f32.gmra.mxu1 %vm389_vm3, %v25711_v43 }
 0x6e8   : > { %v25985_v50 = vadd.f32 %v12680_v7, %v12341_v32  ;;  %v12344_v17 = vadd.f32 %v19382_v62, %v25858_v5  ;;  %19767 = vmatprep.mubr.msk.f32.mxu1 %vm389_vm3, %v14347_v6 }
 0x6e9   : > { %v12296_v27 = vpop.f32.mrf.mxu1  ;;  %v12690_v15 = vpop.f32.mrf.mxu0 }
 0x6ea   : > { %v25989_v11 = vadd.f32 %v19446_v19, %v12344_v17  ;;  %v12343_v46 = vadd.f32 %v12296_v27, %v25862_v34 }
 0x6eb   : > { %v19385_v47 = vpop.f32.mrf.mxu1  ;;  %v19449_v63 = vpop.f32.mrf.mxu0  ;;  %19768 = vmatmul.mubr.msk.f32.gmra.mxu1 %vm389_vm3, %v14348_v53 }
 0x6ec   : > { %v25993_v39 = vadd.f32 %v12690_v15, %v12343_v46  ;;  %v12346_v43 = vadd.f32 %v19385_v47, %v25866_v21 }
 0x6ed   : > { %v12306_v61 = vpop.f32.mrf.mxu1  ;;  %v12700_v16 = vpop.f32.mrf.mxu0 }
 0x6ee   : > { %v25996_v5 = vadd.f32 %v19449_v63, %v12346_v43  ;;  %v12345_v41 = vadd.f32 %v12306_v61, %v25869_v35 }
 0x6ef   : > { %v19468_v38 = vpop.f32.mrf.mxu1  ;;  %v25999_v45 = vpop.f32.mrf.mxu0 }
 0x6f0   : > { %v26001_v51 = vadd.f32 %v12700_v16, %v12345_v41  ;;  %v26004_v34 = vadd.f32 %v19468_v38, %v25876_v28 }
 0x6f1   : > { %v12944_v49 = vpop.f32.mrf.mxu1  ;;  %v26006_v10 = vpop.f32.mrf.mxu0 }
 0x6f2   : > { %v26009_v60 = vadd.f32 %v12944_v49, %v25879_v20 }
 0x6f3   : > { %v19471_v21 = vpop.f32.mrf.mxu1  ;;  %v26011_v36 = vpop.f32.mrf.mxu0 }
 0x6f4   : > { %v26014_v56 = vadd.f32 %v19471_v21, %v25883_v0 }
 0x6f5   : > { %v12954_v35 = vpop.f32.mrf.mxu1  ;;  %v26016_v25 = vpop.f32.mrf.mxu0 }
 0x6f6   : > { %v26019_v29 = vadd.f32 %v12954_v35, %v25887_v1 }
 0x6f7   : > { %v19474_v28 = vpop.f32.mrf.mxu1  ;;  %v26021_v2 = vpop.f32.mrf.mxu0 }
 0x6f8   : > { %v26024_v8 = vadd.f32 %v19474_v28, %v25891_v22 }
 0x6f9   : > { %v12964_v20 = vpop.f32.mrf.mxu1  ;;  %v26026_v12 = vpop.f32.mrf.mxu0 }
 0x6fa   : > { %v26029_v57 = vadd.f32 %v12964_v20, %v25895_v40 }
 0x6fb   : > { %v19477_v0 = vpop.f32.mrf.mxu1  ;;  %v26031_v7 = vpop.f32.mrf.mxu0 }
 0x6fc   : > { %v26034_v6 = vadd.f32 %v19477_v0, %v25899_v52 }
 0x6fd   : > { %v12974_v1 = vpop.f32.mrf.mxu1  ;;  %v26036_v32 = vpop.f32.mrf.mxu0 }
 0x6fe   : > { %v26039_v62 = vadd.f32 %v12974_v1, %v25903_v54 }
 0x6ff   : > { %v19480_v22 = vpop.f32.mrf.mxu1  ;;  %v26041_v19 = vpop.f32.mrf.mxu0 }
 0x700   : > { %v26044_v17 = vadd.f32 %v19480_v22, %v25907_v3 }
 0x701   : > { %v12984_v40 = vpop.f32.mrf.mxu1  ;;  %v26046_v53 = vpop.f32.mrf.mxu0 }
 0x702   : > { %v26049_v27 = vadd.f32 %v12984_v40, %v25911_v14 }
 0x703   : > { %v19483_v52 = vpop.f32.mrf.mxu1  ;;  %v26051_v15 = vpop.f32.mrf.mxu0 }
 0x704   : > { %v26054_v46 = vadd.f32 %v19483_v52, %v25915_v30 }
 0x705   : > { %v12994_v54 = vpop.f32.mrf.mxu1  ;;  %v26056_v47 = vpop.f32.mrf.mxu0 }
 0x706   : > { %v26059_v63 = vadd.f32 %v12994_v54, %v25919_v59 }
 0x707   : > { %v19486_v3 = vpop.f32.mrf.mxu1  ;;  %v26061_v43 = vpop.f32.mrf.mxu0 }
 0x708   : > { %v26064_v61 = vadd.f32 %v19486_v3, %v25923_v26 }
 0x709   : > { %v13004_v14 = vpop.f32.mrf.mxu1  ;;  %v26066_v16 = vpop.f32.mrf.mxu0 }
 0x70a   : > { %v26069_v41 = vadd.f32 %v13004_v14, %v25927_v42 }
 0x70b   : > { %v19489_v30 = vpop.f32.mrf.mxu1  ;;  %v26071_v38 = vpop.f32.mrf.mxu0 }
 0x70c   : > { %27206 = vst [vmem:[#allocation99_spill] sm:$0xff] %v26071_v38  ;;  %v26074_v49 = vadd.f32 %v19489_v30, %v25931_v55 }
 0x70d   : > { %v13014_v59 = vpop.f32.mrf.mxu1  ;;  %v26076_v21 = vpop.f32.mrf.mxu0 }
 0x70e   : > { %27207 = vst [vmem:[#allocation78_spill] sm:$0xff] %v26076_v21  ;;  %v26079_v35 = vadd.f32 %v13014_v59, %v25935_v44 }
 0x70f   : > { %v19492_v26 = vpop.f32.mrf.mxu1  ;;  %v26081_v28 = vpop.f32.mrf.mxu0 }
 0x710   : > { %27208 = vst [vmem:[#allocation93_spill] sm:$0xff] %v26079_v35  ;;  %27209 = vst [vmem:[#allocation94_spill] sm:$0xff] %v26081_v28  ;;  %v26084_v20 = vadd.f32 %v19492_v26, %v25939_v13 }
 0x711   : > { %v13024_v42 = vpop.f32.mrf.mxu1  ;;  %v26086_v0 = vpop.f32.mrf.mxu0 }
 0x712   : > { %27210 = vst [vmem:[#allocation98_spill] sm:$0xff] %v26084_v20  ;;  %27211 = vst [vmem:[#allocation63_spill] sm:$0xff] %v26086_v0  ;;  %v26089_v1 = vadd.f32 %v13024_v42, %v25943_v18 }
 0x713   : > { %v19495_v55 = vpop.f32.mrf.mxu1  ;;  %v26091_v22 = vpop.f32.mrf.mxu0 }
 0x714   : > { %27212 = vst [vmem:[#allocation39_spill] sm:$0xff] %v26089_v1  ;;  %27213 = vst [vmem:[#allocation83_spill] sm:$0xff] %v26091_v22  ;;  %v26094_v40 = vadd.f32 %v19495_v55, %v25947_v33 }
 0x715   : > { %v13034_v44 = vpop.f32.mrf.mxu1  ;;  %v26096_v52 = vpop.f32.mrf.mxu0 }
 0x716   : > { %27214 = vst [vmem:[#allocation7_spill] sm:$0xff] %v26094_v40  ;;  %27215 = vst [vmem:[#allocation71_spill] sm:$0xff] %v26096_v52  ;;  %v26099_v54 = vadd.f32 %v13034_v44, %v25951_v24 }
 0x717   : > { %v19498_v13 = vpop.f32.mrf.mxu1  ;;  %v26101_v3 = vpop.f32.mrf.mxu0 }
 0x718   : > { %27216 = vst [vmem:[#allocation57_spill] sm:$0xff] %v26099_v54  ;;  %27217 = vst [vmem:[#allocation55_spill] sm:$0xff] %v26101_v3  ;;  %v26104_v14 = vadd.f32 %v19498_v13, %v25955_v37 }
 0x719   : > { %v13044_v18 = vpop.f32.mrf.mxu1  ;;  %v26106_v30 = vpop.f32.mrf.mxu0 }
 0x71a   : > { %27218 = vst [vmem:[#allocation9_spill] sm:$0xff] %v26104_v14  ;;  %27219 = vst [vmem:[#allocation32_spill] sm:$0xff] %v26106_v30  ;;  %v26109_v59 = vadd.f32 %v13044_v18, %v25959_v31 }
 0x71b   : > { %v19501_v33 = vpop.f32.mrf.mxu1  ;;  %v26111_v26 = vpop.f32.mrf.mxu0 }
 0x71c   : > { %27220 = vst [vmem:[#allocation8_spill] sm:$0xff] %v26109_v59  ;;  %27221 = vst [vmem:[#allocation66_spill] sm:$0xff] %v26111_v26  ;;  %v26114_v42 = vadd.f32 %v19501_v33, %v25963_v4 }
 0x71d   : > { %v13054_v24 = vpop.f32.mrf.mxu1  ;;  %v26116_v55 = vpop.f32.mrf.mxu0 }
 0x71e   : > { %27222 = vst [vmem:[#allocation24_spill] sm:$0xff] %v26114_v42  ;;  %27223 = vst [vmem:[#allocation33_spill] sm:$0xff] %v26116_v55  ;;  %v26119_v44 = vadd.f32 %v13054_v24, %v25967_v23 }
 0x71f   : > { %v19504_v37 = vpop.f32.mrf.mxu1  ;;  %v26121_v13 = vpop.f32.mrf.mxu0 }
 0x720   : > { %27224 = vst [vmem:[#allocation34_spill] sm:$0xff] %v26119_v44  ;;  %27225 = vst [vmem:[#allocation6_spill] sm:$0xff] %v26121_v13  ;;  %v26124_v30 = vadd.f32 %v19504_v37, %v25971_v58 }
 0x721   : > { %v13064_v31 = vpop.f32.mrf.mxu1  ;;  %v26126_v18 = vpop.f32.mrf.mxu0 }
 0x722   : > { %27226 = vst [vmem:[#allocation69_spill] sm:$0xff] %v26124_v30  ;;  %27227 = vst [vmem:[#allocation26_spill] sm:$0xff] %v26126_v18  ;;  %v26129_v26 = vadd.f32 %v13064_v31, %v25975_v48 }
 0x723   : > { %v19507_v4 = vpop.f32.mrf.mxu1  ;;  %v26131_v33 = vpop.f32.mrf.mxu0 }
 0x724   : > { %27228 = vst [vmem:[#allocation44_spill] sm:$0xff] %v26129_v26  ;;  %27229 = vst [vmem:[#allocation43_spill] sm:$0xff] %v26131_v33  ;;  %v26134_v55 = vadd.f32 %v19507_v4, %v25980_v9 }
 0x725   : > { %v13074_v23 = vpop.f32.mrf.mxu1  ;;  %v26136_v24 = vpop.f32.mrf.mxu0 }
 0x726   : > { %27230 = vst [vmem:[#allocation95_spill] sm:$0xff] %v26134_v55  ;;  %27231 = vst [vmem:[#allocation23_spill] sm:$0xff] %v26136_v24  ;;  %v26139_v13 = vadd.f32 %v13074_v23, %v25985_v50 }
 0x727   : > { %v19510_v58 = vpop.f32.mrf.mxu1  ;;  %v26141_v37 = vpop.f32.mrf.mxu0 }
 0x728   : > { %27232 = vst [vmem:[#allocation75_spill] sm:$0xff] %v26139_v13  ;;  %27233 = vst [vmem:[#allocation100_spill] sm:$0xff] %v26141_v37  ;;  %v26144_v18 = vadd.f32 %v19510_v58, %v25989_v11 }
 0x729   : > { %v13084_v48 = vpop.f32.mrf.mxu1  ;;  %v26146_v31 = vpop.f32.mrf.mxu0 }
 0x72a   : > { %27234 = vst [vmem:[#allocation14_spill] sm:$0xff] %v26144_v18  ;;  %27235 = vst [vmem:[#allocation97_spill] sm:$0xff] %v26146_v31  ;;  %v26149_v33 = vadd.f32 %v13084_v48, %v25993_v39 }
 0x72b   : > { %v19513_v9 = vpop.f32.mrf.mxu1  ;;  %v26151_v4 = vpop.f32.mrf.mxu0 }
 0x72c   : > { %27236 = vst [vmem:[#allocation77_spill] sm:$0xff] %v26149_v33  ;;  %27237 = vst [vmem:[#allocation29_spill] sm:$0xff] %v26151_v4  ;;  %v26154_v24 = vadd.f32 %v19513_v9, %v25996_v5 }
 0x72d   : > { %v13094_v50 = vpop.f32.mrf.mxu1  ;;  %v26156_v23 = vpop.f32.mrf.mxu0 }
 0x72e   : > { %27238 = vst [vmem:[#allocation45_spill] sm:$0xff] %v26154_v24  ;;  %27239 = vst [vmem:[#allocation18_spill] sm:$0xff] %v26156_v23  ;;  %v26159_v37 = vadd.f32 %v13094_v50, %v26001_v51 }
 0x72f   : > { %v19596_v11 = vpop.f32.mrf.mxu1  ;;  %v19660_v58 = vpop.f32.mrf.mxu0 }
 0x730   : > { %27240 = vst [vmem:[#allocation46_spill] sm:$0xff] %v26159_v37 }
 0x731   : > { %v13732_v18 = vpop.f32.mrf.mxu1  ;;  %v14126_v13 = vpop.f32.mrf.mxu0 }
 0x733   : > { %v19599_v31 = vpop.f32.mrf.mxu1  ;;  %v19663_v39 = vpop.f32.mrf.mxu0 }
 0x735   : > { %v13742_v55 = vpop.f32.mrf.mxu1  ;;  %v26163_v4 = vpop.f32.mrf.mxu0 }
 0x737   : > { %v19602_v48 = vpop.f32.mrf.mxu1  ;;  %v26169_v23 = vpop.f32.mrf.mxu0 }
 0x739   : > { %v26161_v33 = vpop.f32.mrf.mxu1  ;;  %v26175_v37 = vpop.f32.mrf.mxu0 }
 0x73b   : > { %v26165_v5 = vpop.f32.mrf.mxu1  ;;  %v26181_v30 = vpop.f32.mrf.mxu0 }
 0x73d   : > { %v26167_v9 = vpop.f32.mrf.mxu1  ;;  %v26187_v59 = vpop.f32.mrf.mxu0 }
 0x73f   : > { %v26171_v51 = vpop.f32.mrf.mxu1  ;;  %v26193_v52 = vpop.f32.mrf.mxu0 }
 0x741   : > { %v26173_v50 = vpop.f32.mrf.mxu1  ;;  %v26199_v40 = vpop.f32.mrf.mxu0 }
 0x743   : > { %v26177_v24 = vpop.f32.mrf.mxu1  ;;  %v26205_v28 = vpop.f32.mrf.mxu0 }
 0x745   : > { %v26179_v26 = vpop.f32.mrf.mxu1 }
 0x747   : > { %v26183_v44 = vpop.f32.mrf.mxu1 }
 0x749   : > { %v26185_v42 = vpop.f32.mrf.mxu1 }
 0x74a   : > { %27241 = vst [vmem:[#allocation13_spill] sm:$0xff] %v26185_v42 }
 0x74b   : > { %v26189_v3 = vpop.f32.mrf.mxu1 }
 0x74c   : > { %27242 = vst [vmem:[#allocation60_spill] sm:$0xff] %v26189_v3  ;;  %v26211_v3 = vpop.f32.mrf.mxu0 }
 0x74d   : > { %v26191_v14 = vpop.f32.mrf.mxu1 }
 0x74e   : > { %27243 = vst [vmem:[#allocation12_spill] sm:$0xff] %v26191_v14 }
 0x74f   : > { %v26195_v54 = vpop.f32.mrf.mxu1 }
 0x750   : > { %27244 = vst [vmem:[#allocation49_spill] sm:$0xff] %v26195_v54  ;;  %v26217_v54 = vpop.f32.mrf.mxu0 }
 0x751   : > { %v26197_v22 = vpop.f32.mrf.mxu1  ;;  %27252 = vst [vmem:[#allocation67_spill] sm:$0xff] %v26217_v54 }
 0x752   : > { %27245 = vst [vmem:[#allocation56_spill] sm:$0xff] %v26197_v22 }
 0x753   : > { %v26201_v0 = vpop.f32.mrf.mxu1 }
 0x754   : > { %27246 = vst [vmem:[#allocation16_spill] sm:$0xff] %v26201_v0  ;;  %v26223_v0 = vpop.f32.mrf.mxu0 }
 0x755   : > { %v26203_v1 = vpop.f32.mrf.mxu1  ;;  %27255 = vst [vmem:[#allocation82_spill] sm:$0xff] %v26223_v0 }
 0x756   : > { %27247 = vst [vmem:[#allocation68_spill] sm:$0xff] %v26203_v1 }
 0x757   : > { %v26207_v20 = vpop.f32.mrf.mxu1 }
 0x758   : > { %27248 = vst [vmem:[#allocation87_spill] sm:$0xff] %v26207_v20  ;;  %v26229_v20 = vpop.f32.mrf.mxu0 }
 0x759   : > { %v26209_v21 = vpop.f32.mrf.mxu1  ;;  %27258 = vst [vmem:[#allocation15_spill] sm:$0xff] %v26229_v20 }
 0x75a   : > { %27249 = vst [vmem:[#allocation11_spill] sm:$0xff] %v26209_v21 }
 0x75b   : > { %v26213_v14 = vpop.f32.mrf.mxu1 }
 0x75c   : > { %27250 = vst [vmem:[#allocation58_spill] sm:$0xff] %v26213_v14  ;;  %v13498_v14 = vadd.f32 %v25999_v45, %v26004_v34  ;;  %v13499_v45 = vadd.f32 %v26016_v25, %v26019_v29 }
 0x75d   : > { %v26215_v35 = vpop.f32.mrf.mxu1 }
 0x75e   : > { %27251 = vst [vmem:[#allocation28_spill] sm:$0xff] %v26215_v35  ;;  %v13892_v54 = vadd.f32 %v19596_v11, %v13498_v14  ;;  %v13502_v14 = vadd.f32 %v26021_v2, %v26024_v8  ;;  %v13504_v8 = vadd.f32 %v26031_v7, %v26034_v6 }
 0x75f   : > { %v26219_v22 = vpop.f32.mrf.mxu1 }
 0x760   : > { %27253 = vst [vmem:[#allocation76_spill] sm:$0xff] %v26219_v22  ;;  %v13497_v22 = vadd.f32 %v26006_v10, %v26009_v60  ;;  %v14286_v34 = vadd.f32 %v19660_v58, %v13892_v54  ;;  %v26254_v60 = vld [vmem:[%s26485_s8] ss:$0 sm:$0xff]  ;;  %v13898_v7 = vadd.f32 %v26165_v5, %v13504_v8  ;;  %v13505_v5 = vadd.f32 %v26046_v53, %v26049_v27 }
 0x761   : > { %v26221_v42 = vpop.f32.mrf.mxu1 }
 0x762   : > { %27254 = vst [vmem:[#allocation27_spill] sm:$0xff] %v26221_v42  ;;  %v26239_v42 = vpop.f32.mrf.mxu0  ;;  %v13899_v53 = vadd.f32 %v26173_v50, %v13505_v5  ;;  %v13510_v50 = vadd.f32 %v26061_v43, %v26064_v61 }
 0x763   : > { %v26225_v1 = vpop.f32.mrf.mxu1 }
 0x764   : > { %27256 = vst [vmem:[#allocation89_spill] sm:$0xff] %v26225_v1  ;;  %v13891_v1 = vadd.f32 %v13732_v18, %v13497_v22  ;;  %v13501_v18 = vadd.f32 %v26026_v12, %v26029_v57  ;;  %v13904_v43 = vadd.f32 %v26183_v44, %v13510_v50 }
 0x765   : > { %v26227_v38 = vpop.f32.mrf.mxu1 }
 0x766   : > { %27257 = vst [vmem:[#allocation19_spill] sm:$0xff] %v26227_v38  ;;  %v13500_v38 = vadd.f32 %v26011_v36, %v26014_v56  ;;  %v14285_v36 = vadd.f32 %v14126_v13, %v13891_v1  ;;  %v13893_v56 = vadd.f32 %v13742_v55, %v13499_v45  ;;  %v13895_v55 = vadd.f32 %v26161_v33, %v13501_v18 }
 0x767   : > { %v26231_v21 = vpop.f32.mrf.mxu1 }
 0x768   : > { %27259 = vst [vmem:[#allocation36_spill] sm:$0xff] %v26231_v21  ;;  %v26249_v21 = vpop.f32.mrf.mxu0  ;;  %v14287_v57 = vadd.f32 %v26163_v4, %v13893_v56  ;;  %v13506_v4 = vadd.f32 %v26041_v19, %v26044_v17  ;;  %v14289_v45 = vadd.f32 %v26175_v37, %v13895_v55 }
 0x769   : > { %v26235_v35 = vpop.f32.mrf.mxu1 }
 0x76a   : > { %27260 = vst [vmem:[#allocation48_spill] sm:$0xff] %v26235_v35  ;;  %v13894_v35 = vadd.f32 %v19599_v31, %v13500_v38  ;;  %v13896_v38 = vadd.f32 %v19602_v48, %v13502_v14  ;;  %v26270_v1 = vpop.f32.mrf.mxu0  ;;  %v13503_v31 = vadd.f32 %v26036_v32, %v26039_v62  ;;  %v13900_v19 = vadd.f32 %v26171_v51, %v13506_v4  ;;  %v27267_v4 = vld [vmem:[#allocation98_spill] sm:$0xff] }
 0x76b   : > { %v26241_v0 = vpop.f32.mrf.mxu1  ;;  %v13507_v51 = vadd.f32 %v26056_v47, %v26059_v63 }
 0x76c   : > { %v14288_v29 = vadd.f32 %v19663_v39, %v13894_v35  ;;  %v14290_v58 = vadd.f32 %v26169_v23, %v13896_v38  ;;  %v26286_v39 = vpop.f32.mrf.mxu0  ;;  %v13897_v32 = vadd.f32 %v26167_v9, %v13503_v31  ;;  %v13508_v9 = vadd.f32 %v26051_v15, %v26054_v46 }
 0x76d   : > { %v26245_v20 = vpop.f32.mrf.mxu1  ;;  %v14294_v18 = vadd.f32 %v26193_v52, %v13900_v19  ;;  %v14293_v38 = vadd.f32 %v26199_v40, %v13899_v53  ;;  %v13901_v47 = vadd.f32 %v26179_v26, %v13507_v51  ;;  %v27261_v26 = vld [vmem:[#allocation99_spill] sm:$0xff] }
 0x76e   : > { %v26302_v14 = vpop.f32.mrf.mxu0  ;;  %v14291_v56 = vadd.f32 %v26187_v59, %v13897_v32  ;;  %v13902_v15 = vadd.f32 %v26177_v24, %v13508_v9  ;;  %v13509_v24 = vadd.f32 %v26066_v16, %v26069_v41  ;;  %v13512_v8 = vadd.f32 %v27261_v26, %v26074_v49  ;;  %v27262_v16 = vld [vmem:[#allocation13_spill] sm:$0xff]  ;;  %v27266_v49 = vld [vmem:[#allocation60_spill] sm:$0xff]  ;;  %v27272_v9 = vld [vmem:[#allocation63_spill] sm:$0xff] }
 0x76f   : > { %v19724_v10 = vpop.f32.mrf.mxu1  ;;  %v14295_v55 = vadd.f32 %v26211_v3, %v13901_v47  ;;  %v27273_v53 = vld [vmem:[#allocation15_spill] sm:$0xff]  ;;  %v27277_v47 = vld [vmem:[#allocation56_spill] sm:$0xff] }
 0x770   : > { %v14680_v22 = vadd.f32 %v19724_v10, %v14286_v34  ;;  %v14292_v10 = vadd.f32 %v26181_v30, %v13898_v7  ;;  %v13903_v41 = vadd.f32 %v27262_v16, %v13509_v24  ;;  %v27280_v26 = vld [vmem:[#allocation16_spill] sm:$0xff]  ;;  %v27282_v16 = vld [vmem:[#allocation55_spill] sm:$0xff] }
 0x771   : > { %v14520_v25 = vpop.f32.mrf.mxu1 }
 0x772   : > { %v14719_v54 = vadd.f32 %v26254_v60, %v14680_v22  ;;  %v14679_v2 = vadd.f32 %v14520_v25, %v14285_v36  ;;  %v26318_v25 = vpop.f32.mrf.mxu0 }
 0x773   : > { %v19727_v12 = vpop.f32.mrf.mxu1 }
 0x774   : > { %14751 = vst.msk [vmem:[%s26265_s26 + $0x8] sm:$0xff] %vm333_vm1, %v14719_v54  ;;  %v14718_v35 = vadd.f32 %v26254_v60, %v14679_v2  ;;  %v14682_v13 = vadd.f32 %v19727_v12, %v14288_v29  ;;  %v14296_v2 = vadd.f32 %v26205_v28, %v13902_v15  ;;  %v26334_v12 = vpop.f32.mrf.mxu0  ;;  %v27275_v15 = vld [vmem:[#allocation7_spill] sm:$0xff] }
 0x775   : > { %v14530_v11 = vpop.f32.mrf.mxu1 }
 0x776   : > { %14750 = vst.msk [vmem:[%s26265_s26] sm:$0xff] %vm333_vm1, %v14718_v35  ;;  %v14721_v6 = vadd.f32 %v26254_v60, %v14682_v13  ;;  %v14681_v33 = vadd.f32 %v14530_v11, %v14287_v57  ;;  %v27263_v35 = vld [vmem:[#allocation93_spill] sm:$0xff]  ;;  %v27264_v13 = vld [vmem:[#allocation78_spill] sm:$0xff]  ;;  %v26350_v32 = vpop.f32.mrf.mxu0 }
 0x777   : > { %v19730_v48 = vpop.f32.mrf.mxu1  ;;  %v13511_v31 = vadd.f32 %v27264_v13, %v27263_v35  ;;  %v27283_v13 = vld [vmem:[#allocation68_spill] sm:$0xff] }
 0x778   : > { %14753 = vst.msk [vmem:[%s26265_s26 + $0x18] sm:$0xff] %vm333_vm1, %v14721_v6  ;;  %v14720_v62 = vadd.f32 %v26254_v60, %v14681_v33  ;;  %v14684_v23 = vadd.f32 %v19730_v48, %v14290_v58  ;;  %v27265_v58 = vld [vmem:[#allocation67_spill] sm:$0xff]  ;;  %v13906_v6 = vadd.f32 %v27266_v49, %v13512_v8  ;;  %v27268_v48 = vld [vmem:[#allocation94_spill] sm:$0xff]  ;;  %v14236_v50 = vpop.f32.mrf.mxu0 }
 0x779   : > { %v14540_v34 = vpop.f32.mrf.mxu1  ;;  %v14298_v7 = vadd.f32 %v27265_v58, %v13904_v43  ;;  %v27284_v58 = vld [vmem:[#allocation8_spill] sm:$0xff] }
 0x77a   : > { %14752 = vst.msk [vmem:[%s26265_s26 + $0x10] sm:$0xff] %vm333_vm1, %v14720_v62  ;;  %v14723_v17 = vadd.f32 %v26254_v60, %v14684_v23  ;;  %v14683_v37 = vadd.f32 %v14540_v34, %v14289_v45  ;;  %v13514_v45 = vadd.f32 %v27268_v48, %v27267_v4  ;;  %v27269_v23 = vld [vmem:[#allocation82_spill] sm:$0xff]  ;;  %v27270_v34 = vld [vmem:[#allocation12_spill] sm:$0xff] }
 0x77b   : > { %v19733_v36 = vpop.f32.mrf.mxu1  ;;  %v14297_v5 = vadd.f32 %v27269_v23, %v13903_v41 }
 0x77c   : > { %14755 = vst.msk [vmem:[%s26265_s26 + $0x28] sm:$0xff] %vm333_vm1, %v14723_v17  ;;  %v14722_v27 = vadd.f32 %v26254_v60, %v14683_v37  ;;  %v14686_v30 = vadd.f32 %v19733_v36, %v14292_v10  ;;  %v13905_v10 = vadd.f32 %v27270_v34, %v13511_v31  ;;  %v27271_v37 = vld [vmem:[#allocation39_spill] sm:$0xff] }
 0x77d   : > { %v14550_v22 = vpop.f32.mrf.mxu1  ;;  %v13513_v36 = vadd.f32 %v27272_v9, %v27271_v37  ;;  %v27290_v9 = vld [vmem:[#allocation34_spill] sm:$0xff] }
 0x77e   : > { %14754 = vst.msk [vmem:[%s26265_s26 + $0x20] sm:$0xff] %vm333_vm1, %v14722_v27  ;;  %v14725_v46 = vadd.f32 %v26254_v60, %v14686_v30  ;;  %v14685_v59 = vadd.f32 %v14550_v22, %v14291_v56  ;;  %v14300_v27 = vadd.f32 %v27273_v53, %v13906_v6  ;;  %v27274_v30 = vld [vmem:[#allocation49_spill] sm:$0xff] }
 0x77f   : > { %v19736_v29 = vpop.f32.mrf.mxu1  ;;  %v13908_v51 = vadd.f32 %v27274_v30, %v13514_v45  ;;  %v27287_v45 = vld [vmem:[#allocation24_spill] sm:$0xff]  ;;  %v27292_v30 = vld [vmem:[#allocation58_spill] sm:$0xff] }
 0x780   : > { %14757 = vst.msk [vmem:[%s26265_s26 + $0x38] sm:$0xff] %vm333_vm1, %v14725_v46  ;;  %v14724_v63 = vadd.f32 %v26254_v60, %v14685_v59  ;;  %v14688_v52 = vadd.f32 %v19736_v29, %v14294_v18  ;;  %v27276_v46 = vld [vmem:[#allocation83_spill] sm:$0xff] }
 0x781   : > { %v14560_v54 = vpop.f32.mrf.mxu1  ;;  %v13516_v59 = vadd.f32 %v27276_v46, %v27275_v15  ;;  %v27294_v15 = vld [vmem:[#allocation6_spill] sm:$0xff] }
 0x782   : > { %14756 = vst.msk [vmem:[%s26265_s26 + $0x30] sm:$0xff] %vm333_vm1, %v14724_v63  ;;  %v14727_v61 = vadd.f32 %v26254_v60, %v14688_v52  ;;  %v14687_v40 = vadd.f32 %v14560_v54, %v14293_v38  ;;  %v14299_v38 = vadd.f32 %v26239_v42, %v13905_v10  ;;  %v13907_v63 = vadd.f32 %v27277_v47, %v13513_v36  ;;  %v27278_v54 = vld [vmem:[#allocation57_spill] sm:$0xff]  ;;  %v27295_v47 = vld [vmem:[#allocation28_spill] sm:$0xff] }
 0x783   : > { %v19739_v57 = vpop.f32.mrf.mxu1  ;;  %v13910_v8 = vadd.f32 %v27280_v26, %v13516_v59  ;;  %v27291_v36 = vld [vmem:[#allocation33_spill] sm:$0xff] }
 0x784   : > { %14759 = vst.msk [vmem:[%s26265_s26 + $0x48] sm:$0xff] %vm333_vm1, %v14727_v61  ;;  %v14726_v28 = vadd.f32 %v26254_v60, %v14687_v40  ;;  %v14690_v44 = vadd.f32 %v19739_v57, %v14296_v2  ;;  %v27279_v2 = vld [vmem:[#allocation71_spill] sm:$0xff]  ;;  %v14302_v40 = vadd.f32 %v26249_v21, %v13908_v51  ;;  %v14301_v35 = vadd.f32 %v26270_v1, %v13907_v63 }
 0x785   : > { %v14570_v11 = vpop.f32.mrf.mxu1  ;;  %v13515_v43 = vadd.f32 %v27279_v2, %v27278_v54  ;;  %v27297_v54 = vld [vmem:[#allocation26_spill] sm:$0xff] }
 0x786   : > { %14758 = vst.msk [vmem:[%s26265_s26 + $0x40] sm:$0xff] %vm333_vm1, %v14726_v28  ;;  %v14729_v3 = vadd.f32 %v26254_v60, %v14690_v44  ;;  %v14689_v33 = vadd.f32 %v14570_v11, %v14295_v55  ;;  %v27281_v55 = vld [vmem:[#allocation9_spill] sm:$0xff]  ;;  %v19696_v28 = vpop.f32.mrf.mxu0 }
 0x787   : > { %v19742_v62 = vpop.f32.mrf.mxu1  ;;  %v13518_v41 = vadd.f32 %v27282_v16, %v27281_v55  ;;  %v13909_v31 = vadd.f32 %v27283_v13, %v13515_v43 }
 0x788   : > { %14761 = vst.msk [vmem:[%s26265_s26 + $0x58] sm:$0xff] %vm333_vm1, %v14729_v3  ;;  %v14728_v19 = vadd.f32 %v26254_v60, %v14689_v33  ;;  %v14692_v17 = vadd.f32 %v19742_v62, %v14298_v7  ;;  %v27285_v7 = vld [vmem:[#allocation32_spill] sm:$0xff]  ;;  %v14304_v3 = vadd.f32 %v26286_v39, %v13910_v8  ;;  %v27286_v33 = vld [vmem:[#allocation87_spill] sm:$0xff]  ;;  %v27288_v62 = vld [vmem:[#allocation66_spill] sm:$0xff] }
 0x789   : > { %v14580_v56 = vpop.f32.mrf.mxu1  ;;  %v13517_v49 = vadd.f32 %v27285_v7, %v27284_v58  ;;  %v13912_v4 = vadd.f32 %v27286_v33, %v13518_v41  ;;  %v13520_v23 = vadd.f32 %v27288_v62, %v27287_v45  ;;  %v14303_v10 = vadd.f32 %v26302_v14, %v13909_v31 }
 0x78a   : > { %14760 = vst.msk [vmem:[%s26265_s26 + $0x50] sm:$0xff] %vm333_vm1, %v14728_v19  ;;  %v14731_v22 = vadd.f32 %v26254_v60, %v14692_v17  ;;  %v14691_v18 = vadd.f32 %v14580_v56, %v14297_v5  ;;  %v14246_v5 = vpop.f32.mrf.mxu0  ;;  %v27289_v19 = vld [vmem:[#allocation11_spill] sm:$0xff]  ;;  %v13519_v56 = vadd.f32 %v27291_v36, %v27290_v9 }
 0x78b   : > { %v19745_v29 = vpop.f32.mrf.mxu1  ;;  %v13911_v17 = vadd.f32 %v27289_v19, %v13517_v49  ;;  %v13914_v51 = vadd.f32 %v27292_v30, %v13520_v23  ;;  %v27311_v30 = vld [vmem:[#allocation45_spill] sm:$0xff] }
 0x78c   : > { %14763 = vst.msk [vmem:[%s26265_s26 + $0x68] sm:$0xff] %vm333_vm1, %v14731_v22  ;;  %v14730_v52 = vadd.f32 %v26254_v60, %v14691_v18  ;;  %v14694_v24 = vadd.f32 %v19745_v29, %v14300_v27  ;;  %v14306_v27 = vadd.f32 %v26318_v25, %v13912_v4  ;;  %v27293_v18 = vld [vmem:[#allocation69_spill] sm:$0xff]  ;;  %v19699_v59 = vpop.f32.mrf.mxu0  ;;  %v13913_v63 = vadd.f32 %v27295_v47, %v13519_v56  ;;  %v27305_v4 = vld [vmem:[#allocation14_spill] sm:$0xff]  ;;  %v27310_v56 = vld [vmem:[#allocation36_spill] sm:$0xff] }
 0x78d   : > { %v14590_v61 = vpop.f32.mrf.mxu1  ;;  %v13522_v46 = vadd.f32 %v27294_v15, %v27293_v18  ;;  %v27314_v47 = vld [vmem:[#allocation46_spill] sm:$0xff] }
 0x78e   : > { %14762 = vst.msk [vmem:[%s26265_s26 + $0x60] sm:$0xff] %vm333_vm1, %v14730_v52  ;;  %v14733_v42 = vadd.f32 %v26254_v60, %v14694_v24  ;;  %v14693_v57 = vadd.f32 %v14590_v61, %v14299_v38  ;;  %v14305_v38 = vadd.f32 %v26334_v12, %v13911_v17  ;;  %v27296_v24 = vld [vmem:[#allocation44_spill] sm:$0xff]  ;;  %v14308_v61 = vadd.f32 %v26350_v32, %v13914_v51  ;;  %v14256_v16 = vpop.f32.mrf.mxu0  ;;  %v27308_v17 = vld [vmem:[#allocation77_spill] sm:$0xff] }
 0x78f   : > { %v19748_v44 = vpop.f32.mrf.mxu1  ;;  %v13521_v2 = vadd.f32 %v27297_v54, %v27296_v24  ;;  %v27312_v51 = vld [vmem:[#allocation29_spill] sm:$0xff] }
 0x790   : > { %14765 = vst.msk [vmem:[%s26265_s26 + $0x78] sm:$0xff] %vm333_vm1, %v14733_v42  ;;  %v14732_v21 = vadd.f32 %v26254_v60, %v14693_v57  ;;  %v14696_v11 = vadd.f32 %v19748_v44, %v14302_v40  ;;  %v27298_v40 = vld [vmem:[#allocation76_spill] sm:$0xff]  ;;  %v27299_v42 = vld [vmem:[#allocation95_spill] sm:$0xff]  ;;  %v14307_v44 = vadd.f32 %v14236_v50, %v13913_v63  ;;  %v19702_v45 = vpop.f32.mrf.mxu0  ;;  %v27315_v63 = vld [vmem:[#allocation18_spill] sm:$0xff] }
 0x791   : > { %v14600_v6 = vpop.f32.mrf.mxu1  ;;  %v13916_v26 = vadd.f32 %v27298_v40, %v13522_v46  ;;  %v27300_v57 = vld [vmem:[#allocation43_spill] sm:$0xff]  ;;  %v27313_v46 = vld [vmem:[#allocation48_spill] sm:$0xff] }
 0x792   : > { %14764 = vst.msk [vmem:[%s26265_s26 + $0x70] sm:$0xff] %vm333_vm1, %v14732_v21  ;;  %v14735_v1 = vadd.f32 %v26254_v60, %v14696_v11  ;;  %v14695_v48 = vadd.f32 %v14600_v6, %v14301_v35  ;;  %v13524_v55 = vadd.f32 %v27300_v57, %v27299_v42  ;;  %v27301_v35 = vld [vmem:[#allocation27_spill] sm:$0xff]  ;;  %v27304_v6 = vld [vmem:[#allocation89_spill] sm:$0xff] }
 0x793   : > { %v19751_v34 = vpop.f32.mrf.mxu1  ;;  %v13915_v13 = vadd.f32 %v27301_v35, %v13521_v2  ;;  %v27302_v21 = vld [vmem:[#allocation75_spill] sm:$0xff]  ;;  %v14310_v49 = vadd.f32 %v19696_v28, %v13916_v26 }
 0x794   : > { %14767 = vst.msk [vmem:[%s26265_s26 + $0x88] sm:$0xff] %vm333_vm1, %v14735_v1  ;;  %v14734_v39 = vadd.f32 %v26254_v60, %v14695_v48  ;;  %v14698_v37 = vadd.f32 %v19751_v34, %v14304_v3  ;;  %v27303_v11 = vld [vmem:[#allocation23_spill] sm:$0xff]  ;;  %v13918_v3 = vadd.f32 %v27304_v6, %v13524_v55  ;;  %v27306_v1 = vld [vmem:[#allocation100_spill] sm:$0xff] }
 0x795   : > { %v14610_v53 = vpop.f32.mrf.mxu1  ;;  %v13523_v58 = vadd.f32 %v27303_v11, %v27302_v21  ;;  %v13526_v48 = vadd.f32 %v27306_v1, %v27305_v4  ;;  %v14309_v23 = vadd.f32 %v14246_v5, %v13915_v13  ;;  %v27307_v34 = vld [vmem:[#allocation19_spill] sm:$0xff] }
 0x796   : > { %14766 = vst.msk [vmem:[%s26265_s26 + $0x80] sm:$0xff] %vm333_vm1, %v14734_v39  ;;  %v14737_v14 = vadd.f32 %v26254_v60, %v14698_v37  ;;  %v14697_v22 = vadd.f32 %v14610_v53, %v14303_v10  ;;  %v27309_v39 = vld [vmem:[#allocation97_spill] sm:$0xff]  ;;  %v14312_v36 = vadd.f32 %v19699_v59, %v13918_v3 }
 0x797   : > { %v19754_v29 = vpop.f32.mrf.mxu1  ;;  %v13917_v10 = vadd.f32 %v27307_v34, %v13523_v58  ;;  %v13525_v37 = vadd.f32 %v27309_v39, %v27308_v17  ;;  %v13920_v53 = vadd.f32 %v27310_v56, %v13526_v48 }
 0x798   : > { %14769 = vst.msk [vmem:[%s26265_s26 + $0x98] sm:$0xff] %vm333_vm1, %v14737_v14  ;;  %v14736_v25 = vadd.f32 %v26254_v60, %v14697_v22  ;;  %v14700_v52 = vadd.f32 %v19754_v29, %v14306_v27  ;;  %v13528_v14 = vadd.f32 %v27312_v51, %v27311_v30  ;;  %v14266_v22 = vpop.f32.mrf.mxu0 }
 0x799   : > { %v14620_v43 = vpop.f32.mrf.mxu1  ;;  %v14311_v15 = vadd.f32 %v14256_v16, %v13917_v10  ;;  %v13919_v29 = vadd.f32 %v27313_v46, %v13525_v37  ;;  %v14314_v54 = vadd.f32 %v19702_v45, %v13920_v53 }
 0x79a   : > { %14768 = vst.msk [vmem:[%s26265_s26 + $0x90] sm:$0xff] %vm333_vm1, %v14736_v25  ;;  %v14739_v12 = vadd.f32 %v26254_v60, %v14700_v52  ;;  %v14699_v8 = vadd.f32 %v14620_v43, %v14305_v38  ;;  %v13527_v25 = vadd.f32 %v27315_v63, %v27314_v47  ;;  %v19705_v52 = vpop.f32.mrf.mxu0  ;;  %v13922_v2 = vadd.f32 %v26241_v0, %v13528_v14 }
 0x79b   : > { %v19757_v41 = vpop.f32.mrf.mxu1  ;;  %v14313_v26 = vadd.f32 %v14266_v22, %v13919_v29 }
 0x79c   : > { %14771 = vst.msk [vmem:[%s26265_s26 + $0xa8] sm:$0xff] %vm333_vm1, %v14739_v12  ;;  %v14738_v32 = vadd.f32 %v26254_v60, %v14699_v8  ;;  %v14702_v31 = vadd.f32 %v19757_v41, %v14308_v61  ;;  %v13921_v12 = vadd.f32 %v26245_v20, %v13527_v25  ;;  %v14276_v57 = vpop.f32.mrf.mxu0  ;;  %v14316_v0 = vadd.f32 %v19705_v52, %v13922_v2 }
 0x79d   : > { %v14630_v7 = vpop.f32.mrf.mxu1 }
 0x79e   : > { %14770 = vst.msk [vmem:[%s26265_s26 + $0xa0] sm:$0xff] %vm333_vm1, %v14738_v32  ;;  %v14741_v50 = vadd.f32 %v26254_v60, %v14702_v31  ;;  %v14701_v33 = vadd.f32 %v14630_v7, %v14307_v44  ;;  %v14315_v35 = vadd.f32 %v14276_v57, %v13921_v12 }
 0x79f   : > { %v19760_v62 = vpop.f32.mrf.mxu1 }
 0x7a0   : > { %14773 = vst.msk [vmem:[%s26265_s26 + $0xb8] sm:$0xff] %vm333_vm1, %v14741_v50  ;;  %v14740_v28 = vadd.f32 %v26254_v60, %v14701_v33  ;;  %v14704_v19 = vadd.f32 %v19760_v62, %v14310_v49 }
 0x7a1   : > { %v14640_v9 = vpop.f32.mrf.mxu1 }
 0x7a2   : > { %14772 = vst.msk [vmem:[%s26265_s26 + $0xb0] sm:$0xff] %vm333_vm1, %v14740_v28  ;;  %v14743_v5 = vadd.f32 %v26254_v60, %v14704_v19  ;;  %v14703_v27 = vadd.f32 %v14640_v9, %v14309_v23 }
 0x7a3   : > { %v19763_v18 = vpop.f32.mrf.mxu1 }
 0x7a4   : > { %14775 = vst.msk [vmem:[%s26265_s26 + $0xc8] sm:$0xff] %vm333_vm1, %v14743_v5  ;;  %v14742_v59 = vadd.f32 %v26254_v60, %v14703_v27  ;;  %v14706_v38 = vadd.f32 %v19763_v18, %v14312_v36 }
 0x7a5   : > { %v14650_v24 = vpop.f32.mrf.mxu1 }
 0x7a6   : > { %14774 = vst.msk [vmem:[%s26265_s26 + $0xc0] sm:$0xff] %vm333_vm1, %v14742_v59  ;;  %v14745_v43 = vadd.f32 %v26254_v60, %v14706_v38  ;;  %v14705_v61 = vadd.f32 %v14650_v24, %v14311_v15 }
 0x7a7   : > { %v19766_v40 = vpop.f32.mrf.mxu1 }
 0x7a8   : > { %14777 = vst.msk [vmem:[%s26265_s26 + $0xd8] sm:$0xff] %vm333_vm1, %v14745_v43  ;;  %v14744_v8 = vadd.f32 %v26254_v60, %v14705_v61  ;;  %v14708_v42 = vadd.f32 %v19766_v40, %v14314_v54 }
 0x7a9   : > { %v14660_v55 = vpop.f32.mrf.mxu1 }
 0x7aa   : > { %14776 = vst.msk [vmem:[%s26265_s26 + $0xd0] sm:$0xff] %vm333_vm1, %v14744_v8  ;;  %v14747_v16 = vadd.f32 %v26254_v60, %v14708_v42  ;;  %v14707_v41 = vadd.f32 %v14660_v55, %v14313_v26 }
 0x7ab   : > { %v19769_v44 = vpop.f32.mrf.mxu1 }
 0x7ac   : > { %14779 = vst.msk [vmem:[%s26265_s26 + $0xe8] sm:$0xff] %vm333_vm1, %v14747_v16  ;;  %v14746_v20 = vadd.f32 %v26254_v60, %v14707_v41  ;;  %v14710_v13 = vadd.f32 %v19769_v44, %v14316_v0 }
 0x7ad   : > { %v14670_v32 = vpop.f32.mrf.mxu1 }
 0x7ae   : > { %14778 = vst.msk [vmem:[%s26265_s26 + $0xe0] sm:$0xff] %vm333_vm1, %v14746_v20  ;;  %v14749_v31 = vadd.f32 %v26254_v60, %v14710_v13  ;;  %v14709_v21 = vadd.f32 %v14670_v32, %v14315_v35 }
 0x7b0   : > { %14781 = vst.msk [vmem:[%s26265_s26 + $0xf8] sm:$0xff] %vm333_vm1, %v14749_v31  ;;  %v14748_v11 = vadd.f32 %v26254_v60, %v14709_v21 }
 0x7b2   : > { %14780 = vst.msk [vmem:[%s26265_s26 + $0xf0] sm:$0xff] %vm333_vm1, %v14748_v11 }
 0x7b3 PF: > { %s19_s30 = sadd.s32 1, %s19785_s30  }
 0x7b4   : > { %p16_p4 = scmp.ge.s32.totalorder %s19_s30, 4  }
 0x7b6   :  { %18 = sbr.rel (!%p16_p4) target bundleno = 1 (0x1), region = 122 }

</bundles_post_ra>
